<compile_context>
chip_gen: v7x
topology: tpu7x:2x2x1
jax: 0.10.0
libtpu: 0.0.40
codegen_flags: <defaults>
</compile_context>

<pallas_src>
import functools
import math

import jax
import jax.numpy as jnp
from jax import lax
from jax.experimental import pallas as pl
from jax.experimental.pallas import tpu as pltpu

LN_EPS = 1e-5  # PyTorch nn.LayerNorm default


def _layernorm_f32(x, gamma, beta):
    mean = jnp.mean(x, axis=-1, keepdims=True)
    xc = x - mean
    var = jnp.mean(xc * xc, axis=-1, keepdims=True)
    return xc * lax.rsqrt(var + LN_EPS) * gamma + beta


def _sigmoid_f32(x):
    # sigmoid(x) == 0.5*(tanh(x/2)+1): single EUP push instead of exp + recip.
    return 0.5 * (jnp.tanh(0.5 * x) + 1.0)


# --------------------- kernel 1: LayerNorm + projections + gates -------------
# x block   : (1, tile, D)   f32/bf16 in, LayerNorm in f32
# outputs   : left_t/right_t (1, H, tile) bf16   (transposed in-kernel)
#             out_gate       (1, tile, H) bf16

def _proj_kernel(x_ref, gamma_ref, beta_ref,
                 wllg_ref, bllg_ref, wrrg_ref, brrg_ref, wog_ref, bog_ref,
                 left_t_ref, right_t_ref, og_ref):
    H = wog_ref.shape[1]
    x = x_ref[0].astype(jnp.float32)                          # (tile, D)
    xn = _layernorm_f32(x, gamma_ref[...], beta_ref[...])
    xb = xn.astype(jnp.bfloat16)                              # bf16 MXU operand

    def lin(w_ref, b_ref):
        return jnp.dot(xb, w_ref[...],
                       preferred_element_type=jnp.float32) + b_ref[...]

    llg = lin(wllg_ref, bllg_ref)                             # (tile, 2H)
    rrg = lin(wrrg_ref, brrg_ref)                             # (tile, 2H)
    og = _sigmoid_f32(lin(wog_ref, bog_ref))                  # (tile, H)

    left = llg[:, :H] * _sigmoid_f32(llg[:, H:])              # f32 gating
    right = rrg[:, :H] * _sigmoid_f32(rrg[:, H:])

    # In-kernel 2D transposes (XLU) -> hidden-major layout, bf16 stores.
    left_t_ref[0] = jnp.transpose(left).astype(left_t_ref.dtype)    # (H, tile)
    right_t_ref[0] = jnp.transpose(right).astype(right_t_ref.dtype)
    og_ref[0] = og.astype(og_ref.dtype)                              # (tile, H)


# --------------------- kernel 2: triangle mix (batched MXU matmul) -----------
# left/right blocks: (1, ht, N, N) bf16, indexed [h, row, col] with
#   left_t4[b,h,i,j]  == gated_left[b,i,j,h]   (same for right).
# Output block: (1, ht, N, N) bf16, out_t4[b,h,i,j] == mix[b,i,j,h].

def _mix_kernel_ingoing(l_ref, r_ref, o_ref):
    # out[h,i,j] = sum_k right[h,k,i] * left[h,k,j]   (A^T B form)
    l = l_ref[0]
    r = r_ref[0]
    acc = lax.dot_general(r, l, (((1,), (1,)), ((0,), (0,))),
                          preferred_element_type=jnp.float32)
    o_ref[0] = acc.astype(o_ref.dtype)


def _mix_kernel_outgoing(l_ref, r_ref, o_ref):
    # out[h,i,j] = sum_k left[h,i,k] * right[h,j,k]   (A B^T form)
    l = l_ref[0]
    r = r_ref[0]
    acc = lax.dot_general(l, r, (((2,), (2,)), ((0,), (0,))),
                          preferred_element_type=jnp.float32)
    o_ref[0] = acc.astype(o_ref.dtype)


# --------------------- kernel 3: out-norm, out-gate, output projection -------
# y block  : (1, H, tile) bf16 (hidden-major mix result), transposed in-kernel
# og block : (1, tile, H) bf16
# out block: (1, tile, D)

def _out_kernel(y_ref, og_ref, gamma_ref, beta_ref, w_ref, b_ref, o_ref):
    y = jnp.transpose(y_ref[0].astype(jnp.float32))           # (tile, H) f32
    yn = _layernorm_f32(y, gamma_ref[...], beta_ref[...])
    g = (yn * og_ref[0].astype(jnp.float32)).astype(jnp.bfloat16)
    out = jnp.dot(g, w_ref[...], preferred_element_type=jnp.float32) + b_ref[...]
    o_ref[0] = out.astype(o_ref.dtype)


# ------------------------------- tiling helpers -------------------------------

def _pick_row_tile(nn, tile_m):
    """Largest multiple of 128 that divides nn and is <= tile_m (lane-dense
    transposed stores, no padding).  Falls back to nn (full per-batch rows)."""
    best = None
    t = 128
    while t <= min(tile_m, nn):
        if nn % t == 0:
            best = t
        t += 128
    return best if best is not None else nn


def _pick_h_tile(h, n, budget_bytes=24 << 20):
    """Largest divisor of h whose double-buffered mix blocks (2 bf16 inputs +
    1 bf16 output, ~12*ht*N*N bytes) fit the VMEM budget (safe on v7x)."""
    divs = [d for d in range(h, 0, -1) if h % d == 0 and (d % 8 == 0 or d == h)]
    for d in divs:
        if 12 * d * n * n <= budget_bytes:
            return d
    # TODO(synk): for very large N add i/k grid tiling + f32 VMEM accumulator.
    return divs[-1]


# ------------------------------- wrapper --------------------------------------

@functools.partial(jax.jit, static_argnames=("mix", "tile_m", "h_tile"))
def triangle_multiplicative_pallas(x, params, *, mix="ingoing",
                                   tile_m=512, h_tile=None):
    """x: (B, N, N, D) float32.  Returns (B, N, N, D)."""
    assert mix in ("ingoing", "outgoing")
    B, I, J, D = x.shape
    assert I == J, "feature map must be symmetrical"
    N = I
    NN = N * N
    H = params["w_left"].shape[1]

    tile = _pick_row_tile(NN, tile_m)
    grid_rows = NN // tile

    bf16, f32 = jnp.bfloat16, jnp.float32
    x3 = x.reshape(B, NN, D)                                   # metadata only

    # Pair-fused projection weights: each dot fills 256 output lanes.
    w_llg = jnp.concatenate([params["w_left"], params["w_lgate"]], axis=1).astype(bf16)
    b_llg = jnp.concatenate([params["b_left"], params["b_lgate"]]).reshape(1, 2 * H)
    w_rrg = jnp.concatenate([params["w_right"], params["w_rgate"]], axis=1).astype(bf16)
    b_rrg = jnp.concatenate([params["b_right"], params["b_rgate"]]).reshape(1, 2 * H)
    w_og = params["w_ogate"].astype(bf16)
    w_o = params["w_out"].astype(bf16)

    x_spec = pl.BlockSpec((1, tile, D), lambda b, r: (b, r, 0))
    vec_d = pl.BlockSpec((1, D), lambda b, r: (0, 0))
    vec_h = pl.BlockSpec((1, H), lambda b, r: (0, 0))
    vec_2h = pl.BlockSpec((1, 2 * H), lambda b, r: (0, 0))
    w_d2h = pl.BlockSpec((D, 2 * H), lambda b, r: (0, 0))
    w_dh = pl.BlockSpec((D, H), lambda b, r: (0, 0))
    w_hd = pl.BlockSpec((H, D), lambda b, r: (0, 0))
    out_t_spec = pl.BlockSpec((1, H, tile), lambda b, r: (b, 0, r))
    row_h_spec = pl.BlockSpec((1, tile, H), lambda b, r: (b, r, 0))
    row_d_spec = pl.BlockSpec((1, tile, D), lambda b, r: (b, r, 0))

    # --- stage 1: LayerNorm + fused projections + gates, hidden-major outputs -
    left_t, right_t, out_gate = pl.pallas_call(
        _proj_kernel,
        out_shape=(jax.ShapeDtypeStruct((B, H, NN), bf16),
                   jax.ShapeDtypeStruct((B, H, NN), bf16),
                   jax.ShapeDtypeStruct((B, NN, H), bf16)),
        grid_spec=pltpu.PrefetchScalarGridSpec(
            num_scalar_prefetch=0,
            grid=(B, grid_rows),
            in_specs=[x_spec, vec_d, vec_d,
                      w_d2h, vec_2h, w_d2h, vec_2h, w_dh, vec_h],
            out_specs=(out_t_spec, out_t_spec, row_h_spec)),
        compiler_params=pltpu.CompilerParams(
            dimension_semantics=("parallel", "parallel")),
    )(x3,
      params["norm_gamma"].reshape(1, D), params["norm_beta"].reshape(1, D),
      w_llg, b_llg, w_rrg, b_rrg,
      w_og, params["b_ogate"].reshape(1, H))

    # --- stage 2: triangle mix on hidden-major tensors (no relayout needed) ---
    left_t4 = left_t.reshape(B, H, N, N)     # [b,h,i,j] = left[b,i,j,h]
    right_t4 = right_t.reshape(B, H, N, N)

    ht = _pick_h_tile(H, N) if h_tile is None else int(h_tile)
    assert H % ht == 0
    mix_kernel = _mix_kernel_ingoing if mix == "ingoing" else _mix_kernel_outgoing

    blk_spec = pl.BlockSpec((1, ht, N, N), lambda b, h: (b, h, 0, 0))
    mix_t = pl.pallas_call(
        mix_kernel,
        out_shape=jax.ShapeDtypeStruct((B, H, N, N), bf16),
        grid_spec=pltpu.PrefetchScalarGridSpec(
            num_scalar_prefetch=0,
            grid=(B, H // ht),
            in_specs=[blk_spec, blk_spec],
            out_specs=blk_spec),
        compiler_params=pltpu.CompilerParams(
            dimension_semantics=("parallel", "parallel"),
            vmem_limit_bytes=48 * 1024 * 1024),
    )(left_t4, right_t4)

    mix_r = mix_t.reshape(B, H, NN)                            # metadata only

    # --- stage 3: LayerNorm(hidden) * out_gate -> Linear(hidden, dim) --------
    y_spec = pl.BlockSpec((1, H, tile), lambda b, r: (b, 0, r))
    out3 = pl.pallas_call(
        _out_kernel,
        out_shape=jax.ShapeDtypeStruct((B, NN, D), x.dtype),
        grid_spec=pltpu.PrefetchScalarGridSpec(
            num_scalar_prefetch=0,
            grid=(B, grid_rows),
            in_specs=[y_spec, row_h_spec, vec_h, vec_h, w_hd, vec_d],
            out_specs=row_d_spec),
        compiler_params=pltpu.CompilerParams(
            dimension_semantics=("parallel", "parallel")),
    )(mix_r, out_gate,
      params["out_norm_gamma"].reshape(1, H), params["out_norm_beta"].reshape(1, H),
      w_o, params["b_out"].reshape(1, D))

    return out3.reshape(B, N, N, D)


# ------------------------------- reference ------------------------------------

def triangle_ref(x, params, *, mix="ingoing", kernel_policy=False):
    """Pure-JAX reference mirroring the PyTorch forward (mask=None).

    kernel_policy=True mirrors the kernel dtype policy (bf16 matmul operands,
    bf16 storage of the mix output and out-gate, f32 accumulation / LayerNorm /
    gating) for a tight check; False is full-precision module semantics."""
    md = jnp.bfloat16 if kernel_policy else jnp.float32

    def mm(a, w):
        return jnp.dot(a.astype(md), w.astype(md),
                       preferred_element_type=jnp.float32)

    xn = _layernorm_f32(x, params["norm_gamma"], params["norm_beta"])
    left = mm(xn, params["w_left"]) + params["b_left"]
    right = mm(xn, params["w_right"]) + params["b_right"]
    lgate = jax.nn.sigmoid(mm(xn, params["w_lgate"]) + params["b_lgate"])
    rgate = jax.nn.sigmoid(mm(xn, params["w_rgate"]) + params["b_rgate"])
    ogate = jax.nn.sigmoid(mm(xn, params["w_ogate"]) + params["b_ogate"])
    left = left * lgate
    right = right * rgate
    if kernel_policy:
        ogate = ogate.astype(jnp.bfloat16).astype(jnp.float32)
    eq = "bkjd,bkid->bijd" if mix == "ingoing" else "bikd,bjkd->bijd"
    out = jnp.einsum(eq, left.astype(md), right.astype(md),
                     preferred_element_type=jnp.float32)
    if kernel_policy:
        out = out.astype(jnp.bfloat16).astype(jnp.float32)
    out = _layernorm_f32(out, params["out_norm_gamma"], params["out_norm_beta"])
    out = out * ogate
    return mm(out, params["w_out"]) + params["b_out"]


if __name__ == "__main__":
    # Small shapes consistent with TriangleMultiplicativeModule(dim=128):
    # x is a square pairwise feature map (B, N, N, dim), hidden_dim = dim.
    B, N, D, H = 2, 16, 128, 128

    key = jax.random.PRNGKey(0)
    keys = jax.random.split(key, 18)

    def linear(kw, kb, fan_in, fan_out):
        w = jax.random.normal(kw, (fan_in, fan_out), jnp.float32) / math.sqrt(fan_in)
        b = 0.1 * jax.random.normal(kb, (fan_out,), jnp.float32)
        return w, b

    x = jax.random.normal(keys[0], (B, N, N, D), dtype=jnp.float32)

    params = {}
    params["norm_gamma"] = 1.0 + 0.1 * jax.random.normal(keys[1], (D,), jnp.float32)
    params["norm_beta"] = 0.1 * jax.random.normal(keys[2], (D,), jnp.float32)
    params["w_left"], params["b_left"] = linear(keys[3], keys[4], D, H)
    params["w_right"], params["b_right"] = linear(keys[5], keys[6], D, H)
    # PyTorch zero-inits the gate Linears (weight=0, bias=1); randomized here so
    # the kernel numerics are exercised (forward semantics identical).
    params["w_lgate"], params["b_lgate"] = linear(keys[7], keys[8], D, H)
    params["w_rgate"], params["b_rgate"] = linear(keys[9], keys[10], D, H)
    params["w_ogate"], params["b_ogate"] = linear(keys[11], keys[12], D, H)
    params["out_norm_gamma"] = 1.0 + 0.1 * jax.random.normal(keys[13], (H,), jnp.float32)
    params["out_norm_beta"] = 0.1 * jax.random.normal(keys[14], (H,), jnp.float32)
    params["w_out"], params["b_out"] = linear(keys[15], keys[16], H, D)

    for mix in ("ingoing", "outgoing"):
        out = triangle_multiplicative_pallas(x, params, mix=mix)
        out = jax.block_until_ready(out)
        assert out.shape == (B, N, N, D)

        # Tight check against a reference mirroring the kernel's dtype policy.
        ref_bf16 = triangle_ref(x, params, mix=mix, kernel_policy=True)
        err_t = float(jnp.max(jnp.abs(out - ref_bf16)))
        assert jnp.allclose(out, ref_bf16, atol=2e-2, rtol=2e-2), (mix, err_t)

        # Loose sanity check against full-f32 module semantics.
        ref_f32 = triangle_ref(x, params, mix=mix, kernel_policy=False)
        err_l = float(jnp.max(jnp.abs(out - ref_f32)))
        assert jnp.allclose(out, ref_f32, atol=2e-1, rtol=2e-1), (mix, err_l)

    print("KERNEL_OK")
</pallas_src>

<mosaic_0001>
module attributes {stable_mosaic.version = 11 : i64} {
  func.func @_proj_kernel(%arg0: i32, %arg1: i32, %arg2: memref<1x256x128xf32, #tpu.memory_space<vmem>>, %arg3: memref<1x128xf32, #tpu.memory_space<vmem>>, %arg4: memref<1x128xf32, #tpu.memory_space<vmem>>, %arg5: memref<128x256xbf16, #tpu.memory_space<vmem>>, %arg6: memref<1x256xf32, #tpu.memory_space<vmem>>, %arg7: memref<128x256xbf16, #tpu.memory_space<vmem>>, %arg8: memref<1x256xf32, #tpu.memory_space<vmem>>, %arg9: memref<128x128xbf16, #tpu.memory_space<vmem>>, %arg10: memref<1x128xf32, #tpu.memory_space<vmem>>, %arg11: memref<1x128x256xbf16, #tpu.memory_space<vmem>>, %arg12: memref<1x128x256xbf16, #tpu.memory_space<vmem>>, %arg13: memref<1x256x128xbf16, #tpu.memory_space<vmem>>) attributes {dimension_semantics = [#tpu.dimension_semantics<parallel>, #tpu.dimension_semantics<parallel>], iteration_bounds = array<i64: 2, 1>, scalar_prefetch = 0 : i64, scratch_operands = 0 : i64, tpu.core_type = #tpu.core_type<tc>, window_params = [{transform_indices = @transform_0, window_bounds = array<i64: 1, 256, 128>}, {pipeline_mode = #tpu.pipeline_mode<synchronous>, transform_indices = @transform_1, window_bounds = array<i64: 1, 128>}, {pipeline_mode = #tpu.pipeline_mode<synchronous>, transform_indices = @transform_2, window_bounds = array<i64: 1, 128>}, {pipeline_mode = #tpu.pipeline_mode<synchronous>, transform_indices = @transform_3, window_bounds = array<i64: 128, 256>}, {pipeline_mode = #tpu.pipeline_mode<synchronous>, transform_indices = @transform_4, window_bounds = array<i64: 1, 256>}, {pipeline_mode = #tpu.pipeline_mode<synchronous>, transform_indices = @transform_5, window_bounds = array<i64: 128, 256>}, {pipeline_mode = #tpu.pipeline_mode<synchronous>, transform_indices = @transform_6, window_bounds = array<i64: 1, 256>}, {pipeline_mode = #tpu.pipeline_mode<synchronous>, transform_indices = @transform_7, window_bounds = array<i64: 128, 128>}, {pipeline_mode = #tpu.pipeline_mode<synchronous>, transform_indices = @transform_8, window_bounds = array<i64: 1, 128>}, {transform_indices = @transform_9, window_bounds = array<i64: 1, 128, 256>}, {transform_indices = @transform_10, window_bounds = array<i64: 1, 128, 256>}, {transform_indices = @transform_11, window_bounds = array<i64: 1, 256, 128>}]} {
    %c0 = arith.constant 0 : index
    %c0_0 = arith.constant 0 : index
    %c0_1 = arith.constant 0 : index
    %0 = vector.load %arg2[%c0, %c0_0, %c0_1] : memref<1x256x128xf32, #tpu.memory_space<vmem>>, vector<1x256x128xf32>
    %1 = vector.shape_cast %0 : vector<1x256x128xf32> to vector<256x128xf32>
    %c0_2 = arith.constant 0 : index
    %c0_3 = arith.constant 0 : index
    %2 = vector.load %arg3[%c0_2, %c0_3] : memref<1x128xf32, #tpu.memory_space<vmem>>, vector<1x128xf32>
    %c0_4 = arith.constant 0 : index
    %c0_5 = arith.constant 0 : index
    %3 = vector.load %arg4[%c0_4, %c0_5] : memref<1x128xf32, #tpu.memory_space<vmem>>, vector<1x128xf32>
    %cst = arith.constant dense<0.000000e+00> : vector<256xf32>
    %4 = vector.multi_reduction <add>, %1, %cst [1] : vector<256x128xf32> to vector<256xf32>
    %5 = vector.shape_cast %4 : vector<256xf32> to vector<256x1xf32>
    %cst_6 = arith.constant 1.280000e+02 : f32
    %6 = vector.broadcast %cst_6 : f32 to vector<256x1xf32>
    %7 = arith.divf %5, %6 : vector<256x1xf32>
    %8 = vector.broadcast %7 : vector<256x1xf32> to vector<256x128xf32>
    %9 = arith.subf %1, %8 : vector<256x128xf32>
    %10 = arith.mulf %9, %9 : vector<256x128xf32>
    %cst_7 = arith.constant dense<0.000000e+00> : vector<256xf32>
    %11 = vector.multi_reduction <add>, %10, %cst_7 [1] : vector<256x128xf32> to vector<256xf32>
    %12 = vector.shape_cast %11 : vector<256xf32> to vector<256x1xf32>
    %cst_8 = arith.constant 1.280000e+02 : f32
    %13 = vector.broadcast %cst_8 : f32 to vector<256x1xf32>
    %14 = arith.divf %12, %13 : vector<256x1xf32>
    %cst_9 = arith.constant 9.99999974E-6 : f32
    %15 = vector.broadcast %cst_9 : f32 to vector<256x1xf32>
    %16 = arith.addf %14, %15 : vector<256x1xf32>
    %17 = math.rsqrt %16 : vector<256x1xf32>
    %18 = vector.broadcast %17 : vector<256x1xf32> to vector<256x128xf32>
    %19 = arith.mulf %9, %18 : vector<256x128xf32>
    %20 = vector.broadcast %2 : vector<1x128xf32> to vector<256x128xf32>
    %21 = arith.mulf %19, %20 : vector<256x128xf32>
    %22 = vector.broadcast %3 : vector<1x128xf32> to vector<256x128xf32>
    %23 = arith.addf %21, %22 : vector<256x128xf32>
    %24 = arith.truncf %23 : vector<256x128xf32> to vector<256x128xbf16>
    %c0_10 = arith.constant 0 : index
    %c0_11 = arith.constant 0 : index
    %25 = vector.load %arg5[%c0_10, %c0_11] : memref<128x256xbf16, #tpu.memory_space<vmem>>, vector<128x256xbf16>
    %cst_12 = arith.constant dense<0.000000e+00> : vector<256x256xf32>
    %26 = tpu.matmul %24, %25, %cst_12 {dimension_numbers = #tpu.dot_dimension_numbers<[1], [0], [0], [1], [0, 0, 1, 1], [], []>} : vector<256x128xbf16>, vector<128x256xbf16>, vector<256x256xf32> -> vector<256x256xf32>
    %c0_13 = arith.constant 0 : index
    %c0_14 = arith.constant 0 : index
    %27 = vector.load %arg6[%c0_13, %c0_14] : memref<1x256xf32, #tpu.memory_space<vmem>>, vector<1x256xf32>
    %28 = vector.broadcast %27 : vector<1x256xf32> to vector<256x256xf32>
    %29 = arith.addf %26, %28 : vector<256x256xf32>
    %c0_15 = arith.constant 0 : index
    %c0_16 = arith.constant 0 : index
    %30 = vector.load %arg7[%c0_15, %c0_16] : memref<128x256xbf16, #tpu.memory_space<vmem>>, vector<128x256xbf16>
    %cst_17 = arith.constant dense<0.000000e+00> : vector<256x256xf32>
    %31 = tpu.matmul %24, %30, %cst_17 {dimension_numbers = #tpu.dot_dimension_numbers<[1], [0], [0], [1], [0, 0, 1, 1], [], []>} : vector<256x128xbf16>, vector<128x256xbf16>, vector<256x256xf32> -> vector<256x256xf32>
    %c0_18 = arith.constant 0 : index
    %c0_19 = arith.constant 0 : index
    %32 = vector.load %arg8[%c0_18, %c0_19] : memref<1x256xf32, #tpu.memory_space<vmem>>, vector<1x256xf32>
    %33 = vector.broadcast %32 : vector<1x256xf32> to vector<256x256xf32>
    %34 = arith.addf %31, %33 : vector<256x256xf32>
    %c0_20 = arith.constant 0 : index
    %c0_21 = arith.constant 0 : index
    %35 = vector.load %arg9[%c0_20, %c0_21] : memref<128x128xbf16, #tpu.memory_space<vmem>>, vector<128x128xbf16>
    %cst_22 = arith.constant dense<0.000000e+00> : vector<256x128xf32>
    %36 = tpu.matmul %24, %35, %cst_22 {dimension_numbers = #tpu.dot_dimension_numbers<[1], [0], [0], [1], [0, 0, 1, 1], [], []>} : vector<256x128xbf16>, vector<128x128xbf16>, vector<256x128xf32> -> vector<256x128xf32>
    %c0_23 = arith.constant 0 : index
    %c0_24 = arith.constant 0 : index
    %37 = vector.load %arg10[%c0_23, %c0_24] : memref<1x128xf32, #tpu.memory_space<vmem>>, vector<1x128xf32>
    %38 = vector.broadcast %37 : vector<1x128xf32> to vector<256x128xf32>
    %39 = arith.addf %36, %38 : vector<256x128xf32>
    %cst_25 = arith.constant 5.000000e-01 : f32
    %40 = vector.broadcast %cst_25 : f32 to vector<256x128xf32>
    %41 = arith.mulf %40, %39 : vector<256x128xf32>
    %42 = math.tanh %41 : vector<256x128xf32>
    %cst_26 = arith.constant 1.000000e+00 : f32
    %43 = vector.broadcast %cst_26 : f32 to vector<256x128xf32>
    %44 = arith.addf %42, %43 : vector<256x128xf32>
    %cst_27 = arith.constant 5.000000e-01 : f32
    %45 = vector.broadcast %cst_27 : f32 to vector<256x128xf32>
    %46 = arith.mulf %45, %44 : vector<256x128xf32>
    %47 = vector.extract_strided_slice %29 {offsets = [0, 0], sizes = [256, 128], strides = [1, 1]} : vector<256x256xf32> to vector<256x128xf32>
    %48 = vector.extract_strided_slice %29 {offsets = [0, 128], sizes = [256, 128], strides = [1, 1]} : vector<256x256xf32> to vector<256x128xf32>
    %cst_28 = arith.constant 5.000000e-01 : f32
    %49 = vector.broadcast %cst_28 : f32 to vector<256x128xf32>
    %50 = arith.mulf %49, %48 : vector<256x128xf32>
    %51 = math.tanh %50 : vector<256x128xf32>
    %cst_29 = arith.constant 1.000000e+00 : f32
    %52 = vector.broadcast %cst_29 : f32 to vector<256x128xf32>
    %53 = arith.addf %51, %52 : vector<256x128xf32>
    %cst_30 = arith.constant 5.000000e-01 : f32
    %54 = vector.broadcast %cst_30 : f32 to vector<256x128xf32>
    %55 = arith.mulf %54, %53 : vector<256x128xf32>
    %56 = arith.mulf %47, %55 : vector<256x128xf32>
    %57 = vector.extract_strided_slice %34 {offsets = [0, 0], sizes = [256, 128], strides = [1, 1]} : vector<256x256xf32> to vector<256x128xf32>
    %58 = vector.extract_strided_slice %34 {offsets = [0, 128], sizes = [256, 128], strides = [1, 1]} : vector<256x256xf32> to vector<256x128xf32>
    %cst_31 = arith.constant 5.000000e-01 : f32
    %59 = vector.broadcast %cst_31 : f32 to vector<256x128xf32>
    %60 = arith.mulf %59, %58 : vector<256x128xf32>
    %61 = math.tanh %60 : vector<256x128xf32>
    %cst_32 = arith.constant 1.000000e+00 : f32
    %62 = vector.broadcast %cst_32 : f32 to vector<256x128xf32>
    %63 = arith.addf %61, %62 : vector<256x128xf32>
    %cst_33 = arith.constant 5.000000e-01 : f32
    %64 = vector.broadcast %cst_33 : f32 to vector<256x128xf32>
    %65 = arith.mulf %64, %63 : vector<256x128xf32>
    %66 = arith.mulf %57, %65 : vector<256x128xf32>
    %67 = tpu.transpose %56, [1, 0] : vector<256x128xf32> -> vector<128x256xf32>
    %68 = arith.truncf %67 : vector<128x256xf32> to vector<128x256xbf16>
    %c0_34 = arith.constant 0 : index
    %c0_35 = arith.constant 0 : index
    %c0_36 = arith.constant 0 : index
    %69 = vector.load %arg11[%c0_34, %c0_35, %c0_36] : memref<1x128x256xbf16, #tpu.memory_space<vmem>>, vector<1x128x256xbf16>
    %70 = vector.shape_cast %69 : vector<1x128x256xbf16> to vector<128x256xbf16>
    %71 = vector.shape_cast %68 : vector<128x256xbf16> to vector<1x128x256xbf16>
    tpu.vector_store %arg11[%c0_34, %c0_35, %c0_36], %71 {strides = array<i32>} : memref<1x128x256xbf16, #tpu.memory_space<vmem>>, vector<1x128x256xbf16>,
    %72 = tpu.transpose %66, [1, 0] : vector<256x128xf32> -> vector<128x256xf32>
    %73 = arith.truncf %72 : vector<128x256xf32> to vector<128x256xbf16>
    %c0_37 = arith.constant 0 : index
    %c0_38 = arith.constant 0 : index
    %c0_39 = arith.constant 0 : index
    %74 = vector.load %arg12[%c0_37, %c0_38, %c0_39] : memref<1x128x256xbf16, #tpu.memory_space<vmem>>, vector<1x128x256xbf16>
    %75 = vector.shape_cast %74 : vector<1x128x256xbf16> to vector<128x256xbf16>
    %76 = vector.shape_cast %73 : vector<128x256xbf16> to vector<1x128x256xbf16>
    tpu.vector_store %arg12[%c0_37, %c0_38, %c0_39], %76 {strides = array<i32>} : memref<1x128x256xbf16, #tpu.memory_space<vmem>>, vector<1x128x256xbf16>,
    %77 = arith.truncf %46 : vector<256x128xf32> to vector<256x128xbf16>
    %c0_40 = arith.constant 0 : index
    %c0_41 = arith.constant 0 : index
    %c0_42 = arith.constant 0 : index
    %78 = vector.load %arg13[%c0_40, %c0_41, %c0_42] : memref<1x256x128xbf16, #tpu.memory_space<vmem>>, vector<1x256x128xbf16>
    %79 = vector.shape_cast %78 : vector<1x256x128xbf16> to vector<256x128xbf16>
    %80 = vector.shape_cast %77 : vector<256x128xbf16> to vector<1x256x128xbf16>
    tpu.vector_store %arg13[%c0_40, %c0_41, %c0_42], %80 {strides = array<i32>} : memref<1x256x128xbf16, #tpu.memory_space<vmem>>, vector<1x256x128xbf16>,
    return
  }
  func.func @transform_0(%arg0: i32, %arg1: i32) -> (i32, i32, i32) {
    %c0_i32 = arith.constant 0 : i32
    %c0_i32_0 = arith.constant 0 : i32
    return %arg0, %arg1, %c0_i32 : i32, i32, i32
  }
  func.func @transform_1(%arg0: i32, %arg1: i32) -> (i32, i32) {
    %c0_i32 = arith.constant 0 : i32
    %c0_i32_0 = arith.constant 0 : i32
    %c0_i32_1 = arith.constant 0 : i32
    return %c0_i32, %c0_i32_0 : i32, i32
  }
  func.func @transform_2(%arg0: i32, %arg1: i32) -> (i32, i32) {
    %c0_i32 = arith.constant 0 : i32
    %c0_i32_0 = arith.constant 0 : i32
    %c0_i32_1 = arith.constant 0 : i32
    return %c0_i32, %c0_i32_0 : i32, i32
  }
  func.func @transform_3(%arg0: i32, %arg1: i32) -> (i32, i32) {
    %c0_i32 = arith.constant 0 : i32
    %c0_i32_0 = arith.constant 0 : i32
    %c0_i32_1 = arith.constant 0 : i32
    return %c0_i32, %c0_i32_0 : i32, i32
  }
  func.func @transform_4(%arg0: i32, %arg1: i32) -> (i32, i32) {
    %c0_i32 = arith.constant 0 : i32
    %c0_i32_0 = arith.constant 0 : i32
    %c0_i32_1 = arith.constant 0 : i32
    return %c0_i32, %c0_i32_0 : i32, i32
  }
  func.func @transform_5(%arg0: i32, %arg1: i32) -> (i32, i32) {
    %c0_i32 = arith.constant 0 : i32
    %c0_i32_0 = arith.constant 0 : i32
    %c0_i32_1 = arith.constant 0 : i32
    return %c0_i32, %c0_i32_0 : i32, i32
  }
  func.func @transform_6(%arg0: i32, %arg1: i32) -> (i32, i32) {
    %c0_i32 = arith.constant 0 : i32
    %c0_i32_0 = arith.constant 0 : i32
    %c0_i32_1 = arith.constant 0 : i32
    return %c0_i32, %c0_i32_0 : i32, i32
  }
  func.func @transform_7(%arg0: i32, %arg1: i32) -> (i32, i32) {
    %c0_i32 = arith.constant 0 : i32
    %c0_i32_0 = arith.constant 0 : i32
    %c0_i32_1 = arith.constant 0 : i32
    return %c0_i32, %c0_i32_0 : i32, i32
  }
  func.func @transform_8(%arg0: i32, %arg1: i32) -> (i32, i32) {
    %c0_i32 = arith.constant 0 : i32
    %c0_i32_0 = arith.constant 0 : i32
    %c0_i32_1 = arith.constant 0 : i32
    return %c0_i32, %c0_i32_0 : i32, i32
  }
  func.func @transform_9(%arg0: i32, %arg1: i32) -> (i32, i32, i32) {
    %c0_i32 = arith.constant 0 : i32
    %c0_i32_0 = arith.constant 0 : i32
    return %arg0, %c0_i32, %arg1 : i32, i32, i32
  }
  func.func @transform_10(%arg0: i32, %arg1: i32) -> (i32, i32, i32) {
    %c0_i32 = arith.constant 0 : i32
    %c0_i32_0 = arith.constant 0 : i32
    return %arg0, %c0_i32, %arg1 : i32, i32, i32
  }
  func.func @transform_11(%arg0: i32, %arg1: i32) -> (i32, i32, i32) {
    %c0_i32 = arith.constant 0 : i32
    %c0_i32_0 = arith.constant 0 : i32
    return %arg0, %arg1, %c0_i32 : i32, i32, i32
  }
}

module attributes {stable_mosaic.version = 11 : i64} {
  func.func @_mix_kernel_ingoing(%arg0: i32, %arg1: i32, %arg2: memref<1x128x16x16xbf16, #tpu.memory_space<vmem>>, %arg3: memref<1x128x16x16xbf16, #tpu.memory_space<vmem>>, %arg4: memref<1x128x16x16xbf16, #tpu.memory_space<vmem>>) attributes {dimension_semantics = [#tpu.dimension_semantics<parallel>, #tpu.dimension_semantics<parallel>], iteration_bounds = array<i64: 2, 1>, scalar_prefetch = 0 : i64, scratch_operands = 0 : i64, tpu.core_type = #tpu.core_type<tc>, window_params = [{transform_indices = @transform_0, window_bounds = array<i64: 1, 128, 16, 16>}, {transform_indices = @transform_1, window_bounds = array<i64: 1, 128, 16, 16>}, {transform_indices = @transform_2, window_bounds = array<i64: 1, 128, 16, 16>}]} {
    %c0 = arith.constant 0 : index
    %c0_0 = arith.constant 0 : index
    %c0_1 = arith.constant 0 : index
    %c0_2 = arith.constant 0 : index
    %0 = vector.load %arg2[%c0, %c0_0, %c0_1, %c0_2] : memref<1x128x16x16xbf16, #tpu.memory_space<vmem>>, vector<1x128x16x16xbf16>
    %1 = vector.shape_cast %0 : vector<1x128x16x16xbf16> to vector<128x16x16xbf16>
    %c0_3 = arith.constant 0 : index
    %c0_4 = arith.constant 0 : index
    %c0_5 = arith.constant 0 : index
    %c0_6 = arith.constant 0 : index
    %2 = vector.load %arg3[%c0_3, %c0_4, %c0_5, %c0_6] : memref<1x128x16x16xbf16, #tpu.memory_space<vmem>>, vector<1x128x16x16xbf16>
    %3 = vector.shape_cast %2 : vector<1x128x16x16xbf16> to vector<128x16x16xbf16>
    %cst = arith.constant dense<0.000000e+00> : vector<128x16x16xf32>
    %4 = tpu.matmul %3, %1, %cst {dimension_numbers = #tpu.dot_dimension_numbers<[1], [1], [2], [2], [0, 0, 0, 2, 1, 2], [0], [0]>} : vector<128x16x16xbf16>, vector<128x16x16xbf16>, vector<128x16x16xf32> -> vector<128x16x16xf32>
    %5 = arith.truncf %4 : vector<128x16x16xf32> to vector<128x16x16xbf16>
    %c0_7 = arith.constant 0 : index
    %c0_8 = arith.constant 0 : index
    %c0_9 = arith.constant 0 : index
    %c0_10 = arith.constant 0 : index
    %6 = vector.load %arg4[%c0_7, %c0_8, %c0_9, %c0_10] : memref<1x128x16x16xbf16, #tpu.memory_space<vmem>>, vector<1x128x16x16xbf16>
    %7 = vector.shape_cast %6 : vector<1x128x16x16xbf16> to vector<128x16x16xbf16>
    %8 = vector.shape_cast %5 : vector<128x16x16xbf16> to vector<1x128x16x16xbf16>
    tpu.vector_store %arg4[%c0_7, %c0_8, %c0_9, %c0_10], %8 {strides = array<i32>} : memref<1x128x16x16xbf16, #tpu.memory_space<vmem>>, vector<1x128x16x16xbf16>,
    return
  }
  func.func @transform_0(%arg0: i32, %arg1: i32) -> (i32, i32, i32, i32) {
    %c0_i32 = arith.constant 0 : i32
    %c0_i32_0 = arith.constant 0 : i32
    %c0_i32_1 = arith.constant 0 : i32
    return %arg0, %arg1, %c0_i32, %c0_i32_0 : i32, i32, i32, i32
  }
  func.func @transform_1(%arg0: i32, %arg1: i32) -> (i32, i32, i32, i32) {
    %c0_i32 = arith.constant 0 : i32
    %c0_i32_0 = arith.constant 0 : i32
    %c0_i32_1 = arith.constant 0 : i32
    return %arg0, %arg1, %c0_i32, %c0_i32_0 : i32, i32, i32, i32
  }
  func.func @transform_2(%arg0: i32, %arg1: i32) -> (i32, i32, i32, i32) {
    %c0_i32 = arith.constant 0 : i32
    %c0_i32_0 = arith.constant 0 : i32
    %c0_i32_1 = arith.constant 0 : i32
    return %arg0, %arg1, %c0_i32, %c0_i32_0 : i32, i32, i32, i32
  }
}

module attributes {stable_mosaic.version = 11 : i64} {
  func.func @_out_kernel(%arg0: i32, %arg1: i32, %arg2: memref<1x128x256xbf16, #tpu.memory_space<vmem>>, %arg3: memref<1x256x128xbf16, #tpu.memory_space<vmem>>, %arg4: memref<1x128xf32, #tpu.memory_space<vmem>>, %arg5: memref<1x128xf32, #tpu.memory_space<vmem>>, %arg6: memref<128x128xbf16, #tpu.memory_space<vmem>>, %arg7: memref<1x128xf32, #tpu.memory_space<vmem>>, %arg8: memref<1x256x128xf32, #tpu.memory_space<vmem>>) attributes {dimension_semantics = [#tpu.dimension_semantics<parallel>, #tpu.dimension_semantics<parallel>], iteration_bounds = array<i64: 2, 1>, scalar_prefetch = 0 : i64, scratch_operands = 0 : i64, tpu.core_type = #tpu.core_type<tc>, window_params = [{transform_indices = @transform_0, window_bounds = array<i64: 1, 128, 256>}, {transform_indices = @transform_1, window_bounds = array<i64: 1, 256, 128>}, {pipeline_mode = #tpu.pipeline_mode<synchronous>, transform_indices = @transform_2, window_bounds = array<i64: 1, 128>}, {pipeline_mode = #tpu.pipeline_mode<synchronous>, transform_indices = @transform_3, window_bounds = array<i64: 1, 128>}, {pipeline_mode = #tpu.pipeline_mode<synchronous>, transform_indices = @transform_4, window_bounds = array<i64: 128, 128>}, {pipeline_mode = #tpu.pipeline_mode<synchronous>, transform_indices = @transform_5, window_bounds = array<i64: 1, 128>}, {transform_indices = @transform_6, window_bounds = array<i64: 1, 256, 128>}]} {
    %c0 = arith.constant 0 : index
    %c0_0 = arith.constant 0 : index
    %c0_1 = arith.constant 0 : index
    %0 = vector.load %arg2[%c0, %c0_0, %c0_1] : memref<1x128x256xbf16, #tpu.memory_space<vmem>>, vector<1x128x256xbf16>
    %1 = vector.shape_cast %0 : vector<1x128x256xbf16> to vector<128x256xbf16>
    %2 = arith.extf %1 : vector<128x256xbf16> to vector<128x256xf32>
    %3 = tpu.transpose %2, [1, 0] : vector<128x256xf32> -> vector<256x128xf32>
    %c0_2 = arith.constant 0 : index
    %c0_3 = arith.constant 0 : index
    %4 = vector.load %arg4[%c0_2, %c0_3] : memref<1x128xf32, #tpu.memory_space<vmem>>, vector<1x128xf32>
    %c0_4 = arith.constant 0 : index
    %c0_5 = arith.constant 0 : index
    %5 = vector.load %arg5[%c0_4, %c0_5] : memref<1x128xf32, #tpu.memory_space<vmem>>, vector<1x128xf32>
    %cst = arith.constant dense<0.000000e+00> : vector<256xf32>
    %6 = vector.multi_reduction <add>, %3, %cst [1] : vector<256x128xf32> to vector<256xf32>
    %7 = vector.shape_cast %6 : vector<256xf32> to vector<256x1xf32>
    %cst_6 = arith.constant 1.280000e+02 : f32
    %8 = vector.broadcast %cst_6 : f32 to vector<256x1xf32>
    %9 = arith.divf %7, %8 : vector<256x1xf32>
    %10 = vector.broadcast %9 : vector<256x1xf32> to vector<256x128xf32>
    %11 = arith.subf %3, %10 : vector<256x128xf32>
    %12 = arith.mulf %11, %11 : vector<256x128xf32>
    %cst_7 = arith.constant dense<0.000000e+00> : vector<256xf32>
    %13 = vector.multi_reduction <add>, %12, %cst_7 [1] : vector<256x128xf32> to vector<256xf32>
    %14 = vector.shape_cast %13 : vector<256xf32> to vector<256x1xf32>
    %cst_8 = arith.constant 1.280000e+02 : f32
    %15 = vector.broadcast %cst_8 : f32 to vector<256x1xf32>
    %16 = arith.divf %14, %15 : vector<256x1xf32>
    %cst_9 = arith.constant 9.99999974E-6 : f32
    %17 = vector.broadcast %cst_9 : f32 to vector<256x1xf32>
    %18 = arith.addf %16, %17 : vector<256x1xf32>
    %19 = math.rsqrt %18 : vector<256x1xf32>
    %20 = vector.broadcast %19 : vector<256x1xf32> to vector<256x128xf32>
    %21 = arith.mulf %11, %20 : vector<256x128xf32>
    %22 = vector.broadcast %4 : vector<1x128xf32> to vector<256x128xf32>
    %23 = arith.mulf %21, %22 : vector<256x128xf32>
    %24 = vector.broadcast %5 : vector<1x128xf32> to vector<256x128xf32>
    %25 = arith.addf %23, %24 : vector<256x128xf32>
    %c0_10 = arith.constant 0 : index
    %c0_11 = arith.constant 0 : index
    %c0_12 = arith.constant 0 : index
    %26 = vector.load %arg3[%c0_10, %c0_11, %c0_12] : memref<1x256x128xbf16, #tpu.memory_space<vmem>>, vector<1x256x128xbf16>
    %27 = vector.shape_cast %26 : vector<1x256x128xbf16> to vector<256x128xbf16>
    %28 = arith.extf %27 : vector<256x128xbf16> to vector<256x128xf32>
    %29 = arith.mulf %25, %28 : vector<256x128xf32>
    %30 = arith.truncf %29 : vector<256x128xf32> to vector<256x128xbf16>
    %c0_13 = arith.constant 0 : index
    %c0_14 = arith.constant 0 : index
    %31 = vector.load %arg6[%c0_13, %c0_14] : memref<128x128xbf16, #tpu.memory_space<vmem>>, vector<128x128xbf16>
    %cst_15 = arith.constant dense<0.000000e+00> : vector<256x128xf32>
    %32 = tpu.matmul %30, %31, %cst_15 {dimension_numbers = #tpu.dot_dimension_numbers<[1], [0], [0], [1], [0, 0, 1, 1], [], []>} : vector<256x128xbf16>, vector<128x128xbf16>, vector<256x128xf32> -> vector<256x128xf32>
    %c0_16 = arith.constant 0 : index
    %c0_17 = arith.constant 0 : index
    %33 = vector.load %arg7[%c0_16, %c0_17] : memref<1x128xf32, #tpu.memory_space<vmem>>, vector<1x128xf32>
    %34 = vector.broadcast %33 : vector<1x128xf32> to vector<256x128xf32>
    %35 = arith.addf %32, %34 : vector<256x128xf32>
    %c0_18 = arith.constant 0 : index
    %c0_19 = arith.constant 0 : index
    %c0_20 = arith.constant 0 : index
    %36 = vector.load %arg8[%c0_18, %c0_19, %c0_20] : memref<1x256x128xf32, #tpu.memory_space<vmem>>, vector<1x256x128xf32>
    %37 = vector.shape_cast %36 : vector<1x256x128xf32> to vector<256x128xf32>
    %38 = vector.shape_cast %35 : vector<256x128xf32> to vector<1x256x128xf32>
    tpu.vector_store %arg8[%c0_18, %c0_19, %c0_20], %38 {strides = array<i32>} : memref<1x256x128xf32, #tpu.memory_space<vmem>>, vector<1x256x128xf32>,
    return
  }
  func.func @transform_0(%arg0: i32, %arg1: i32) -> (i32, i32, i32) {
    %c0_i32 = arith.constant 0 : i32
    %c0_i32_0 = arith.constant 0 : i32
    return %arg0, %c0_i32, %arg1 : i32, i32, i32
  }
  func.func @transform_1(%arg0: i32, %arg1: i32) -> (i32, i32, i32) {
    %c0_i32 = arith.constant 0 : i32
    %c0_i32_0 = arith.constant 0 : i32
    return %arg0, %arg1, %c0_i32 : i32, i32, i32
  }
  func.func @transform_2(%arg0: i32, %arg1: i32) -> (i32, i32) {
    %c0_i32 = arith.constant 0 : i32
    %c0_i32_0 = arith.constant 0 : i32
    %c0_i32_1 = arith.constant 0 : i32
    return %c0_i32, %c0_i32_0 : i32, i32
  }
  func.func @transform_3(%arg0: i32, %arg1: i32) -> (i32, i32) {
    %c0_i32 = arith.constant 0 : i32
    %c0_i32_0 = arith.constant 0 : i32
    %c0_i32_1 = arith.constant 0 : i32
    return %c0_i32, %c0_i32_0 : i32, i32
  }
  func.func @transform_4(%arg0: i32, %arg1: i32) -> (i32, i32) {
    %c0_i32 = arith.constant 0 : i32
    %c0_i32_0 = arith.constant 0 : i32
    %c0_i32_1 = arith.constant 0 : i32
    return %c0_i32, %c0_i32_0 : i32, i32
  }
  func.func @transform_5(%arg0: i32, %arg1: i32) -> (i32, i32) {
    %c0_i32 = arith.constant 0 : i32
    %c0_i32_0 = arith.constant 0 : i32
    %c0_i32_1 = arith.constant 0 : i32
    return %c0_i32, %c0_i32_0 : i32, i32
  }
  func.func @transform_6(%arg0: i32, %arg1: i32) -> (i32, i32, i32) {
    %c0_i32 = arith.constant 0 : i32
    %c0_i32_0 = arith.constant 0 : i32
    return %arg0, %arg1, %c0_i32 : i32, i32, i32
  }
}

</mosaic_0001>

<bundles_post_ra>
// kernel: triangle_multiplicative_pallas.3
= control target key start
LH: loop header
LB: loop body
LE: loop exit
PB: predicated region body
PF: predicated region fallthrough
CT: control target
= control target key end

     0   :  { %s3953_s17 = smov 0   ;;  %s3955_s18 = smov 0   ;;  %s5180_s0 = inlined_call_operand.vmem [shape: f32[2,256,128], index: 0, kind: input, shape index: {}]   ;;  %s5181_s1 = inlined_call_operand.vmem [shape: f32[1,128], index: 1, kind: input, shape index: {}]   ;;  %s5182_s2 = inlined_call_operand.vmem [shape: f32[1,128], index: 2, kind: input, shape index: {}]   ;;  %s5183_s3 = inlined_call_operand.vmem [shape: bf16[128,256], index: 3, kind: input, shape index: {}]   ;;  %s5184_s4 = inlined_call_operand.vmem [shape: f32[1,256], index: 4, kind: input, shape index: {}]   ;;  %s5185_s5 = inlined_call_operand.vmem [shape: bf16[128,256], index: 5, kind: input, shape index: {}]   ;;  %s5186_s6 = inlined_call_operand.vmem [shape: f32[1,256], index: 6, kind: input, shape index: {}]   ;;  %s5187_s7 = inlined_call_operand.vmem [shape: bf16[128,128], index: 7, kind: input, shape index: {}]   ;;  %s5188_s8 = inlined_call_operand.vmem [shape: f32[1,128], index: 8, kind: input, shape index: {}]   ;;  %s5189_s9 = inlined_call_operand.vmem [shape: bf16[2,128,256], index: 9, kind: output, shape index: {0}]   ;;  %s5190_s10 = inlined_call_operand.vmem [shape: bf16[2,128,256], index: 10, kind: output, shape index: {1}]   ;;  %s5191_s11 = inlined_call_operand.vmem [shape: bf16[2,256,128], index: 11, kind: output, shape index: {2}]  }
   0x1   :  { %s3957_s19 = smov 0  }
   0x2 LB: > { %s34_s20 = sadd.s32 1, %s3886_s18  ;;  %p2938_p0 = scmp.ge.s32.totalorder %s3890_s19, 1  ;;  %s3890_s19 = sphi %s3957_s19, %s22_s19   ;;  %s3886_s18 = sphi %s3955_s18, %s5237_s18   ;;  %s3882_s17 = sphi %s3953_s17, %s5236_s17  }
   0x3   : > { %p36_p1 = scmp.ge.s32.totalorder %s34_s20, 2  ;;  %p367_p2 = scmp.lt.s32.totalorder %s3890_s19, 3 }
   0x5   : > { %s5239_s20 = smov (%p36_p1, %s34_s20), 0  ;;  %p368_p3 = pnand %p2938_p0, %p367_p2 }
   0x7   : > { %371 = sbr.rel (%p368_p3) target bundleno = 950 (0x3b6), region = 56 }
   0xe   : > { %p434_p4 = scmp.lt.s32.totalorder %s3882_s17, 1  ;;  %v3556_v20 = vld [vmem:[%s5183_s3 + $0x4] ss:$8 sps:$4 sm:$0xff]   ;;  %v3558_v21 = vld [vmem:[%s5183_s3] ss:$8 sps:$4 sm:$0xff]  }
   0xf   : > { %v3559_v22 = vld [vmem:[%s5183_s3 + $0x14] ss:$8 sps:$4 sm:$0xff]   ;;  %3291 = vmatprep.subr.bf16.mxu1 %v3556_v20  ;;  %1061 = vmatprep.subr.bf16.mxu0 %v3556_v20  ;;  %v3561_v51 = vld [vmem:[%s5183_s3 + $0x10] ss:$8 sps:$4 sm:$0xff]   ;;  %v3562_v54 = vld [vmem:[%s5183_s3 + $0x24] ss:$8 sps:$4 sm:$0xff]  }
  0x10   : > { %s5241_s17 = smov (!%p434_p4, %s3882_s17), 1  ;;  %3299 = vmatpush1.bf16.msra.mxu1 %v3558_v21  ;;  %1062 = vmatpush1.bf16.msra.mxu0 %v3558_v21  ;;  %v3564_v58 = vld [vmem:[%s5183_s3 + $0x20] ss:$8 sps:$4 sm:$0xff]   ;;  %v3565_v61 = vld [vmem:[%s5183_s3 + $0x34] ss:$8 sps:$4 sm:$0xff]  }
  0x11   : > { %s3056_s21 = sshll.u32 %s5241_s17, 8  ;;  %3292 = vmatprep.subr.bf16.mxu1 %v3559_v22  ;;  %1063 = vmatprep.subr.bf16.mxu0 %v3559_v22  ;;  %v3570_v21 = vld [vmem:[%s5183_s3 + $0x40] ss:$8 sps:$4 sm:$0xff]   ;;  %s5004_s27 = sshll.u32 %s5241_s17, 7 }
  0x12   : > { %s3977_s24 = scalar_lea.vmem %s5180_s0, %s3056_s21  ;;  %s5014_s29 = scalar_lea.vmem %s5191_s11, %s5004_s27 }
  0x13   : > { %v498_v0 = vld [vmem:[%s3977_s24 + $0xc0] sm:$0xff]  ;;  %v500_v1 = vld [vmem:[%s3977_s24 + $0xd0] sm:$0xff]  ;;  %v499_v2 = vld [vmem:[%s3977_s24 + $0xc8] sm:$0xff]  ;;  %s5131_s12 = scalar_lea.vmem %s5189_s9, %s5004_s27  ;;  %s5137_s15 = scalar_lea.vmem %s5190_s10, %s5004_s27 }
  0x14   : > { %556 = vadd.xlane.f32.xlu0 %v498_v0  ;;  %560 = vadd.xlane.f32.xlu1 %v500_v1  ;;  %v501_v3 = vld [vmem:[%s3977_s24 + $0xd8] sm:$0xff]  ;;  %v3984_v4 = vld [vmem:[%s3977_s24 + $0xe0] sm:$0xff]  ;;  %v3987_v5 = vld [vmem:[%s3977_s24 + $0xe8] sm:$0xff] }
  0x15   : > { %v3990_v6 = vld [vmem:[%s3977_s24 + $0xf0] sm:$0xff]  ;;  %v3993_v7 = vld [vmem:[%s3977_s24 + $0xf8] sm:$0xff]  ;;  %v3998_v8 = vld [vmem:[%s3977_s24] sm:$0xff]  ;;  %3300 = vmatpush1.bf16.msra.mxu1 %v3561_v51  ;;  %1064 = vmatpush1.bf16.msra.mxu0 %v3561_v51 }
  0x16   : > { %v4001_v9 = vld [vmem:[%s3977_s24 + $0x8] sm:$0xff]  ;;  %v4008_v10 = vld [vmem:[%s3977_s24 + $0x10] sm:$0xff]  ;;  %v4011_v11 = vld [vmem:[%s3977_s24 + $0x18] sm:$0xff]  ;;  %3293 = vmatprep.subr.bf16.mxu1 %v3562_v54  ;;  %1065 = vmatprep.subr.bf16.mxu0 %v3562_v54 }
  0x17   : > { %v4016_v12 = vld [vmem:[%s3977_s24 + $0x20] sm:$0xff]  ;;  %v4019_v13 = vld [vmem:[%s3977_s24 + $0x28] sm:$0xff]  ;;  %v4024_v14 = vld [vmem:[%s3977_s24 + $0x30] sm:$0xff] }
  0x18   : > { %558 = vadd.xlane.f32.xlu0 %v499_v2  ;;  %562 = vadd.xlane.f32.xlu1 %v501_v3  ;;  %v4027_v15 = vld [vmem:[%s3977_s24 + $0x38] sm:$0xff]  ;;  %v4032_v16 = vld [vmem:[%s3977_s24 + $0x40] sm:$0xff]  ;;  %v4035_v17 = vld [vmem:[%s3977_s24 + $0x48] sm:$0xff] }
  0x19   : > { %v4040_v18 = vld [vmem:[%s3977_s24 + $0x50] sm:$0xff]  ;;  %v4043_v19 = vld [vmem:[%s3977_s24 + $0x58] sm:$0xff]  ;;  %v4065_v35 = vld [vmem:[%s3977_s24 + $0x60] sm:$0xff]  ;;  %3301 = vmatpush1.bf16.msra.mxu1 %v3564_v58  ;;  %1066 = vmatpush1.bf16.msra.mxu0 %v3564_v58 }
  0x1a   : > { %v4075_v41 = vld [vmem:[%s3977_s24 + $0x68] sm:$0xff]  ;;  %v4084_v46 = vld [vmem:[%s3977_s24 + $0x70] sm:$0xff]  ;;  %v4096_v52 = vld [vmem:[%s3977_s24 + $0x78] sm:$0xff]  ;;  %3294 = vmatprep.subr.bf16.mxu1 %v3565_v61  ;;  %1067 = vmatprep.subr.bf16.mxu0 %v3565_v61  ;;  %v3892_v61 = vmov 0  }
  0x1b   : > { %v4111_v59 = vld [vmem:[%s3977_s24 + $0x80] sm:$0xff]  ;;  %v4141_v22 = vld [vmem:[%s3977_s24 + $0x90] sm:$0xff]  ;;  %1213 = vmatprep.mubr.bf16.mxu1 %v3892_v61  ;;  %1093 = vmatprep.mubr.bf16.mxu0 %v3892_v61 }
  0x1c   : > { %564 = vadd.xlane.f32.xlu0 %v3984_v4  ;;  %566 = vadd.xlane.f32.xlu1 %v3987_v5 }
  0x20   : > { %568 = vadd.xlane.f32.xlu0 %v3990_v6  ;;  %570 = vadd.xlane.f32.xlu1 %v3993_v7 }
  0x24   : > { %508 = vadd.xlane.f32.xlu0 %v3998_v8  ;;  %510 = vadd.xlane.f32.xlu1 %v4001_v9 }
  0x28   : > { %512 = vadd.xlane.f32.xlu0 %v4008_v10  ;;  %514 = vadd.xlane.f32.xlu1 %v4011_v11 }
  0x2c   : > { %516 = vadd.xlane.f32.xlu0 %v4016_v12  ;;  %518 = vadd.xlane.f32.xlu1 %v4019_v13 }
  0x30   : > { %520 = vadd.xlane.f32.xlu0 %v4024_v14  ;;  %522 = vadd.xlane.f32.xlu1 %v4027_v15 }
  0x34   : > { %524 = vadd.xlane.f32.xlu0 %v4032_v16  ;;  %526 = vadd.xlane.f32.xlu1 %v4035_v17 }
  0x38   : > { %528 = vadd.xlane.f32.xlu0 %v4040_v18  ;;  %530 = vadd.xlane.f32.xlu1 %v4043_v19 }
  0xa1   : > { %v557_v23 = vpop.xlane.xlu0 %556  ;;  %v561_v24 = vpop.xlane.xlu1 %560 }
  0xa2   : > { %v597_v25 = vmul.f32 0.0078125, %v557_v23  ;;  %v599_v27 = vmul.f32 0.0078125, %v561_v24 }
  0xa4   : > { %v4056_v26 = vsub.f32 %v498_v0, %v597_v25  ;;  %v4062_v33 = vsub.f32 %v500_v1, %v599_v27  ;;  %v3567_v1 = vld [vmem:[%s5183_s3 + $0x30] ss:$8 sps:$4 sm:$0xff]  }
  0xa5   : > { %v559_v28 = vpop.xlane.xlu0 %558  ;;  %v563_v29 = vpop.xlane.xlu1 %562  ;;  %3302 = vmatpush1.bf16.msra.mxu1 %v3567_v1  ;;  %1068 = vmatpush1.bf16.msra.mxu0 %v3567_v1 }
  0xa6   : > { %v598_v30 = vmul.f32 0.0078125, %v559_v28  ;;  %v661_v31 = vmul.f32 %v4056_v26, %v4056_v26  ;;  %v600_v34 = vmul.f32 0.0078125, %v563_v29  ;;  %v663_v39 = vmul.f32 %v4062_v33, %v4062_v33  ;;  %v3573_v29 = vld [vmem:[%s5183_s3 + $0x50] ss:$8 sps:$4 sm:$0xff]  }
  0xa8   : > { %v4060_v32 = vsub.f32 %v499_v2, %v598_v30  ;;  %717 = vadd.xlane.f32.xlu0 %v661_v31  ;;  %v4070_v38 = vsub.f32 %v501_v3, %v600_v34  ;;  %v4126_v2 = vld [vmem:[%s3977_s24 + $0x88] sm:$0xff]  ;;  %v4156_v30 = vld [vmem:[%s3977_s24 + $0x98] sm:$0xff] }
  0xa9   : > { %v565_v36 = vpop.xlane.xlu0 %564  ;;  %v567_v42 = vpop.xlane.xlu1 %566 }
  0xaa   : > { %v662_v37 = vmul.f32 %v4060_v32, %v4060_v32  ;;  %v601_v40 = vmul.f32 0.0078125, %v565_v36  ;;  %v664_v44 = vmul.f32 %v4070_v38, %v4070_v38  ;;  %v602_v45 = vmul.f32 0.0078125, %v567_v42 }
  0xac   : > { %719 = vadd.xlane.f32.xlu1 %v662_v37  ;;  %532 = vadd.xlane.f32.xlu0 %v4065_v35  ;;  %v4079_v43 = vsub.f32 %v3984_v4, %v601_v40  ;;  %v4088_v48 = vsub.f32 %v3987_v5, %v602_v45  ;;  %v3568_v5 = vld [vmem:[%s5183_s3 + $0x44] ss:$8 sps:$4 sm:$0xff]  }
  0xad   : > { %v569_v47 = vpop.xlane.xlu0 %568  ;;  %v571_v53 = vpop.xlane.xlu1 %570  ;;  %3295 = vmatprep.subr.bf16.mxu1 %v3568_v5  ;;  %1069 = vmatprep.subr.bf16.mxu0 %v3568_v5  ;;  %v4171_v40 = vld [vmem:[%s3977_s24 + $0xa0] sm:$0xff]  ;;  %v4212_v5 = vld [vmem:[%s3977_s24 + $0xb8] sm:$0xff] }
  0xae   : > { %v665_v49 = vmul.f32 %v4079_v43, %v4079_v43  ;;  %v603_v50 = vmul.f32 0.0078125, %v569_v47  ;;  %v666_v56 = vmul.f32 %v4088_v48, %v4088_v48  ;;  %v604_v57 = vmul.f32 0.0078125, %v571_v53  ;;  %3303 = vmatpush1.bf16.msra.mxu1 %v3570_v21  ;;  %1070 = vmatpush1.bf16.msra.mxu0 %v3570_v21 }
  0xb0   : > { %534 = vadd.xlane.f32.xlu1 %v4075_v41  ;;  %721 = vadd.xlane.f32.xlu0 %v663_v39  ;;  %v4103_v55 = vsub.f32 %v3990_v6, %v603_v50  ;;  %v4118_v62 = vsub.f32 %v3993_v7, %v604_v57  ;;  %v3576_v39 = vld [vmem:[%s5183_s3 + $0x60] ss:$8 sps:$4 sm:$0xff]  }
  0xb1   : > { %v509_v60 = vpop.xlane.xlu0 %508  ;;  %v511_v3 = vpop.xlane.xlu1 %510  ;;  %v4186_v50 = vld [vmem:[%s3977_s24 + $0xa8] sm:$0xff] }
  0xb2   : > { %v667_v63 = vmul.f32 %v4103_v55, %v4103_v55  ;;  %v573_v0 = vmul.f32 0.0078125, %v509_v60  ;;  %v668_v7 = vmul.f32 %v4118_v62, %v4118_v62  ;;  %v574_v20 = vmul.f32 0.0078125, %v511_v3  ;;  %v4198_v60 = vld [vmem:[%s3977_s24 + $0xb0] sm:$0xff] }
  0xb4   : > { %723 = vadd.xlane.f32.xlu1 %v664_v44  ;;  %536 = vadd.xlane.f32.xlu0 %v4084_v46  ;;  %v4133_v6 = vsub.f32 %v3998_v8, %v573_v0  ;;  %v3571_v8 = vld [vmem:[%s5183_s3 + $0x54] ss:$8 sps:$4 sm:$0xff]   ;;  %v4148_v25 = vsub.f32 %v4001_v9, %v574_v20  ;;  %v3574_v9 = vld [vmem:[%s5183_s3 + $0x64] ss:$8 sps:$4 sm:$0xff]  }
  0xb5   : > { %v513_v4 = vpop.xlane.xlu0 %512  ;;  %v515_v23 = vpop.xlane.xlu1 %514  ;;  %3296 = vmatprep.subr.bf16.mxu1 %v3571_v8  ;;  %1071 = vmatprep.subr.bf16.mxu0 %v3571_v8 }
  0xb6   : > { %v637_v27 = vmul.f32 %v4133_v6, %v4133_v6  ;;  %v575_v28 = vmul.f32 0.0078125, %v513_v4  ;;  %3304 = vmatpush1.bf16.msra.mxu1 %v3573_v29  ;;  %1072 = vmatpush1.bf16.msra.mxu0 %v3573_v29  ;;  %v638_v36 = vmul.f32 %v4148_v25, %v4148_v25  ;;  %v576_v37 = vmul.f32 0.0078125, %v515_v23 }
  0xb7   : > { %3297 = vmatprep.subr.bf16.mxu1 %v3574_v9  ;;  %1073 = vmatprep.subr.bf16.mxu0 %v3574_v9 }
  0xb8   : > { %538 = vadd.xlane.f32.xlu1 %v4096_v52  ;;  %725 = vadd.xlane.f32.xlu0 %v665_v49  ;;  %v4163_v34 = vsub.f32 %v4008_v10, %v575_v28  ;;  %v3577_v10 = vld [vmem:[%s5183_s3 + $0x74] ss:$8 sps:$4 sm:$0xff]   ;;  %v4178_v44 = vsub.f32 %v4011_v11, %v576_v37  ;;  %v3579_v49 = vld [vmem:[%s5183_s3 + $0x70] ss:$8 sps:$4 sm:$0xff]   ;;  %v3582_v11 = vld [vmem:[%s5185_s5 + $0x4] ss:$8 sps:$4 sm:$0xff]  }
  0xb9   : > { %v517_v24 = vpop.xlane.xlu0 %516  ;;  %v519_v31 = vpop.xlane.xlu1 %518 }
  0xba   : > { %3305 = vmatpush1.bf16.msra.mxu1 %v3576_v39  ;;  %1074 = vmatpush1.bf16.msra.mxu0 %v3576_v39  ;;  %v639_v45 = vmul.f32 %v4163_v34, %v4163_v34  ;;  %v577_v47 = vmul.f32 0.0078125, %v517_v24  ;;  %v578_v53 = vmul.f32 0.0078125, %v519_v31  ;;  %v640_v57 = vmul.f32 %v4178_v44, %v4178_v44 }
  0xbb   : > { %3298 = vmatprep.subr.bf16.mxu1 %v3577_v10  ;;  %1075 = vmatprep.subr.bf16.mxu0 %v3577_v10 }
  0xbc   : > { %727 = vadd.xlane.f32.xlu1 %v666_v56  ;;  %540 = vadd.xlane.f32.xlu0 %v4111_v59  ;;  %v4193_v56 = vsub.f32 %v4016_v12, %v577_v47 }
  0xbd   : > { %v521_v42 = vpop.xlane.xlu0 %520  ;;  %v523_v51 = vpop.xlane.xlu1 %522 }
  0xbe   : > { %3306 = vmatpush1.bf16.msra.mxu1 %v3579_v49  ;;  %1076 = vmatpush1.bf16.msra.mxu0 %v3579_v49  ;;  %v579_v58 = vmul.f32 0.0078125, %v521_v42  ;;  %v580_v0 = vmul.f32 0.0078125, %v523_v51  ;;  %v641_v3 = vmul.f32 %v4193_v56, %v4193_v56 }
  0xbf   : > { %1362 = vmatprep.subr.bf16.mxu1 %v3582_v11 }
  0xc0   : > { %542 = vadd.xlane.f32.xlu1 %v4126_v2  ;;  %729 = vadd.xlane.f32.xlu0 %v667_v63  ;;  %v4203_v63 = vsub.f32 %v4019_v13, %v578_v53  ;;  %v4207_v12 = vsub.f32 %v4024_v14, %v579_v58  ;;  %v4215_v20 = vsub.f32 %v4027_v15, %v580_v0 }
  0xc1   : > { %v525_v54 = vpop.xlane.xlu0 %524  ;;  %v527_v1 = vpop.xlane.xlu1 %526 }
  0xc2   : > { %v581_v4 = vmul.f32 0.0078125, %v525_v54  ;;  %v642_v13 = vmul.f32 %v4203_v63, %v4203_v63  ;;  %v643_v14 = vmul.f32 %v4207_v12, %v4207_v12  ;;  %v582_v23 = vmul.f32 0.0078125, %v527_v1 }
  0xc4   : > { %731 = vadd.xlane.f32.xlu1 %v668_v7  ;;  %544 = vadd.xlane.f32.xlu0 %v4141_v22  ;;  %v4221_v21 = vsub.f32 %v4032_v16, %v581_v4  ;;  %v4228_v15 = vsub.f32 %v4035_v17, %v582_v23 }
  0xc5   : > { %v529_v7 = vpop.xlane.xlu0 %528  ;;  %v531_v8 = vpop.xlane.xlu1 %530 }
  0xc6   : > { %v583_v24 = vmul.f32 0.0078125, %v529_v7  ;;  %v645_v16 = vmul.f32 %v4221_v21, %v4221_v21  ;;  %v584_v29 = vmul.f32 0.0078125, %v531_v8  ;;  %v646_v9 = vmul.f32 %v4228_v15, %v4228_v15 }
  0xc8   : > { %546 = vadd.xlane.f32.xlu1 %v4156_v30  ;;  %669 = vadd.xlane.f32.xlu0 %v637_v27  ;;  %v644_v27 = vmul.f32 %v4215_v20, %v4215_v20  ;;  %v4231_v28 = vsub.f32 %v4040_v18, %v583_v24  ;;  %v4236_v31 = vsub.f32 %v4043_v19, %v584_v29 }
  0xca   : > { %v648_v17 = vmul.f32 %v4236_v31, %v4236_v31 }
  0xcc   : > { %671 = vadd.xlane.f32.xlu1 %v638_v36  ;;  %548 = vadd.xlane.f32.xlu0 %v4171_v40  ;;  %v647_v36 = vmul.f32 %v4231_v28, %v4231_v28 }
  0xd0   : > { %550 = vadd.xlane.f32.xlu1 %v4186_v50  ;;  %673 = vadd.xlane.f32.xlu0 %v639_v45 }
  0xd4   : > { %675 = vadd.xlane.f32.xlu1 %v640_v57  ;;  %552 = vadd.xlane.f32.xlu0 %v4198_v60 }
  0xd8   : > { %554 = vadd.xlane.f32.xlu1 %v4212_v5  ;;  %677 = vadd.xlane.f32.xlu0 %v641_v3 }
  0xdc   : > { %679 = vadd.xlane.f32.xlu1 %v642_v13  ;;  %681 = vadd.xlane.f32.xlu0 %v643_v14 }
  0xe0   : > { %683 = vadd.xlane.f32.xlu1 %v644_v27  ;;  %685 = vadd.xlane.f32.xlu0 %v645_v16 }
  0xe4   : > { %687 = vadd.xlane.f32.xlu1 %v646_v9  ;;  %689 = vadd.xlane.f32.xlu0 %v647_v36  ;;  %v4263_v9 = vld [vmem:[%s5181_s1] ss:$0 sm:$0xff] }
  0xe8   : > { %691 = vadd.xlane.f32.xlu1 %v648_v17 }
 0x135   : > { %v718_v18 = vpop.xlane.xlu0 %717 }
 0x136   : > { %v757_v37 = vmul.f32 0.0078125, %v718_v18 }
 0x138   : > { %v789_v39 = vadd.f32 1e-05, %v757_v37 }
 0x139   : > { %v720_v42 = vpop.xlane.xlu1 %719  ;;  %v533_v10 = vpop.xlane.xlu0 %532 }
 0x13a   : > { %3612 = vrsqrt.f32 %v789_v39  ;;  %v758_v19 = vmul.f32 0.0078125, %v720_v42  ;;  %v585_v45 = vmul.f32 0.0078125, %v533_v10 }
 0x13c   : > { %v790_v47 = vadd.f32 1e-05, %v758_v19  ;;  %v4245_v49 = vsub.f32 %v4065_v35, %v585_v45  ;;  %v4275_v45 = vld [vmem:[%s5182_s2] ss:$0 sm:$0xff] }
 0x13d   : > { %v535_v51 = vpop.xlane.xlu1 %534  ;;  %v722_v53 = vpop.xlane.xlu0 %721 }
 0x13e   : > { %3614 = vrsqrt.f32 %v790_v47  ;;  %v586_v54 = vmul.f32 0.0078125, %v535_v51  ;;  %v759_v11 = vmul.f32 0.0078125, %v722_v53  ;;  %v649_v57 = vmul.f32 %v4245_v49, %v4245_v49 }
 0x140   : > { %v4250_v58 = vsub.f32 %v4075_v41, %v586_v54  ;;  %v791_v0 = vadd.f32 1e-05, %v759_v11  ;;  %693 = vadd.xlane.f32.xlu0 %v649_v57 }
 0x141   : > { %v724_v1 = vpop.xlane.xlu1 %723  ;;  %v537_v3 = vpop.xlane.xlu0 %536 }
 0x142   : > { %3616 = vrsqrt.f32 %v791_v0  ;;  %v760_v4 = vmul.f32 0.0078125, %v724_v1  ;;  %v587_v7 = vmul.f32 0.0078125, %v537_v3  ;;  %v650_v35 = vmul.f32 %v4250_v58, %v4250_v58 }
 0x144   : > { %v3613_v13 = vpop.eup %3612  ;;  %v792_v14 = vadd.f32 1e-05, %v760_v4  ;;  %v4255_v23 = vsub.f32 %v4084_v46, %v587_v7  ;;  %695 = vadd.xlane.f32.xlu1 %v650_v35  ;;  %v3585_v35 = vld [vmem:[%s5185_s5 + $0x14] ss:$8 sps:$4 sm:$0xff]  }
 0x145   : > { %v539_v24 = vpop.xlane.xlu1 %538  ;;  %v726_v8 = vpop.xlane.xlu0 %725  ;;  %v853_v41 = vmul.f32 %v3613_v13, %v4056_v26 }
 0x146   : > { %3618 = vrsqrt.f32 %v792_v14  ;;  %v588_v27 = vmul.f32 0.0078125, %v539_v24  ;;  %v761_v16 = vmul.f32 0.0078125, %v726_v8  ;;  %v651_v29 = vmul.f32 %v4255_v23, %v4255_v23 }
 0x147   : > { %v891_v39 = vmul.f32 %v4263_v9, %v853_v41 }
 0x148   : > { %v3615_v36 = vpop.eup %3614  ;;  %v4266_v46 = vsub.f32 %v4096_v52, %v588_v27  ;;  %v793_v17 = vadd.f32 1e-05, %v761_v16  ;;  %697 = vadd.xlane.f32.xlu0 %v651_v29 }
 0x149   : > { %v728_v18 = vpop.xlane.xlu1 %727  ;;  %v541_v37 = vpop.xlane.xlu0 %540  ;;  %v854_v26 = vmul.f32 %v3615_v36, %v4060_v32  ;;  %v929_v11 = vadd.f32 %v4275_v45, %v891_v39 }
 0x14a   : > { %3620 = vrsqrt.f32 %v793_v17  ;;  %v762_v42 = vmul.f32 0.0078125, %v728_v18  ;;  %v589_v10 = vmul.f32 0.0078125, %v541_v37  ;;  %v652_v19 = vmul.f32 %v4266_v46, %v4266_v46 }
 0x14b   : > { %v892_v52 = vmul.f32 %v4263_v9, %v854_v26 }
 0x14c   : > { %v3617_v47 = vpop.eup %3616  ;;  %v794_v51 = vadd.f32 1e-05, %v762_v42  ;;  %v4279_v53 = vsub.f32 %v4111_v59, %v589_v10  ;;  %699 = vadd.xlane.f32.xlu1 %v652_v19  ;;  %v3580_v59 = vld [vmem:[%s5185_s5] ss:$8 sps:$4 sm:$0xff]  }
 0x14d   : > { %v543_v32 = vpop.xlane.xlu1 %542  ;;  %v730_v54 = vpop.xlane.xlu0 %729  ;;  %v930_v57 = vadd.f32 %v4275_v45, %v892_v52  ;;  %v855_v0 = vmul.f32 %v3617_v47, %v4062_v33 }
 0x14e   : > { %3622 = vrsqrt.f32 %v794_v51  ;;  %v590_v1 = vmul.f32 0.0078125, %v543_v32  ;;  %v763_v3 = vmul.f32 0.0078125, %v730_v54  ;;  %v653_v4 = vmul.f32 %v4279_v53, %v4279_v53 }
 0x14f   : > { %v4289_v7 = vpack.c.bf16 %v930_v57, %v929_v11  ;;  %v893_v27 = vmul.f32 %v4263_v9, %v855_v0  ;;  %v3591_v11 = vld [vmem:[%s5185_s5 + $0x34] ss:$8 sps:$4 sm:$0xff]  }
 0x150   : > { %v3619_v13 = vpop.eup %3618  ;;  %v4295_v14 = vsub.f32 %v4126_v2, %v590_v1  ;;  %v795_v33 = vadd.f32 1e-05, %v763_v3  ;;  %701 = vadd.xlane.f32.xlu0 %v653_v4  ;;  %v3583_v2 = vld [vmem:[%s5185_s5 + $0x10] ss:$8 sps:$4 sm:$0xff]  }
 0x151   : > { %v732_v24 = vpop.xlane.xlu1 %731  ;;  %1214 = vmatmul.mubr.bf16.vlgmr.msra.gmra.mrb[0].mxu1 %v4289_v7  ;;  %v545_v8 = vpop.xlane.xlu0 %544  ;;  %v856_v41 = vmul.f32 %v3619_v13, %v4070_v38  ;;  %v3588_v38 = vld [vmem:[%s5185_s5 + $0x24] ss:$8 sps:$4 sm:$0xff]   ;;  %v931_v10 = vadd.f32 %v4275_v45, %v893_v27 }
 0x152   : > { %3624 = vrsqrt.f32 %v795_v33  ;;  %v764_v16 = vmul.f32 0.0078125, %v732_v24  ;;  %v591_v29 = vmul.f32 0.0078125, %v545_v8  ;;  %1363 = vmatpush1.bf16.msra.mxu1 %v3580_v59  ;;  %v654_v36 = vmul.f32 %v4295_v14, %v4295_v14  ;;  %1223 = vmatprep.mubr.bf16.mxu1 %v3892_v61 }
 0x153   : > { %1364 = vmatprep.subr.bf16.mxu1 %v3585_v35  ;;  %v894_v17 = vmul.f32 %v4263_v9, %v856_v41 }
 0x154   : > { %v3621_v18 = vpop.eup %3620  ;;  %v796_v37 = vadd.f32 1e-05, %v764_v16  ;;  %v4311_v26 = vsub.f32 %v4141_v22, %v591_v29  ;;  %703 = vadd.xlane.f32.xlu1 %v654_v36  ;;  %v3586_v22 = vld [vmem:[%s5185_s5 + $0x20] ss:$8 sps:$4 sm:$0xff]  }
 0x155   : > { %v547_v39 = vpop.xlane.xlu1 %546  ;;  %v670_v42 = vpop.xlane.xlu0 %669  ;;  %v932_v19 = vadd.f32 %v4275_v45, %v894_v17  ;;  %v857_v52 = vmul.f32 %v3621_v18, %v4079_v43 }
 0x156   : > { %3626 = vrsqrt.f32 %v796_v37  ;;  %v592_v47 = vmul.f32 0.0078125, %v547_v39  ;;  %v733_v51 = vmul.f32 0.0078125, %v670_v42  ;;  %1365 = vmatpush1.bf16.msra.mxu1 %v3583_v2  ;;  %v655_v32 = vmul.f32 %v4311_v26, %v4311_v26  ;;  %v3597_v42 = vld [vmem:[%s5185_s5 + $0x54] ss:$8 sps:$4 sm:$0xff]  }
 0x157   : > { %v4321_v54 = vpack.c.bf16 %v932_v19, %v931_v10  ;;  %1366 = vmatprep.subr.bf16.mxu1 %v3588_v38  ;;  %v895_v59 = vmul.f32 %v4263_v9, %v857_v52 }
 0x158   : > { %v3623_v57 = vpop.eup %3622  ;;  %v4327_v43 = vsub.f32 %v4156_v30, %v592_v47  ;;  %v765_v0 = vadd.f32 1e-05, %v733_v51  ;;  %705 = vadd.xlane.f32.xlu0 %v655_v32  ;;  %v3589_v30 = vld [vmem:[%s5185_s5 + $0x30] ss:$8 sps:$4 sm:$0xff]  }
 0x159   : > { %v672_v1 = vpop.xlane.xlu1 %671  ;;  %1224 = vmatmul.mubr.bf16.gmra.mrb[4].mxu1 %v4321_v54  ;;  %v549_v3 = vpop.xlane.xlu0 %548  ;;  %v858_v4 = vmul.f32 %v3623_v57, %v4088_v48  ;;  %v3594_v48 = vld [vmem:[%s5185_s5 + $0x44] ss:$8 sps:$4 sm:$0xff]   ;;  %v933_v36 = vadd.f32 %v4275_v45, %v895_v59 }
 0x15a   : > { %3628 = vrsqrt.f32 %v765_v0  ;;  %v734_v35 = vmul.f32 0.0078125, %v672_v1  ;;  %v593_v13 = vmul.f32 0.0078125, %v549_v3  ;;  %1367 = vmatpush1.bf16.msra.mxu1 %v3586_v22  ;;  %v656_v33 = vmul.f32 %v4327_v43, %v4327_v43  ;;  %1233 = vmatprep.mubr.bf16.mxu1 %v3892_v61 }
 0x15b   : > { %1368 = vmatprep.subr.bf16.mxu1 %v3591_v11  ;;  %v896_v24 = vmul.f32 %v4263_v9, %v858_v4 }
 0x15c   : > { %v3625_v8 = vpop.eup %3624  ;;  %v766_v41 = vadd.f32 1e-05, %v734_v35  ;;  %v4343_v27 = vsub.f32 %v4171_v40, %v593_v13  ;;  %707 = vadd.xlane.f32.xlu1 %v656_v33  ;;  %v3592_v40 = vld [vmem:[%s5185_s5 + $0x40] ss:$8 sps:$4 sm:$0xff]  }
 0x15d   : > { %v551_v16 = vpop.xlane.xlu1 %550  ;;  %v674_v29 = vpop.xlane.xlu0 %673  ;;  %v934_v2 = vadd.f32 %v4275_v45, %v896_v24  ;;  %v859_v17 = vmul.f32 %v3625_v8, %v4103_v55 }
 0x15e   : > { %3630 = vrsqrt.f32 %v766_v41  ;;  %v594_v38 = vmul.f32 0.0078125, %v551_v16  ;;  %v735_v18 = vmul.f32 0.0078125, %v674_v29  ;;  %1369 = vmatpush1.bf16.msra.mxu1 %v3589_v30  ;;  %v657_v37 = vmul.f32 %v4343_v27, %v4343_v27  ;;  %v3603_v16 = vld [vmem:[%s5185_s5 + $0x74] ss:$8 sps:$4 sm:$0xff]  }
 0x15f   : > { %v4353_v39 = vpack.c.bf16 %v934_v2, %v933_v36  ;;  %1370 = vmatprep.subr.bf16.mxu1 %v3594_v48  ;;  %v897_v32 = vmul.f32 %v4263_v9, %v859_v17 }
 0x160   : > { %v3627_v10 = vpop.eup %3626  ;;  %v4359_v55 = vsub.f32 %v4186_v50, %v594_v38  ;;  %v767_v19 = vadd.f32 1e-05, %v735_v18  ;;  %709 = vadd.xlane.f32.xlu0 %v657_v37  ;;  %v3595_v50 = vld [vmem:[%s5185_s5 + $0x50] ss:$8 sps:$4 sm:$0xff]  }
 0x161   : > { %v676_v52 = vpop.xlane.xlu1 %675  ;;  %1234 = vmatmul.mubr.bf16.gmra.mrb[8].mxu1 %v4353_v39  ;;  %v553_v47 = vpop.xlane.xlu0 %552  ;;  %v860_v51 = vmul.f32 %v3627_v10, %v4118_v62  ;;  %v3600_v62 = vld [vmem:[%s5185_s5 + $0x64] ss:$8 sps:$4 sm:$0xff]   ;;  %v935_v13 = vadd.f32 %v4275_v45, %v897_v32 }
 0x162   : > { %3632 = vrsqrt.f32 %v767_v19  ;;  %v736_v22 = vmul.f32 0.0078125, %v676_v52  ;;  %v595_v11 = vmul.f32 0.0078125, %v553_v47  ;;  %1371 = vmatpush1.bf16.msra.mxu1 %v3592_v40  ;;  %v658_v57 = vmul.f32 %v4359_v55, %v4359_v55  ;;  %1243 = vmatprep.mubr.bf16.mxu1 %v3892_v61 }
 0x163   : > { %1372 = vmatprep.subr.bf16.mxu1 %v3597_v42  ;;  %v898_v0 = vmul.f32 %v4263_v9, %v860_v51 }
 0x164   : > { %v3629_v1 = vpop.eup %3628  ;;  %v768_v3 = vadd.f32 1e-05, %v736_v22  ;;  %v4375_v4 = vsub.f32 %v4198_v60, %v595_v11  ;;  %711 = vadd.xlane.f32.xlu1 %v658_v57  ;;  %v3598_v60 = vld [vmem:[%s5185_s5 + $0x60] ss:$8 sps:$4 sm:$0xff]  }
 0x165   : > { %v555_v59 = vpop.xlane.xlu1 %554  ;;  %v678_v35 = vpop.xlane.xlu0 %677  ;;  %v936_v33 = vadd.f32 %v4275_v45, %v898_v0  ;;  %v829_v30 = vmul.f32 %v3629_v1, %v4133_v6 }
 0x166   : > { %3634 = vrsqrt.f32 %v768_v3  ;;  %v596_v24 = vmul.f32 0.0078125, %v555_v59  ;;  %v737_v48 = vmul.f32 0.0078125, %v678_v35  ;;  %1373 = vmatpush1.bf16.msra.mxu1 %v3595_v50  ;;  %v659_v8 = vmul.f32 %v4375_v4, %v4375_v4 }
 0x167   : > { %v4385_v41 = vpack.c.bf16 %v936_v33, %v935_v13  ;;  %1374 = vmatprep.subr.bf16.mxu1 %v3600_v62  ;;  %v867_v18 = vmul.f32 %v4263_v9, %v829_v30 }
 0x168   : > { %v3631_v29 = vpop.eup %3630  ;;  %v4391_v6 = vsub.f32 %v4212_v5, %v596_v24  ;;  %v769_v36 = vadd.f32 1e-05, %v737_v48  ;;  %713 = vadd.xlane.f32.xlu0 %v659_v8  ;;  %v3601_v5 = vld [vmem:[%s5185_s5 + $0x70] ss:$8 sps:$4 sm:$0xff]  }
 0x169   : > { %v680_v2 = vpop.xlane.xlu1 %679  ;;  %1244 = vmatmul.mubr.bf16.gmra.mrb[12].mxu1 %v4385_v41  ;;  %v682_v17 = vpop.xlane.xlu0 %681  ;;  %v830_v38 = vmul.f32 %v3631_v29, %v4148_v25  ;;  %v905_v32 = vadd.f32 %v4275_v45, %v867_v18 }
 0x16a   : > { %3636 = vrsqrt.f32 %v769_v36  ;;  %v738_v37 = vmul.f32 0.0078125, %v680_v2  ;;  %v739_v40 = vmul.f32 0.0078125, %v682_v17  ;;  %1375 = vmatpush1.bf16.msra.mxu1 %v3598_v60  ;;  %v660_v42 = vmul.f32 %v4391_v6, %v4391_v6  ;;  %1394 = vmatprep.mubr.bf16.mxu1 %v3892_v61 }
 0x16b   : > { %1376 = vmatprep.subr.bf16.mxu1 %v3603_v16  ;;  %v868_v10 = vmul.f32 %v4263_v9, %v830_v38  ;;  %v3604_v38 = vld [vmem:[%s5187_s7] sm:$0xff]  }
 0x16c   : > { %v3633_v19 = vpop.eup %3632  ;;  %v770_v25 = vadd.f32 1e-05, %v738_v37  ;;  %v771_v52 = vadd.f32 1e-05, %v739_v40  ;;  %715 = vadd.xlane.f32.xlu1 %v660_v42  ;;  %3243 = vmatprep.subr.bf16.mxu0 %v3604_v38 }
 0x16d   : > { %v684_v47 = vpop.xlane.xlu1 %683  ;;  %v686_v51 = vpop.xlane.xlu0 %685  ;;  %v906_v22 = vadd.f32 %v4275_v45, %v868_v10  ;;  %v831_v11 = vmul.f32 %v3633_v19, %v4163_v34  ;;  %v3605_v19 = vld [vmem:[%s5187_s7 + $0x8] sm:$0xff]  }
 0x16e   : > { %3638 = vrsqrt.f32 %v770_v25  ;;  %v740_v57 = vmul.f32 0.0078125, %v684_v47  ;;  %1377 = vmatpush1.bf16.msra.mxu1 %v3601_v5  ;;  %v741_v1 = vmul.f32 0.0078125, %v686_v51 }
 0x16f   : > { %v4406_v50 = vpack.c.bf16 %v906_v22, %v905_v32  ;;  %3640 = vrsqrt.f32 %v771_v52  ;;  %v869_v35 = vmul.f32 %v4263_v9, %v831_v11  ;;  %v3606_v11 = vld [vmem:[%s5187_s7 + $0x10] sm:$0xff]  }
 0x170   : > { %v3635_v0 = vpop.eup %3634  ;;  %v772_v62 = vadd.f32 1e-05, %v740_v57  ;;  %v773_v30 = vadd.f32 1e-05, %v741_v1 }
 0x171   : > { %v688_v3 = vpop.xlane.xlu1 %687  ;;  %1094 = vmatmul.mubr.bf16.vlgmr.msra.gmra.mrb[0].mxu0 %v4406_v50  ;;  %1395 = vmatmul.mubr.bf16.vlgmr.msra.gmra.mrb[16].mxu1 %v4406_v50  ;;  %v832_v59 = vmul.f32 %v3635_v0, %v4178_v44  ;;  %v690_v48 = vpop.xlane.xlu0 %689  ;;  %v907_v60 = vadd.f32 %v4275_v45, %v869_v35 }
 0x172   : > { %3642 = vrsqrt.f32 %v772_v62  ;;  %v742_v34 = vmul.f32 0.0078125, %v688_v3  ;;  %1103 = vmatprep.mubr.bf16.mxu0 %v3892_v61  ;;  %1404 = vmatprep.mubr.bf16.mxu1 %v3892_v61  ;;  %v743_v17 = vmul.f32 0.0078125, %v690_v48 }
 0x173   : > { %v870_v13 = vmul.f32 %v4263_v9, %v832_v59  ;;  %3244 = vmatpush3.bf16.msra.mxu0 %v3604_v38 }
 0x174   : > { %v3637_v33 = vpop.eup %3636  ;;  %v774_v24 = vadd.f32 1e-05, %v742_v34  ;;  %v775_v10 = vadd.f32 1e-05, %v743_v17  ;;  %3245 = vmatprep.subr.bf16.mxu0 %v3605_v19 }
 0x175   : > { %v692_v8 = vpop.xlane.xlu1 %691  ;;  %v908_v16 = vadd.f32 %v4275_v45, %v870_v13  ;;  %v833_v44 = vmul.f32 %v3637_v33, %v4193_v56  ;;  %v3608_v13 = vld [vmem:[%s5187_s7 + $0x20] sm:$0xff]  }
 0x176   : > { %3644 = vrsqrt.f32 %v774_v24  ;;  %v744_v29 = vmul.f32 0.0078125, %v692_v8 }
 0x177   : > { %v4418_v36 = vpack.c.bf16 %v908_v16, %v907_v60  ;;  %3646 = vrsqrt.f32 %v773_v30  ;;  %v871_v37 = vmul.f32 %v4263_v9, %v833_v44  ;;  %3246 = vmatpush3.bf16.msra.mxu0 %v3605_v19  ;;  %v3610_v44 = vld [vmem:[%s5187_s7 + $0x30] sm:$0xff]  }
 0x178   : > { %v3639_v2 = vpop.eup %3638  ;;  %v776_v40 = vadd.f32 1e-05, %v744_v29  ;;  %3247 = vmatprep.subr.bf16.mxu0 %v3606_v11 }
 0x179   : > { %1104 = vmatmul.mubr.bf16.gmra.mrb[4].mxu0 %v4418_v36  ;;  %1405 = vmatmul.mubr.bf16.gmra.mrb[20].mxu1 %v4418_v36  ;;  %v834_v18 = vmul.f32 %v3639_v2, %v4203_v63  ;;  %v3641_v56 = vpop.eup %3640  ;;  %v909_v63 = vadd.f32 %v4275_v45, %v871_v37 }
 0x17a   : > { %1113 = vmatprep.mubr.bf16.mxu0 %v3892_v61  ;;  %1414 = vmatprep.mubr.bf16.mxu1 %v3892_v61  ;;  %v835_v52 = vmul.f32 %v3641_v56, %v4207_v12  ;;  %3648 = vrsqrt.f32 %v776_v40 }
 0x17b   : > { %v872_v42 = vmul.f32 %v4263_v9, %v834_v18  ;;  %3650 = vrsqrt.f32 %v775_v10  ;;  %3248 = vmatpush3.bf16.msra.mxu0 %v3606_v11 }
 0x17c   : > { %v3643_v5 = vpop.eup %3642  ;;  %v873_v12 = vmul.f32 %v4263_v9, %v835_v52 }
 0x17d   : > { %v910_v25 = vadd.f32 %v4275_v45, %v872_v42  ;;  %v836_v47 = vmul.f32 %v3643_v5, %v4215_v20  ;;  %v3607_v20 = vld [vmem:[%s5187_s7 + $0x18] sm:$0xff]  }
 0x17e   : > { %v911_v1 = vadd.f32 %v4275_v45, %v873_v12  ;;  %3249 = vmatprep.subr.bf16.mxu0 %v3607_v20 }
 0x17f   : > { %v4437_v51 = vpack.c.bf16 %v910_v25, %v909_v63  ;;  %v874_v32 = vmul.f32 %v4263_v9, %v836_v47  ;;  %3250 = vmatpush3.bf16.msra.mxu0 %v3607_v20 }
 0x180   : > { %v3645_v22 = vpop.eup %3644  ;;  %3251 = vmatprep.subr.bf16.mxu0 %v3608_v13 }
 0x181   : > { %1114 = vmatmul.mubr.bf16.gmra.mrb[8].mxu0 %v4437_v51  ;;  %1415 = vmatmul.mubr.bf16.gmra.mrb[24].mxu1 %v4437_v51  ;;  %v3647_v57 = vpop.eup %3646  ;;  %v912_v0 = vadd.f32 %v4275_v45, %v874_v32  ;;  %v838_v62 = vmul.f32 %v3645_v22, %v4228_v15 }
 0x182   : > { %1123 = vmatprep.mubr.bf16.mxu0 %v3892_v61  ;;  %1424 = vmatprep.mubr.bf16.mxu1 %v3892_v61  ;;  %v837_v3 = vmul.f32 %v3647_v57, %v4221_v21  ;;  %v3609_v21 = vld [vmem:[%s5187_s7 + $0x28] sm:$0xff]  }
 0x183   : > { %v4455_v59 = vpack.c.bf16 %v912_v0, %v911_v1  ;;  %v876_v35 = vmul.f32 %v4263_v9, %v838_v62  ;;  %3252 = vmatpush3.bf16.msra.mxu0 %v3608_v13 }
 0x184   : > { %v3649_v34 = vpop.eup %3648  ;;  %v875_v15 = vmul.f32 %v4263_v9, %v837_v3  ;;  %3253 = vmatprep.subr.bf16.mxu0 %v3609_v21 }
 0x185   : > { %v3651_v33 = vpop.eup %3650  ;;  %v914_v30 = vadd.f32 %v4275_v45, %v876_v35  ;;  %v840_v24 = vmul.f32 %v3649_v34, %v4236_v31 }
 0x186   : > { %v913_v48 = vadd.f32 %v4275_v45, %v875_v15  ;;  %v839_v8 = vmul.f32 %v3651_v33, %v4231_v28  ;;  %v3611_v28 = vld [vmem:[%s5187_s7 + $0x38] sm:$0xff]  }
 0x187   : > { %v878_v16 = vmul.f32 %v4263_v9, %v840_v24  ;;  %3254 = vmatpush3.bf16.msra.mxu0 %v3609_v21 }
 0x188   : > { %v4473_v60 = vpack.c.bf16 %v914_v30, %v913_v48  ;;  %v877_v31 = vmul.f32 %v4263_v9, %v839_v8  ;;  %3255 = vmatprep.subr.bf16.mxu0 %v3610_v44 }
 0x189   : > { %1124 = vmatmul.mubr.bf16.gmra.mrb[12].mxu0 %v4455_v59  ;;  %1425 = vmatmul.mubr.bf16.gmra.mrb[28].mxu1 %v4455_v59  ;;  %v916_v29 = vadd.f32 %v4275_v45, %v878_v16 }
 0x18a   : > { %1133 = vmatprep.mubr.bf16.mxu0 %v3892_v61  ;;  %1434 = vmatprep.mubr.bf16.mxu1 %v3892_v61  ;;  %v915_v2 = vadd.f32 %v4275_v45, %v877_v31 }
 0x18b   : > { %3256 = vmatpush3.bf16.msra.mxu0 %v3610_v44 }
 0x18c   : > { %3257 = vmatprep.subr.bf16.mxu0 %v3611_v28  ;;  %v4489_v17 = vpack.c.bf16 %v916_v29, %v915_v2 }
 0x18f   : > { %3258 = vmatpush3.bf16.msra.mxu0 %v3611_v28 }
 0x191   : > { %1134 = vmatmul.mubr.bf16.gmra.mrb[16].mxu0 %v4473_v60  ;;  %1435 = vmatmul.mubr.bf16.gmra.mrb[32].mxu1 %v4473_v60 }
 0x192   : > { %1143 = vmatprep.mubr.bf16.mxu0 %v3892_v61  ;;  %1444 = vmatprep.mubr.bf16.mxu1 %v3892_v61 }
 0x199   : > { %1144 = vmatmul.mubr.bf16.gmra.mrb[20].mxu0 %v4489_v17  ;;  %1445 = vmatmul.mubr.bf16.gmra.mrb[36].mxu1 %v4489_v17 }
 0x19a   : > { %1153 = vmatprep.mubr.bf16.mxu0 %v3892_v61  ;;  %1454 = vmatprep.mubr.bf16.mxu1 %v3892_v61 }
 0x1cd   : > { %v694_v38 = vpop.xlane.xlu0 %693 }
 0x1ce   : > { %v745_v18 = vmul.f32 0.0078125, %v694_v38 }
 0x1d0   : > { %v777_v37 = vadd.f32 1e-05, %v745_v18 }
 0x1d1   : > { %v696_v56 = vpop.xlane.xlu1 %695 }
 0x1d2   : > { %3652 = vrsqrt.f32 %v777_v37  ;;  %v746_v40 = vmul.f32 0.0078125, %v696_v56 }
 0x1d4   : > { %v778_v42 = vadd.f32 1e-05, %v746_v40 }
 0x1d5   : > { %v698_v5 = vpop.xlane.xlu0 %697 }
 0x1d6   : > { %3654 = vrsqrt.f32 %v778_v42  ;;  %v747_v10 = vmul.f32 0.0078125, %v698_v5 }
 0x1d8   : > { %v779_v19 = vadd.f32 1e-05, %v747_v10 }
 0x1d9   : > { %v700_v63 = vpop.xlane.xlu1 %699 }
 0x1da   : > { %3656 = vrsqrt.f32 %v779_v19  ;;  %v748_v25 = vmul.f32 0.0078125, %v700_v63 }
 0x1dc   : > { %v3653_v52 = vpop.eup %3652  ;;  %v780_v47 = vadd.f32 1e-05, %v748_v25 }
 0x1dd   : > { %v702_v32 = vpop.xlane.xlu0 %701  ;;  %v841_v22 = vmul.f32 %v3653_v52, %v4245_v49 }
 0x1de   : > { %3658 = vrsqrt.f32 %v780_v47  ;;  %v749_v11 = vmul.f32 0.0078125, %v702_v32 }
 0x1df   : > { %v879_v62 = vmul.f32 %v4263_v9, %v841_v22 }
 0x1e0   : > { %v3655_v12 = vpop.eup %3654  ;;  %v781_v20 = vadd.f32 1e-05, %v749_v11 }
 0x1e1   : > { %v704_v57 = vpop.xlane.xlu1 %703  ;;  %v842_v0 = vmul.f32 %v3655_v12, %v4250_v58  ;;  %v917_v15 = vadd.f32 %v4275_v45, %v879_v62 }
 0x1e2   : > { %3660 = vrsqrt.f32 %v781_v20  ;;  %v750_v1 = vmul.f32 0.0078125, %v704_v57 }
 0x1e3   : > { %v880_v3 = vmul.f32 %v4263_v9, %v842_v0 }
 0x1e4   : > { %v3657_v35 = vpop.eup %3656  ;;  %v782_v34 = vadd.f32 1e-05, %v750_v1 }
 0x1e5   : > { %v706_v13 = vpop.xlane.xlu0 %705  ;;  %v918_v49 = vadd.f32 %v4275_v45, %v880_v3  ;;  %v843_v21 = vmul.f32 %v3657_v35, %v4255_v23 }
 0x1e6   : > { %3662 = vrsqrt.f32 %v782_v34  ;;  %v751_v33 = vmul.f32 0.0078125, %v706_v13 }
 0x1e7   : > { %v4502_v30 = vpack.c.bf16 %v918_v49, %v917_v15  ;;  %v881_v16 = vmul.f32 %v4263_v9, %v843_v21 }
 0x1e8   : > { %v3659_v58 = vpop.eup %3658  ;;  %v783_v24 = vadd.f32 1e-05, %v751_v33 }
 0x1e9   : > { %v708_v48 = vpop.xlane.xlu1 %707  ;;  %1154 = vmatmul.mubr.bf16.gmra.mrb[24].mxu0 %v4502_v30  ;;  %1455 = vmatmul.mubr.bf16.gmra.mrb[40].mxu1 %v4502_v30  ;;  %v844_v8 = vmul.f32 %v3659_v58, %v4266_v46  ;;  %v919_v2 = vadd.f32 %v4275_v45, %v881_v16 }
 0x1ea   : > { %3664 = vrsqrt.f32 %v783_v24  ;;  %v752_v44 = vmul.f32 0.0078125, %v708_v48  ;;  %1163 = vmatprep.mubr.bf16.mxu0 %v3892_v61  ;;  %1464 = vmatprep.mubr.bf16.mxu1 %v3892_v61 }
 0x1eb   : > { %v882_v23 = vmul.f32 %v4263_v9, %v844_v8 }
 0x1ec   : > { %v3661_v31 = vpop.eup %3660  ;;  %v784_v28 = vadd.f32 1e-05, %v752_v44 }
 0x1ed   : > { %v710_v29 = vpop.xlane.xlu0 %709  ;;  %v920_v38 = vadd.f32 %v4275_v45, %v882_v23  ;;  %v845_v18 = vmul.f32 %v3661_v31, %v4279_v53 }
 0x1ee   : > { %3666 = vrsqrt.f32 %v784_v28  ;;  %v753_v46 = vmul.f32 0.0078125, %v710_v29 }
 0x1ef   : > { %v4514_v37 = vpack.c.bf16 %v920_v38, %v919_v2  ;;  %v883_v10 = vmul.f32 %v4263_v9, %v845_v18  ;;  %v969_v2 = vld [vmem:[%s5184_s4] sm:$0x3] }
 0x1f0   : > { %v3663_v56 = vpop.eup %3662  ;;  %v785_v40 = vadd.f32 1e-05, %v753_v46 }
 0x1f1   : > { %v712_v42 = vpop.xlane.xlu1 %711  ;;  %1164 = vmatmul.mubr.bf16.gmra.mrb[28].mxu0 %v4514_v37  ;;  %1465 = vmatmul.mubr.bf16.gmra.mrb[44].mxu1 %v4514_v37  ;;  %v846_v5 = vmul.f32 %v3663_v56, %v4295_v14  ;;  %v921_v47 = vadd.f32 %v4275_v45, %v883_v10 }
 0x1f2   : > { %3668 = vrsqrt.f32 %v785_v40  ;;  %v754_v19 = vmul.f32 0.0078125, %v712_v42  ;;  %1173 = vmatprep.mubr.bf16.mxu0 %v3892_v61  ;;  %1474 = vmatprep.mubr.bf16.mxu1 %v3892_v61 }
 0x1f3   : > { %v884_v53 = vmul.f32 %v4263_v9, %v846_v5 }
 0x1f4   : > { %v3665_v63 = vpop.eup %3664  ;;  %v786_v25 = vadd.f32 1e-05, %v754_v19 }
 0x1f5   : > { %v714_v52 = vpop.xlane.xlu0 %713  ;;  %v922_v32 = vadd.f32 %v4275_v45, %v884_v53  ;;  %v847_v22 = vmul.f32 %v3665_v63, %v4311_v26 }
 0x1f6   : > { %3670 = vrsqrt.f32 %v786_v25  ;;  %v755_v14 = vmul.f32 0.0078125, %v714_v52 }
 0x1f7   : > { %v4526_v11 = vpack.c.bf16 %v922_v32, %v921_v47  ;;  %v885_v62 = vmul.f32 %v4263_v9, %v847_v22 }
 0x1f8   : > { %v3667_v12 = vpop.eup %3666  ;;  %v787_v20 = vadd.f32 1e-05, %v755_v14 }
 0x1f9   : > { %v716_v57 = vpop.xlane.xlu1 %715  ;;  %1174 = vmatmul.mubr.bf16.gmra.mrb[32].mxu0 %v4526_v11  ;;  %1475 = vmatmul.mubr.bf16.gmra.mrb[48].mxu1 %v4526_v11  ;;  %v848_v0 = vmul.f32 %v3667_v12, %v4327_v43  ;;  %v923_v34 = vadd.f32 %v4275_v45, %v885_v62 }
 0x1fa   : > { %3672 = vrsqrt.f32 %v787_v20  ;;  %v756_v1 = vmul.f32 0.0078125, %v716_v57  ;;  %1183 = vmatprep.mubr.bf16.mxu0 %v3892_v61  ;;  %1484 = vmatprep.mubr.bf16.mxu1 %v3892_v61 }
 0x1fb   : > { %v886_v26 = vmul.f32 %v4263_v9, %v848_v0 }
 0x1fc   : > { %v3669_v3 = vpop.eup %3668  ;;  %v788_v35 = vadd.f32 1e-05, %v756_v1 }
 0x1fd   : > { %v924_v13 = vadd.f32 %v4275_v45, %v886_v26  ;;  %v849_v15 = vmul.f32 %v3669_v3, %v4343_v27 }
 0x1fe   : > { %3674 = vrsqrt.f32 %v788_v35 }
 0x1ff   : > { %v4538_v43 = vpack.c.bf16 %v924_v13, %v923_v34  ;;  %v887_v33 = vmul.f32 %v4263_v9, %v849_v15 }
 0x200   : > { %v3671_v49 = vpop.eup %3670 }
 0x201   : > { %1184 = vmatmul.mubr.bf16.gmra.mrb[36].mxu0 %v4538_v43  ;;  %1485 = vmatmul.mubr.bf16.gmra.mrb[52].mxu1 %v4538_v43  ;;  %v850_v21 = vmul.f32 %v3671_v49, %v4359_v55  ;;  %v925_v27 = vadd.f32 %v4275_v45, %v887_v33 }
 0x202   : > { %1193 = vmatprep.mubr.bf16.mxu0 %v3892_v61  ;;  %1494 = vmatprep.mubr.bf16.mxu1 %v3892_v61 }
 0x203   : > { %v888_v58 = vmul.f32 %v4263_v9, %v850_v21 }
 0x204   : > { %v3673_v24 = vpop.eup %3672 }
 0x205   : > { %v926_v48 = vadd.f32 %v4275_v45, %v888_v58  ;;  %v851_v8 = vmul.f32 %v3673_v24, %v4375_v4 }
 0x207   : > { %v4550_v16 = vpack.c.bf16 %v926_v48, %v925_v27  ;;  %v889_v23 = vmul.f32 %v4263_v9, %v851_v8 }
 0x208   : > { %v3675_v44 = vpop.eup %3674 }
 0x209   : > { %1194 = vmatmul.mubr.bf16.gmra.mrb[40].mxu0 %v4550_v16  ;;  %1495 = vmatmul.mubr.bf16.gmra.mrb[56].mxu1 %v4550_v16  ;;  %v852_v55 = vmul.f32 %v3675_v44, %v4391_v6  ;;  %v927_v28 = vadd.f32 %v4275_v45, %v889_v23  ;;  %v971_v6 = vlaneseq }
 0x20a   : > { %1203 = vmatprep.mubr.bf16.mxu0 %v3892_v61  ;;  %1504 = vmatprep.mubr.bf16.mxu1 %v3892_v61 }
 0x20b   : > { %v890_v31 = vmul.f32 %v4263_v9, %v852_v55  ;;  %v4571_v9 = vshrl.u32 %v971_v6, 7 }
 0x20d   : > { %v928_v4 = vadd.f32 %v4275_v45, %v890_v31  ;;  %v977_v45 = vsub.s32 1, %v4571_v9  ;;  %v973_v19 = vsub.s32 0, %v4571_v9 }
 0x20f   : > { %v4561_v29 = vpack.c.bf16 %v928_v4, %v927_v28 }
 0x211   : > { %1204 = vmatmul.mubr.bf16.gmra.mrb[44].mxu0 %v4561_v29  ;;  %1505 = vmatmul.mubr.bf16.gmra.mrb[60].mxu1 %v4561_v29 }
 0x212   : > { %3259 = vmatprep.mubr.bf16.mxu0 %v4406_v50  ;;  %1514 = vmatprep.mubr.bf16.mxu1 %v3892_v61  ;;  %v4582_v50 = vrot.slane %v969_v2, %v977_v45 }
 0x219   : > { %1515 = vmatmul.mubr.bf16.gmra.mrb[64].mxu1 %v4289_v7  ;;  %3260 = vmatmul.mubr.bf16.vlgmr.msra.gmra.mrb[48].mxu0 %v4418_v36 }
 0x21a   : > { %3263 = vmatprep.mubr.bf16.mxu0 %v4437_v51  ;;  %1524 = vmatprep.mubr.bf16.mxu1 %v3892_v61 }
 0x221   : > { %1525 = vmatmul.mubr.bf16.gmra.mrb[68].mxu1 %v4321_v54  ;;  %3264 = vmatmul.mubr.bf16.gmra.mrb[52].mxu0 %v4455_v59 }
 0x222   : > { %3267 = vmatprep.mubr.bf16.mxu0 %v4473_v60  ;;  %1534 = vmatprep.mubr.bf16.mxu1 %v3892_v61 }
 0x224   : > { %v1215_v36 = vpop.f32.mrb[0].mxu1 }
 0x225   : > { %v1217_v51 = vpop.f32.mrb[1].mxu1 }
 0x226   : > { %v1218_v38 = vadd.f32 %v1217_v51, %v4582_v50  ;;  %v1219_v18 = vpop.f32.mrb[2].mxu1 }
 0x227   : > { %v1221_v46 = vpop.f32.mrb[3].mxu1 }
 0x228   : > { %v1939_v56 = vmul.f32 0.5, %v1218_v38  ;;  %v1222_v40 = vadd.f32 %v1221_v46, %v4582_v50 }
 0x229   : > { %1535 = vmatmul.mubr.bf16.gmra.mrb[72].mxu1 %v4353_v39  ;;  %3268 = vmatmul.mubr.bf16.gmra.mrb[56].mxu0 %v4489_v17 }
 0x22a   : > { %3676 = vtanh.f32 %v1939_v56  ;;  %v1940_v59 = vmul.f32 0.5, %v1222_v40  ;;  %3271 = vmatprep.mubr.bf16.mxu0 %v4502_v30  ;;  %1544 = vmatprep.mubr.bf16.mxu1 %v3892_v61  ;;  %v4599_v61 = vrot.slane %v969_v2, %v973_v19 }
 0x22c   : > { %3678 = vtanh.f32 %v1940_v59  ;;  %v1225_v60 = vpop.f32.mrb[4].mxu1  ;;  %v1216_v20 = vadd.f32 %v1215_v36, %v4599_v61  ;;  %v1220_v1 = vadd.f32 %v1219_v18, %v4599_v61 }
 0x22d   : > { %v1227_v42 = vpop.f32.mrb[5].mxu1 }
 0x22e   : > { %v1228_v5 = vadd.f32 %v1227_v42, %v4582_v50  ;;  %v1229_v10 = vpop.f32.mrb[6].mxu1 }
 0x22f   : > { %v1231_v53 = vpop.f32.mrb[7].mxu1  ;;  %v1230_v23 = vadd.f32 %v1229_v10, %v4599_v61 }
 0x230   : > { %v1941_v63 = vmul.f32 0.5, %v1228_v5  ;;  %v1232_v25 = vadd.f32 %v1231_v53, %v4582_v50 }
 0x231   : > { %1545 = vmatmul.mubr.bf16.gmra.mrb[76].mxu1 %v4385_v41  ;;  %3272 = vmatmul.mubr.bf16.gmra.mrb[60].mxu0 %v4514_v37 }
 0x232   : > { %3680 = vtanh.f32 %v1941_v63  ;;  %v1942_v17 = vmul.f32 0.5, %v1232_v25  ;;  %3275 = vmatprep.mubr.bf16.mxu0 %v4526_v11 }
 0x234   : > { %v3677_v30 = vpop.eup %3676  ;;  %3682 = vtanh.f32 %v1942_v17  ;;  %v1235_v52 = vpop.f32.mrb[8].mxu1 }
 0x235   : > { %v2003_v47 = vadd.f32 1.0, %v3677_v30  ;;  %v1237_v32 = vpop.f32.mrb[9].mxu1 }
 0x236   : > { %v3679_v22 = vpop.eup %3678  ;;  %v1238_v14 = vadd.f32 %v1237_v32, %v4582_v50  ;;  %v1239_v12 = vpop.f32.mrb[10].mxu1 }
 0x237   : > { %v2035_v37 = vmul.f32 0.5, %v2003_v47  ;;  %v2004_v57 = vadd.f32 1.0, %v3679_v22  ;;  %v1241_v0 = vpop.f32.mrb[11].mxu1  ;;  %v1240_v47 = vadd.f32 %v1239_v12, %v4599_v61 }
 0x238   : > { %v1943_v62 = vmul.f32 0.5, %v1238_v14  ;;  %v1242_v11 = vadd.f32 %v1241_v0, %v4582_v50 }
 0x239   : > { %v2036_v26 = vmul.f32 0.5, %v2004_v57  ;;  %3276 = vmatmul.mubr.bf16.gmra.mrb[64].mxu0 %v4538_v43  ;;  %v4606_v3 = vmul.f32 %v2035_v37, %v1216_v20  ;;  %v1226_v43 = vadd.f32 %v1225_v60, %v4599_v61  ;;  %v1236_v60 = vadd.f32 %v1235_v52, %v4599_v61 }
 0x23a   : > { %3684 = vtanh.f32 %v1943_v62  ;;  %v1944_v35 = vmul.f32 0.5, %v1242_v11  ;;  %3279 = vmatprep.mubr.bf16.mxu0 %v4550_v16  ;;  %v4620_v16 = vld [vmem:[%s5186_s6] sm:$0x3] }
 0x23b   : > { %v4609_v34 = vmul.f32 %v2036_v26, %v1220_v1  ;;  %v4631_v6 = vrot.slane %v4620_v16, %v977_v45 }
 0x23c   : > { %v3681_v13 = vpop.eup %3680  ;;  %3686 = vtanh.f32 %v1944_v35  ;;  %v4611_v15 = vpop.f32.mrb[12].mxu1 }
 0x23d   : > { %v2005_v49 = vadd.f32 1.0, %v3681_v13  ;;  %v1247_v21 = vpop.f32.mrb[13].mxu1  ;;  %v1246_v13 = vadd.f32 %v4611_v15, %v4599_v61 }
 0x23e   : > { %v3683_v33 = vpop.eup %3682  ;;  %v1248_v58 = vadd.f32 %v1247_v21, %v4582_v50  ;;  %v4614_v24 = vpop.f32.mrb[14].mxu1 }
 0x23f   : > { %v2037_v27 = vmul.f32 0.5, %v2005_v49  ;;  %v2006_v48 = vadd.f32 1.0, %v3683_v33  ;;  %v1251_v8 = vpop.f32.mrb[15].mxu1 }
 0x240   : > { %v1945_v44 = vmul.f32 0.5, %v1248_v58  ;;  %v1252_v55 = vadd.f32 %v1251_v8, %v4582_v50 }
 0x241   : > { %v2038_v31 = vmul.f32 0.5, %v2006_v48  ;;  %3280 = vmatmul.mubr.bf16.gmra.mrb[68].mxu0 %v4561_v29  ;;  %v4625_v28 = vmul.f32 %v2037_v27, %v1226_v43 }
 0x242   : > { %3688 = vtanh.f32 %v1945_v44  ;;  %v1946_v4 = vmul.f32 0.5, %v1252_v55  ;;  %3283 = vmatprep.mubr.bf16.mxu0 %v4289_v7  ;;  %v1250_v44 = vadd.f32 %v4614_v24, %v4599_v61 }
 0x243   : > { %5202 = vst [vmem:[#allocation2_spill] sm:$0xff] %v4625_v28  ;;  %v4633_v2 = vmul.f32 %v2038_v31, %v1230_v23 }
 0x244   : > { %v3685_v36 = vpop.eup %3684  ;;  %3690 = vtanh.f32 %v1946_v4  ;;  %v4635_v51 = vpop.f32.mrb[0].mxu0  ;;  %v4677_v4 = vrot.slane %v4620_v16, %v973_v19 }
 0x245   : > { %5203 = vst [vmem:[#allocation3_spill] sm:$0xff] %v4633_v2  ;;  %v4637_v38 = vpop.f32.mrb[16].mxu1  ;;  %v2007_v29 = vadd.f32 1.0, %v3685_v36  ;;  %v1097_v18 = vpop.f32.mrb[1].mxu0  ;;  %v1096_v9 = vadd.f32 %v4635_v51, %v4599_v61 }
 0x246   : > { %v1398_v46 = vpop.f32.mrb[17].mxu1  ;;  %v3687_v56 = vpop.eup %3686  ;;  %v1098_v40 = vadd.f32 %v1097_v18, %v4582_v50 }
 0x247   : > { %v1399_v7 = vadd.f32 %v1398_v46, %v4631_v6  ;;  %v4641_v59 = vpop.f32.mrb[2].mxu0  ;;  %v4643_v45 = vpop.f32.mrb[18].mxu1  ;;  %v2039_v42 = vmul.f32 0.5, %v2007_v29  ;;  %v2008_v5 = vadd.f32 1.0, %v3687_v56 }
 0x248   : > { %v1101_v10 = vpop.f32.mrb[3].mxu0  ;;  %v1402_v53 = vpop.f32.mrb[19].mxu1  ;;  %v1915_v63 = vmul.f32 0.5, %v1098_v40 }
 0x249   : > { %v2075_v25 = vmul.f32 0.5, %v1399_v7  ;;  %v1102_v17 = vadd.f32 %v1101_v10, %v4582_v50  ;;  %v1403_v30 = vadd.f32 %v1402_v53, %v4631_v6  ;;  %v2040_v32 = vmul.f32 0.5, %v2008_v5  ;;  %3284 = vmatmul.mubr.bf16.gmra.mrb[72].mxu0 %v4321_v54 }
 0x24a   : > { %v4650_v22 = vmul.f32 %v2039_v42, %v1236_v60  ;;  %3692 = vtanh.f32 %v1915_v63  ;;  %3287 = vmatprep.mubr.bf16.mxu0 %v4353_v39  ;;  %v1397_v53 = vadd.f32 %v4637_v38, %v4677_v4  ;;  %v1401_v38 = vadd.f32 %v4643_v45, %v4677_v4 }
 0x24b   : > { %v1916_v14 = vmul.f32 0.5, %v1102_v17  ;;  %v2076_v52 = vmul.f32 0.5, %v1403_v30  ;;  %3694 = vtanh.f32 %v2075_v25  ;;  %v4653_v20 = vmul.f32 %v2040_v32, %v1240_v47 }
 0x24c   : > { %5204 = vst [vmem:[#allocation4_spill] sm:$0xff] %v4650_v22  ;;  %v3689_v37 = vpop.eup %3688  ;;  %v4655_v57 = vpop.f32.mrb[4].mxu0  ;;  %v1100_v25 = vadd.f32 %v4641_v59, %v4599_v61 }
 0x24d   : > { %5205 = vst [vmem:[#allocation5_spill] sm:$0xff] %v4653_v20  ;;  %3696 = vtanh.f32 %v1916_v14  ;;  %v4657_v0 = vpop.f32.mrb[20].mxu1  ;;  %v2009_v12 = vadd.f32 1.0, %v3689_v37  ;;  %v1107_v62 = vpop.f32.mrb[5].mxu0  ;;  %v1106_v45 = vadd.f32 %v4655_v57, %v4599_v61 }
 0x24e   : > { %3698 = vtanh.f32 %v2076_v52  ;;  %v1408_v54 = vpop.f32.mrb[21].mxu1  ;;  %v3691_v11 = vpop.eup %3690  ;;  %v1108_v1 = vadd.f32 %v1107_v62, %v4582_v50 }
 0x24f   : > { %v1409_v26 = vadd.f32 %v1408_v54, %v4631_v6  ;;  %v4661_v35 = vpop.f32.mrb[6].mxu0  ;;  %v4663_v39 = vpop.f32.mrb[22].mxu1  ;;  %v2041_v49 = vmul.f32 0.5, %v2009_v12  ;;  %v2010_v21 = vadd.f32 1.0, %v3691_v11 }
 0x250   : > { %v1111_v33 = vpop.f32.mrb[7].mxu0  ;;  %v1412_v58 = vpop.f32.mrb[23].mxu1  ;;  %v1917_v43 = vmul.f32 0.5, %v1108_v1 }
 0x251   : > { %v2077_v27 = vmul.f32 0.5, %v1409_v26  ;;  %v1112_v48 = vadd.f32 %v1111_v33, %v4582_v50  ;;  %v1413_v8 = vadd.f32 %v1412_v58, %v4631_v6  ;;  %v2042_v55 = vmul.f32 0.5, %v2010_v21  ;;  %3288 = vmatmul.mubr.bf16.gmra.mrb[76].mxu0 %v4385_v41 }
 0x252   : > { %v4672_v23 = vmul.f32 %v2041_v49, %v1246_v13  ;;  %3700 = vtanh.f32 %v1917_v43 }
 0x253   : > { %v1918_v15 = vmul.f32 0.5, %v1112_v48  ;;  %v2078_v31 = vmul.f32 0.5, %v1413_v8  ;;  %3702 = vtanh.f32 %v2077_v27  ;;  %v4679_v36 = vmul.f32 %v2042_v55, %v1250_v44 }
 0x254   : > { %5206 = vst [vmem:[#allocation6_spill] sm:$0xff] %v4672_v23  ;;  %v3693_v29 = vpop.eup %3692  ;;  %v4681_v18 = vpop.f32.mrb[8].mxu0 }
 0x255   : > { %3704 = vtanh.f32 %v1918_v15  ;;  %v4683_v24 = vpop.f32.mrb[24].mxu1  ;;  %v3695_v41 = vpop.eup %3694  ;;  %v1979_v46 = vadd.f32 1.0, %v3693_v29 }
 0x256   : > { %3706 = vtanh.f32 %v2078_v31  ;;  %v1117_v56 = vpop.f32.mrb[9].mxu0  ;;  %v1418_v40 = vpop.f32.mrb[25].mxu1  ;;  %v2139_v19 = vadd.f32 1.0, %v3695_v41 }
 0x257   : > { %v3697_v7 = vpop.eup %3696  ;;  %v1118_v16 = vadd.f32 %v1117_v56, %v4582_v50  ;;  %v1419_v60 = vadd.f32 %v1418_v40, %v4631_v6  ;;  %v4689_v42 = vpop.f32.mrb[10].mxu0  ;;  %v2011_v63 = vmul.f32 0.5, %v1979_v46  ;;  %v1407_v56 = vadd.f32 %v4657_v0, %v4677_v4 }
 0x258   : > { %v4691_v5 = vpop.f32.mrb[26].mxu1  ;;  %v3699_v10 = vpop.eup %3698  ;;  %v1980_v17 = vadd.f32 1.0, %v3697_v7  ;;  %v2171_v47 = vmul.f32 0.5, %v2139_v19  ;;  %v1110_v40 = vadd.f32 %v4661_v35, %v4599_v61  ;;  %v1411_v0 = vadd.f32 %v4663_v39, %v4677_v4 }
 0x259   : > { %v1121_v30 = vpop.f32.mrb[11].mxu0  ;;  %v1422_v51 = vpop.f32.mrb[27].mxu1  ;;  %v2140_v32 = vadd.f32 1.0, %v3699_v10  ;;  %v1919_v14 = vmul.f32 0.5, %v1118_v16  ;;  %v2079_v52 = vmul.f32 0.5, %v1419_v60  ;;  %v4699_v54 = vmul.f32 %v2011_v63, %v1096_v9 }
 0x25a   : > { %v2012_v37 = vmul.f32 0.5, %v1980_v17  ;;  %v1122_v12 = vadd.f32 %v1121_v30, %v4582_v50  ;;  %v1423_v62 = vadd.f32 %v1422_v51, %v4631_v6  ;;  %v4703_v59 = vmul.f32 %v2171_v47, %v1397_v53 }
 0x25b   : > { %v2172_v11 = vmul.f32 0.5, %v2140_v32  ;;  %3708 = vtanh.f32 %v1919_v14 }
 0x25c   : > { %3710 = vtanh.f32 %v2079_v52  ;;  %v1920_v1 = vmul.f32 0.5, %v1122_v12  ;;  %v2080_v26 = vmul.f32 0.5, %v1423_v62  ;;  %v4705_v13 = vmul.f32 %v2012_v37, %v1100_v25  ;;  %v3701_v49 = vpop.eup %3700  ;;  %v4707_v21 = vpop.f32.mrb[12].mxu0 }
 0x25d   : > { %v4709_v33 = vpop.f32.mrb[28].mxu1  ;;  %v4711_v58 = vmul.f32 %v2172_v11, %v1401_v38  ;;  %v3703_v43 = vpop.eup %3702  ;;  %v1981_v27 = vadd.f32 1.0, %v3701_v49 }
 0x25e   : > { %3712 = vtanh.f32 %v1920_v1  ;;  %v1127_v48 = vpop.f32.mrb[13].mxu0  ;;  %v1428_v8 = vpop.f32.mrb[29].mxu1  ;;  %v2141_v55 = vadd.f32 1.0, %v3703_v43 }
 0x25f   : > { %v3705_v44 = vpop.eup %3704  ;;  %3714 = vtanh.f32 %v2080_v26  ;;  %v1128_v15 = vadd.f32 %v1127_v48, %v4582_v50  ;;  %v1429_v31 = vadd.f32 %v1428_v8, %v4631_v6  ;;  %v4717_v29 = vpop.f32.mrb[14].mxu0  ;;  %v2013_v57 = vmul.f32 0.5, %v1981_v27 }
 0x260   : > { %v4719_v41 = vpop.f32.mrb[30].mxu1  ;;  %v3707_v46 = vpop.eup %3706  ;;  %v1982_v7 = vadd.f32 1.0, %v3705_v44  ;;  %v2173_v16 = vmul.f32 0.5, %v2141_v55  ;;  %v1116_v8 = vadd.f32 %v4681_v18, %v4599_v61  ;;  %v1417_v44 = vadd.f32 %v4683_v24, %v4677_v4 }
 0x261   : > { %v1131_v9 = vpop.f32.mrb[15].mxu0  ;;  %v1432_v19 = vpop.f32.mrb[31].mxu1  ;;  %v2142_v60 = vadd.f32 1.0, %v3707_v46  ;;  %v1921_v10 = vmul.f32 0.5, %v1128_v15  ;;  %v2081_v53 = vmul.f32 0.5, %v1429_v31  ;;  %v4727_v30 = vmul.f32 %v2013_v57, %v1106_v45 }
 0x262   : > { %v2014_v63 = vmul.f32 0.5, %v1982_v7  ;;  %v1132_v25 = vadd.f32 %v1131_v9, %v4582_v50  ;;  %v1433_v17 = vadd.f32 %v1432_v19, %v4631_v6  ;;  %v4731_v35 = vmul.f32 %v2173_v16, %v1407_v56 }
 0x263   : > { %v2174_v51 = vmul.f32 0.5, %v2142_v60  ;;  %3716 = vtanh.f32 %v1921_v10  ;;  %v1120_v18 = vadd.f32 %v4689_v42, %v4599_v61  ;;  %v1126_v42 = vadd.f32 %v4707_v21, %v4599_v61 }
 0x264   : > { %3718 = vtanh.f32 %v2081_v53  ;;  %v1922_v47 = vmul.f32 0.5, %v1132_v25  ;;  %v2082_v32 = vmul.f32 0.5, %v1433_v17  ;;  %v4733_v14 = vmul.f32 %v2014_v63, %v1110_v40  ;;  %v4735_v37 = vpop.f32.mrb[16].mxu0  ;;  %v4737_v12 = vpop.f32.mrb[32].mxu1 }
 0x265   : > { %v3709_v52 = vpop.eup %3708  ;;  %v4739_v62 = vmul.f32 %v2174_v51, %v1411_v0  ;;  %v1137_v39 = vpop.f32.mrb[17].mxu0  ;;  %v1130_v21 = vadd.f32 %v4717_v29, %v4599_v61 }
 0x266   : > { %v3711_v38 = vpop.eup %3710  ;;  %v1983_v11 = vadd.f32 1.0, %v3709_v52  ;;  %3720 = vtanh.f32 %v1922_v47  ;;  %v1438_v1 = vpop.f32.mrb[33].mxu1  ;;  %v1138_v49 = vadd.f32 %v1137_v39, %v4582_v50  ;;  %v1421_v52 = vadd.f32 %v4691_v5, %v4677_v4 }
 0x267   : > { %v2143_v26 = vadd.f32 1.0, %v3711_v38  ;;  %3722 = vtanh.f32 %v2082_v32  ;;  %v1439_v43 = vadd.f32 %v1438_v1, %v4631_v6  ;;  %v4743_v45 = vpop.f32.mrb[18].mxu0  ;;  %v4745_v27 = vpop.f32.mrb[34].mxu1  ;;  %v1427_v5 = vadd.f32 %v4709_v33, %v4677_v4 }
 0x268   : > { %v3713_v48 = vpop.eup %3712  ;;  %v2015_v55 = vmul.f32 0.5, %v1983_v11  ;;  %v1141_v15 = vpop.f32.mrb[19].mxu0  ;;  %v1923_v40 = vmul.f32 0.5, %v1138_v49  ;;  %v1431_v33 = vadd.f32 %v4719_v41, %v4677_v4  ;;  %v1136_v41 = vadd.f32 %v4735_v37, %v4599_v61 }
 0x269   : > { %v1442_v31 = vpop.f32.mrb[35].mxu1  ;;  %v3715_v46 = vpop.eup %3714  ;;  %v2175_v56 = vmul.f32 0.5, %v2143_v26  ;;  %v1984_v57 = vadd.f32 1.0, %v3713_v48  ;;  %v2083_v7 = vmul.f32 0.5, %v1439_v43  ;;  %v1142_v19 = vadd.f32 %v1141_v15, %v4582_v50 }
 0x26a   : > { %v2144_v9 = vadd.f32 1.0, %v3715_v46  ;;  %v1443_v16 = vadd.f32 %v1442_v31, %v4631_v6  ;;  %v4753_v60 = vmul.f32 %v2015_v55, %v1116_v8  ;;  %3724 = vtanh.f32 %v1923_v40 }
 0x26b   : > { %v2016_v10 = vmul.f32 0.5, %v1984_v57  ;;  %v4757_v24 = vmul.f32 %v2175_v56, %v1417_v44  ;;  %3726 = vtanh.f32 %v2083_v7  ;;  %v1924_v63 = vmul.f32 0.5, %v1142_v19 }
 0x26c   : > { %v2176_v53 = vmul.f32 0.5, %v2144_v9  ;;  %v2084_v25 = vmul.f32 0.5, %v1443_v16  ;;  %v4759_v0 = vpop.f32.mrb[20].mxu0  ;;  %v4761_v51 = vpop.f32.mrb[36].mxu1 }
 0x26d   : > { %v3717_v17 = vpop.eup %3716  ;;  %v4763_v47 = vmul.f32 %v2016_v10, %v1120_v18  ;;  %3728 = vtanh.f32 %v1924_v63  ;;  %v1147_v11 = vpop.f32.mrb[21].mxu0 }
 0x26e   : > { %v3719_v32 = vpop.eup %3718  ;;  %v1985_v38 = vadd.f32 1.0, %v3717_v17  ;;  %v1448_v39 = vpop.f32.mrb[37].mxu1  ;;  %3730 = vtanh.f32 %v2084_v25  ;;  %v1148_v26 = vadd.f32 %v1147_v11, %v4582_v50  ;;  %v4779_v31 = vmul.f32 %v2176_v53, %v1421_v52 }
 0x26f   : > { %v2145_v1 = vadd.f32 1.0, %v3719_v32  ;;  %v1449_v49 = vadd.f32 %v1448_v39, %v4631_v6  ;;  %v4771_v43 = vpop.f32.mrb[22].mxu0  ;;  %v4773_v48 = vpop.f32.mrb[38].mxu1 }
 0x270   : > { %v3721_v8 = vpop.eup %3720  ;;  %v2017_v44 = vmul.f32 0.5, %v1985_v38  ;;  %v1151_v55 = vpop.f32.mrb[23].mxu0  ;;  %v1925_v40 = vmul.f32 0.5, %v1148_v26 }
 0x271   : > { %v1452_v15 = vpop.f32.mrb[39].mxu1  ;;  %v3723_v46 = vpop.eup %3722  ;;  %v2177_v56 = vmul.f32 0.5, %v2145_v1  ;;  %v1986_v57 = vadd.f32 1.0, %v3721_v8  ;;  %v2085_v7 = vmul.f32 0.5, %v1449_v49  ;;  %v1152_v19 = vadd.f32 %v1151_v55, %v4582_v50 }
 0x272   : > { %v2146_v9 = vadd.f32 1.0, %v3723_v46  ;;  %v1453_v16 = vadd.f32 %v1452_v15, %v4631_v6  ;;  %v4783_v18 = vmul.f32 %v2017_v44, %v1126_v42  ;;  %3732 = vtanh.f32 %v1925_v40 }
 0x273   : > { %v2018_v29 = vmul.f32 0.5, %v1986_v57  ;;  %v4787_v10 = vmul.f32 %v2177_v56, %v1427_v5  ;;  %3734 = vtanh.f32 %v2085_v7  ;;  %v1926_v63 = vmul.f32 0.5, %v1152_v19 }
 0x274   : > { %v2178_v53 = vmul.f32 0.5, %v2146_v9  ;;  %v2086_v25 = vmul.f32 0.5, %v1453_v16  ;;  %v3725_v17 = vpop.eup %3724  ;;  %v1437_v49 = vadd.f32 %v4737_v12, %v4677_v4  ;;  %v1140_v55 = vadd.f32 %v4743_v45, %v4599_v61 }
 0x275   : > { %v4789_v32 = vmul.f32 %v2018_v29, %v1130_v21  ;;  %v3727_v52 = vpop.eup %3726  ;;  %v1987_v38 = vadd.f32 1.0, %v3725_v17  ;;  %3736 = vtanh.f32 %v1926_v63  ;;  %v1441_v56 = vadd.f32 %v4745_v27, %v4677_v4 }
 0x276   : > { %v4791_v11 = vmul.f32 %v2178_v53, %v1431_v33  ;;  %v2147_v42 = vadd.f32 1.0, %v3727_v52  ;;  %3738 = vtanh.f32 %v2086_v25  ;;  %v1146_v29 = vadd.f32 %v4759_v0, %v4599_v61 }
 0x277   : > { %v3729_v39 = vpop.eup %3728  ;;  %v2019_v1 = vmul.f32 0.5, %v1987_v38  ;;  %v1447_v63 = vadd.f32 %v4761_v51, %v4677_v4 }
 0x278   : > { %v3731_v26 = vpop.eup %3730  ;;  %v2179_v8 = vmul.f32 0.5, %v2147_v42  ;;  %v1988_v5 = vadd.f32 1.0, %v3729_v39  ;;  %v1150_v42 = vadd.f32 %v4771_v43, %v4599_v61 }
 0x279   : > { %v2148_v44 = vadd.f32 1.0, %v3731_v26  ;;  %v4797_v21 = vmul.f32 %v2019_v1, %v1136_v41  ;;  %v1451_v1 = vadd.f32 %v4773_v48, %v4677_v4 }
 0x27a   : > { %v2020_v15 = vmul.f32 0.5, %v1988_v5  ;;  %v4801_v46 = vmul.f32 %v2179_v8, %v1437_v49 }
 0x27b   : > { %v2180_v37 = vmul.f32 0.5, %v2148_v44 }
 0x27c   : > { %v3733_v40 = vpop.eup %3732  ;;  %v4807_v12 = vmul.f32 %v2020_v15, %v1140_v55 }
 0x27d   : > { %v3735_v7 = vpop.eup %3734  ;;  %v1989_v9 = vadd.f32 1.0, %v3733_v40  ;;  %v4809_v19 = vmul.f32 %v2180_v37, %v1441_v56 }
 0x27e   : > { %v2149_v16 = vadd.f32 1.0, %v3735_v7 }
 0x27f   : > { %v3737_v33 = vpop.eup %3736  ;;  %v2021_v27 = vmul.f32 0.5, %v1989_v9 }
 0x280   : > { %v3739_v53 = vpop.eup %3738  ;;  %v2181_v25 = vmul.f32 0.5, %v2149_v16  ;;  %v1990_v17 = vadd.f32 1.0, %v3737_v33 }
 0x281   : > { %v2150_v52 = vadd.f32 1.0, %v3739_v53  ;;  %v4817_v38 = vmul.f32 %v2021_v27, %v1146_v29 }
 0x282   : > { %v2022_v39 = vmul.f32 0.5, %v1990_v17  ;;  %v4821_v41 = vmul.f32 %v2181_v25, %v1447_v63 }
 0x283   : > { %5207 = vst [vmem:[#allocation7_spill] sm:$0xff] %v4817_v38  ;;  %v2182_v0 = vmul.f32 0.5, %v2150_v52 }
 0x284   : > { %v4827_v49 = vmul.f32 %v2022_v39, %v1150_v42 }
 0x285   : > { %v4829_v51 = vmul.f32 %v2182_v0, %v1451_v1 }
 0x286   : > { %5208 = vst [vmem:[#allocation8_spill] sm:$0xff] %v4827_v49 }
 0x287   : > { %5209 = vst [vmem:[#allocation9_spill] sm:$0xff] %v4829_v51 }
 0x2bc   : > { %v1155_v5 = vpop.f32.mrb[24].mxu0  ;;  %v1456_v44 = vpop.f32.mrb[40].mxu1 }
 0x2bd   : > { %v1157_v43 = vpop.f32.mrb[25].mxu0  ;;  %v1458_v55 = vpop.f32.mrb[41].mxu1 }
 0x2be   : > { %v1158_v15 = vadd.f32 %v1157_v43, %v4582_v50  ;;  %v1459_v56 = vadd.f32 %v1458_v55, %v4631_v6  ;;  %v1159_v48 = vpop.f32.mrb[26].mxu0  ;;  %v1460_v37 = vpop.f32.mrb[42].mxu1 }
 0x2bf   : > { %v1161_v40 = vpop.f32.mrb[27].mxu0  ;;  %v1462_v7 = vpop.f32.mrb[43].mxu1  ;;  %v1160_v45 = vadd.f32 %v1159_v48, %v4599_v61 }
 0x2c0   : > { %v1927_v9 = vmul.f32 0.5, %v1158_v15  ;;  %v2087_v16 = vmul.f32 0.5, %v1459_v56  ;;  %v1162_v33 = vadd.f32 %v1161_v40, %v4582_v50  ;;  %v1463_v29 = vadd.f32 %v1462_v7, %v4631_v6 }
 0x2c2   : > { %3740 = vtanh.f32 %v1927_v9  ;;  %v1928_v27 = vmul.f32 0.5, %v1162_v33  ;;  %v2088_v53 = vmul.f32 0.5, %v1463_v29 }
 0x2c3   : > { %3742 = vtanh.f32 %v2087_v16 }
 0x2c4   : > { %3744 = vtanh.f32 %v1928_v27  ;;  %v1165_v63 = vpop.f32.mrb[28].mxu0  ;;  %v1466_v25 = vpop.f32.mrb[44].mxu1 }
 0x2c5   : > { %3746 = vtanh.f32 %v2088_v53  ;;  %v1167_v17 = vpop.f32.mrb[29].mxu0  ;;  %v1468_v52 = vpop.f32.mrb[45].mxu1 }
 0x2c6   : > { %v1168_v42 = vadd.f32 %v1167_v17, %v4582_v50  ;;  %v1469_v39 = vadd.f32 %v1468_v52, %v4631_v6  ;;  %v1169_v1 = vpop.f32.mrb[30].mxu0  ;;  %v1470_v0 = vpop.f32.mrb[46].mxu1  ;;  %v1156_v17 = vadd.f32 %v1155_v5, %v4599_v61  ;;  %v1461_v5 = vadd.f32 %v1460_v37, %v4677_v4 }
 0x2c7   : > { %v1171_v43 = vpop.f32.mrb[31].mxu0  ;;  %v1472_v55 = vpop.f32.mrb[47].mxu1 }
 0x2c8   : > { %v1929_v15 = vmul.f32 0.5, %v1168_v42  ;;  %v2089_v56 = vmul.f32 0.5, %v1469_v39  ;;  %v1172_v40 = vadd.f32 %v1171_v43, %v4582_v50  ;;  %v1473_v7 = vadd.f32 %v1472_v55, %v4631_v6 }
 0x2c9   : > { %v1457_v43 = vadd.f32 %v1456_v44, %v4677_v4 }
 0x2ca   : > { %3748 = vtanh.f32 %v1929_v15  ;;  %v1930_v9 = vmul.f32 0.5, %v1172_v40  ;;  %v2090_v16 = vmul.f32 0.5, %v1473_v7 }
 0x2cb   : > { %3750 = vtanh.f32 %v2089_v56 }
 0x2cc   : > { %v3741_v33 = vpop.eup %3740  ;;  %3752 = vtanh.f32 %v1930_v9  ;;  %v1175_v29 = vpop.f32.mrb[32].mxu0 }
 0x2cd   : > { %v1476_v27 = vpop.f32.mrb[48].mxu1  ;;  %v3743_v53 = vpop.eup %3742  ;;  %v1991_v52 = vadd.f32 1.0, %v3741_v33  ;;  %3754 = vtanh.f32 %v2090_v16 }
 0x2ce   : > { %v1177_v8 = vpop.f32.mrb[33].mxu0  ;;  %v1478_v42 = vpop.f32.mrb[49].mxu1  ;;  %v2151_v26 = vadd.f32 1.0, %v3743_v53 }
 0x2cf   : > { %v3745_v39 = vpop.eup %3744  ;;  %v1178_v55 = vadd.f32 %v1177_v8, %v4582_v50  ;;  %v1479_v15 = vadd.f32 %v1478_v42, %v4631_v6  ;;  %v1179_v56 = vpop.f32.mrb[34].mxu0  ;;  %v2023_v9 = vmul.f32 0.5, %v1991_v52  ;;  %v1166_v52 = vadd.f32 %v1165_v63, %v4599_v61 }
 0x2d0   : > { %v4845_v40 = vpop.f32.mrb[50].mxu1  ;;  %v3747_v7 = vpop.eup %3746  ;;  %v1992_v16 = vadd.f32 1.0, %v3745_v39  ;;  %v2183_v49 = vmul.f32 0.5, %v2151_v26 }
 0x2d1   : > { %v1181_v33 = vpop.f32.mrb[35].mxu0  ;;  %v1482_v57 = vpop.f32.mrb[51].mxu1  ;;  %v2152_v2 = vadd.f32 1.0, %v3747_v7  ;;  %v1931_v44 = vmul.f32 0.5, %v1178_v55  ;;  %v2091_v53 = vmul.f32 0.5, %v1479_v15  ;;  %v4851_v38 = vmul.f32 %v2023_v9, %v1156_v17 }
 0x2d2   : > { %v2024_v51 = vmul.f32 0.5, %v1992_v16  ;;  %v1182_v8 = vadd.f32 %v1181_v33, %v4582_v50  ;;  %v1483_v42 = vadd.f32 %v1482_v57, %v4631_v6  ;;  %v4854_v48 = vmul.f32 %v2183_v49, %v1457_v43 }
 0x2d3   : > { %5210 = vst [vmem:[#allocation10_spill] sm:$0xff] %v4851_v38  ;;  %v2184_v28 = vmul.f32 0.5, %v2152_v2  ;;  %3756 = vtanh.f32 %v1931_v44  ;;  %v1467_v15 = vadd.f32 %v1466_v25, %v4677_v4  ;;  %v1170_v7 = vadd.f32 %v1169_v1, %v4599_v61 }
 0x2d4   : > { %3758 = vtanh.f32 %v2091_v53  ;;  %v1932_v37 = vmul.f32 0.5, %v1182_v8  ;;  %v2092_v39 = vmul.f32 0.5, %v1483_v42  ;;  %v3749_v55 = vpop.eup %3748  ;;  %v1185_v57 = vpop.f32.mrb[36].mxu0  ;;  %v4862_v2 = vmul.f32 %v2024_v51, %v1160_v45 }
 0x2d5   : > { %v1486_v17 = vpop.f32.mrb[52].mxu1  ;;  %v4860_v9 = vmul.f32 %v2184_v28, %v1461_v5  ;;  %v3751_v63 = vpop.eup %3750  ;;  %v1993_v49 = vadd.f32 1.0, %v3749_v55  ;;  %v1471_v43 = vadd.f32 %v1470_v0, %v4677_v4  ;;  %v4866_v16 = vadd.f32 %v1175_v29, %v4599_v61 }
 0x2d6   : > { %5212 = vst [vmem:[#allocation12_spill] sm:$0xff] %v4862_v2  ;;  %3760 = vtanh.f32 %v1932_v37  ;;  %v1187_v33 = vpop.f32.mrb[37].mxu0  ;;  %v1488_v44 = vpop.f32.mrb[53].mxu1  ;;  %v2153_v25 = vadd.f32 1.0, %v3751_v63  ;;  %v1477_v0 = vadd.f32 %v1476_v27, %v4677_v4  ;;  %v4872_v29 = vadd.f32 %v1179_v56, %v4599_v61 }
 0x2d7   : > { %5211 = vst [vmem:[#allocation11_spill] sm:$0xff] %v4860_v9  ;;  %v3753_v53 = vpop.eup %3752  ;;  %3762 = vtanh.f32 %v2092_v39  ;;  %v1188_v1 = vadd.f32 %v1187_v33, %v4582_v50  ;;  %v1489_v28 = vadd.f32 %v1488_v44, %v4631_v6  ;;  %v1189_v5 = vpop.f32.mrb[38].mxu0  ;;  %v2025_v8 = vmul.f32 0.5, %v1993_v49 }
 0x2d8   : > { %v1490_v45 = vpop.f32.mrb[54].mxu1  ;;  %v3755_v51 = vpop.eup %3754  ;;  %v1994_v42 = vadd.f32 1.0, %v3753_v53  ;;  %v2185_v26 = vmul.f32 0.5, %v2153_v25 }
 0x2d9   : > { %v1191_v37 = vpop.f32.mrb[39].mxu0  ;;  %v1492_v55 = vpop.f32.mrb[55].mxu1  ;;  %v2154_v9 = vadd.f32 1.0, %v3755_v51  ;;  %v1933_v63 = vmul.f32 0.5, %v1188_v1  ;;  %v2093_v39 = vmul.f32 0.5, %v1489_v28  ;;  %v4880_v56 = vmul.f32 %v2025_v8, %v1166_v52 }
 0x2da   : > { %v2026_v38 = vmul.f32 0.5, %v1994_v42  ;;  %v1192_v33 = vadd.f32 %v1191_v37, %v4582_v50  ;;  %v1493_v44 = vadd.f32 %v1492_v55, %v4631_v6  ;;  %v4878_v27 = vmul.f32 %v2185_v26, %v1467_v15 }
 0x2db   : > { %v2186_v53 = vmul.f32 0.5, %v2154_v9  ;;  %3764 = vtanh.f32 %v1933_v63  ;;  %5213 = vst [vmem:[#allocation13_spill] sm:$0xff] %v4880_v56  ;;  %v4886_v28 = vadd.f32 %v4845_v40, %v4677_v4  ;;  %v4889_v42 = vadd.f32 %v1185_v57, %v4599_v61 }
 0x2dc   : > { %3766 = vtanh.f32 %v2093_v39  ;;  %v1934_v22 = vmul.f32 0.5, %v1192_v33  ;;  %v2094_v25 = vmul.f32 0.5, %v1493_v44  ;;  %v4882_v51 = vmul.f32 %v2026_v38, %v1170_v7  ;;  %v1195_v37 = vpop.f32.mrb[40].mxu0  ;;  %v1496_v9 = vpop.f32.mrb[56].mxu1 }
 0x2dd   : > { %v3757_v1 = vpop.eup %3756  ;;  %v4893_v52 = vmul.f32 %v2186_v53, %v1471_v43  ;;  %v4896_v38 = vadd.f32 %v1486_v17, %v4677_v4  ;;  %v4899_v7 = vadd.f32 %v1189_v5, %v4599_v61  ;;  %v1197_v40 = vpop.f32.mrb[41].mxu0  ;;  %v4907_v17 = vadd.f32 %v1195_v37, %v4599_v61 }
 0x2de   : > { %v3759_v15 = vpop.eup %3758  ;;  %v1995_v8 = vadd.f32 1.0, %v3757_v1  ;;  %3768 = vtanh.f32 %v1934_v22  ;;  %v1498_v55 = vpop.f32.mrb[57].mxu1  ;;  %v1198_v63 = vadd.f32 %v1197_v40, %v4582_v50  ;;  %v4904_v1 = vadd.f32 %v1490_v45, %v4677_v4 }
 0x2df   : > { %5214 = vst [vmem:[#allocation14_spill] sm:$0xff] %v4893_v52  ;;  %v2155_v57 = vadd.f32 1.0, %v3759_v15  ;;  %3770 = vtanh.f32 %v2094_v25  ;;  %v1499_v39 = vadd.f32 %v1498_v55, %v4631_v6  ;;  %v1199_v33 = vpop.f32.mrb[42].mxu0  ;;  %v1500_v43 = vpop.f32.mrb[58].mxu1  ;;  %v4915_v37 = vadd.f32 %v1496_v9, %v4677_v4 }
 0x2e0   : > { %v3761_v44 = vpop.eup %3760  ;;  %v2027_v53 = vmul.f32 0.5, %v1995_v8  ;;  %v1201_v5 = vpop.f32.mrb[43].mxu0  ;;  %v1935_v49 = vmul.f32 0.5, %v1198_v63  ;;  %v4918_v63 = vadd.f32 %v1199_v33, %v4599_v61 }
 0x2e1   : > { %v1502_v22 = vpop.f32.mrb[59].mxu1  ;;  %v3763_v25 = vpop.eup %3762  ;;  %v2187_v26 = vmul.f32 0.5, %v2155_v57  ;;  %v1996_v40 = vadd.f32 1.0, %v3761_v44  ;;  %v2095_v55 = vmul.f32 0.5, %v1499_v39  ;;  %v1202_v56 = vadd.f32 %v1201_v5, %v4582_v50 }
 0x2e2   : > { %v2156_v52 = vadd.f32 1.0, %v3763_v25  ;;  %v1503_v8 = vadd.f32 %v1502_v22, %v4631_v6  ;;  %v2059_v45 = vmul.f32 %v2027_v53, %v4866_v16  ;;  %3772 = vtanh.f32 %v1935_v49 }
 0x2e3   : > { %v2028_v23 = vmul.f32 0.5, %v1996_v40  ;;  %v2219_v2 = vmul.f32 %v2187_v26, %v1477_v0  ;;  %3774 = vtanh.f32 %v2095_v55  ;;  %v1936_v15 = vmul.f32 0.5, %v1202_v56 }
 0x2e4   : > { %v2188_v20 = vmul.f32 0.5, %v2156_v52  ;;  %v2096_v57 = vmul.f32 0.5, %v1503_v8  ;;  %v1205_v39 = vpop.f32.mrb[44].mxu0  ;;  %v1506_v5 = vpop.f32.mrb[60].mxu1  ;;  %v3332_v16 = vpack.i.bf16 %v2059_v45, %v4699_v54  ;;  %v4924_v0 = vadd.f32 %v1500_v43, %v4677_v4 }
 0x2e5   : > { %v3765_v44 = vpop.eup %3764  ;;  %v3444_v22 = vpack.i.bf16 %v2219_v2, %v4703_v59  ;;  %v2060_v53 = vmul.f32 %v2028_v23, %v4872_v29  ;;  %3776 = vtanh.f32 %v1936_v15  ;;  %v4927_v49 = vadd.f32 %v1205_v39, %v4599_v61  ;;  %v1207_v56 = vpop.f32.mrb[45].mxu0 }
 0x2e6   : > { %v3767_v9 = vpop.eup %3766  ;;  %v1997_v25 = vadd.f32 1.0, %v3765_v44  ;;  %v1508_v26 = vpop.f32.mrb[61].mxu1  ;;  %3778 = vtanh.f32 %v2096_v57  ;;  %3333 = vxpose.xlu0.b32.start [1/16] %v3332_v16, 128  ;;  %v1208_v59 = vadd.f32 %v1207_v56, %v4582_v50  ;;  %v4932_v43 = vadd.f32 %v1506_v5, %v4677_v4 }
 0x2e7   : > { %v2157_v52 = vadd.f32 1.0, %v3767_v9  ;;  %3445 = vxpose.xlu1.b32.start [1/16] %v3444_v22, 128  ;;  %v1509_v54 = vadd.f32 %v1508_v26, %v4631_v6  ;;  %v1209_v23 = vpop.f32.mrb[46].mxu0  ;;  %v1510_v2 = vpop.f32.mrb[62].mxu1  ;;  %v2220_v8 = vmul.f32 %v2188_v20, %v4886_v28  ;;  %v4945_v20 = vld [vmem:[%s5188_s8] ss:$0 sm:$0xff] }
 0x2e8   : > { %v3769_v29 = vpop.eup %3768  ;;  %v2029_v33 = vmul.f32 0.5, %v1997_v25  ;;  %v4935_v15 = vadd.f32 %v1209_v23, %v4599_v61  ;;  %v1211_v40 = vpop.f32.mrb[47].mxu0  ;;  %v1937_v39 = vmul.f32 0.5, %v1208_v59  ;;  %v3334_v61 = vpack.i.bf16 %v2060_v53, %v4705_v13 }
 0x2e9   : > { %v1512_v55 = vpop.f32.mrb[63].mxu1  ;;  %v3771_v45 = vpop.eup %3770  ;;  %v2189_v57 = vmul.f32 0.5, %v2157_v52  ;;  %v1998_v44 = vadd.f32 1.0, %v3769_v29  ;;  %v2097_v22 = vmul.f32 0.5, %v1509_v54  ;;  %v1212_v9 = vadd.f32 %v1211_v40, %v4582_v50 }
 0x2ea   : > { %v2158_v16 = vadd.f32 1.0, %v3771_v45  ;;  %v1513_v25 = vadd.f32 %v1512_v55, %v4631_v6  ;;  %v3446_v5 = vpack.i.bf16 %v2220_v8, %v4711_v58  ;;  %3780 = vtanh.f32 %v1937_v39  ;;  %3335 = vxpose.xlu0.b32.cont [2/16] %v3334_v61, 128 }
 0x2eb   : > { %v2030_v56 = vmul.f32 0.5, %v1998_v44  ;;  %v2221_v28 = vmul.f32 %v2189_v57, %v4896_v38  ;;  %3782 = vtanh.f32 %v2097_v22  ;;  %v4949_v26 = vadd.f32 %v1510_v2, %v4677_v4 }
 0x2ec   : > { %v1938_v50 = vmul.f32 0.5, %v1212_v9  ;;  %v2098_v52 = vmul.f32 0.5, %v1513_v25  ;;  %3447 = vxpose.xlu1.b32.cont [2/16] %v3446_v5, 128  ;;  %v3773_v59 = vpop.eup %3772  ;;  %v2190_v58 = vmul.f32 0.5, %v2158_v16  ;;  %v1516_v54 = vpop.f32.mrb[64].mxu1  ;;  %v2061_v53 = vmul.f32 %v2029_v33, %v4889_v42 }
 0x2ed   : > { %v3261_v23 = vpop.f32.mrb[48].mxu0  ;;  %v3448_v13 = vpack.i.bf16 %v2221_v28, %v4731_v35  ;;  %v2062_v29 = vmul.f32 %v2030_v56, %v4899_v7  ;;  %v3775_v40 = vpop.eup %3774  ;;  %v1999_v38 = vadd.f32 1.0, %v3773_v59  ;;  %v4955_v2 = vadd.f32 %v1516_v54, %v4677_v4 }
 0x2ee   : > { %3784 = vtanh.f32 %v1938_v50  ;;  %v1669_v55 = vadd.f32 %v3261_v23, %v4945_v20  ;;  %v1518_v8 = vpop.f32.mrb[65].mxu1  ;;  %v1660_v45 = vpop.f32.mrb[49].mxu0  ;;  %v2159_v57 = vadd.f32 1.0, %v3775_v40  ;;  %v3336_v44 = vpack.i.bf16 %v2061_v53, %v4727_v30 }
 0x2ef   : > { %3786 = vtanh.f32 %v2098_v52  ;;  %v1519_v35 = vadd.f32 %v1518_v8, %v4631_v6  ;;  %v1520_v39 = vpop.f32.mrb[66].mxu1  ;;  %v3262_v42 = vpop.f32.mrb[50].mxu0  ;;  %v2031_v7 = vmul.f32 0.5, %v1999_v38  ;;  %v1661_v16 = vadd.f32 %v4945_v20, %v1660_v45 }
 0x2f0   : > { %v3777_v33 = vpop.eup %3776  ;;  %v1789_v22 = vmul.f32 0.5, %v1669_v55  ;;  %3449 = vxpose.xlu1.b32.cont [3/16] %v3448_v13, 128  ;;  %v4962_v9 = vadd.f32 %v1520_v39, %v4677_v4  ;;  %v1522_v25 = vpop.f32.mrb[67].mxu1  ;;  %v2191_v61 = vmul.f32 0.5, %v2159_v57  ;;  %3337 = vxpose.xlu0.b32.cont [3/16] %v3336_v44, 128  ;;  %v1672_v50 = vadd.f32 %v3262_v42, %v4945_v20 }
 0x2f1   : > { %v1663_v5 = vpop.f32.mrb[51].mxu0  ;;  %v3779_v56 = vpop.eup %3778  ;;  %v2000_v28 = vadd.f32 1.0, %v3777_v33  ;;  %v2099_v30 = vmul.f32 0.5, %v1519_v35  ;;  %v1787_v59 = vmul.f32 0.5, %v1661_v16  ;;  %v1523_v54 = vadd.f32 %v1522_v25, %v4631_v6 }
 0x2f2   : > { %v2160_v52 = vadd.f32 1.0, %v3779_v56  ;;  %3788 = vtanh.f32 %v1789_v22  ;;  %v1790_v13 = vmul.f32 0.5, %v1672_v50  ;;  %v1664_v53 = vadd.f32 %v4945_v20, %v1663_v5 }
 0x2f3   : > { %v4966_v23 = vmul.f32 0.5, %v2000_v28  ;;  %3790 = vtanh.f32 %v2099_v30  ;;  %v2100_v38 = vmul.f32 0.5, %v1523_v54  ;;  %v2222_v55 = vmul.f32 %v2190_v58, %v4904_v1 }
 0x2f4   : > { %v2192_v40 = vmul.f32 0.5, %v2160_v52  ;;  %3792 = vtanh.f32 %v1787_v59  ;;  %v3781_v8 = vpop.eup %3780  ;;  %v1788_v45 = vmul.f32 0.5, %v1664_v53  ;;  %v3338_v57 = vpack.i.bf16 %v2062_v29, %v4733_v14  ;;  %v1526_v44 = vpop.f32.mrb[68].mxu1 }
 0x2f5   : > { %3794 = vtanh.f32 %v1790_v13  ;;  %v3265_v35 = vpop.f32.mrb[52].mxu0  ;;  %v2223_v39 = vmul.f32 %v2191_v61, %v4915_v37  ;;  %v3783_v42 = vpop.eup %3782  ;;  %v2001_v33 = vadd.f32 1.0, %v3781_v8  ;;  %v3450_v22 = vpack.i.bf16 %v2222_v55, %v4739_v62 }
 0x2f6   : > { %3796 = vtanh.f32 %v2100_v38  ;;  %v4974_v16 = vadd.f32 %v1526_v44, %v4677_v4  ;;  %v1528_v25 = vpop.f32.mrb[69].mxu1  ;;  %v1676_v5 = vpop.f32.mrb[53].mxu0  ;;  %v2161_v1 = vadd.f32 1.0, %v3783_v42  ;;  %3339 = vxpose.xlu0.b32.cont [4/16] %v3338_v57, 128  ;;  %v1685_v58 = vadd.f32 %v3265_v35, %v4945_v20 }
 0x2f7   : > { %3798 = vtanh.f32 %v1788_v45  ;;  %v3452_v14 = vpack.i.bf16 %v2223_v39, %v4757_v24  ;;  %v1530_v29 = vpop.f32.mrb[70].mxu1  ;;  %v3266_v56 = vpop.f32.mrb[54].mxu0  ;;  %v4978_v61 = vmul.f32 0.5, %v2001_v33  ;;  %3451 = vxpose.xlu1.b32.cont [4/16] %v3450_v22, 128  ;;  %v2063_v62 = vmul.f32 %v2031_v7, %v4907_v17 }
 0x2f8   : > { %v3785_v37 = vpop.eup %3784  ;;  %v1529_v28 = vadd.f32 %v1528_v25, %v4631_v6  ;;  %v1677_v30 = vadd.f32 %v4945_v20, %v1676_v5  ;;  %v1532_v50 = vpop.f32.mrb[71].mxu1  ;;  %v2193_v54 = vmul.f32 0.5, %v2161_v1  ;;  %v1793_v53 = vmul.f32 0.5, %v1685_v58 }
 0x2f9   : > { %v1679_v52 = vpop.f32.mrb[55].mxu0  ;;  %v3787_v59 = vpop.eup %3786  ;;  %v2002_v13 = vadd.f32 1.0, %v3785_v37  ;;  %v4984_v24 = vadd.f32 %v1530_v29, %v4677_v4  ;;  %v3340_v55 = vpack.i.bf16 %v2063_v62, %v4753_v60  ;;  %v1688_v17 = vadd.f32 %v3266_v56, %v4945_v20 }
 0x2fa   : > { %v2162_v38 = vadd.f32 1.0, %v3787_v59  ;;  %v2101_v8 = vmul.f32 0.5, %v1529_v28  ;;  %v1791_v45 = vmul.f32 0.5, %v1677_v30  ;;  %3800 = vtanh.f32 %v1793_v53 }
 0x2fb   : > { %v4987_v57 = vmul.f32 0.5, %v2002_v13  ;;  %v1533_v7 = vadd.f32 %v1532_v50, %v4631_v6  ;;  %3453 = vxpose.xlu1.b32.cont [5/16] %v3452_v14, 128  ;;  %3341 = vxpose.xlu0.b32.cont [5/16] %v3340_v55, 128  ;;  %v1680_v39 = vadd.f32 %v4945_v20, %v1679_v52  ;;  %v2224_v42 = vmul.f32 %v2192_v40, %v4924_v0 }
 0x2fc   : > { %v3789_v44 = vpop.eup %3788  ;;  %v4991_v35 = vmul.f32 0.5, %v2162_v38  ;;  %3802 = vtanh.f32 %v2101_v8  ;;  %v1794_v22 = vmul.f32 0.5, %v1688_v17  ;;  %v1536_v5 = vpop.f32.mrb[72].mxu1  ;;  %v2064_v14 = vmul.f32 %v4966_v23, %v4918_v63 }
 0x2fd   : > { %v3791_v60 = vpop.eup %3790  ;;  %v1853_v33 = vadd.f32 1.0, %v3789_v44  ;;  %3804 = vtanh.f32 %v1791_v45  ;;  %v2102_v25 = vmul.f32 0.5, %v1533_v7  ;;  %v3269_v1 = vpop.f32.mrb[56].mxu0  ;;  %v1792_v56 = vmul.f32 0.5, %v1680_v39 }
 0x2fe   : > { %v3793_v58 = vpop.eup %3792  ;;  %v2163_v29 = vadd.f32 1.0, %v3791_v60  ;;  %v3454_v37 = vpack.i.bf16 %v2224_v42, %v4779_v31  ;;  %v1538_v62 = vpop.f32.mrb[73].mxu1  ;;  %3806 = vtanh.f32 %v1794_v22  ;;  %v4999_v50 = vadd.f32 %v1536_v5, %v4677_v4 }
 0x2ff   : > { %v1692_v28 = vpop.f32.mrb[57].mxu0  ;;  %v3795_v30 = vpop.eup %3794  ;;  %v1885_v0 = vmul.f32 0.5, %v1853_v33  ;;  %v1851_v40 = vadd.f32 1.0, %v3793_v58  ;;  %3808 = vtanh.f32 %v2102_v25  ;;  %v3342_v63 = vpack.i.bf16 %v2064_v14, %v4763_v47 }
 0x300   : > { %v1540_v52 = vpop.f32.mrb[74].mxu1  ;;  %v3270_v59 = vpop.f32.mrb[58].mxu0  ;;  %v5001_v53 = vmul.f32 0.5, %v2163_v29  ;;  %v1854_v31 = vadd.f32 1.0, %v3795_v30  ;;  %3455 = vxpose.xlu1.b32.cont [6/16] %v3454_v37, 128  ;;  %3810 = vtanh.f32 %v1792_v56  ;;  %v1701_v17 = vadd.f32 %v3269_v1, %v4945_v20 }
 0x301   : > { %v3797_v13 = vpop.eup %3796  ;;  %v1542_v23 = vpop.f32.mrb[75].mxu1  ;;  %v1883_v8 = vmul.f32 0.5, %v1851_v40  ;;  %3343 = vxpose.xlu0.b32.cont [6/16] %v3342_v63, 128  ;;  %v1539_v39 = vadd.f32 %v1538_v62, %v4631_v6  ;;  %v2225_v42 = vmul.f32 %v2193_v54, %v4932_v43  ;;  %v1693_v33 = vadd.f32 %v4945_v20, %v1692_v28 }
 0x302   : > { %v1695_v38 = vpop.f32.mrb[59].mxu0  ;;  %v3799_v55 = vpop.eup %3798  ;;  %v2164_v45 = vadd.f32 1.0, %v3797_v13  ;;  %v1886_v7 = vmul.f32 0.5, %v1854_v31  ;;  %v1797_v60 = vmul.f32 0.5, %v1701_v17  ;;  %v2065_v22 = vmul.f32 %v4978_v61, %v4927_v49 }
 0x303   : > { %v1852_v44 = vadd.f32 1.0, %v3799_v55  ;;  %v2103_v1 = vmul.f32 0.5, %v1539_v39  ;;  %v3456_v58 = vpack.i.bf16 %v2225_v42, %v4787_v10  ;;  %v1795_v54 = vmul.f32 0.5, %v1693_v33 }
 0x304   : > { %v5016_v47 = vmul.f32 0.5, %v2164_v45  ;;  %v3132_v25 = vpack.c.bf16 %v1886_v7, %v1885_v0  ;;  %v3801_v43 = vpop.eup %3800  ;;  %3812 = vtanh.f32 %v1797_v60  ;;  %v3344_v29 = vpack.i.bf16 %v2065_v22, %v4783_v18  ;;  %v1546_v37 = vpop.f32.mrb[76].mxu1 }
 0x305   : > { %v1884_v5 = vmul.f32 0.5, %v1852_v44  ;;  %v5024_v56 = vadd.f32 %v1540_v52, %v4677_v4  ;;  %v3273_v14 = vpop.f32.mrb[60].mxu0  ;;  %v1857_v49 = vadd.f32 1.0, %v3801_v43  ;;  %3814 = vtanh.f32 %v2103_v1  ;;  %3457 = vxpose.xlu1.b32.cont [7/16] %v3456_v58, 128  ;;  %v1548_v10 = vpop.f32.mrb[77].mxu1 }
 0x306   : > { %v3803_v62 = vpop.eup %3802  ;;  %3204 = vst [vmem:[%s5014_s29 + $0x8] sm:$0xff] %v3132_v25   ;;  %v1704_v61 = vadd.f32 %v3270_v59, %v4945_v20  ;;  %v1708_v30 = vpop.f32.mrb[61].mxu0  ;;  %3816 = vtanh.f32 %v1795_v54  ;;  %3345 = vxpose.xlu0.b32.cont [7/16] %v3344_v29, 128  ;;  %v1543_v18 = vadd.f32 %v1542_v23, %v4631_v6  ;;  %v1696_v52 = vadd.f32 %v4945_v20, %v1695_v38 }
 0x307   : > { %v3127_v28 = vpack.c.bf16 %v1884_v5, %v1883_v8  ;;  %v3805_v0 = vpop.eup %3804  ;;  %v2165_v40 = vadd.f32 1.0, %v3803_v62  ;;  %v1550_v13 = vpop.f32.mrb[78].mxu1  ;;  %v1889_v63 = vmul.f32 0.5, %v1857_v49  ;;  %v2226_v45 = vmul.f32 %v4991_v35, %v4949_v26 }
 0x308   : > { %v3274_v31 = vpop.f32.mrb[62].mxu0  ;;  %v1855_v55 = vadd.f32 1.0, %v3805_v0  ;;  %v1798_v8 = vmul.f32 0.5, %v1704_v61  ;;  %v1552_v59 = vpop.f32.mrb[79].mxu1  ;;  %v2104_v39 = vmul.f32 0.5, %v1543_v18  ;;  %v1796_v42 = vmul.f32 0.5, %v1696_v52 }
 0x309   : > { %3128 = vst [vmem:[%s5014_s29] sm:$0xff] %v3127_v28   ;;  %v1711_v17 = vpop.f32.mrb[63].mxu0  ;;  %v3807_v7 = vpop.eup %3806  ;;  %v5033_v44 = vmul.f32 0.5, %v2165_v40  ;;  %v2066_v23 = vmul.f32 %v4987_v57, %v4935_v15  ;;  %v3458_v22 = vpack.i.bf16 %v2226_v45, %v4791_v11  ;;  %v5040_v35 = vadd.f32 %v1546_v37, %v4677_v4 }
 0x30a   : > { %v3809_v38 = vpop.eup %3808  ;;  %v1887_v60 = vmul.f32 0.5, %v1855_v55  ;;  %v1858_v33 = vadd.f32 1.0, %v3807_v7  ;;  %3818 = vtanh.f32 %v1798_v8  ;;  %v1717_v15 = vadd.f32 %v3273_v14, %v4945_v20 }
 0x30b   : > { %v3811_v25 = vpop.eup %3810  ;;  %v2166_v5 = vadd.f32 1.0, %v3809_v38  ;;  %3820 = vtanh.f32 %v2104_v39  ;;  %v3346_v26 = vpack.i.bf16 %v2066_v23, %v4789_v32  ;;  %3459 = vxpose.xlu1.b32.cont [8/16] %v3458_v22, 128  ;;  %v1549_v43 = vadd.f32 %v1548_v10, %v4631_v6 }
 0x30c   : > { %v1890_v1 = vmul.f32 0.5, %v1858_v33  ;;  %v1856_v58 = vadd.f32 1.0, %v3811_v25  ;;  %3822 = vtanh.f32 %v1796_v42  ;;  %v2227_v11 = vmul.f32 %v5001_v53, %v4955_v2  ;;  %v3277_v54 = vpop.f32.mrb[64].mxu0 }
 0x30d   : > { %v5043_v57 = vmul.f32 0.5, %v2166_v5  ;;  %3347 = vxpose.xlu0.b32.cont [8/16] %v3346_v26, 128  ;;  %v1709_v32 = vadd.f32 %v4945_v20, %v1708_v30  ;;  %v1801_v62 = vmul.f32 0.5, %v1717_v15  ;;  %v5050_v28 = vadd.f32 %v1550_v13, %v4677_v4  ;;  %v1724_v49 = vpop.f32.mrb[65].mxu0 }
 0x30e   : > { %v3142_v29 = vpack.c.bf16 %v1890_v1, %v1889_v63  ;;  %v1888_v37 = vmul.f32 0.5, %v1856_v58  ;;  %v3813_v14 = vpop.eup %3812  ;;  %v2105_v61 = vmul.f32 0.5, %v1549_v43  ;;  %v3460_v0 = vpack.i.bf16 %v2227_v11, %v4801_v46  ;;  %v3278_v18 = vpop.f32.mrb[66].mxu0 }
 0x30f   : > { %v1799_v40 = vmul.f32 0.5, %v1709_v32  ;;  %v1720_v10 = vadd.f32 %v3274_v31, %v4945_v20  ;;  %v3815_v2 = vpop.eup %3814  ;;  %v1861_v30 = vadd.f32 1.0, %v3813_v14  ;;  %3824 = vtanh.f32 %v1801_v62  ;;  %v1727_v63 = vpop.f32.mrb[67].mxu0 }
 0x310   : > { %3206 = vst [vmem:[%s5014_s29 + $0x18] sm:$0xff] %v3142_v29   ;;  %v3137_v53 = vpack.c.bf16 %v1888_v37, %v1887_v60  ;;  %v1553_v52 = vadd.f32 %v1552_v59, %v4631_v6  ;;  %v3817_v4 = vpop.eup %3816  ;;  %v2167_v13 = vadd.f32 1.0, %v3815_v2  ;;  %3826 = vtanh.f32 %v2105_v61  ;;  %3461 = vxpose.xlu1.b32.cont [9/16] %v3460_v0, 128  ;;  %v5217_v29 = vld [vmem:[#allocation2_spill] sm:$0xff]  ;;  %v5218_v37 = vld [vmem:[#allocation7_spill] sm:$0xff]  ;;  %v5220_v61 = vld [vmem:[#allocation9_spill] sm:$0xff] }
 0x311   : > { %v5215_v46 = vpack.i.bf16 %v4606_v3, %v4797_v21  ;;  %v1802_v55 = vmul.f32 0.5, %v1720_v10  ;;  %v1712_v31 = vadd.f32 %v4945_v20, %v1711_v17  ;;  %v1893_v8 = vmul.f32 0.5, %v1861_v30 }
 0x312   : > { %3205 = vst [vmem:[%s5014_s29 + $0x10] sm:$0xff] %v3137_v53   ;;  %v1859_v45 = vadd.f32 1.0, %v3817_v4  ;;  %3828 = vtanh.f32 %v1799_v40  ;;  %v2106_v7 = vmul.f32 0.5, %v1553_v52  ;;  %v2199_v39 = vmul.f32 0.5, %v2167_v13 }
 0x313   : > { %3349 = vxpose.xlu0.b32.cont [9/16] %v5215_v46, 128  ;;  %3830 = vtanh.f32 %v1802_v55  ;;  %v1800_v6 = vmul.f32 0.5, %v1712_v31  ;;  %v2228_v59 = vmul.f32 %v5016_v47, %v4962_v9  ;;  %v1733_v3 = vadd.f32 %v3277_v54, %v4945_v20  ;;  %v5222_v31 = vld [vmem:[#allocation8_spill] sm:$0xff] }
 0x314   : > { %v3819_v42 = vpop.eup %3818  ;;  %v1891_v23 = vmul.f32 0.5, %v1859_v45  ;;  %3832 = vtanh.f32 %v2106_v7  ;;  %v2229_v21 = vmul.f32 %v5033_v44, %v4974_v16  ;;  %v5216_v33 = vpack.i.bf16 %v4609_v34, %v4807_v12  ;;  %v3281_v9 = vpop.f32.mrb[68].mxu0 }
 0x315   : > { %v3821_v17 = vpop.eup %3820  ;;  %v1862_v38 = vadd.f32 1.0, %v3819_v42  ;;  %3834 = vtanh.f32 %v1800_v6  ;;  %v3462_v60 = vpack.i.bf16 %v2228_v59, %v4809_v19  ;;  %v1725_v22 = vadd.f32 %v4945_v20, %v1724_v49  ;;  %v1740_v16 = vpop.f32.mrb[69].mxu0 }
 0x316   : > { %v3823_v47 = vpop.eup %3822  ;;  %v2168_v25 = vadd.f32 1.0, %v3821_v17  ;;  %v1805_v5 = vmul.f32 0.5, %v1733_v3  ;;  %v3464_v26 = vpack.i.bf16 %v2229_v21, %v4821_v41  ;;  %v1736_v1 = vadd.f32 %v3278_v18, %v4945_v20  ;;  %v3282_v43 = vpop.f32.mrb[70].mxu0 }
 0x317   : > { %3351 = vxpose.xlu0.b32.cont [10/16] %v5216_v33, 128  ;;  %v1894_v44 = vmul.f32 0.5, %v1862_v38  ;;  %v1860_v58 = vadd.f32 1.0, %v3823_v47  ;;  %3463 = vxpose.xlu1.b32.cont [10/16] %v3462_v60, 128  ;;  %v1803_v15 = vmul.f32 0.5, %v1725_v22  ;;  %v1728_v19 = vadd.f32 %v4945_v20, %v1727_v63  ;;  %v1743_v32 = vpop.f32.mrb[71].mxu0 }
 0x318   : > { %v2200_v34 = vmul.f32 0.5, %v2168_v25  ;;  %3836 = vtanh.f32 %v1805_v5  ;;  %v1806_v12 = vmul.f32 0.5, %v1736_v1  ;;  %v2230_v11 = vmul.f32 %v5043_v57, %v4984_v24  ;;  %v5224_v5 = vld [vmem:[#allocation4_spill] sm:$0xff] }
 0x319   : > { %v3152_v54 = vpack.c.bf16 %v1894_v44, %v1893_v8  ;;  %v1892_v41 = vmul.f32 0.5, %v1860_v58  ;;  %3838 = vtanh.f32 %v1803_v15  ;;  %v5219_v62 = vpack.i.bf16 %v5217_v29, %v5218_v37  ;;  %v3825_v14 = vpop.eup %3824 }
 0x31a   : > { %v1804_v49 = vmul.f32 0.5, %v1728_v19  ;;  %3840 = vtanh.f32 %v1806_v12  ;;  %v3466_v0 = vpack.i.bf16 %v2230_v11, %v5220_v61  ;;  %v1749_v40 = vadd.f32 %v3281_v9, %v4945_v20  ;;  %v3827_v18 = vpop.eup %3826 }
 0x31b   : > { %3353 = vxpose.xlu0.b32.cont [11/16] %v5219_v62, 128  ;;  %v2231_v10 = vmul.f32 %v2199_v39, %v4999_v50  ;;  %3208 = vst [vmem:[%s5014_s29 + $0x28] sm:$0xff] %v3152_v54   ;;  %v3147_v24 = vpack.c.bf16 %v1892_v41, %v1891_v23  ;;  %v1865_v57 = vadd.f32 1.0, %v3825_v14  ;;  %3465 = vxpose.xlu1.b32.cont [11/16] %v3464_v26, 128  ;;  %v2169_v30 = vadd.f32 1.0, %v3827_v18  ;;  %v5221_v50 = vld [vmem:[#allocation3_spill] sm:$0xff]  ;;  %v5225_v26 = vld [vmem:[#allocation10_spill] sm:$0xff] }
 0x31c   : > { %3842 = vtanh.f32 %v1804_v49  ;;  %v1741_v2 = vadd.f32 %v4945_v20, %v1740_v16  ;;  %v3829_v53 = vpop.eup %3828  ;;  %v1809_v52 = vmul.f32 0.5, %v1749_v40  ;;  %v1752_v4 = vadd.f32 %v3282_v43, %v4945_v20  ;;  %v3285_v39 = vpop.f32.mrb[72].mxu0  ;;  %v5227_v43 = vld [vmem:[#allocation11_spill] sm:$0xff]  ;;  %v5228_v40 = vld [vmem:[#allocation5_spill] sm:$0xff] }
 0x31d   : > { %v3468_v63 = vpack.i.bf16 %v2231_v10, %v4854_v48  ;;  %v3831_v13 = vpop.eup %3830  ;;  %3207 = vst [vmem:[%s5014_s29 + $0x20] sm:$0xff] %v3147_v24   ;;  %v1897_v46 = vmul.f32 0.5, %v1865_v57  ;;  %v1863_v55 = vadd.f32 1.0, %v3829_v53  ;;  %v5223_v8 = vpack.i.bf16 %v5221_v50, %v5222_v31  ;;  %v1756_v48 = vpop.f32.mrb[73].mxu0  ;;  %v5229_v10 = vld [vmem:[#allocation12_spill] sm:$0xff] }
 0x31e   : > { %v1807_v45 = vmul.f32 0.5, %v1741_v2  ;;  %v1744_v7 = vadd.f32 %v4945_v20, %v1743_v32  ;;  %v3833_v6 = vpop.eup %3832  ;;  %v2201_v59 = vmul.f32 0.5, %v2169_v30  ;;  %v1866_v42 = vadd.f32 1.0, %v3831_v13  ;;  %v3286_v60 = vpop.f32.mrb[74].mxu0 }
 0x31f   : > { %3355 = vxpose.xlu0.b32.cont [12/16] %v5223_v8, 128  ;;  %3844 = vtanh.f32 %v1809_v52  ;;  %v1810_v23 = vmul.f32 0.5, %v1752_v4  ;;  %v3835_v3 = vpop.eup %3834  ;;  %v1895_v21 = vmul.f32 0.5, %v1863_v55  ;;  %v2170_v17 = vadd.f32 1.0, %v3833_v6  ;;  %3467 = vxpose.xlu1.b32.cont [12/16] %v3466_v0, 128  ;;  %v1759_v47 = vpop.f32.mrb[75].mxu0  ;;  %v5231_v6 = vld [vmem:[#allocation6_spill] sm:$0xff] }
 0x320   : > { %3846 = vtanh.f32 %v1807_v45  ;;  %v1808_v38 = vmul.f32 0.5, %v1744_v7  ;;  %v1898_v33 = vmul.f32 0.5, %v1866_v42  ;;  %v1864_v22 = vadd.f32 1.0, %v3835_v3 }
 0x321   : > { %3848 = vtanh.f32 %v1810_v23  ;;  %v2232_v9 = vmul.f32 %v2200_v34, %v5024_v56  ;;  %v2202_v25 = vmul.f32 0.5, %v2170_v17  ;;  %v5226_v1 = vpack.i.bf16 %v5224_v5, %v5225_v26 }
 0x322   : > { %3850 = vtanh.f32 %v1808_v38  ;;  %v1765_v16 = vadd.f32 %v3285_v39, %v4945_v20  ;;  %v2233_v44 = vmul.f32 %v2201_v59, %v5040_v35  ;;  %v3837_v58 = vpop.eup %3836  ;;  %v3162_v15 = vpack.c.bf16 %v1898_v33, %v1897_v46  ;;  %v5232_v59 = vld [vmem:[#allocation13_spill] sm:$0xff] }
 0x323   : > { %3357 = vxpose.xlu0.b32.cont [13/16] %v5226_v1, 128  ;;  %v1896_v19 = vmul.f32 0.5, %v1864_v22  ;;  %v3470_v12 = vpack.i.bf16 %v2232_v9, %v5227_v43  ;;  %v1757_v11 = vadd.f32 %v4945_v20, %v1756_v48  ;;  %v3839_v56 = vpop.eup %3838  ;;  %v1869_v34 = vadd.f32 1.0, %v3837_v58  ;;  %3469 = vxpose.xlu1.b32.cont [13/16] %v3468_v63, 128 }
 0x324   : > { %v1813_v32 = vmul.f32 0.5, %v1765_v16  ;;  %v3472_v54 = vpack.i.bf16 %v2233_v44, %v4878_v27  ;;  %v1768_v41 = vadd.f32 %v3286_v60, %v4945_v20  ;;  %v3841_v29 = vpop.eup %3840  ;;  %3210 = vst [vmem:[%s5014_s29 + $0x38] sm:$0xff] %v3162_v15   ;;  %v1867_v35 = vadd.f32 1.0, %v3839_v56  ;;  %v3289_v57 = vpop.f32.mrb[76].mxu0 }
 0x325   : > { %v3157_v37 = vpack.c.bf16 %v1896_v19, %v1895_v21  ;;  %v1811_v62 = vmul.f32 0.5, %v1757_v11  ;;  %v1760_v49 = vadd.f32 %v4945_v20, %v1759_v47  ;;  %v1901_v61 = vmul.f32 0.5, %v1869_v34  ;;  %v1772_v30 = vpop.f32.mrb[77].mxu0 }
 0x326   : > { %v3843_v14 = vpop.eup %3842  ;;  %v1870_v0 = vadd.f32 1.0, %v3841_v29  ;;  %v5230_v18 = vpack.i.bf16 %v5228_v40, %v5229_v10  ;;  %3852 = vtanh.f32 %v1813_v32  ;;  %v1814_v24 = vmul.f32 0.5, %v1768_v41  ;;  %v3290_v13 = vpop.f32.mrb[78].mxu0 }
 0x327   : > { %3209 = vst [vmem:[%s5014_s29 + $0x30] sm:$0xff] %v3157_v37   ;;  %v1899_v27 = vmul.f32 0.5, %v1867_v35  ;;  %v1868_v2 = vadd.f32 1.0, %v3843_v14  ;;  %3854 = vtanh.f32 %v1811_v62  ;;  %v1812_v53 = vmul.f32 0.5, %v1760_v49  ;;  %3471 = vxpose.xlu1.b32.cont [14/16] %v3470_v12, 128  ;;  %v1775_v8 = vpop.f32.mrb[79].mxu0 }
 0x328   : > { %3359 = vxpose.xlu0.b32.cont [14/16] %v5230_v18, 128  ;;  %v1902_v52 = vmul.f32 0.5, %v1870_v0  ;;  %3856 = vtanh.f32 %v1814_v24  ;;  %v2234_v63 = vmul.f32 %v2202_v25, %v5050_v28  ;;  %v1781_v4 = vadd.f32 %v3289_v57, %v4945_v20  ;;  %v5234_v28 = vld [vmem:[#allocation14_spill] sm:$0xff] }
 0x329   : > { %v3845_v46 = vpop.eup %3844  ;;  %v1900_v55 = vmul.f32 0.5, %v1868_v2  ;;  %3858 = vtanh.f32 %v1812_v53  ;;  %v1773_v50 = vadd.f32 %v4945_v20, %v1772_v30  ;;  %v1784_v31 = vadd.f32 %v3290_v13, %v4945_v20 }
 0x32a   : > { %v3847_v45 = vpop.eup %3846  ;;  %v3172_v7 = vpack.c.bf16 %v1902_v52, %v1901_v61  ;;  %v1873_v39 = vadd.f32 1.0, %v3845_v46  ;;  %v5233_v42 = vpack.i.bf16 %v5231_v6, %v5232_v59  ;;  %v3474_v23 = vpack.i.bf16 %v2234_v63, %v5234_v28 }
 0x32b   : > { %v1817_v48 = vmul.f32 0.5, %v1781_v4  ;;  %v3849_v3 = vpop.eup %3848  ;;  %v3167_v21 = vpack.c.bf16 %v1900_v55, %v1899_v27  ;;  %v1871_v17 = vadd.f32 1.0, %v3847_v45  ;;  %v1815_v38 = vmul.f32 0.5, %v1773_v50  ;;  %3473 = vxpose.xlu1.b32.cont [15/16] %v3472_v54, 128 }
 0x32c   : > { %3361 = vxpose.xlu0.b32.cont [15/16] %v5233_v42, 128  ;;  %v1818_v60 = vmul.f32 0.5, %v1784_v31  ;;  %v3851_v33 = vpop.eup %3850  ;;  %3212 = vst [vmem:[%s5014_s29 + $0x48] sm:$0xff] %v3172_v7   ;;  %v1874_v22 = vadd.f32 1.0, %v3849_v3  ;;  %v1776_v9 = vadd.f32 %v4945_v20, %v1775_v8  ;;  %v1905_v25 = vmul.f32 0.5, %v1873_v39 }
 0x32d   : > { %3860 = vtanh.f32 %v1817_v48  ;;  %3211 = vst [vmem:[%s5014_s29 + $0x40] sm:$0xff] %v3167_v21   ;;  %v1872_v47 = vadd.f32 1.0, %v3851_v33  ;;  %v5235_v26 = vpack.i.bf16 %v4679_v36, %v4882_v51  ;;  %v1903_v16 = vmul.f32 0.5, %v1871_v17 }
 0x32e   : > { %3862 = vtanh.f32 %v1815_v38  ;;  %v1906_v5 = vmul.f32 0.5, %v1874_v22  ;;  %v1816_v1 = vmul.f32 0.5, %v1776_v9 }
 0x32f   : > { %3864 = vtanh.f32 %v1818_v60  ;;  %v1904_v44 = vmul.f32 0.5, %v1872_v47  ;;  %3475 = vxpose.xlu1.b32.end [16/16] %v3474_v23, 128 }
 0x330   : > { %3363 = vxpose.xlu0.b32.end [16/16] %v5235_v26, 128  ;;  %v3853_v58 = vpop.eup %3852  ;;  %v3182_v15 = vpack.c.bf16 %v1906_v5, %v1905_v25  ;;  %3866 = vtanh.f32 %v1816_v1 }
 0x331   : > { %v3855_v20 = vpop.eup %3854  ;;  %v3177_v19 = vpack.c.bf16 %v1904_v44, %v1903_v16  ;;  %v1877_v43 = vadd.f32 1.0, %v3853_v58 }
 0x332   : > { %v3857_v12 = vpop.eup %3856  ;;  %3214 = vst [vmem:[%s5014_s29 + $0x58] sm:$0xff] %v3182_v15   ;;  %v1875_v11 = vadd.f32 1.0, %v3855_v20 }
 0x333   : > { %v3859_v56 = vpop.eup %3858  ;;  %3213 = vst [vmem:[%s5014_s29 + $0x50] sm:$0xff] %v3177_v19   ;;  %v1878_v36 = vadd.f32 1.0, %v3857_v12  ;;  %v1909_v34 = vmul.f32 0.5, %v1877_v43 }
 0x334   : > { %v1876_v51 = vadd.f32 1.0, %v3859_v56  ;;  %v1907_v41 = vmul.f32 0.5, %v1875_v11 }
 0x335   : > { %v1910_v32 = vmul.f32 0.5, %v1878_v36 }
 0x336   : > { %v1908_v29 = vmul.f32 0.5, %v1876_v51 }
 0x337   : > { %v3861_v54 = vpop.eup %3860  ;;  %v3192_v35 = vpack.c.bf16 %v1910_v32, %v1909_v34 }
 0x338   : > { %v3863_v37 = vpop.eup %3862  ;;  %v1881_v62 = vadd.f32 1.0, %v3861_v54  ;;  %v3187_v14 = vpack.c.bf16 %v1908_v29, %v1907_v41 }
 0x339   : > { %v3865_v49 = vpop.eup %3864  ;;  %3216 = vst [vmem:[%s5014_s29 + $0x68] sm:$0xff] %v3192_v35   ;;  %v1879_v61 = vadd.f32 1.0, %v3863_v37 }
 0x33a   : > { %v1882_v0 = vadd.f32 1.0, %v3865_v49  ;;  %v3867_v40 = vpop.eup %3866  ;;  %3215 = vst [vmem:[%s5014_s29 + $0x60] sm:$0xff] %v3187_v14   ;;  %v1913_v10 = vmul.f32 0.5, %v1881_v62 }
 0x33b   : > { %v1880_v24 = vadd.f32 1.0, %v3867_v40  ;;  %v1911_v57 = vmul.f32 0.5, %v1879_v61 }
 0x33c   : > { %v1914_v18 = vmul.f32 0.5, %v1882_v0 }
 0x33d   : > { %v1912_v2 = vmul.f32 0.5, %v1880_v24 }
 0x33e   : > { %v3202_v27 = vpack.c.bf16 %v1914_v18, %v1913_v10 }
 0x33f   : > { %v3197_v53 = vpack.c.bf16 %v1912_v2, %v1911_v57 }
 0x340   : > { %3218 = vst [vmem:[%s5014_s29 + $0x78] sm:$0xff] %v3202_v27  }
 0x341   : > { %3217 = vst [vmem:[%s5014_s29 + $0x70] sm:$0xff] %v3197_v53  }
 0x373   : > { %v3476_v4 = vpop.trf.xlu1 }
 0x374   : > { %v3364_v30 = vpop.trf.xlu0  ;;  %v3480_v13 = vunpack.i.h.bf16 %v3476_v4  ;;  %v3477_v46 = vunpack.i.l.bf16 %v3476_v4 }
 0x375   : > { %v3368_v52 = vunpack.i.h.bf16 %v3364_v30  ;;  %v3365_v63 = vunpack.i.l.bf16 %v3364_v30 }
 0x376   : > { %v3076_v31 = vpack.c.bf16 %v3480_v13, %v3477_v46 }
 0x377   : > { %v3060_v55 = vpack.c.bf16 %v3368_v52, %v3365_v63  ;;  %v3481_v45 = vpop.trf.xlu1 }
 0x378   : > { %v3369_v50 = vpop.trf.xlu0  ;;  %2571 = vst [vmem:[%s5137_s15] sm:$0xff] %v3076_v31  ;;  %v3485_v39 = vunpack.i.h.bf16 %v3481_v45  ;;  %v3482_v6 = vunpack.i.l.bf16 %v3481_v45 }
 0x379   : > { %v3373_v8 = vunpack.i.h.bf16 %v3369_v50  ;;  %2395 = vst [vmem:[%s5131_s12] sm:$0xff] %v3060_v55  ;;  %v3370_v7 = vunpack.i.l.bf16 %v3369_v50 }
 0x37a   : > { %v3077_v28 = vpack.c.bf16 %v3485_v39, %v3482_v6 }
 0x37b   : > { %v3061_v59 = vpack.c.bf16 %v3373_v8, %v3370_v7  ;;  %v3486_v48 = vpop.trf.xlu1 }
 0x37c   : > { %v3374_v42 = vpop.trf.xlu0  ;;  %2572 = vst [vmem:[%s5137_s15 + $0x8] sm:$0xff] %v3077_v28  ;;  %v3490_v21 = vunpack.i.h.bf16 %v3486_v48  ;;  %v3487_v17 = vunpack.i.l.bf16 %v3486_v48 }
 0x37d   : > { %v3378_v23 = vunpack.i.h.bf16 %v3374_v42  ;;  %2396 = vst [vmem:[%s5131_s12 + $0x8] sm:$0xff] %v3061_v59  ;;  %v3375_v3 = vunpack.i.l.bf16 %v3374_v42 }
 0x37e   : > { %v3078_v33 = vpack.c.bf16 %v3490_v21, %v3487_v17 }
 0x37f   : > { %v3062_v38 = vpack.c.bf16 %v3378_v23, %v3375_v3  ;;  %v3491_v9 = vpop.trf.xlu1 }
 0x380   : > { %v3379_v60 = vpop.trf.xlu0  ;;  %2573 = vst [vmem:[%s5137_s15 + $0x10] sm:$0xff] %v3078_v33  ;;  %v3495_v25 = vunpack.i.h.bf16 %v3491_v9  ;;  %v3492_v5 = vunpack.i.l.bf16 %v3491_v9 }
 0x381   : > { %v3383_v22 = vunpack.i.h.bf16 %v3379_v60  ;;  %2397 = vst [vmem:[%s5131_s12 + $0x10] sm:$0xff] %v3062_v38  ;;  %v3380_v47 = vunpack.i.l.bf16 %v3379_v60 }
 0x382   : > { %v3079_v16 = vpack.c.bf16 %v3495_v25, %v3492_v5 }
 0x383   : > { %v3063_v26 = vpack.c.bf16 %v3383_v22, %v3380_v47  ;;  %v3496_v58 = vpop.trf.xlu1 }
 0x384   : > { %v3384_v1 = vpop.trf.xlu0  ;;  %2574 = vst [vmem:[%s5137_s15 + $0x18] sm:$0xff] %v3079_v16  ;;  %v3500_v20 = vunpack.i.h.bf16 %v3496_v58  ;;  %v3497_v19 = vunpack.i.l.bf16 %v3496_v58 }
 0x385   : > { %v3388_v44 = vunpack.i.h.bf16 %v3384_v1  ;;  %2398 = vst [vmem:[%s5131_s12 + $0x18] sm:$0xff] %v3063_v26  ;;  %v3385_v15 = vunpack.i.l.bf16 %v3384_v1 }
 0x386   : > { %v3080_v11 = vpack.c.bf16 %v3500_v20, %v3497_v19 }
 0x387   : > { %v3064_v43 = vpack.c.bf16 %v3388_v44, %v3385_v15  ;;  %v3501_v36 = vpop.trf.xlu1 }
 0x388   : > { %v3389_v12 = vpop.trf.xlu0  ;;  %2575 = vst [vmem:[%s5137_s15 + $0x20] sm:$0xff] %v3080_v11  ;;  %v3505_v34 = vunpack.i.h.bf16 %v3501_v36  ;;  %v3502_v32 = vunpack.i.l.bf16 %v3501_v36 }
 0x389   : > { %v3393_v56 = vunpack.i.h.bf16 %v3389_v12  ;;  %2399 = vst [vmem:[%s5131_s12 + $0x20] sm:$0xff] %v3064_v43  ;;  %v3390_v51 = vunpack.i.l.bf16 %v3389_v12 }
 0x38a   : > { %v3081_v29 = vpack.c.bf16 %v3505_v34, %v3502_v32 }
 0x38b   : > { %v3065_v54 = vpack.c.bf16 %v3393_v56, %v3390_v51  ;;  %v3506_v35 = vpop.trf.xlu1 }
 0x38c   : > { %v3394_v41 = vpop.trf.xlu0  ;;  %2576 = vst [vmem:[%s5137_s15 + $0x28] sm:$0xff] %v3081_v29  ;;  %v3510_v49 = vunpack.i.h.bf16 %v3506_v35  ;;  %v3507_v14 = vunpack.i.l.bf16 %v3506_v35 }
 0x38d   : > { %v3398_v37 = vunpack.i.h.bf16 %v3394_v41  ;;  %2400 = vst [vmem:[%s5131_s12 + $0x28] sm:$0xff] %v3065_v54  ;;  %v3395_v62 = vunpack.i.l.bf16 %v3394_v41 }
 0x38e   : > { %v3082_v40 = vpack.c.bf16 %v3510_v49, %v3507_v14 }
 0x38f   : > { %v3066_v61 = vpack.c.bf16 %v3398_v37, %v3395_v62  ;;  %v3511_v18 = vpop.trf.xlu1 }
 0x390   : > { %v3399_v0 = vpop.trf.xlu0  ;;  %2577 = vst [vmem:[%s5137_s15 + $0x30] sm:$0xff] %v3082_v40  ;;  %v3515_v57 = vunpack.i.h.bf16 %v3511_v18  ;;  %v3512_v27 = vunpack.i.l.bf16 %v3511_v18 }
 0x391   : > { %v3403_v10 = vunpack.i.h.bf16 %v3399_v0  ;;  %2401 = vst [vmem:[%s5131_s12 + $0x30] sm:$0xff] %v3066_v61  ;;  %v3400_v24 = vunpack.i.l.bf16 %v3399_v0 }
 0x392   : > { %v3083_v30 = vpack.c.bf16 %v3515_v57, %v3512_v27 }
 0x393   : > { %v3067_v2 = vpack.c.bf16 %v3403_v10, %v3400_v24  ;;  %v3516_v63 = vpop.trf.xlu1 }
 0x394   : > { %v3404_v53 = vpop.trf.xlu0  ;;  %2578 = vst [vmem:[%s5137_s15 + $0x38] sm:$0xff] %v3083_v30  ;;  %v3520_v13 = vunpack.i.h.bf16 %v3516_v63  ;;  %v3517_v46 = vunpack.i.l.bf16 %v3516_v63 }
 0x395   : > { %v3408_v52 = vunpack.i.h.bf16 %v3404_v53  ;;  %2402 = vst [vmem:[%s5131_s12 + $0x38] sm:$0xff] %v3067_v2  ;;  %v3405_v4 = vunpack.i.l.bf16 %v3404_v53 }
 0x396   : > { %v3084_v31 = vpack.c.bf16 %v3520_v13, %v3517_v46 }
 0x397   : > { %v3068_v55 = vpack.c.bf16 %v3408_v52, %v3405_v4  ;;  %v3521_v45 = vpop.trf.xlu1 }
 0x398   : > { %v3409_v50 = vpop.trf.xlu0  ;;  %2579 = vst [vmem:[%s5137_s15 + $0x40] sm:$0xff] %v3084_v31  ;;  %v3525_v39 = vunpack.i.h.bf16 %v3521_v45  ;;  %v3522_v6 = vunpack.i.l.bf16 %v3521_v45 }
 0x399   : > { %v3413_v8 = vunpack.i.h.bf16 %v3409_v50  ;;  %2403 = vst [vmem:[%s5131_s12 + $0x40] sm:$0xff] %v3068_v55  ;;  %v3410_v7 = vunpack.i.l.bf16 %v3409_v50 }
 0x39a   : > { %v3085_v28 = vpack.c.bf16 %v3525_v39, %v3522_v6 }
 0x39b   : > { %v3069_v59 = vpack.c.bf16 %v3413_v8, %v3410_v7  ;;  %v3526_v48 = vpop.trf.xlu1 }
 0x39c   : > { %v3414_v42 = vpop.trf.xlu0  ;;  %2580 = vst [vmem:[%s5137_s15 + $0x48] sm:$0xff] %v3085_v28  ;;  %v3530_v21 = vunpack.i.h.bf16 %v3526_v48  ;;  %v3527_v17 = vunpack.i.l.bf16 %v3526_v48 }
 0x39d   : > { %v3418_v23 = vunpack.i.h.bf16 %v3414_v42  ;;  %2404 = vst [vmem:[%s5131_s12 + $0x48] sm:$0xff] %v3069_v59  ;;  %v3415_v3 = vunpack.i.l.bf16 %v3414_v42 }
 0x39e   : > { %v3086_v33 = vpack.c.bf16 %v3530_v21, %v3527_v17 }
 0x39f   : > { %v3070_v38 = vpack.c.bf16 %v3418_v23, %v3415_v3  ;;  %v3531_v9 = vpop.trf.xlu1 }
 0x3a0   : > { %v3419_v60 = vpop.trf.xlu0  ;;  %2581 = vst [vmem:[%s5137_s15 + $0x50] sm:$0xff] %v3086_v33  ;;  %v3535_v25 = vunpack.i.h.bf16 %v3531_v9  ;;  %v3532_v5 = vunpack.i.l.bf16 %v3531_v9 }
 0x3a1   : > { %v3423_v22 = vunpack.i.h.bf16 %v3419_v60  ;;  %2405 = vst [vmem:[%s5131_s12 + $0x50] sm:$0xff] %v3070_v38  ;;  %v3420_v47 = vunpack.i.l.bf16 %v3419_v60 }
 0x3a2   : > { %v3087_v16 = vpack.c.bf16 %v3535_v25, %v3532_v5 }
 0x3a3   : > { %v3071_v26 = vpack.c.bf16 %v3423_v22, %v3420_v47  ;;  %v3536_v58 = vpop.trf.xlu1 }
 0x3a4   : > { %v3424_v1 = vpop.trf.xlu0  ;;  %2582 = vst [vmem:[%s5137_s15 + $0x58] sm:$0xff] %v3087_v16  ;;  %v3540_v20 = vunpack.i.h.bf16 %v3536_v58  ;;  %v3537_v19 = vunpack.i.l.bf16 %v3536_v58 }
 0x3a5   : > { %v3428_v44 = vunpack.i.h.bf16 %v3424_v1  ;;  %2406 = vst [vmem:[%s5131_s12 + $0x58] sm:$0xff] %v3071_v26  ;;  %v3425_v15 = vunpack.i.l.bf16 %v3424_v1 }
 0x3a6   : > { %v3088_v11 = vpack.c.bf16 %v3540_v20, %v3537_v19 }
 0x3a7   : > { %v3072_v43 = vpack.c.bf16 %v3428_v44, %v3425_v15  ;;  %v3541_v36 = vpop.trf.xlu1 }
 0x3a8   : > { %v3429_v12 = vpop.trf.xlu0  ;;  %2583 = vst [vmem:[%s5137_s15 + $0x60] sm:$0xff] %v3088_v11  ;;  %v3545_v34 = vunpack.i.h.bf16 %v3541_v36  ;;  %v3542_v32 = vunpack.i.l.bf16 %v3541_v36 }
 0x3a9   : > { %v3433_v56 = vunpack.i.h.bf16 %v3429_v12  ;;  %2407 = vst [vmem:[%s5131_s12 + $0x60] sm:$0xff] %v3072_v43  ;;  %v3430_v51 = vunpack.i.l.bf16 %v3429_v12 }
 0x3aa   : > { %v3089_v29 = vpack.c.bf16 %v3545_v34, %v3542_v32 }
 0x3ab   : > { %v3073_v54 = vpack.c.bf16 %v3433_v56, %v3430_v51  ;;  %v3546_v35 = vpop.trf.xlu1 }
 0x3ac   : > { %v3434_v41 = vpop.trf.xlu0  ;;  %2584 = vst [vmem:[%s5137_s15 + $0x68] sm:$0xff] %v3089_v29  ;;  %v3550_v49 = vunpack.i.h.bf16 %v3546_v35  ;;  %v3547_v14 = vunpack.i.l.bf16 %v3546_v35 }
 0x3ad   : > { %v3438_v37 = vunpack.i.h.bf16 %v3434_v41  ;;  %2408 = vst [vmem:[%s5131_s12 + $0x68] sm:$0xff] %v3073_v54  ;;  %v3435_v62 = vunpack.i.l.bf16 %v3434_v41 }
 0x3ae   : > { %v3090_v40 = vpack.c.bf16 %v3550_v49, %v3547_v14 }
 0x3af   : > { %v3074_v61 = vpack.c.bf16 %v3438_v37, %v3435_v62  ;;  %v3551_v18 = vpop.trf.xlu1 }
 0x3b0   : > { %v3439_v0 = vpop.trf.xlu0  ;;  %2585 = vst [vmem:[%s5137_s15 + $0x70] sm:$0xff] %v3090_v40  ;;  %v3555_v57 = vunpack.i.h.bf16 %v3551_v18  ;;  %v3552_v27 = vunpack.i.l.bf16 %v3551_v18 }
 0x3b1   : > { %v3443_v10 = vunpack.i.h.bf16 %v3439_v0  ;;  %2409 = vst [vmem:[%s5131_s12 + $0x70] sm:$0xff] %v3074_v61  ;;  %v3440_v24 = vunpack.i.l.bf16 %v3439_v0 }
 0x3b2   : > { %v3091_v53 = vpack.c.bf16 %v3555_v57, %v3552_v27 }
 0x3b3   : > { %v3075_v2 = vpack.c.bf16 %v3443_v10, %v3440_v24 }
 0x3b4   : > { %2586 = vst [vmem:[%s5137_s15 + $0x78] sm:$0xff] %v3091_v53 }
 0x3b5   : > { %2410 = vst [vmem:[%s5131_s12 + $0x78] sm:$0xff] %v3075_v2 }
 0x3b6 PF: > { %s22_s19 = sadd.s32 1, %s3890_s19   ;;  %s5236_s17 = smov %s3886_s18 }
 0x3b7   : > { %p19_p5 = scmp.ge.s32.totalorder %s22_s19, 4   ;;  %s5237_s18 = smov %s5239_s20 }
 0x3b9   :  { %21 = sbr.rel (!%p19_p5) target bundleno = 2 (0x2), region = 110 }

// kernel: triangle_multiplicative_pallas.5
= control target key start
LH: loop header
LB: loop body
LE: loop exit
PB: predicated region body
PF: predicated region fallthrough
CT: control target
= control target key end

     0   :  { %11 = vsyncpa [#allocation3], 0  ;;  %s2592_s0 = inlined_call_operand.vmem [shape: bf16[2,128,256], index: 0, kind: input, shape index: {}]   ;;  %s2593_s1 = inlined_call_operand.vmem [shape: bf16[2,256,128], index: 1, kind: input, shape index: {}]   ;;  %s2594_s2 = inlined_call_operand.vmem [shape: f32[1,128], index: 2, kind: input, shape index: {}]   ;;  %s2595_s3 = inlined_call_operand.vmem [shape: f32[1,128], index: 3, kind: input, shape index: {}]   ;;  %s2596_s4 = inlined_call_operand.vmem [shape: bf16[128,128], index: 4, kind: input, shape index: {}]   ;;  %s2597_s5 = inlined_call_operand.vmem [shape: f32[1,128], index: 5, kind: input, shape index: {}]   ;;  %s2598_s6 = inlined_call_operand.hbm [shape: f32[2,256,128], index: 6, kind: output, shape index: {}]  }
   0x1   :  { %13 = vsyncpa [#allocation3 + $0x1], 0  ;;  %s1905_s21 = smov 0   ;;  %s1907_s22 = smov 0  }
   0x2   :  { %s1909_s23 = smov 0   ;;  %s1911_s24 = smov 0  }
   0x3   :  { %s1913_s25 = smov 0   ;;  %s1915_s26 = smov 0  }
   0x4 LB: > { %s1350_s27 = sadd.s32 4294967295, %s1865_s26   ;;  %s1351_s28 = sadd.s32 4294967294, %s1865_s26   ;;  %s1865_s26 = sphi %s1915_s26, %s19_s26   ;;  %s1861_s25 = sphi %s1913_s25, %s2605_s25   ;;  %s1857_s24 = sphi %s1911_s24, %s2604_s24   ;;  %s1853_s23 = sphi %s1909_s23, %s2603_s23   ;;  %s1849_s22 = sphi %s1907_s22, %s2602_s22   ;;  %s1845_s21 = sphi %s1905_s21, %s2601_s21  }
   0x5   : > { %s31_s29 = sadd.s32 1, %s1861_s25  ;;  %s180_s30 = sadd.s32 1, %s1853_s23 }
   0x6   : > { %p33_p0 = scmp.ge.s32.totalorder %s31_s29, 2  ;;  %p190_p1 = scmp.ne.s32.totalorder %s1853_s23, %s1849_s22 }
   0x7   : > { %p191_p2 = scmp.eq.s32.totalorder %s1350_s27, 1  ;;  %p196_p3 = scmp.ne.s32.totalorder %s1849_s22, %s1845_s21 }
   0x8   : > { %s2607_s29 = smov (%p33_p0, %s31_s29), 0  ;;  %p197_p5 = scmp.eq.s32.totalorder %s1351_s28, 1 }
   0x9   : > { %p1945_p4 = por %p191_p2, %p190_p1  ;;  %s175_s8 = ssub.s32 %s1861_s25, %s2607_s29 }
   0xa   : > { %p1354_p6 = scmp.ge.s32.totalorder %s1865_s26, 1  ;;  %p178_p7 = scmp.eq.s32.totalorder %s175_s8, 0 }
   0xb   : > { %p1952_p8 = por %p197_p5, %p196_p3  ;;  %p253_p9 = scmp.lt.s32.totalorder %s1865_s26, 3 }
   0xc   : > { %s1958_s10 = scalar_select %p178_p7, %s1853_s23, %s180_s30  }
   0xd   : > { %p254_p10 = pnand %p1354_p6, %p253_p9 }
   0xe   : > { %p297_p11 = scmp.lt.s32.totalorder (!%p254_p10), %s1857_s24, 1  ;;  %s293_s13 = sand.u32 (!%p254_p10), 1, %s1849_s22  }
   0xf   : > { %257 = sbr.rel (%p254_p10) target bundleno = 822 (0x336), region = 44  ;;  %s1355_s14 = sshll.u32 (!%p254_p10), %s293_s13, 8 }
  0x10   : > { %s2471_s17 = scalar_lea.vmem (!%p254_p10), [#allocation2], %s1355_s14  ;;  %s1378_s18 = sshll.u32 (!%p254_p10), %s1857_s24, 12 }
  0x11   : > { %s1253_s19 = sshll.u32 (!%p254_p10), %s2471_s17, 4  ;;  %s1867_s8 = smov (!%p254_p10), [#allocation2]   ;;  %s2538_s19 = int_to_ptr.vmem [resolvable:$true] %s1253_s19 }
  0x12   : > { %s1787_s30 = scalar_lea.vmem (!%p254_p10), %s2538_s19, 4096 }
  0x13   : > { %p1788_p12 = scmp.ne.s32.totalorder (!%p254_p10), %s2538_s19, %s1787_s30 }
  0x15   : > { %p1789_p13 = pnand (!%p254_p10), %p1788_p12, %p1945_p4 }
  0x16   : > { %s1962_s11 = scalar_select %p297_p11, %s1857_s24, 1 }
  0x17   : > { %s2536_s24 = scalar_lea.hbm %s2598_s6, %s1378_s18  ;;  %p1790_p0 = pneg %p1789_p13 }
  0x18   : > { %s1376_s12 = sshll.u32 %s1962_s11, 7  ;;  %s1791_s11 = sshll.u32 %s1867_s8, 4  ;;  %s1792_s11 = int_to_ptr.vmem [resolvable:$false] %s1791_s11 }
  0x19   : > { %s1970_s15 = scalar_lea.vmem %s2592_s0, %s1376_s12  ;;  %s2338_s28 = scalar_lea.vmem %s2593_s1, %s1376_s12 }
  0x1a   : > { %v318_v0 = vld [vmem:[%s1970_s15] sm:$0xff]  ;;  %v319_v1 = vld [vmem:[%s1970_s15 + $0x8] sm:$0xff]  ;;  %v320_v6 = vld [vmem:[%s1970_s15 + $0x10] sm:$0xff]  ;;  %s1793_s12 = scalar_lea.vmem %s1792_s11, 8192  ;;  %p1794_p1 = scmp.lt.s32.totalorder %s2538_s19, %s1792_s11 }
  0x1b   : > { %v334_v2 = vunpack.c.l.bf16 %v318_v0  ;;  %v335_v3 = vunpack.c.h.bf16 %v318_v0  ;;  %v336_v4 = vunpack.c.l.bf16 %v319_v1  ;;  %v337_v5 = vunpack.c.h.bf16 %v319_v1  ;;  %v321_v11 = vld [vmem:[%s1970_s15 + $0x18] sm:$0xff]  ;;  %v322_v15 = vld [vmem:[%s1970_s15 + $0x20] sm:$0xff]  ;;  %v323_v19 = vld [vmem:[%s1970_s15 + $0x28] sm:$0xff]  ;;  %p1795_p2 = scmp.lt.s32.totalorder %s1793_s12, %s1787_s30 }
  0x1c   : > { %v338_v9 = vunpack.c.l.bf16 %v320_v6  ;;  %v339_v10 = vunpack.c.h.bf16 %v320_v6  ;;  %v340_v13 = vunpack.c.l.bf16 %v321_v11  ;;  %v341_v14 = vunpack.c.h.bf16 %v321_v11  ;;  %v324_v23 = vld [vmem:[%s1970_s15 + $0x30] sm:$0xff]  ;;  %v325_v27 = vld [vmem:[%s1970_s15 + $0x38] sm:$0xff]  ;;  %v326_v31 = vld [vmem:[%s1970_s15 + $0x40] sm:$0xff] }
  0x1d   : > { %v1603_v7 = vpack.i.bf16 %v335_v3, %v334_v2  ;;  %v1605_v8 = vpack.i.bf16 %v337_v5, %v336_v4  ;;  %v342_v17 = vunpack.c.l.bf16 %v322_v15  ;;  %v343_v18 = vunpack.c.h.bf16 %v322_v15  ;;  %v327_v35 = vld [vmem:[%s1970_s15 + $0x48] sm:$0xff]  ;;  %v328_v39 = vld [vmem:[%s1970_s15 + $0x50] sm:$0xff]  ;;  %v329_v43 = vld [vmem:[%s1970_s15 + $0x58] sm:$0xff]  ;;  %p1796_p3 = por %p1795_p2, %p1794_p1 }
  0x1e   : > { %v1607_v12 = vpack.i.bf16 %v339_v10, %v338_v9  ;;  %v1609_v16 = vpack.i.bf16 %v341_v14, %v340_v13  ;;  %v344_v21 = vunpack.c.l.bf16 %v323_v19  ;;  %v345_v22 = vunpack.c.h.bf16 %v323_v19  ;;  %v330_v47 = vld [vmem:[%s1970_s15 + $0x60] sm:$0xff]  ;;  %v331_v51 = vld [vmem:[%s1970_s15 + $0x68] sm:$0xff]  ;;  %v332_v55 = vld [vmem:[%s1970_s15 + $0x70] sm:$0xff] }
  0x1f   : > { %1604 = vxpose.xlu0.b32.start [1/16] %v1603_v7, 128  ;;  %v1611_v20 = vpack.i.bf16 %v343_v18, %v342_v17  ;;  %v346_v25 = vunpack.c.l.bf16 %v324_v23  ;;  %v347_v26 = vunpack.c.h.bf16 %v324_v23  ;;  %v348_v29 = vunpack.c.l.bf16 %v325_v27  ;;  %v333_v59 = vld [vmem:[%s1970_s15 + $0x78] sm:$0xff]  ;;  %p1797_p5 = pnand %p1796_p3, %p1790_p0 }
  0x20   : > { %v1613_v24 = vpack.i.bf16 %v345_v22, %v344_v21  ;;  %v349_v30 = vunpack.c.h.bf16 %v325_v27  ;;  %v350_v33 = vunpack.c.l.bf16 %v326_v31  ;;  %v351_v34 = vunpack.c.h.bf16 %v326_v31 }
  0x21   : > { %v1615_v28 = vpack.i.bf16 %v347_v26, %v346_v25  ;;  %v352_v37 = vunpack.c.l.bf16 %v327_v35  ;;  %v353_v38 = vunpack.c.h.bf16 %v327_v35  ;;  %v354_v41 = vunpack.c.l.bf16 %v328_v39 }
  0x22   : > { %v1617_v32 = vpack.i.bf16 %v349_v30, %v348_v29  ;;  %v1619_v36 = vpack.i.bf16 %v351_v34, %v350_v33  ;;  %v355_v42 = vunpack.c.h.bf16 %v328_v39  ;;  %v356_v45 = vunpack.c.l.bf16 %v329_v43 }
  0x23   : > { %1606 = vxpose.xlu0.b32.cont [2/16] %v1605_v8, 128  ;;  %v1621_v40 = vpack.i.bf16 %v353_v38, %v352_v37  ;;  %v357_v46 = vunpack.c.h.bf16 %v329_v43  ;;  %v358_v49 = vunpack.c.l.bf16 %v330_v47  ;;  %v359_v50 = vunpack.c.h.bf16 %v330_v47 }
  0x24   : > { %v1623_v44 = vpack.i.bf16 %v355_v42, %v354_v41  ;;  %v360_v53 = vunpack.c.l.bf16 %v331_v51  ;;  %v361_v54 = vunpack.c.h.bf16 %v331_v51  ;;  %v362_v57 = vunpack.c.l.bf16 %v332_v55 }
  0x25   : > { %v1625_v48 = vpack.i.bf16 %v357_v46, %v356_v45  ;;  %v1627_v52 = vpack.i.bf16 %v359_v50, %v358_v49  ;;  %v363_v58 = vunpack.c.h.bf16 %v332_v55  ;;  %v364_v61 = vunpack.c.l.bf16 %v333_v59 }
  0x26   : > { %v1629_v56 = vpack.i.bf16 %v361_v54, %v360_v53  ;;  %v365_v62 = vunpack.c.h.bf16 %v333_v59 }
  0x27   : > { %1608 = vxpose.xlu0.b32.cont [3/16] %v1607_v12, 128  ;;  %v1631_v60 = vpack.i.bf16 %v363_v58, %v362_v57 }
  0x28   : > { %v1633_v63 = vpack.i.bf16 %v365_v62, %v364_v61 }
  0x2b   : > { %1610 = vxpose.xlu0.b32.cont [4/16] %v1609_v16, 128 }
  0x2f   : > { %1612 = vxpose.xlu0.b32.cont [5/16] %v1611_v20, 128 }
  0x33   : > { %1614 = vxpose.xlu0.b32.cont [6/16] %v1613_v24, 128 }
  0x37   : > { %1616 = vxpose.xlu0.b32.cont [7/16] %v1615_v28, 128 }
  0x3b   : > { %1618 = vxpose.xlu0.b32.cont [8/16] %v1617_v32, 128 }
  0x3f   : > { %1620 = vxpose.xlu0.b32.cont [9/16] %v1619_v36, 128 }
  0x43   : > { %1622 = vxpose.xlu0.b32.cont [10/16] %v1621_v40, 128 }
  0x47   : > { %1624 = vxpose.xlu0.b32.cont [11/16] %v1623_v44, 128 }
  0x4b   : > { %1626 = vxpose.xlu0.b32.cont [12/16] %v1625_v48, 128 }
  0x4f   : > { %1628 = vxpose.xlu0.b32.cont [13/16] %v1627_v52, 128 }
  0x53   : > { %1630 = vxpose.xlu0.b32.cont [14/16] %v1629_v56, 128 }
  0x57   : > { %1632 = vxpose.xlu0.b32.cont [15/16] %v1631_v60, 128 }
  0x5b   : > { %1634 = vxpose.xlu0.b32.end [16/16] %v1633_v63, 128 }
  0x9f   : > { %v1988_v0 = vpop.trf.xlu0 }
  0xa0   : > { %v1636_v1 = vunpack.i.l.bf16 %v1988_v0  ;;  %v1639_v3 = vunpack.i.h.bf16 %v1988_v0 }
  0xa2   : > { %432 = vadd.xlane.f32.xlu1 %v1636_v1 }
  0xa3   : > { %v1993_v2 = vpop.trf.xlu0 }
  0xa4   : > { %v1641_v4 = vunpack.i.l.bf16 %v1993_v2  ;;  %v1644_v7 = vunpack.i.h.bf16 %v1993_v2 }
  0xa6   : > { %464 = vadd.xlane.f32.xlu1 %v1639_v3 }
  0xa7   : > { %v1999_v5 = vpop.trf.xlu0 }
  0xa8   : > { %v1646_v8 = vunpack.i.l.bf16 %v1999_v5  ;;  %v1649_v11 = vunpack.i.h.bf16 %v1999_v5 }
  0xaa   : > { %434 = vadd.xlane.f32.xlu1 %v1641_v4 }
  0xab   : > { %v2003_v6 = vpop.trf.xlu0 }
  0xac   : > { %v1651_v12 = vunpack.i.l.bf16 %v2003_v6  ;;  %v1654_v15 = vunpack.i.h.bf16 %v2003_v6 }
  0xae   : > { %466 = vadd.xlane.f32.xlu1 %v1644_v7 }
  0xaf   : > { %v2009_v9 = vpop.trf.xlu0 }
  0xb0   : > { %v1656_v16 = vunpack.i.l.bf16 %v2009_v9  ;;  %v1659_v20 = vunpack.i.h.bf16 %v2009_v9 }
  0xb2   : > { %436 = vadd.xlane.f32.xlu1 %v1646_v8 }
  0xb3   : > { %v2013_v10 = vpop.trf.xlu0 }
  0xb4   : > { %v1661_v21 = vunpack.i.l.bf16 %v2013_v10  ;;  %v1664_v24 = vunpack.i.h.bf16 %v2013_v10 }
  0xb6   : > { %468 = vadd.xlane.f32.xlu1 %v1649_v11 }
  0xb7   : > { %v2019_v13 = vpop.trf.xlu0 }
  0xb8   : > { %v1666_v25 = vunpack.i.l.bf16 %v2019_v13  ;;  %v1669_v28 = vunpack.i.h.bf16 %v2019_v13 }
  0xba   : > { %438 = vadd.xlane.f32.xlu1 %v1651_v12 }
  0xbb   : > { %v2023_v14 = vpop.trf.xlu0 }
  0xbc   : > { %v1671_v29 = vunpack.i.l.bf16 %v2023_v14  ;;  %v1674_v33 = vunpack.i.h.bf16 %v2023_v14 }
  0xbe   : > { %470 = vadd.xlane.f32.xlu1 %v1654_v15 }
  0xbf   : > { %v2029_v17 = vpop.trf.xlu0 }
  0xc0   : > { %v1676_v18 = vunpack.i.l.bf16 %v2029_v17  ;;  %v1679_v35 = vunpack.i.h.bf16 %v2029_v17 }
  0xc2   : > { %448 = vadd.xlane.f32.xlu0 %v1676_v18  ;;  %440 = vadd.xlane.f32.xlu1 %v1656_v16 }
  0xc3   : > { %v2036_v19 = vpop.trf.xlu0 }
  0xc4   : > { %v1681_v36 = vunpack.i.l.bf16 %v2036_v19  ;;  %v1684_v37 = vunpack.i.h.bf16 %v2036_v19 }
  0xc6   : > { %472 = vadd.xlane.f32.xlu1 %v1659_v20 }
  0xc7   : > { %v2042_v22 = vpop.trf.xlu0 }
  0xc8   : > { %v1686_v38 = vunpack.i.l.bf16 %v2042_v22  ;;  %v1689_v39 = vunpack.i.h.bf16 %v2042_v22 }
  0xca   : > { %442 = vadd.xlane.f32.xlu1 %v1661_v21 }
  0xcb   : > { %v2046_v23 = vpop.trf.xlu0 }
  0xcc   : > { %v1691_v40 = vunpack.i.l.bf16 %v2046_v23  ;;  %v1694_v41 = vunpack.i.h.bf16 %v2046_v23 }
  0xce   : > { %474 = vadd.xlane.f32.xlu1 %v1664_v24 }
  0xcf   : > { %v2052_v26 = vpop.trf.xlu0 }
  0xd0   : > { %v1696_v42 = vunpack.i.l.bf16 %v2052_v26  ;;  %v1699_v43 = vunpack.i.h.bf16 %v2052_v26 }
  0xd2   : > { %444 = vadd.xlane.f32.xlu1 %v1666_v25 }
  0xd3   : > { %v2056_v27 = vpop.trf.xlu0 }
  0xd4   : > { %v1701_v44 = vunpack.i.l.bf16 %v2056_v27  ;;  %v1704_v45 = vunpack.i.h.bf16 %v2056_v27 }
  0xd6   : > { %476 = vadd.xlane.f32.xlu1 %v1669_v28 }
  0xd7   : > { %v2062_v30 = vpop.trf.xlu0 }
  0xd8   : > { %v1706_v46 = vunpack.i.l.bf16 %v2062_v30  ;;  %v1709_v47 = vunpack.i.h.bf16 %v2062_v30 }
  0xda   : > { %446 = vadd.xlane.f32.xlu1 %v1671_v29 }
  0xdb   : > { %v2066_v31 = vpop.trf.xlu0 }
  0xdc   : > { %v1711_v32 = vunpack.i.l.bf16 %v2066_v31  ;;  %v1714_v34 = vunpack.i.h.bf16 %v2066_v31 }
  0xde   : > { %462 = vadd.xlane.f32.xlu0 %v1711_v32  ;;  %478 = vadd.xlane.f32.xlu1 %v1674_v33 }
  0xe2   : > { %494 = vadd.xlane.f32.xlu0 %v1714_v34  ;;  %480 = vadd.xlane.f32.xlu1 %v1679_v35 }
  0xe6   : > { %450 = vadd.xlane.f32.xlu1 %v1681_v36 }
  0xea   : > { %482 = vadd.xlane.f32.xlu1 %v1684_v37 }
  0xee   : > { %452 = vadd.xlane.f32.xlu1 %v1686_v38 }
  0xf2   : > { %484 = vadd.xlane.f32.xlu1 %v1689_v39 }
  0xf6   : > { %454 = vadd.xlane.f32.xlu1 %v1691_v40 }
  0xfa   : > { %486 = vadd.xlane.f32.xlu1 %v1694_v41 }
  0xfe   : > { %456 = vadd.xlane.f32.xlu1 %v1696_v42 }
 0x102   : > { %488 = vadd.xlane.f32.xlu1 %v1699_v43 }
 0x106   : > { %458 = vadd.xlane.f32.xlu1 %v1701_v44 }
 0x10a   : > { %490 = vadd.xlane.f32.xlu1 %v1704_v45 }
 0x10e   : > { %460 = vadd.xlane.f32.xlu1 %v1706_v46 }
 0x112   : > { %492 = vadd.xlane.f32.xlu1 %v1709_v47 }
 0x12f   : > { %v433_v48 = vpop.xlane.xlu1 %432 }
 0x130   : > { %v497_v49 = vmul.f32 0.0078125, %v433_v48 }
 0x132   : > { %v2118_v50 = vsub.f32 %v1636_v1, %v497_v49 }
 0x133   : > { %v465_v51 = vpop.xlane.xlu1 %464 }
 0x134   : > { %v513_v52 = vmul.f32 0.0078125, %v465_v51  ;;  %v561_v53 = vmul.f32 %v2118_v50, %v2118_v50 }
 0x136   : > { %v2124_v54 = vsub.f32 %v1639_v3, %v513_v52  ;;  %593 = vadd.xlane.f32.xlu1 %v561_v53 }
 0x137   : > { %v435_v55 = vpop.xlane.xlu1 %434 }
 0x138   : > { %v498_v56 = vmul.f32 0.0078125, %v435_v55  ;;  %v577_v57 = vmul.f32 %v2124_v54, %v2124_v54 }
 0x13a   : > { %v2130_v58 = vsub.f32 %v1641_v4, %v498_v56  ;;  %625 = vadd.xlane.f32.xlu1 %v577_v57 }
 0x13b   : > { %v467_v59 = vpop.xlane.xlu1 %466 }
 0x13c   : > { %v514_v60 = vmul.f32 0.0078125, %v467_v59  ;;  %v562_v61 = vmul.f32 %v2130_v58, %v2130_v58 }
 0x13e   : > { %v2136_v62 = vsub.f32 %v1644_v7, %v514_v60  ;;  %595 = vadd.xlane.f32.xlu0 %v562_v61  ;;  %v1715_v61 = vld [vmem:[%s2596_s4] sm:$0xff]  }
 0x13f   : > { %v437_v63 = vpop.xlane.xlu1 %436  ;;  %1482 = vmatprep.subr.bf16.mxu0 %v1715_v61  ;;  %1530 = vmatprep.subr.bf16.mxu1 %v1715_v61 }
 0x140   : > { %v499_v0 = vmul.f32 0.0078125, %v437_v63  ;;  %v578_v1 = vmul.f32 %v2136_v62, %v2136_v62  ;;  %1483 = vmatpush3.bf16.msra.mxu0 %v1715_v61  ;;  %1538 = vmatpush3.bf16.msra.mxu1 %v1715_v61 }
 0x142   : > { %v2142_v3 = vsub.f32 %v1646_v8, %v499_v0  ;;  %627 = vadd.xlane.f32.xlu0 %v578_v1  ;;  %v1716_v0 = vld [vmem:[%s2596_s4 + $0x8] sm:$0xff]  }
 0x143   : > { %v469_v4 = vpop.xlane.xlu1 %468  ;;  %1484 = vmatprep.subr.bf16.mxu0 %v1716_v0  ;;  %1531 = vmatprep.subr.bf16.mxu1 %v1716_v0 }
 0x144   : > { %v515_v48 = vmul.f32 0.0078125, %v469_v4  ;;  %v563_v49 = vmul.f32 %v2142_v3, %v2142_v3  ;;  %1485 = vmatpush3.bf16.msra.mxu0 %v1716_v0  ;;  %1539 = vmatpush3.bf16.msra.mxu1 %v1716_v0 }
 0x146   : > { %v2148_v2 = vsub.f32 %v1649_v11, %v515_v48  ;;  %597 = vadd.xlane.f32.xlu1 %v563_v49 }
 0x147   : > { %v439_v7 = vpop.xlane.xlu1 %438 }
 0x148   : > { %v500_v51 = vmul.f32 0.0078125, %v439_v7  ;;  %v579_v52 = vmul.f32 %v2148_v2, %v2148_v2 }
 0x14a   : > { %v2154_v8 = vsub.f32 %v1651_v12, %v500_v51  ;;  %629 = vadd.xlane.f32.xlu1 %v579_v52  ;;  %v1718_v52 = vld [vmem:[%s2596_s4 + $0x18] sm:$0xff]  }
 0x14b   : > { %v471_v53 = vpop.xlane.xlu1 %470 }
 0x14c   : > { %v516_v55 = vmul.f32 0.0078125, %v471_v53  ;;  %v564_v56 = vmul.f32 %v2154_v8, %v2154_v8 }
 0x14e   : > { %v2160_v5 = vsub.f32 %v1654_v15, %v516_v55  ;;  %599 = vadd.xlane.f32.xlu0 %v564_v56 }
 0x14f   : > { %v441_v11 = vpop.xlane.xlu1 %440  ;;  %v449_v56 = vpop.xlane.xlu0 %448 }
 0x150   : > { %v501_v57 = vmul.f32 0.0078125, %v441_v11  ;;  %v580_v59 = vmul.f32 %v2160_v5, %v2160_v5  ;;  %v1719_v11 = vld [vmem:[%s2596_s4 + $0x20] sm:$0xff]  }
 0x152   : > { %v2166_v12 = vsub.f32 %v1656_v16, %v501_v57  ;;  %631 = vadd.xlane.f32.xlu0 %v580_v59  ;;  %v505_v57 = vmul.f32 0.0078125, %v449_v56 }
 0x153   : > { %v473_v60 = vpop.xlane.xlu1 %472 }
 0x154   : > { %v517_v63 = vmul.f32 0.0078125, %v473_v60  ;;  %v565_v6 = vmul.f32 %v2166_v12, %v2166_v12 }
 0x156   : > { %v2175_v15 = vsub.f32 %v1659_v20, %v517_v63  ;;  %601 = vadd.xlane.f32.xlu1 %v565_v6  ;;  %v1717_v20 = vld [vmem:[%s2596_s4 + $0x10] sm:$0xff]   ;;  %v1720_v63 = vld [vmem:[%s2596_s4 + $0x28] sm:$0xff]   ;;  %v2218_v6 = vsub.f32 %v1676_v18, %v505_v57 }
 0x157   : > { %v443_v16 = vpop.xlane.xlu1 %442  ;;  %1486 = vmatprep.subr.bf16.mxu0 %v1717_v20  ;;  %1532 = vmatprep.subr.bf16.mxu1 %v1717_v20 }
 0x158   : > { %v502_v1 = vmul.f32 0.0078125, %v443_v16  ;;  %v581_v4 = vmul.f32 %v2175_v15, %v2175_v15  ;;  %1487 = vmatpush3.bf16.msra.mxu0 %v1717_v20  ;;  %1540 = vmatpush3.bf16.msra.mxu1 %v1717_v20 }
 0x159   : > { %1488 = vmatprep.subr.bf16.mxu0 %v1718_v52  ;;  %1533 = vmatprep.subr.bf16.mxu1 %v1718_v52 }
 0x15a   : > { %v2184_v48 = vsub.f32 %v1661_v21, %v502_v1  ;;  %633 = vadd.xlane.f32.xlu1 %v581_v4  ;;  %v1721_v1 = vld [vmem:[%s2596_s4 + $0x30] sm:$0xff]   ;;  %v569_v4 = vmul.f32 %v2218_v6, %v2218_v6 }
 0x15b   : > { %v475_v9 = vpop.xlane.xlu1 %474 }
 0x15c   : > { %v518_v49 = vmul.f32 0.0078125, %v475_v9  ;;  %v566_v7 = vmul.f32 %v2184_v48, %v2184_v48  ;;  %1489 = vmatpush3.bf16.msra.mxu0 %v1718_v52  ;;  %1541 = vmatpush3.bf16.msra.mxu1 %v1718_v52 }
 0x15d   : > { %1490 = vmatprep.subr.bf16.mxu0 %v1719_v11  ;;  %1534 = vmatprep.subr.bf16.mxu1 %v1719_v11 }
 0x15e   : > { %v2193_v51 = vsub.f32 %v1664_v24, %v518_v49  ;;  %603 = vadd.xlane.f32.xlu0 %v566_v7  ;;  %v1722_v49 = vld [vmem:[%s2596_s4 + $0x38] sm:$0xff]  }
 0x15f   : > { %v445_v21 = vpop.xlane.xlu1 %444 }
 0x160   : > { %v503_v53 = vmul.f32 0.0078125, %v445_v21  ;;  %v582_v55 = vmul.f32 %v2193_v51, %v2193_v51  ;;  %1491 = vmatpush3.bf16.msra.mxu0 %v1719_v11  ;;  %1542 = vmatpush3.bf16.msra.mxu1 %v1719_v11 }
 0x161   : > { %1492 = vmatprep.subr.bf16.mxu0 %v1720_v63  ;;  %1535 = vmatprep.subr.bf16.mxu1 %v1720_v63 }
 0x162   : > { %v2202_v10 = vsub.f32 %v1666_v25, %v503_v53  ;;  %635 = vadd.xlane.f32.xlu0 %v582_v55 }
 0x163   : > { %v477_v24 = vpop.xlane.xlu1 %476 }
 0x164   : > { %v519_v59 = vmul.f32 0.0078125, %v477_v24  ;;  %v567_v60 = vmul.f32 %v2202_v10, %v2202_v10  ;;  %1493 = vmatpush3.bf16.msra.mxu0 %v1720_v63  ;;  %1543 = vmatpush3.bf16.msra.mxu1 %v1720_v63 }
 0x165   : > { %1494 = vmatprep.subr.bf16.mxu0 %v1721_v1  ;;  %1536 = vmatprep.subr.bf16.mxu1 %v1721_v1 }
 0x166   : > { %v2211_v61 = vsub.f32 %v1669_v28, %v519_v59  ;;  %605 = vadd.xlane.f32.xlu1 %v567_v60 }
 0x167   : > { %v447_v25 = vpop.xlane.xlu1 %446 }
 0x168   : > { %v504_v16 = vmul.f32 0.0078125, %v447_v25  ;;  %v583_v0 = vmul.f32 %v2211_v61, %v2211_v61  ;;  %1495 = vmatpush3.bf16.msra.mxu0 %v1721_v1  ;;  %1544 = vmatpush3.bf16.msra.mxu1 %v1721_v1 }
 0x169   : > { %1496 = vmatprep.subr.bf16.mxu0 %v1722_v49  ;;  %1537 = vmatprep.subr.bf16.mxu1 %v1722_v49 }
 0x16a   : > { %v2224_v13 = vsub.f32 %v1671_v29, %v504_v16  ;;  %637 = vadd.xlane.f32.xlu1 %v583_v0 }
 0x16b   : > { %v479_v28 = vpop.xlane.xlu1 %478 }
 0x16c   : > { %v520_v18 = vmul.f32 0.0078125, %v479_v28  ;;  %v568_v9 = vmul.f32 %v2224_v13, %v2224_v13  ;;  %1497 = vmatpush3.bf16.msra.mxu0 %v1722_v49  ;;  %1545 = vmatpush3.bf16.msra.mxu1 %v1722_v49 }
 0x16e   : > { %v2235_v29 = vsub.f32 %v1674_v33, %v520_v18  ;;  %609 = vadd.xlane.f32.xlu1 %v569_v4  ;;  %607 = vadd.xlane.f32.xlu0 %v568_v9 }
 0x16f   : > { %v481_v20 = vpop.xlane.xlu1 %480 }
 0x170   : > { %v521_v7 = vmul.f32 0.0078125, %v481_v20  ;;  %v584_v21 = vmul.f32 %v2235_v29, %v2235_v29 }
 0x172   : > { %v2244_v14 = vsub.f32 %v1679_v35, %v521_v7  ;;  %639 = vadd.xlane.f32.xlu0 %v584_v21 }
 0x173   : > { %v451_v33 = vpop.xlane.xlu1 %450 }
 0x174   : > { %v506_v52 = vmul.f32 0.0078125, %v451_v33  ;;  %v585_v53 = vmul.f32 %v2244_v14, %v2244_v14 }
 0x176   : > { %v2250_v55 = vsub.f32 %v1681_v36, %v506_v52  ;;  %641 = vadd.xlane.f32.xlu1 %v585_v53 }
 0x177   : > { %v483_v56 = vpop.xlane.xlu1 %482 }
 0x178   : > { %v522_v24 = vmul.f32 0.0078125, %v483_v56  ;;  %v570_v17 = vmul.f32 %v2250_v55, %v2250_v55 }
 0x17a   : > { %v2256_v35 = vsub.f32 %v1684_v37, %v522_v24  ;;  %611 = vadd.xlane.f32.xlu0 %v570_v17 }
 0x17b   : > { %v453_v11 = vpop.xlane.xlu1 %452 }
 0x17c   : > { %v507_v57 = vmul.f32 0.0078125, %v453_v11  ;;  %v586_v59 = vmul.f32 %v2256_v35, %v2256_v35 }
 0x17e   : > { %v2262_v36 = vsub.f32 %v1686_v38, %v507_v57  ;;  %643 = vadd.xlane.f32.xlu0 %v586_v59 }
 0x17f   : > { %v485_v60 = vpop.xlane.xlu1 %484 }
 0x180   : > { %v523_v25 = vmul.f32 0.0078125, %v485_v60  ;;  %v571_v63 = vmul.f32 %v2262_v36, %v2262_v36 }
 0x182   : > { %v2268_v19 = vsub.f32 %v1689_v39, %v523_v25  ;;  %613 = vadd.xlane.f32.xlu1 %v571_v63 }
 0x183   : > { %v455_v37 = vpop.xlane.xlu1 %454 }
 0x184   : > { %v508_v16 = vmul.f32 0.0078125, %v455_v37  ;;  %v587_v0 = vmul.f32 %v2268_v19, %v2268_v19 }
 0x186   : > { %v2274_v38 = vsub.f32 %v1691_v40, %v508_v16  ;;  %645 = vadd.xlane.f32.xlu1 %v587_v0 }
 0x187   : > { %v487_v28 = vpop.xlane.xlu1 %486 }
 0x188   : > { %v524_v1 = vmul.f32 0.0078125, %v487_v28  ;;  %v572_v18 = vmul.f32 %v2274_v38, %v2274_v38 }
 0x18a   : > { %v2280_v22 = vsub.f32 %v1694_v41, %v524_v1  ;;  %615 = vadd.xlane.f32.xlu0 %v572_v18  ;;  %v463_v41 = vpop.xlane.xlu0 %462 }
 0x18b   : > { %v457_v39 = vpop.xlane.xlu1 %456  ;;  %v512_v56 = vmul.f32 0.0078125, %v463_v41 }
 0x18c   : > { %v509_v4 = vmul.f32 0.0078125, %v457_v39  ;;  %v588_v9 = vmul.f32 %v2280_v22, %v2280_v22 }
 0x18d   : > { %v2308_v57 = vsub.f32 %v1711_v32, %v512_v56  ;;  %v2343_v56 = vld [vmem:[%s2594_s2] ss:$0 sm:$0xff] }
 0x18e   : > { %v2286_v40 = vsub.f32 %v1696_v42, %v509_v4  ;;  %647 = vadd.xlane.f32.xlu0 %v588_v9 }
 0x18f   : > { %v489_v20 = vpop.xlane.xlu1 %488  ;;  %v576_v32 = vmul.f32 %v2308_v57, %v2308_v57 }
 0x190   : > { %v525_v49 = vmul.f32 0.0078125, %v489_v20  ;;  %v573_v7 = vmul.f32 %v2286_v40, %v2286_v40 }
 0x192   : > { %v2292_v23 = vsub.f32 %v1699_v43, %v525_v49  ;;  %617 = vadd.xlane.f32.xlu1 %v573_v7  ;;  %v495_v43 = vpop.xlane.xlu0 %494 }
 0x193   : > { %v459_v21 = vpop.xlane.xlu1 %458 }
 0x194   : > { %v510_v33 = vmul.f32 0.0078125, %v459_v21  ;;  %v589_v52 = vmul.f32 %v2292_v23, %v2292_v23 }
 0x196   : > { %v2298_v42 = vsub.f32 %v1701_v44, %v510_v33  ;;  %649 = vadd.xlane.f32.xlu1 %v589_v52  ;;  %v528_v44 = vmul.f32 0.0078125, %v495_v43  ;;  %v1380_v43 = vld [vmem:[%s2338_s28] sm:$0xff]  }
 0x197   : > { %v491_v53 = vpop.xlane.xlu1 %490 }
 0x198   : > { %v526_v24 = vmul.f32 0.0078125, %v491_v53  ;;  %v574_v26 = vmul.f32 %v2298_v42, %v2298_v42  ;;  %v2318_v27 = vsub.f32 %v1714_v34, %v528_v44 }
 0x19a   : > { %v2304_v17 = vsub.f32 %v1704_v45, %v526_v24  ;;  %619 = vadd.xlane.f32.xlu0 %v574_v26 }
 0x19b   : > { %v461_v11 = vpop.xlane.xlu1 %460 }
 0x19c   : > { %v511_v59 = vmul.f32 0.0078125, %v461_v11  ;;  %v590_v60 = vmul.f32 %v2304_v17, %v2304_v17 }
 0x19e   : > { %v2314_v25 = vsub.f32 %v1706_v46, %v511_v59  ;;  %651 = vadd.xlane.f32.xlu0 %v590_v60  ;;  %v592_v46 = vmul.f32 %v2318_v27, %v2318_v27  ;;  %v2351_v60 = vld [vmem:[%s2595_s3] ss:$0 sm:$0xff] }
 0x19f   : > { %v493_v63 = vpop.xlane.xlu1 %492 }
 0x1a0   : > { %v527_v45 = vmul.f32 0.0078125, %v493_v63  ;;  %v575_v37 = vmul.f32 %v2314_v25, %v2314_v25 }
 0x1a2   : > { %v2326_v16 = vsub.f32 %v1709_v47, %v527_v45  ;;  %623 = vadd.xlane.f32.xlu0 %v576_v32  ;;  %621 = vadd.xlane.f32.xlu1 %v575_v37  ;;  %v1381_v37 = vunpack.c.l.bf16 %v1380_v43 }
 0x1a4   : > { %v591_v31 = vmul.f32 %v2326_v16, %v2326_v16 }
 0x1a6   : > { %655 = vadd.xlane.f32.xlu0 %v592_v46  ;;  %653 = vadd.xlane.f32.xlu1 %v591_v31 }
 0x1c3   : > { %v594_v34 = vpop.xlane.xlu1 %593 }
 0x1c4   : > { %v657_v0 = vmul.f32 0.0078125, %v594_v34  ;;  %v1382_v34 = vunpack.c.h.bf16 %v1380_v43 }
 0x1c6   : > { %v689_v28 = vadd.f32 1e-05, %v657_v0  ;;  %v1450_v0 = vld [vmem:[%s2338_s28 + $0x40] sm:$0xff]  }
 0x1c7   : > { %v626_v1 = vpop.xlane.xlu1 %625 }
 0x1c8   : > { %1723 = vrsqrt.f32 %v689_v28  ;;  %v673_v18 = vmul.f32 0.0078125, %v626_v1 }
 0x1ca   : > { %v705_v39 = vadd.f32 1e-05, %v673_v18 }
 0x1cb   : > { %v596_v30 = vpop.xlane.xlu0 %595 }
 0x1cc   : > { %1725 = vrsqrt.f32 %v705_v39  ;;  %v658_v47 = vmul.f32 0.0078125, %v596_v30 }
 0x1ce   : > { %v690_v4 = vadd.f32 1e-05, %v658_v47  ;;  %v1413_v47 = vunpack.c.l.bf16 %v1450_v0 }
 0x1cf   : > { %v628_v9 = vpop.xlane.xlu0 %627 }
 0x1d0   : > { %1727 = vrsqrt.f32 %v690_v4  ;;  %v674_v20 = vmul.f32 0.0078125, %v628_v9  ;;  %v1414_v4 = vunpack.c.h.bf16 %v1450_v0 }
 0x1d2   : > { %v1724_v49 = vpop.eup %1723  ;;  %v706_v7 = vadd.f32 1e-05, %v674_v20 }
 0x1d3   : > { %v598_v41 = vpop.xlane.xlu1 %597  ;;  %v753_v33 = vmul.f32 %v1724_v49, %v2118_v50 }
 0x1d4   : > { %1729 = vrsqrt.f32 %v706_v7  ;;  %v659_v21 = vmul.f32 0.0078125, %v598_v41 }
 0x1d5   : > { %v791_v50 = vmul.f32 %v2343_v56, %v753_v33 }
 0x1d6   : > { %v1726_v52 = vpop.eup %1725  ;;  %v691_v53 = vadd.f32 1e-05, %v659_v21 }
 0x1d7   : > { %v630_v24 = vpop.xlane.xlu1 %629  ;;  %v769_v11 = vmul.f32 %v1726_v52, %v2124_v54  ;;  %v829_v31 = vadd.f32 %v2351_v60, %v791_v50 }
 0x1d8   : > { %1731 = vrsqrt.f32 %v691_v53  ;;  %v675_v26 = vmul.f32 0.0078125, %v630_v24 }
 0x1d9   : > { %v807_v54 = vmul.f32 %v2343_v56, %v769_v11  ;;  %v925_v9 = vmul.f32 %v1381_v37, %v829_v31 }
 0x1da   : > { %v1728_v44 = vpop.eup %1727  ;;  %v707_v59 = vadd.f32 1e-05, %v675_v26 }
 0x1db   : > { %v600_v63 = vpop.xlane.xlu0 %599  ;;  %v754_v45 = vmul.f32 %v1728_v44, %v2130_v58  ;;  %v845_v7 = vadd.f32 %v2351_v60, %v807_v54 }
 0x1dc   : > { %1733 = vrsqrt.f32 %v707_v59  ;;  %v660_v32 = vmul.f32 0.0078125, %v600_v63 }
 0x1dd   : > { %v792_v46 = vmul.f32 %v2343_v56, %v754_v45 }
 0x1de   : > { %v1730_v28 = vpop.eup %1729  ;;  %v692_v1 = vadd.f32 1e-05, %v660_v32  ;;  %v1443_v32 = vld [vmem:[%s2338_s28 + $0x8] sm:$0xff]  }
 0x1df   : > { %v632_v18 = vpop.xlane.xlu0 %631  ;;  %v830_v39 = vadd.f32 %v2351_v60, %v792_v46  ;;  %v770_v30 = vmul.f32 %v1730_v28, %v2136_v62  ;;  %v941_v62 = vmul.f32 %v1413_v47, %v845_v7  ;;  %v1385_v0 = vunpack.c.l.bf16 %v1443_v32 }
 0x1e0   : > { %1735 = vrsqrt.f32 %v692_v1  ;;  %v676_v58 = vmul.f32 0.0078125, %v632_v18  ;;  %v1386_v18 = vunpack.c.h.bf16 %v1443_v32 }
 0x1e1   : > { %v926_v20 = vmul.f32 %v1382_v34, %v830_v39  ;;  %v808_v49 = vmul.f32 %v2343_v56, %v770_v30  ;;  %v1451_v30 = vld [vmem:[%s2338_s28 + $0x48] sm:$0xff]  }
 0x1e2   : > { %v1732_v41 = vpop.eup %1731  ;;  %v708_v21 = vadd.f32 1e-05, %v676_v58 }
 0x1e3   : > { %v602_v33 = vpop.xlane.xlu1 %601  ;;  %v957_v52 = vpack.c.bf16 %v926_v20, %v925_v9  ;;  %v846_v53 = vadd.f32 %v2351_v60, %v808_v49  ;;  %v755_v50 = vmul.f32 %v1732_v41, %v2142_v3  ;;  %v1417_v20 = vunpack.c.l.bf16 %v1451_v30 }
 0x1e4   : > { %1737 = vrsqrt.f32 %v708_v21  ;;  %v661_v24 = vmul.f32 0.0078125, %v602_v33  ;;  %v1418_v49 = vunpack.c.h.bf16 %v1451_v30 }
 0x1e5   : > { %1498 = vmatprep.mubr.bf16.mxu0 %v957_v52  ;;  %v942_v26 = vmul.f32 %v1414_v4, %v846_v53  ;;  %v793_v45 = vmul.f32 %v2343_v56, %v755_v50 }
 0x1e6   : > { %v1734_v43 = vpop.eup %1733  ;;  %v693_v11 = vadd.f32 1e-05, %v661_v24 }
 0x1e7   : > { %v634_v44 = vpop.xlane.xlu1 %633  ;;  %v965_v59 = vpack.c.bf16 %v942_v26, %v941_v62  ;;  %v771_v37 = vmul.f32 %v1734_v43, %v2148_v2  ;;  %v831_v1 = vadd.f32 %v2351_v60, %v793_v45 }
 0x1e8   : > { %1739 = vrsqrt.f32 %v693_v11  ;;  %v677_v63 = vmul.f32 0.0078125, %v634_v44 }
 0x1e9   : > { %1514 = vmatprep.mubr.bf16.mxu1 %v965_v59  ;;  %v809_v39 = vmul.f32 %v2343_v56, %v771_v37  ;;  %v927_v7 = vmul.f32 %v1385_v0, %v831_v1 }
 0x1ea   : > { %v1736_v46 = vpop.eup %1735  ;;  %v709_v31 = vadd.f32 1e-05, %v677_v63 }
 0x1eb   : > { %v604_v34 = vpop.xlane.xlu0 %603  ;;  %v756_v54 = vmul.f32 %v1736_v46, %v2154_v8  ;;  %v847_v33 = vadd.f32 %v2351_v60, %v809_v39  ;;  %v1444_v46 = vld [vmem:[%s2338_s28 + $0x10] sm:$0xff]  }
 0x1ec   : > { %1741 = vrsqrt.f32 %v709_v31  ;;  %v662_v3 = vmul.f32 0.0078125, %v604_v34 }
 0x1ed   : > { %v794_v28 = vmul.f32 %v2343_v56, %v756_v54 }
 0x1ee   : > { %v1738_v58 = vpop.eup %1737  ;;  %v694_v47 = vadd.f32 1e-05, %v662_v3 }
 0x1ef   : > { %v636_v4 = vpop.xlane.xlu0 %635  ;;  %v832_v2 = vadd.f32 %v2351_v60, %v794_v28  ;;  %v772_v9 = vmul.f32 %v1738_v58, %v2160_v5  ;;  %v943_v5 = vmul.f32 %v1417_v20, %v847_v33  ;;  %v1390_v58 = vunpack.c.h.bf16 %v1444_v46 }
 0x1f0   : > { %1743 = vrsqrt.f32 %v694_v47  ;;  %v678_v8 = vmul.f32 0.0078125, %v636_v4  ;;  %v1452_v4 = vld [vmem:[%s2338_s28 + $0x50] sm:$0xff]  }
 0x1f1   : > { %v928_v41 = vmul.f32 %v1386_v18, %v832_v2  ;;  %v810_v21 = vmul.f32 %v2343_v56, %v772_v9  ;;  %v1389_v18 = vunpack.c.l.bf16 %v1444_v46 }
 0x1f2   : > { %v1740_v52 = vpop.eup %1739  ;;  %v710_v53 = vadd.f32 1e-05, %v678_v8 }
 0x1f3   : > { %v606_v24 = vpop.xlane.xlu1 %605  ;;  %v958_v62 = vpack.c.bf16 %v928_v41, %v927_v7  ;;  %v848_v26 = vadd.f32 %v2351_v60, %v810_v21  ;;  %v757_v11 = vmul.f32 %v1740_v52, %v2166_v12  ;;  %v1421_v7 = vunpack.c.l.bf16 %v1452_v4 }
 0x1f4   : > { %1745 = vrsqrt.f32 %v710_v53  ;;  %v663_v50 = vmul.f32 0.0078125, %v606_v24  ;;  %v1422_v41 = vunpack.c.h.bf16 %v1452_v4 }
 0x1f5   : > { %1499 = vmatmul.mubr.bf16.vlgmr.msra.gmra.mrb[0].mxu0 %v958_v62  ;;  %v944_v43 = vmul.f32 %v1418_v49, %v848_v26  ;;  %v795_v37 = vmul.f32 %v2343_v56, %v757_v11 }
 0x1f6   : > { %v1742_v44 = vpop.eup %1741  ;;  %v695_v59 = vadd.f32 1e-05, %v663_v50 }
 0x1f7   : > { %v638_v63 = vpop.xlane.xlu1 %637  ;;  %v966_v45 = vpack.c.bf16 %v944_v43, %v943_v5  ;;  %v773_v31 = vmul.f32 %v1742_v44, %v2175_v15  ;;  %v833_v30 = vadd.f32 %v2351_v60, %v795_v37 }
 0x1f8   : > { %1747 = vrsqrt.f32 %v695_v59  ;;  %v679_v32 = vmul.f32 0.0078125, %v638_v63 }
 0x1f9   : > { %1515 = vmatmul.mubr.bf16.vlgmr.msra.gmra.mrb[0].mxu1 %v966_v45  ;;  %v811_v47 = vmul.f32 %v2343_v56, %v773_v31  ;;  %v929_v21 = vmul.f32 %v1389_v18, %v833_v30  ;;  %v1445_v31 = vld [vmem:[%s2338_s28 + $0x18] sm:$0xff]  }
 0x1fa   : > { %v1744_v34 = vpop.eup %1743  ;;  %v711_v54 = vadd.f32 1e-05, %v679_v32  ;;  %v1453_v18 = vld [vmem:[%s2338_s28 + $0x58] sm:$0xff]  }
 0x1fb   : > { %v608_v3 = vpop.xlane.xlu0 %607  ;;  %v610_v0 = vpop.xlane.xlu1 %609  ;;  %v758_v28 = vmul.f32 %v1744_v34, %v2184_v48  ;;  %v849_v53 = vadd.f32 %v2351_v60, %v811_v47 }
 0x1fc   : > { %1749 = vrsqrt.f32 %v711_v54  ;;  %v664_v12 = vmul.f32 0.0078125, %v608_v3  ;;  %v665_v1 = vmul.f32 0.0078125, %v610_v0 }
 0x1fd   : > { %v796_v39 = vmul.f32 %v2343_v56, %v758_v28  ;;  %v945_v11 = vmul.f32 %v1421_v7, %v849_v53 }
 0x1fe   : > { %v1746_v2 = vpop.eup %1745  ;;  %v696_v15 = vadd.f32 1e-05, %v664_v12  ;;  %v697_v9 = vadd.f32 1e-05, %v665_v1  ;;  %v1393_v1 = vunpack.c.l.bf16 %v1445_v31 }
 0x1ff   : > { %v640_v8 = vpop.xlane.xlu0 %639  ;;  %v834_v20 = vadd.f32 %v2351_v60, %v796_v39  ;;  %v774_v48 = vmul.f32 %v1746_v2, %v2193_v51 }
 0x200   : > { %1751 = vrsqrt.f32 %v696_v15  ;;  %v680_v49 = vmul.f32 0.0078125, %v640_v8 }
 0x201   : > { %v930_v33 = vmul.f32 %v1390_v58, %v834_v20  ;;  %v812_v52 = vmul.f32 %v2343_v56, %v774_v48  ;;  %1753 = vrsqrt.f32 %v697_v9  ;;  %v1394_v58 = vunpack.c.h.bf16 %v1445_v31 }
 0x202   : > { %v1748_v24 = vpop.eup %1747  ;;  %v712_v62 = vadd.f32 1e-05, %v680_v49  ;;  %v1426_v48 = vunpack.c.h.bf16 %v1453_v18 }
 0x203   : > { %v642_v26 = vpop.xlane.xlu1 %641  ;;  %v959_v50 = vpack.c.bf16 %v930_v33, %v929_v21  ;;  %v850_v5 = vadd.f32 %v2351_v60, %v812_v52  ;;  %v759_v43 = vmul.f32 %v1748_v24, %v2202_v10 }
 0x204   : > { %1755 = vrsqrt.f32 %v712_v62  ;;  %v681_v51 = vmul.f32 0.0078125, %v642_v26 }
 0x205   : > { %1502 = vmatprep.mubr.bf16.mxu0 %v959_v50  ;;  %v946_v44 = vmul.f32 %v1422_v41, %v850_v5  ;;  %v797_v46 = vmul.f32 %v2343_v56, %v759_v43 }
 0x206   : > { %v1750_v59 = vpop.eup %1749  ;;  %v713_v63 = vadd.f32 1e-05, %v681_v51  ;;  %v1446_v51 = vld [vmem:[%s2338_s28 + $0x20] sm:$0xff]  }
 0x207   : > { %v612_v45 = vpop.xlane.xlu0 %611  ;;  %v967_v32 = vpack.c.bf16 %v946_v44, %v945_v11  ;;  %v775_v34 = vmul.f32 %v1750_v59, %v2211_v61  ;;  %v835_v12 = vadd.f32 %v2351_v60, %v797_v46  ;;  %v1398_v31 = vunpack.c.h.bf16 %v1446_v51 }
 0x208   : > { %1757 = vrsqrt.f32 %v713_v63  ;;  %v666_v37 = vmul.f32 0.0078125, %v612_v45 }
 0x209   : > { %1518 = vmatprep.mubr.bf16.mxu1 %v967_v32  ;;  %v813_v47 = vmul.f32 %v2343_v56, %v775_v34  ;;  %v931_v20 = vmul.f32 %v1393_v1, %v835_v12  ;;  %v1397_v32 = vunpack.c.l.bf16 %v1446_v51 }
 0x20a   : > { %v1752_v54 = vpop.eup %1751  ;;  %v698_v3 = vadd.f32 1e-05, %v666_v37 }
 0x20b   : > { %v644_v0 = vpop.xlane.xlu0 %643  ;;  %v760_v10 = vmul.f32 %v1752_v54, %v2224_v13  ;;  %v1754_v39 = vpop.eup %1753  ;;  %v1425_v13 = vunpack.c.l.bf16 %v1453_v18  ;;  %v851_v41 = vadd.f32 %v2351_v60, %v813_v47  ;;  %v1454_v54 = vld [vmem:[%s2338_s28 + $0x60] sm:$0xff]  }
 0x20c   : > { %1759 = vrsqrt.f32 %v698_v3  ;;  %v682_v28 = vmul.f32 0.0078125, %v644_v0  ;;  %v761_v21 = vmul.f32 %v1754_v39, %v2218_v6  ;;  %v1429_v12 = vunpack.c.l.bf16 %v1454_v54 }
 0x20d   : > { %v798_v30 = vmul.f32 %v2343_v56, %v760_v10  ;;  %v947_v26 = vmul.f32 %v1425_v13, %v851_v41  ;;  %v1430_v1 = vunpack.c.h.bf16 %v1454_v54 }
 0x20e   : > { %v1756_v4 = vpop.eup %1755  ;;  %v714_v2 = vadd.f32 1e-05, %v682_v28  ;;  %v799_v5 = vmul.f32 %v2343_v56, %v761_v21 }
 0x20f   : > { %v614_v61 = vpop.xlane.xlu1 %613  ;;  %v836_v15 = vadd.f32 %v2351_v60, %v798_v30  ;;  %v776_v9 = vmul.f32 %v1756_v4, %v2235_v29 }
 0x210   : > { %1761 = vrsqrt.f32 %v714_v2  ;;  %v667_v8 = vmul.f32 0.0078125, %v614_v61  ;;  %v837_v46 = vadd.f32 %v2351_v60, %v799_v5 }
 0x211   : > { %v932_v49 = vmul.f32 %v1394_v58, %v836_v15  ;;  %v814_v7 = vmul.f32 %v2343_v56, %v776_v9 }
 0x212   : > { %v1758_v33 = vpop.eup %1757  ;;  %v699_v52 = vadd.f32 1e-05, %v667_v8  ;;  %v933_v18 = vmul.f32 %v1397_v32, %v837_v46 }
 0x213   : > { %v646_v53 = vpop.xlane.xlu1 %645  ;;  %v960_v24 = vpack.c.bf16 %v932_v49, %v931_v20  ;;  %v852_v62 = vadd.f32 %v2351_v60, %v814_v7  ;;  %v777_v43 = vmul.f32 %v1758_v33, %v2244_v14  ;;  %v1447_v33 = vld [vmem:[%s2338_s28 + $0x28] sm:$0xff]  }
 0x214   : > { %1763 = vrsqrt.f32 %v699_v52  ;;  %v683_v29 = vmul.f32 0.0078125, %v646_v53  ;;  %v1402_v51 = vunpack.c.h.bf16 %v1447_v33 }
 0x215   : > { %1503 = vmatmul.mubr.bf16.gmra.mrb[4].mxu0 %v960_v24  ;;  %v948_v50 = vmul.f32 %v1426_v48, %v852_v62  ;;  %v815_v34 = vmul.f32 %v2343_v56, %v777_v43 }
 0x216   : > { %v1760_v11 = vpop.eup %1759  ;;  %v715_v44 = vadd.f32 1e-05, %v683_v29 }
 0x217   : > { %v616_v6 = vpop.xlane.xlu0 %615  ;;  %v968_v59 = vpack.c.bf16 %v948_v50, %v947_v26  ;;  %v762_v63 = vmul.f32 %v1760_v11, %v2250_v55  ;;  %v853_v58 = vadd.f32 %v2351_v60, %v815_v34  ;;  %v1401_v26 = vunpack.c.l.bf16 %v1447_v33  ;;  %v1455_v11 = vld [vmem:[%s2338_s28 + $0x68] sm:$0xff]  }
 0x218   : > { %1765 = vrsqrt.f32 %v715_v44  ;;  %v668_v45 = vmul.f32 0.0078125, %v616_v6  ;;  %v1434_v32 = vunpack.c.h.bf16 %v1455_v11 }
 0x219   : > { %1519 = vmatmul.mubr.bf16.gmra.mrb[4].mxu1 %v968_v59  ;;  %v800_v37 = vmul.f32 %v2343_v56, %v762_v63 }
 0x21a   : > { %v1762_v3 = vpop.eup %1761  ;;  %v700_v14 = vadd.f32 1e-05, %v668_v45  ;;  %v1433_v45 = vunpack.c.l.bf16 %v1455_v11 }
 0x21b   : > { %v648_v0 = vpop.xlane.xlu0 %647  ;;  %v838_v10 = vadd.f32 %v2351_v60, %v800_v37  ;;  %v778_v28 = vmul.f32 %v1762_v3, %v2256_v35  ;;  %v949_v35 = vmul.f32 %v1429_v12, %v853_v58 }
 0x21c   : > { %1767 = vrsqrt.f32 %v700_v14  ;;  %v684_v55 = vmul.f32 0.0078125, %v648_v0 }
 0x21d   : > { %v934_v39 = vmul.f32 %v1398_v31, %v838_v10  ;;  %v816_v30 = vmul.f32 %v2343_v56, %v778_v28 }
 0x21e   : > { %v1764_v47 = vpop.eup %1763  ;;  %v716_v4 = vadd.f32 1e-05, %v684_v55 }
 0x21f   : > { %v618_v2 = vpop.xlane.xlu1 %617  ;;  %v961_v61 = vpack.c.bf16 %v934_v39, %v933_v18  ;;  %v854_v15 = vadd.f32 %v2351_v60, %v816_v30  ;;  %v763_v8 = vmul.f32 %v1764_v47, %v2262_v36 }
 0x220   : > { %1769 = vrsqrt.f32 %v716_v4  ;;  %v669_v9 = vmul.f32 0.0078125, %v618_v2 }
 0x221   : > { %1506 = vmatprep.mubr.bf16.mxu0 %v961_v61  ;;  %v950_v13 = vmul.f32 %v1430_v1, %v854_v15  ;;  %v801_v21 = vmul.f32 %v2343_v56, %v763_v8 }
 0x222   : > { %v1766_v20 = vpop.eup %1765  ;;  %v701_v48 = vadd.f32 1e-05, %v669_v9 }
 0x223   : > { %v650_v49 = vpop.xlane.xlu1 %649  ;;  %v969_v7 = vpack.c.bf16 %v950_v13, %v949_v35  ;;  %v779_v52 = vmul.f32 %v1766_v20, %v2268_v19  ;;  %v839_v5 = vadd.f32 %v2351_v60, %v801_v21  ;;  %v1448_v35 = vld [vmem:[%s2338_s28 + $0x30] sm:$0xff]  }
 0x224   : > { %1771 = vrsqrt.f32 %v701_v48  ;;  %v685_v41 = vmul.f32 0.0078125, %v650_v49  ;;  %v1405_v49 = vunpack.c.l.bf16 %v1448_v35 }
 0x225   : > { %1522 = vmatprep.mubr.bf16.mxu1 %v969_v7  ;;  %v817_v43 = vmul.f32 %v2343_v56, %v779_v52  ;;  %v935_v37 = vmul.f32 %v1401_v26, %v839_v5  ;;  %v1406_v7 = vunpack.c.h.bf16 %v1448_v35  ;;  %v1456_v52 = vld [vmem:[%s2338_s28 + $0x70] sm:$0xff]  }
 0x226   : > { %v1768_v53 = vpop.eup %1767  ;;  %v717_v24 = vadd.f32 1e-05, %v685_v41 }
 0x227   : > { %v620_v62 = vpop.xlane.xlu0 %619  ;;  %v764_v29 = vmul.f32 %v1768_v53, %v2274_v38  ;;  %v855_v34 = vadd.f32 %v2351_v60, %v817_v43 }
 0x228   : > { %1773 = vrsqrt.f32 %v717_v24  ;;  %v670_v36 = vmul.f32 0.0078125, %v620_v62  ;;  %v1437_v62 = vunpack.c.l.bf16 %v1456_v52 }
 0x229   : > { %v802_v50 = vmul.f32 %v2343_v56, %v764_v29  ;;  %v951_v12 = vmul.f32 %v1433_v45, %v855_v34  ;;  %v1438_v29 = vunpack.c.h.bf16 %v1456_v52 }
 0x22a   : > { %v1770_v44 = vpop.eup %1769  ;;  %v702_v6 = vadd.f32 1e-05, %v670_v36 }
 0x22b   : > { %v652_v59 = vpop.xlane.xlu0 %651  ;;  %v840_v19 = vadd.f32 %v2351_v60, %v802_v50  ;;  %v780_v63 = vmul.f32 %v1770_v44, %v2280_v22 }
 0x22c   : > { %1775 = vrsqrt.f32 %v702_v6  ;;  %v686_v38 = vmul.f32 0.0078125, %v652_v59 }
 0x22d   : > { %v936_v46 = vmul.f32 %v1402_v51, %v840_v19  ;;  %v818_v31 = vmul.f32 %v2343_v56, %v780_v63  ;;  %v1449_v51 = vld [vmem:[%s2338_s28 + $0x38] sm:$0xff]  }
 0x22e   : > { %v1772_v54 = vpop.eup %1771  ;;  %v718_v3 = vadd.f32 1e-05, %v686_v38  ;;  %v1410_v38 = vunpack.c.h.bf16 %v1449_v51 }
 0x22f   : > { %v624_v14 = vpop.xlane.xlu0 %623  ;;  %v622_v0 = vpop.xlane.xlu1 %621  ;;  %v962_v10 = vpack.c.bf16 %v936_v46, %v935_v37  ;;  %v856_v28 = vadd.f32 %v2351_v60, %v818_v31  ;;  %v765_v18 = vmul.f32 %v1772_v54, %v2286_v40  ;;  %v1409_v37 = vunpack.c.l.bf16 %v1449_v51  ;;  %v1457_v46 = vld [vmem:[%s2338_s28 + $0x78] sm:$0xff]   ;;  %s2546_s28 = scalar_lea.sflag [#allocation3], %s293_s13 }
 0x230   : > { %1777 = vrsqrt.f32 %v718_v3  ;;  %v672_v55 = vmul.f32 0.0078125, %v624_v14  ;;  %v671_v22 = vmul.f32 0.0078125, %v622_v0 }
 0x231   : > { %1507 = vmatmul.mubr.bf16.gmra.mrb[8].mxu0 %v962_v10  ;;  %v952_v1 = vmul.f32 %v1434_v32, %v856_v28  ;;  %v803_v9 = vmul.f32 %v2343_v56, %v765_v18  ;;  %v1442_v10 = vunpack.c.h.bf16 %v1457_v46 }
 0x232   : > { %v1774_v39 = vpop.eup %1773  ;;  %v704_v30 = vadd.f32 1e-05, %v672_v55  ;;  %v703_v58 = vadd.f32 1e-05, %v671_v22  ;;  %v1441_v22 = vunpack.c.l.bf16 %v1457_v46 }
 0x233   : > { %v656_v47 = vpop.xlane.xlu0 %655  ;;  %v654_v4 = vpop.xlane.xlu1 %653  ;;  %v970_v2 = vpack.c.bf16 %v952_v1, %v951_v12  ;;  %v781_v13 = vmul.f32 %v1774_v39, %v2292_v23  ;;  %v841_v21 = vadd.f32 %v2351_v60, %v803_v9 }
 0x234   : > { %1779 = vrsqrt.f32 %v704_v30  ;;  %v688_v61 = vmul.f32 0.0078125, %v656_v47  ;;  %v687_v15 = vmul.f32 0.0078125, %v654_v4  ;;  %v2467_v30 = vld [vmem:[%s2597_s5] ss:$0 sm:$0xff] }
 0x235   : > { %1781 = vrsqrt.f32 %v703_v58  ;;  %1523 = vmatmul.mubr.bf16.gmra.mrb[8].mxu1 %v970_v2  ;;  %v819_v33 = vmul.f32 %v2343_v56, %v781_v13 }
 0x236   : > { %v1776_v8 = vpop.eup %1775  ;;  %v720_v20 = vadd.f32 1e-05, %v688_v61  ;;  %v719_v40 = vadd.f32 1e-05, %v687_v15 }
 0x237   : > { %v766_v48 = vmul.f32 %v1776_v8, %v2298_v42  ;;  %v937_v42 = vmul.f32 %v1405_v49, %v841_v21  ;;  %v857_v50 = vadd.f32 %v2351_v60, %v819_v33 }
 0x238   : > { %1783 = vrsqrt.f32 %v720_v20 }
 0x239   : > { %1785 = vrsqrt.f32 %v719_v40  ;;  %v804_v41 = vmul.f32 %v2343_v56, %v766_v48 }
 0x23a   : > { %v1778_v53 = vpop.eup %1777 }
 0x23b   : > { %v842_v23 = vadd.f32 %v2351_v60, %v804_v41  ;;  %v782_v24 = vmul.f32 %v1778_v53, %v2304_v17  ;;  %v953_v17 = vmul.f32 %v1437_v62, %v857_v50 }
 0x23d   : > { %v938_v36 = vmul.f32 %v1406_v7, %v842_v23  ;;  %v820_v26 = vmul.f32 %v2343_v56, %v782_v24 }
 0x23e   : > { %v1780_v5 = vpop.eup %1779 }
 0x23f   : > { %v1782_v43 = vpop.eup %1781  ;;  %v963_v11 = vpack.c.bf16 %v938_v36, %v937_v42  ;;  %v858_v44 = vadd.f32 %v2351_v60, %v820_v26  ;;  %v768_v6 = vmul.f32 %v1780_v5, %v2308_v57 }
 0x240   : > { %v767_v59 = vmul.f32 %v1782_v43, %v2314_v25 }
 0x241   : > { %1510 = vmatprep.mubr.bf16.mxu0 %v963_v11  ;;  %v954_v19 = vmul.f32 %v1438_v29, %v858_v44  ;;  %v806_v63 = vmul.f32 %v2343_v56, %v768_v6 }
 0x242   : > { %v1784_v45 = vpop.eup %1783  ;;  %v805_v32 = vmul.f32 %v2343_v56, %v767_v59 }
 0x243   : > { %v1786_v31 = vpop.eup %1785  ;;  %v784_v34 = vmul.f32 %v1784_v45, %v2318_v27  ;;  %v971_v54 = vpack.c.bf16 %v954_v19, %v953_v17  ;;  %v844_v3 = vadd.f32 %v2351_v60, %v806_v63 }
 0x244   : > { %v783_v57 = vmul.f32 %v1786_v31, %v2326_v16  ;;  %v843_v25 = vadd.f32 %v2351_v60, %v805_v32 }
 0x245   : > { %1526 = vmatprep.mubr.bf16.mxu1 %v971_v54  ;;  %v940_v14 = vmul.f32 %v1410_v38, %v844_v3  ;;  %v822_v0 = vmul.f32 %v2343_v56, %v784_v34 }
 0x246   : > { %v939_v28 = vmul.f32 %v1409_v37, %v843_v25  ;;  %v821_v55 = vmul.f32 %v2343_v56, %v783_v57 }
 0x247   : > { %v860_v27 = vadd.f32 %v2351_v60, %v822_v0 }
 0x248   : > { %v964_v12 = vpack.c.bf16 %v940_v14, %v939_v28  ;;  %v859_v1 = vadd.f32 %v2351_v60, %v821_v55 }
 0x249   : > { %v956_v18 = vmul.f32 %v1442_v10, %v860_v27 }
 0x24a   : > { %1511 = vmatmul.mubr.bf16.gmra.mrb[12].mxu0 %v964_v12  ;;  %v955_v16 = vmul.f32 %v1441_v22, %v859_v1 }
 0x24c   : > { %v972_v39 = vpack.c.bf16 %v956_v18, %v955_v16 }
 0x24e   : > { %1527 = vmatmul.mubr.bf16.gmra.mrb[12].mxu1 %v972_v39 }
 0x2c8   : > { %v1500_v56 = vpop.f32.mrb[0].mxu0 }
 0x2c9   : > { %v1087_v58 = vadd.f32 %v1500_v56, %v2467_v30  ;;  %v1078_v47 = vpop.f32.mrb[1].mxu0 }
 0x2ca   : > { %v1079_v4 = vadd.f32 %v2467_v30, %v1078_v47  ;;  %v1501_v60 = vpop.f32.mrb[2].mxu0 }
 0x2cb   : > { %1207 = vst [vmem:[%s2471_s17 + $0x10] sm:$0xff] %v1087_v58  ;;  %v1090_v2 = vadd.f32 %v1501_v60, %v2467_v30  ;;  %v1081_v61 = vpop.f32.mrb[3].mxu0 }
 0x2cc   : > { %1205 = vst [vmem:[%s2471_s17] sm:$0xff] %v1079_v4  ;;  %v1082_v15 = vadd.f32 %v2467_v30, %v1081_v61  ;;  %v1516_v9 = vpop.f32.mrb[0].mxu1 }
 0x2cd   : > { %1208 = vst [vmem:[%s2471_s17 + $0x18] sm:$0xff] %v1090_v2  ;;  %v1151_v35 = vadd.f32 %v1516_v9, %v2467_v30  ;;  %v1142_v13 = vpop.f32.mrb[1].mxu1 }
 0x2ce   : > { %1206 = vst [vmem:[%s2471_s17 + $0x8] sm:$0xff] %v1082_v15  ;;  %v1143_v8 = vadd.f32 %v2467_v30, %v1142_v13  ;;  %v1517_v20 = vpop.f32.mrb[2].mxu1 }
 0x2cf   : > { %1223 = vst [vmem:[%s2471_s17 + $0x90] sm:$0xff] %v1151_v35  ;;  %v1154_v40 = vadd.f32 %v1517_v20, %v2467_v30  ;;  %v1145_v48 = vpop.f32.mrb[3].mxu1 }
 0x2d0   : > { %1221 = vst [vmem:[%s2471_s17 + $0x80] sm:$0xff] %v1143_v8  ;;  %v1146_v49 = vadd.f32 %v2467_v30, %v1145_v48 }
 0x2d1   : > { %1224 = vst [vmem:[%s2471_s17 + $0x98] sm:$0xff] %v1154_v40 }
 0x2d2   : > { %1222 = vst [vmem:[%s2471_s17 + $0x88] sm:$0xff] %v1146_v49 }
 0x2e8   : > { %v1504_v7 = vpop.f32.mrb[4].mxu0 }
 0x2e9   : > { %v1103_v41 = vadd.f32 %v1504_v7, %v2467_v30  ;;  %v1094_v21 = vpop.f32.mrb[5].mxu0 }
 0x2ea   : > { %v1095_v33 = vadd.f32 %v2467_v30, %v1094_v21  ;;  %v1505_v52 = vpop.f32.mrb[6].mxu0 }
 0x2eb   : > { %1211 = vst [vmem:[%s2471_s17 + $0x30] sm:$0xff] %v1103_v41  ;;  %v1106_v53 = vadd.f32 %v1505_v52, %v2467_v30  ;;  %v1097_v23 = vpop.f32.mrb[7].mxu0 }
 0x2ec   : > { %1209 = vst [vmem:[%s2471_s17 + $0x20] sm:$0xff] %v1095_v33  ;;  %v1098_v24 = vadd.f32 %v2467_v30, %v1097_v23  ;;  %v1520_v62 = vpop.f32.mrb[4].mxu1 }
 0x2ed   : > { %1212 = vst [vmem:[%s2471_s17 + $0x38] sm:$0xff] %v1106_v53  ;;  %v1167_v29 = vadd.f32 %v1520_v62, %v2467_v30  ;;  %v1158_v42 = vpop.f32.mrb[5].mxu1 }
 0x2ee   : > { %1210 = vst [vmem:[%s2471_s17 + $0x28] sm:$0xff] %v1098_v24  ;;  %v1159_v36 = vadd.f32 %v2467_v30, %v1158_v42  ;;  %v1521_v26 = vpop.f32.mrb[6].mxu1 }
 0x2ef   : > { %1227 = vst [vmem:[%s2471_s17 + $0xb0] sm:$0xff] %v1167_v29  ;;  %v1170_v50 = vadd.f32 %v1521_v26, %v2467_v30  ;;  %v1161_v5 = vpop.f32.mrb[7].mxu1 }
 0x2f0   : > { %1225 = vst [vmem:[%s2471_s17 + $0xa0] sm:$0xff] %v1159_v36  ;;  %v1162_v51 = vadd.f32 %v2467_v30, %v1161_v5 }
 0x2f1   : > { %1228 = vst [vmem:[%s2471_s17 + $0xb8] sm:$0xff] %v1170_v50 }
 0x2f2   : > { %1226 = vst [vmem:[%s2471_s17 + $0xa8] sm:$0xff] %v1162_v51 }
 0x304   : > { %v1508_v43 = vpop.f32.mrb[8].mxu0 }
 0x305   : > { %v1119_v11 = vadd.f32 %v1508_v43, %v2467_v30  ;;  %v1110_v44 = vpop.f32.mrb[9].mxu0 }
 0x306   : > { %v1111_v6 = vadd.f32 %v2467_v30, %v1110_v44  ;;  %v1509_v59 = vpop.f32.mrb[10].mxu0 }
 0x307   : > { %1215 = vst [vmem:[%s2471_s17 + $0x50] sm:$0xff] %v1119_v11  ;;  %v1122_v17 = vadd.f32 %v1509_v59, %v2467_v30  ;;  %v1113_v19 = vpop.f32.mrb[11].mxu0 }
 0x308   : > { %1213 = vst [vmem:[%s2471_s17 + $0x40] sm:$0xff] %v1111_v6  ;;  %v1114_v63 = vadd.f32 %v2467_v30, %v1113_v19  ;;  %v1524_v38 = vpop.f32.mrb[8].mxu1 }
 0x309   : > { %1216 = vst [vmem:[%s2471_s17 + $0x58] sm:$0xff] %v1122_v17  ;;  %v1183_v45 = vadd.f32 %v1524_v38, %v2467_v30  ;;  %v1174_v32 = vpop.f32.mrb[9].mxu1 }
 0x30a   : > { %1214 = vst [vmem:[%s2471_s17 + $0x48] sm:$0xff] %v1114_v63  ;;  %v1175_v37 = vadd.f32 %v2467_v30, %v1174_v32  ;;  %v1525_v46 = vpop.f32.mrb[10].mxu1 }
 0x30b   : > { %1231 = vst [vmem:[%s2471_s17 + $0xd0] sm:$0xff] %v1183_v45  ;;  %v1186_v31 = vadd.f32 %v1525_v46, %v2467_v30  ;;  %v1177_v34 = vpop.f32.mrb[11].mxu1 }
 0x30c   : > { %1229 = vst [vmem:[%s2471_s17 + $0xc0] sm:$0xff] %v1175_v37  ;;  %v1178_v54 = vadd.f32 %v2467_v30, %v1177_v34 }
 0x30d   : > { %1232 = vst [vmem:[%s2471_s17 + $0xd8] sm:$0xff] %v1186_v31 }
 0x30e   : > { %1230 = vst [vmem:[%s2471_s17 + $0xc8] sm:$0xff] %v1178_v54 }
 0x31d   : > { %v1512_v3 = vpop.f32.mrb[12].mxu0 }
 0x31e   : > { %v1135_v57 = vadd.f32 %v1512_v3, %v2467_v30  ;;  %v1126_v25 = vpop.f32.mrb[13].mxu0 }
 0x31f   : > { %v1127_v14 = vadd.f32 %v2467_v30, %v1126_v25  ;;  %v1513_v0 = vpop.f32.mrb[14].mxu0 }
 0x320   : > { %1219 = vst [vmem:[%s2471_s17 + $0x70] sm:$0xff] %v1135_v57  ;;  %v1138_v10 = vadd.f32 %v1513_v0, %v2467_v30  ;;  %v1129_v28 = vpop.f32.mrb[15].mxu0 }
 0x321   : > { %1217 = vst [vmem:[%s2471_s17 + $0x60] sm:$0xff] %v1127_v14  ;;  %v1130_v55 = vadd.f32 %v2467_v30, %v1129_v28  ;;  %v1528_v22 = vpop.f32.mrb[12].mxu1 }
 0x322   : > { %1220 = vst [vmem:[%s2471_s17 + $0x78] sm:$0xff] %v1138_v10  ;;  %v1199_v27 = vadd.f32 %v1528_v22, %v2467_v30  ;;  %v1190_v12 = vpop.f32.mrb[13].mxu1 }
 0x323   : > { %1218 = vst [vmem:[%s2471_s17 + $0x68] sm:$0xff] %v1130_v55  ;;  %v1191_v1 = vadd.f32 %v2467_v30, %v1190_v12  ;;  %v1529_v18 = vpop.f32.mrb[14].mxu1 }
 0x324   : > { %1235 = vst [vmem:[%s2471_s17 + $0xf0] sm:$0xff] %v1199_v27  ;;  %v1202_v16 = vadd.f32 %v1529_v18, %v2467_v30  ;;  %v1193_v39 = vpop.f32.mrb[15].mxu1 }
 0x325   : > { %1233 = vst [vmem:[%s2471_s17 + $0xe0] sm:$0xff] %v1191_v1  ;;  %v1194_v56 = vadd.f32 %v2467_v30, %v1193_v39 }
 0x326   : > { %1236 = vst [vmem:[%s2471_s17 + $0xf8] sm:$0xff] %v1202_v16 }
 0x327   : > { %1234 = vst [vmem:[%s2471_s17 + $0xe8] sm:$0xff] %v1194_v56 }
 0x328   : > { %1800 = shalt.err (!%p1797_p5)
}
 0x329   : > { %s1801_s13 = scalar_lea.hbm %s2536_s24, 4096  ;;  %s1805_s16 = scalar_lea.hbm %s2598_s6, 8192 }
 0x32a   : > { %p1802_p6 = scmp.ne.s32.totalorder %s2536_s24, %s1801_s13  ;;  %p1806_p10 = scmp.lt.u32.totalorder %s2536_s24, %s2598_s6 }
 0x32b   : > { %p1807_p11 = scmp.lt.u32.totalorder %s1805_s16, %s1801_s13  ;;  %p1809_p13 = scmp.lt.u32.totalorder %s1801_s13, %s2536_s24 }
 0x32c   : > { %p1803_p7 = pnand %p1802_p6, %p1945_p4 }
 0x32d   : > { %p1808_p12 = por %p1807_p11, %p1806_p10 }
 0x32e   : > { %p1804_p9 = pneg %p1803_p7 }
 0x32f   : > { %p1810_p0 = por %p1809_p13, %p1808_p12 }
 0x331   : > { %p1811_p1 = pnand %p1810_p0, %p1804_p9 }
 0x333   : > { %1814 = shalt.err (!%p1811_p1)
}
 0x334   : > { %s1868_s20 = smov 128   ;;  %s1869_s27 = smov 8  }
 0x335   : > { %1546 = dma.vmem_to_hbm [thread:$0]  (%p1945_p4), %s2538_s19, 4096, %s2536_s24, %s2546_s28, %s1868_s20, %s1868_s20, %s1869_s27  }
 0x336 PF: > { %p1552_p2 = scmp.ge.s32.totalorder %s1865_s26, 2  ;;  %s1268_s30 = sand.u32 1, %s1845_s21  }
 0x337   : > { %s1269_s8 = scalar_lea.sflag [#allocation3], %s1268_s30 }
 0x338   : > { %p1549_p3 = pnand %p1552_p2, %p1952_p8 }
 0x33a   : > { %1840 = dma.done.wait (!%p1549_p3), %s1269_s8, 4096  }
 0x33b   : > { %1842 = vsyncadd (!%p1549_p3), %s1269_s8, 4294963200  ;;  %s19_s26 = sadd.s32 1, %s1865_s26   ;;  %s2601_s21 = smov %s1849_s22 }
 0x33c   : > { %p16_p5 = scmp.ge.s32.totalorder %s19_s26, 4   ;;  %s2602_s22 = smov %s1853_s23 }
 0x33d   : > { %s2603_s23 = smov %s1958_s10  ;;  %s2604_s24 = smov %s1861_s25 }
 0x33e   : > { %s2605_s25 = smov %s2607_s29  ;;  %18 = sbr.rel (!%p16_p5) target bundleno = 4 (0x4), region = 82 }
 0x345   :  { %1274 = vsyncpa [#allocation3], 1 }
 0x346   :  { %1276 = vsyncpa [#allocation3 + $0x1], 1 }

// kernel: triangle_multiplicative_pallas.4
= control target key start
LH: loop header
LB: loop body
LE: loop exit
PB: predicated region body
PF: predicated region fallthrough
CT: control target
= control target key end

     0   :  { %s13615_s9 = smov 0   ;;  %s13617_s10 = smov 0   ;;  %s14942_s0 = inlined_call_operand.vmem [shape: bf16[2,128,16,16], index: 0, kind: input, shape index: {}]   ;;  %s14943_s1 = inlined_call_operand.vmem [shape: bf16[2,128,16,16], index: 1, kind: input, shape index: {}]   ;;  %s14944_s2 = inlined_call_operand.vmem [shape: bf16[2,128,16,16], index: 2, kind: output, shape index: {}]  }
   0x1   :  { %s13619_s11 = smov 0  }
   0x2 LB: > { %s24_s12 = sadd.s32 1, %s13592_s10  ;;  %p11359_p0 = scmp.ge.s32.totalorder %s13596_s11, 1  ;;  %s13596_s11 = sphi %s13619_s11, %s12_s11   ;;  %s13592_s10 = sphi %s13617_s10, %s14946_s10   ;;  %s13588_s9 = sphi %s13615_s9, %s14945_s9  }
   0x3   : > { %p26_p1 = scmp.ge.s32.totalorder %s24_s12, 2  ;;  %p152_p2 = scmp.lt.s32.totalorder %s13596_s11, 3 }
   0x5   : > { %s14948_s12 = smov (%p26_p1, %s24_s12), 0  ;;  %p153_p3 = pnand %p11359_p0, %p152_p2 }
   0x6   : > { %p195_p4 = scmp.lt.s32.totalorder (!%p153_p3), %s13588_s9, 1  ;;  %v13598_v0 = vmov (!%p153_p3), 0.0   ;;  %vm13599_vm0 = vmmov (!%p153_p3), 0   ;;  %vm768_vm1 = vcmask (!%p153_p3), 130048   ;;  %vm10981_vm2 = vcmask (!%p153_p3), 125952  }
   0x7   : > { %156 = sbr.rel (%p153_p3) target bundleno = 846 (0x34e), region = 28  ;;  %12523 = vmatprep.subr.bf16.mxu0 (!%p153_p3), %v13598_v0  ;;  %12525 = vmatprep.mubr.msk.bf16.mxu0 (!%p153_p3), %vm13599_vm0, %v13598_v0 }
   0x8   : > { %12529 = vmatprep.subr.bf16.mxu1 (!%p153_p3), %v13598_v0  ;;  %12531 = vmatprep.mubr.msk.bf16.mxu1 (!%p153_p3), %vm13599_vm0, %v13598_v0 }
   0xe   : > { %s14950_s9 = smov (!%p195_p4, %s13588_s9), 1 }
   0xf   : > { %s13639_s13 = sshll.u32 %s14950_s9, 10 }
  0x10   : > { %s13645_s16 = scalar_lea.vmem %s14943_s1, %s13639_s13  ;;  %s13664_s19 = scalar_lea.vmem %s14942_s0, %s13639_s13 }
  0x11   : > { %v13318_v1 = vld [vmem:[%s13645_s16] sm:$0xff]   ;;  %v13319_v2 = vld [vmem:[%s13645_s16 + $0x8] sm:$0xff]   ;;  %v13320_v3 = vld [vmem:[%s13645_s16 + $0x10] sm:$0xff]   ;;  %s14038_s22 = scalar_lea.vmem %s14944_s2, %s13639_s13 }
  0x12   : > { %746 = vxpose.xlu0.c.b16.start.end [1/1] (short) (narrow) %v13318_v1, 16  ;;  %891 = vxpose.xlu1.c.b16.start.end [1/1] (short) (narrow) %v13320_v3, 16  ;;  %v13321_v4 = vld [vmem:[%s13645_s16 + $0x18] sm:$0xff]   ;;  %v13322_v5 = vld [vmem:[%s13645_s16 + $0x20] sm:$0xff]   ;;  %v13323_v6 = vld [vmem:[%s13645_s16 + $0x28] sm:$0xff]  }
  0x13   : > { %v13324_v7 = vld [vmem:[%s13645_s16 + $0x30] sm:$0xff]   ;;  %v13325_v8 = vld [vmem:[%s13645_s16 + $0x38] sm:$0xff]   ;;  %v13326_v9 = vld [vmem:[%s13645_s16 + $0x40] sm:$0xff]  }
  0x14   : > { %v13327_v10 = vld [vmem:[%s13645_s16 + $0x48] sm:$0xff]   ;;  %v13328_v11 = vld [vmem:[%s13645_s16 + $0x50] sm:$0xff]   ;;  %v13329_v12 = vld [vmem:[%s13645_s16 + $0x58] sm:$0xff]  }
  0x15   : > { %v13330_v13 = vld [vmem:[%s13645_s16 + $0x60] sm:$0xff]   ;;  %v13331_v14 = vld [vmem:[%s13645_s16 + $0x68] sm:$0xff]   ;;  %v13332_v15 = vld [vmem:[%s13645_s16 + $0x70] sm:$0xff]  }
  0x16   : > { %819 = vxpose.xlu0.c.b16.start.end [1/1] (short) (narrow) %v13319_v2, 16  ;;  %963 = vxpose.xlu1.c.b16.start.end [1/1] (short) (narrow) %v13321_v4, 16  ;;  %v13344_v16 = vld [vmem:[%s13664_s19] sm:$0xff]   ;;  %v13345_v17 = vld [vmem:[%s13664_s19 + $0x8] sm:$0xff]   ;;  %v13333_v18 = vld [vmem:[%s13645_s16 + $0x78] sm:$0xff]  }
  0x17   : > { %12524 = vmatpush3.bf16.msra.mxu0 %v13344_v16  ;;  %12530 = vmatpush3.bf16.msra.mxu1 %v13345_v17  ;;  %v13334_v19 = vld [vmem:[%s13645_s16 + $0x80] sm:$0xff]   ;;  %v13335_v20 = vld [vmem:[%s13645_s16 + $0x88] sm:$0xff]   ;;  %v13336_v21 = vld [vmem:[%s13645_s16 + $0x90] sm:$0xff]  }
  0x18   : > { %12535 = vmatprep.subr.bf16.mxu0 %v13598_v0  ;;  %12541 = vmatprep.subr.bf16.mxu1 %v13598_v0  ;;  %v13337_v22 = vld [vmem:[%s13645_s16 + $0x98] sm:$0xff]   ;;  %v13338_v23 = vld [vmem:[%s13645_s16 + $0xa0] sm:$0xff]   ;;  %v13339_v24 = vld [vmem:[%s13645_s16 + $0xa8] sm:$0xff]  }
  0x19   : > { %v13340_v25 = vld [vmem:[%s13645_s16 + $0xb0] sm:$0xff]   ;;  %v13341_v26 = vld [vmem:[%s13645_s16 + $0xb8] sm:$0xff]   ;;  %v13342_v27 = vld [vmem:[%s13645_s16 + $0xc0] sm:$0xff]  }
  0x1a   : > { %1035 = vxpose.xlu0.c.b16.start.end [1/1] (short) (narrow) %v13322_v5, 16  ;;  %1107 = vxpose.xlu1.c.b16.start.end [1/1] (short) (narrow) %v13323_v6, 16  ;;  %v13343_v28 = vld [vmem:[%s13645_s16 + $0xc8] sm:$0xff]   ;;  %v13346_v29 = vld [vmem:[%s13645_s16 + $0xd0] sm:$0xff]   ;;  %v13349_v30 = vld [vmem:[%s13645_s16 + $0xd8] sm:$0xff]  }
  0x1b   : > { %v13350_v31 = vld [vmem:[%s13645_s16 + $0xe0] sm:$0xff]   ;;  %v13353_v32 = vld [vmem:[%s13645_s16 + $0xe8] sm:$0xff]   ;;  %v13354_v33 = vld [vmem:[%s13645_s16 + $0xf0] sm:$0xff]  }
  0x1c   : > { %v13357_v34 = vld [vmem:[%s13645_s16 + $0xf8] sm:$0xff]   ;;  %v13358_v35 = vld [vmem:[%s13645_s16 + $0x100] sm:$0xff]   ;;  %v13361_v36 = vld [vmem:[%s13645_s16 + $0x108] sm:$0xff]  }
  0x1d   : > { %v13362_v37 = vld [vmem:[%s13645_s16 + $0x110] sm:$0xff]   ;;  %v13365_v38 = vld [vmem:[%s13645_s16 + $0x118] sm:$0xff]   ;;  %v13366_v39 = vld [vmem:[%s13645_s16 + $0x120] sm:$0xff]  }
  0x1e   : > { %1179 = vxpose.xlu0.c.b16.start.end [1/1] (short) (narrow) %v13324_v7, 16  ;;  %1251 = vxpose.xlu1.c.b16.start.end [1/1] (short) (narrow) %v13325_v8, 16  ;;  %v13369_v40 = vld [vmem:[%s13645_s16 + $0x128] sm:$0xff]   ;;  %v13370_v41 = vld [vmem:[%s13645_s16 + $0x130] sm:$0xff]   ;;  %v13373_v42 = vld [vmem:[%s13645_s16 + $0x138] sm:$0xff]  }
  0x1f   : > { %v13374_v43 = vld [vmem:[%s13645_s16 + $0x140] sm:$0xff]   ;;  %v13377_v44 = vld [vmem:[%s13645_s16 + $0x148] sm:$0xff]   ;;  %v13378_v45 = vld [vmem:[%s13645_s16 + $0x150] sm:$0xff]  }
  0x20   : > { %v13381_v46 = vld [vmem:[%s13645_s16 + $0x158] sm:$0xff]   ;;  %v13382_v47 = vld [vmem:[%s13645_s16 + $0x160] sm:$0xff]   ;;  %v13385_v48 = vld [vmem:[%s13645_s16 + $0x168] sm:$0xff]  }
  0x21   : > { %v13386_v49 = vld [vmem:[%s13645_s16 + $0x170] sm:$0xff]   ;;  %v13389_v50 = vld [vmem:[%s13645_s16 + $0x178] sm:$0xff]   ;;  %v13390_v51 = vld [vmem:[%s13645_s16 + $0x180] sm:$0xff]  }
  0x22   : > { %1323 = vxpose.xlu0.c.b16.start.end [1/1] (short) (narrow) %v13326_v9, 16  ;;  %1395 = vxpose.xlu1.c.b16.start.end [1/1] (short) (narrow) %v13327_v10, 16  ;;  %v13393_v52 = vld [vmem:[%s13645_s16 + $0x188] sm:$0xff]   ;;  %v13394_v53 = vld [vmem:[%s13645_s16 + $0x190] sm:$0xff]   ;;  %v13397_v54 = vld [vmem:[%s13645_s16 + $0x198] sm:$0xff]  }
  0x23   : > { %v13347_v55 = vld [vmem:[%s13664_s19 + $0x10] sm:$0xff]   ;;  %v13398_v56 = vld [vmem:[%s13645_s16 + $0x1a0] sm:$0xff]   ;;  %v13401_v58 = vld [vmem:[%s13645_s16 + $0x1a8] sm:$0xff]  }
  0x24   : > { %v13348_v59 = vld [vmem:[%s13664_s19 + $0x18] sm:$0xff]   ;;  %v13402_v60 = vld [vmem:[%s13645_s16 + $0x1b0] sm:$0xff]   ;;  %v13351_v1 = vld [vmem:[%s13664_s19 + $0x20] sm:$0xff]  }
  0x25   : > { %v13405_v63 = vld [vmem:[%s13645_s16 + $0x1b8] sm:$0xff]   ;;  %v13406_v2 = vld [vmem:[%s13645_s16 + $0x1c0] sm:$0xff]   ;;  %v13409_v3 = vld [vmem:[%s13645_s16 + $0x1c8] sm:$0xff]  }
  0x26   : > { %1467 = vxpose.xlu0.c.b16.start.end [1/1] (short) (narrow) %v13328_v11, 16  ;;  %1539 = vxpose.xlu1.c.b16.start.end [1/1] (short) (narrow) %v13329_v12, 16  ;;  %v13352_v4 = vld [vmem:[%s13664_s19 + $0x28] sm:$0xff]   ;;  %v13410_v6 = vld [vmem:[%s13645_s16 + $0x1d0] sm:$0xff]   ;;  %v13413_v7 = vld [vmem:[%s13645_s16 + $0x1d8] sm:$0xff]  }
  0x27   : > { %v13355_v8 = vld [vmem:[%s13664_s19 + $0x30] sm:$0xff]   ;;  %v13414_v10 = vld [vmem:[%s13645_s16 + $0x1e0] sm:$0xff]   ;;  %v13417_v11 = vld [vmem:[%s13645_s16 + $0x1e8] sm:$0xff]  }
  0x28   : > { %v13356_v12 = vld [vmem:[%s13664_s19 + $0x38] sm:$0xff]   ;;  %v13359_v16 = vld [vmem:[%s13664_s19 + $0x40] sm:$0xff]  }
  0x2a   : > { %1611 = vxpose.xlu0.c.b16.start.end [1/1] (short) (narrow) %v13330_v13, 16  ;;  %1683 = vxpose.xlu1.c.b16.start.end [1/1] (short) (narrow) %v13331_v14, 16  ;;  %v13418_v14 = vld [vmem:[%s13645_s16 + $0x1f0] sm:$0xff]  }
  0x2e   : > { %1755 = vxpose.xlu0.c.b16.start.end [1/1] (short) (narrow) %v13332_v15, 16  ;;  %1827 = vxpose.xlu1.c.b16.start.end [1/1] (short) (narrow) %v13333_v18, 16  ;;  %v13421_v15 = vld [vmem:[%s13645_s16 + $0x1f8] sm:$0xff]   ;;  %v13360_v18 = vld [vmem:[%s13664_s19 + $0x48] sm:$0xff]  }
  0x32   : > { %1899 = vxpose.xlu0.c.b16.start.end [1/1] (short) (narrow) %v13334_v19, 16  ;;  %1971 = vxpose.xlu1.c.b16.start.end [1/1] (short) (narrow) %v13335_v20, 16  ;;  %v13422_v19 = vld [vmem:[%s13645_s16 + $0x200] sm:$0xff]  }
  0x36   : > { %2043 = vxpose.xlu0.c.b16.start.end [1/1] (short) (narrow) %v13336_v21, 16  ;;  %2115 = vxpose.xlu1.c.b16.start.end [1/1] (short) (narrow) %v13337_v22, 16  ;;  %v13425_v21 = vld [vmem:[%s13645_s16 + $0x208] sm:$0xff]   ;;  %v13363_v22 = vld [vmem:[%s13664_s19 + $0x50] sm:$0xff]  }
  0x3a   : > { %2187 = vxpose.xlu0.c.b16.start.end [1/1] (short) (narrow) %v13338_v23, 16  ;;  %2259 = vxpose.xlu1.c.b16.start.end [1/1] (short) (narrow) %v13339_v24, 16  ;;  %v13364_v24 = vld [vmem:[%s13664_s19 + $0x58] sm:$0xff]  }
  0x3e   : > { %2331 = vxpose.xlu0.c.b16.start.end [1/1] (short) (narrow) %v13340_v25, 16  ;;  %2403 = vxpose.xlu1.c.b16.start.end [1/1] (short) (narrow) %v13341_v26, 16  ;;  %v13426_v25 = vld [vmem:[%s13645_s16 + $0x210] sm:$0xff]  }
  0x42   : > { %2475 = vxpose.xlu0.c.b16.start.end [1/1] (short) (narrow) %v13342_v27, 16  ;;  %2547 = vxpose.xlu1.c.b16.start.end [1/1] (short) (narrow) %v13343_v28, 16  ;;  %v13429_v27 = vld [vmem:[%s13645_s16 + $0x218] sm:$0xff]   ;;  %v13367_v28 = vld [vmem:[%s13664_s19 + $0x60] sm:$0xff]  }
  0x46   : > { %2619 = vxpose.xlu0.c.b16.start.end [1/1] (short) (narrow) %v13346_v29, 16  ;;  %2691 = vxpose.xlu1.c.b16.start.end [1/1] (short) (narrow) %v13349_v30, 16  ;;  %v13368_v30 = vld [vmem:[%s13664_s19 + $0x68] sm:$0xff]  }
  0x4a   : > { %2763 = vxpose.xlu0.c.b16.start.end [1/1] (short) (narrow) %v13350_v31, 16  ;;  %2835 = vxpose.xlu1.c.b16.start.end [1/1] (short) (narrow) %v13353_v32, 16  ;;  %v13430_v31 = vld [vmem:[%s13645_s16 + $0x220] sm:$0xff]  }
  0x4e   : > { %2907 = vxpose.xlu0.c.b16.start.end [1/1] (short) (narrow) %v13354_v33, 16  ;;  %2979 = vxpose.xlu1.c.b16.start.end [1/1] (short) (narrow) %v13357_v34, 16  ;;  %v13433_v33 = vld [vmem:[%s13645_s16 + $0x228] sm:$0xff]   ;;  %v13371_v34 = vld [vmem:[%s13664_s19 + $0x70] sm:$0xff]  }
  0x52   : > { %3051 = vxpose.xlu0.c.b16.start.end [1/1] (short) (narrow) %v13358_v35, 16  ;;  %3123 = vxpose.xlu1.c.b16.start.end [1/1] (short) (narrow) %v13361_v36, 16  ;;  %v13372_v36 = vld [vmem:[%s13664_s19 + $0x78] sm:$0xff]  }
  0x56   : > { %3195 = vxpose.xlu0.c.b16.start.end [1/1] (short) (narrow) %v13362_v37, 16  ;;  %3267 = vxpose.xlu1.c.b16.start.end [1/1] (short) (narrow) %v13365_v38, 16  ;;  %v13434_v37 = vld [vmem:[%s13645_s16 + $0x230] sm:$0xff]  }
  0x5a   : > { %3339 = vxpose.xlu0.c.b16.start.end [1/1] (short) (narrow) %v13366_v39, 16  ;;  %3411 = vxpose.xlu1.c.b16.start.end [1/1] (short) (narrow) %v13369_v40, 16  ;;  %v13437_v39 = vld [vmem:[%s13645_s16 + $0x238] sm:$0xff]   ;;  %v13375_v40 = vld [vmem:[%s13664_s19 + $0x80] sm:$0xff]  }
  0x5e   : > { %3483 = vxpose.xlu0.c.b16.start.end [1/1] (short) (narrow) %v13370_v41, 16  ;;  %3555 = vxpose.xlu1.c.b16.start.end [1/1] (short) (narrow) %v13373_v42, 16  ;;  %v13376_v42 = vld [vmem:[%s13664_s19 + $0x88] sm:$0xff]  }
  0x62   : > { %3627 = vxpose.xlu0.c.b16.start.end [1/1] (short) (narrow) %v13374_v43, 16  ;;  %3699 = vxpose.xlu1.c.b16.start.end [1/1] (short) (narrow) %v13377_v44, 16  ;;  %v13438_v43 = vld [vmem:[%s13645_s16 + $0x240] sm:$0xff]  }
  0x66   : > { %3771 = vxpose.xlu0.c.b16.start.end [1/1] (short) (narrow) %v13378_v45, 16  ;;  %3843 = vxpose.xlu1.c.b16.start.end [1/1] (short) (narrow) %v13381_v46, 16  ;;  %v13441_v45 = vld [vmem:[%s13645_s16 + $0x248] sm:$0xff]   ;;  %v13379_v46 = vld [vmem:[%s13664_s19 + $0x90] sm:$0xff]  }
  0x6a   : > { %3915 = vxpose.xlu0.c.b16.start.end [1/1] (short) (narrow) %v13382_v47, 16  ;;  %3987 = vxpose.xlu1.c.b16.start.end [1/1] (short) (narrow) %v13385_v48, 16  ;;  %v13380_v48 = vld [vmem:[%s13664_s19 + $0x98] sm:$0xff]  }
  0x6e   : > { %4059 = vxpose.xlu0.c.b16.start.end [1/1] (short) (narrow) %v13386_v49, 16  ;;  %4131 = vxpose.xlu1.c.b16.start.end [1/1] (short) (narrow) %v13389_v50, 16  ;;  %v13442_v49 = vld [vmem:[%s13645_s16 + $0x250] sm:$0xff]  }
  0x72   : > { %4203 = vxpose.xlu0.c.b16.start.end [1/1] (short) (narrow) %v13390_v51, 16  ;;  %4275 = vxpose.xlu1.c.b16.start.end [1/1] (short) (narrow) %v13393_v52, 16  ;;  %v13445_v51 = vld [vmem:[%s13645_s16 + $0x258] sm:$0xff]   ;;  %v13383_v52 = vld [vmem:[%s13664_s19 + $0xa0] sm:$0xff]  }
  0x76   : > { %4347 = vxpose.xlu0.c.b16.start.end [1/1] (short) (narrow) %v13394_v53, 16  ;;  %4419 = vxpose.xlu1.c.b16.start.end [1/1] (short) (narrow) %v13397_v54, 16  ;;  %v13384_v54 = vld [vmem:[%s13664_s19 + $0xa8] sm:$0xff]  }
  0x78   : > { %v754_v57 = vpop.trf.xlu0  ;;  %v899_v62 = vpop.trf.xlu1 }
  0x79   : > { %12526 = vmatmul.mubr.msk.bf16.vlgmr.msra.gmra.mrb[0].mxu0 %vm768_vm1, %v754_v57  ;;  %v13449_v57 = vld [vmem:[%s13645_s16 + $0x268] sm:$0xff]  }
  0x7a   : > { %12536 = vmatpush3.bf16.msra.mxu0 %v13347_v55  ;;  %12537 = vmatprep.mubr.msk.bf16.mxu0 %vm13599_vm0, %v13598_v0  ;;  %v13446_v55 = vld [vmem:[%s13645_s16 + $0x260] sm:$0xff]  }
  0x7b   : > { %12547 = vmatprep.subr.bf16.mxu0 %v13598_v0  ;;  %4491 = vxpose.xlu0.c.b16.start.end [1/1] (short) (narrow) %v13398_v56, 16 }
  0x7c   : > { %v827_v61 = vpop.trf.xlu0  ;;  %4563 = vxpose.xlu1.c.b16.start.end [1/1] (short) (narrow) %v13401_v58, 16  ;;  %v971_v5 = vpop.trf.xlu1  ;;  %v13387_v58 = vld [vmem:[%s13664_s19 + $0xb0] sm:$0xff]  }
  0x7d   : > { %12532 = vmatmul.mubr.msk.bf16.vlgmr.msra.gmra.mrb[0].mxu1 %vm768_vm1, %v827_v61  ;;  %v13450_v61 = vld [vmem:[%s13645_s16 + $0x270] sm:$0xff]  }
  0x7e   : > { %12542 = vmatpush3.bf16.msra.mxu1 %v13348_v59  ;;  %12543 = vmatprep.mubr.msk.bf16.mxu1 %vm13599_vm0, %v13598_v0 }
  0x7f   : > { %12553 = vmatprep.subr.bf16.mxu1 %v13598_v0  ;;  %4635 = vxpose.xlu0.c.b16.start.end [1/1] (short) (narrow) %v13402_v60, 16  ;;  %v13388_v60 = vld [vmem:[%s13664_s19 + $0xb8] sm:$0xff]  }
  0x80   : > { %4707 = vxpose.xlu1.c.b16.start.end [1/1] (short) (narrow) %v13405_v63, 16  ;;  %v1043_v9 = vpop.trf.xlu0  ;;  %v1115_v13 = vpop.trf.xlu1  ;;  %v13453_v63 = vld [vmem:[%s13645_s16 + $0x278] sm:$0xff]  }
  0x81   : > { %12538 = vmatmul.mubr.msk.bf16.vlgmr.msra.gmra.mrb[4].mxu0 %vm768_vm1, %v899_v62 }
  0x82   : > { %12548 = vmatpush3.bf16.msra.mxu0 %v13351_v1  ;;  %12549 = vmatprep.mubr.msk.bf16.mxu0 %vm13599_vm0, %v13598_v0  ;;  %v13391_v1 = vld [vmem:[%s13664_s19 + $0xc0] sm:$0xff]  }
  0x83   : > { %12559 = vmatprep.subr.bf16.mxu0 %v13598_v0  ;;  %4779 = vxpose.xlu0.c.b16.start.end [1/1] (short) (narrow) %v13406_v2, 16 }
  0x84   : > { %4851 = vxpose.xlu1.c.b16.start.end [1/1] (short) (narrow) %v13409_v3, 16  ;;  %v1187_v17 = vpop.trf.xlu0  ;;  %v1259_v20 = vpop.trf.xlu1  ;;  %v13392_v3 = vld [vmem:[%s13664_s19 + $0xc8] sm:$0xff]  }
  0x85   : > { %12544 = vmatmul.mubr.msk.bf16.vlgmr.msra.gmra.mrb[4].mxu1 %vm768_vm1, %v971_v5 }
  0x86   : > { %12554 = vmatpush3.bf16.msra.mxu1 %v13352_v4  ;;  %12555 = vmatprep.mubr.msk.bf16.mxu1 %vm13599_vm0, %v13598_v0  ;;  %v13454_v4 = vld [vmem:[%s13645_s16 + $0x280] sm:$0xff]  }
  0x87   : > { %12565 = vmatprep.subr.bf16.mxu1 %v13598_v0  ;;  %4923 = vxpose.xlu0.c.b16.start.end [1/1] (short) (narrow) %v13410_v6, 16  ;;  %v13457_v6 = vld [vmem:[%s13645_s16 + $0x288] sm:$0xff]  }
  0x88   : > { %4995 = vxpose.xlu1.c.b16.start.end [1/1] (short) (narrow) %v13413_v7, 16  ;;  %v1331_v23 = vpop.trf.xlu0  ;;  %v1403_v26 = vpop.trf.xlu1  ;;  %v13395_v7 = vld [vmem:[%s13664_s19 + $0xd0] sm:$0xff]  }
  0x89   : > { %12550 = vmatmul.mubr.msk.bf16.vlgmr.msra.gmra.mrb[8].mxu0 %vm768_vm1, %v1043_v9  ;;  %v13396_v9 = vld [vmem:[%s13664_s19 + $0xd8] sm:$0xff]  }
  0x8a   : > { %12560 = vmatpush3.bf16.msra.mxu0 %v13355_v8  ;;  %12561 = vmatprep.mubr.msk.bf16.mxu0 %vm13599_vm0, %v13598_v0 }
  0x8b   : > { %12571 = vmatprep.subr.bf16.mxu0 %v13598_v0  ;;  %5067 = vxpose.xlu0.c.b16.start.end [1/1] (short) (narrow) %v13414_v10, 16  ;;  %v13458_v10 = vld [vmem:[%s13645_s16 + $0x290] sm:$0xff]  }
  0x8c   : > { %5139 = vxpose.xlu1.c.b16.start.end [1/1] (short) (narrow) %v13417_v11, 16  ;;  %v1475_v29 = vpop.trf.xlu0  ;;  %v1547_v32 = vpop.trf.xlu1 }
  0x8d   : > { %12556 = vmatmul.mubr.msk.bf16.vlgmr.msra.gmra.mrb[8].mxu1 %vm768_vm1, %v1115_v13  ;;  %v13399_v13 = vld [vmem:[%s13664_s19 + $0xe0] sm:$0xff]  }
  0x8e   : > { %12566 = vmatpush3.bf16.msra.mxu1 %v13356_v12  ;;  %12567 = vmatprep.mubr.msk.bf16.mxu1 %vm13599_vm0, %v13598_v0  ;;  %v13461_v12 = vld [vmem:[%s13645_s16 + $0x298] sm:$0xff]  }
  0x8f   : > { %12577 = vmatprep.subr.bf16.mxu1 %v13598_v0  ;;  %5211 = vxpose.xlu0.c.b16.start.end [1/1] (short) (narrow) %v13418_v14, 16 }
  0x90   : > { %5283 = vxpose.xlu1.c.b16.start.end [1/1] (short) (narrow) %v13421_v15, 16  ;;  %v1619_v35 = vpop.trf.xlu0  ;;  %v1691_v38 = vpop.trf.xlu1  ;;  %v13400_v15 = vld [vmem:[%s13664_s19 + $0xe8] sm:$0xff]  }
  0x91   : > { %12562 = vmatmul.mubr.msk.bf16.vlgmr.msra.gmra.mrb[12].mxu0 %vm768_vm1, %v1187_v17 }
  0x92   : > { %12572 = vmatpush3.bf16.msra.mxu0 %v13359_v16  ;;  %12573 = vmatprep.mubr.msk.bf16.mxu0 %vm13599_vm0, %v13598_v0  ;;  %v13462_v16 = vld [vmem:[%s13645_s16 + $0x2a0] sm:$0xff]  }
  0x93   : > { %12583 = vmatprep.subr.bf16.mxu0 %v13598_v0  ;;  %5355 = vxpose.xlu0.c.b16.start.end [1/1] (short) (narrow) %v13422_v19, 16  ;;  %v13403_v19 = vld [vmem:[%s13664_s19 + $0xf0] sm:$0xff]  }
  0x94   : > { %5427 = vxpose.xlu1.c.b16.start.end [1/1] (short) (narrow) %v13425_v21, 16  ;;  %v1763_v41 = vpop.trf.xlu0  ;;  %v1835_v44 = vpop.trf.xlu1  ;;  %v13404_v21 = vld [vmem:[%s13664_s19 + $0xf8] sm:$0xff]  }
  0x95   : > { %12568 = vmatmul.mubr.msk.bf16.vlgmr.msra.gmra.mrb[12].mxu1 %vm768_vm1, %v1259_v20 }
  0x96   : > { %12578 = vmatpush3.bf16.msra.mxu1 %v13360_v18  ;;  %12579 = vmatprep.mubr.msk.bf16.mxu1 %vm13599_vm0, %v13598_v0  ;;  %v13465_v18 = vld [vmem:[%s13645_s16 + $0x2a8] sm:$0xff]  }
  0x97   : > { %12589 = vmatprep.subr.bf16.mxu1 %v13598_v0  ;;  %5499 = vxpose.xlu0.c.b16.start.end [1/1] (short) (narrow) %v13426_v25, 16  ;;  %v13407_v25 = vld [vmem:[%s13664_s19 + $0x100] sm:$0xff]  }
  0x98   : > { %5571 = vxpose.xlu1.c.b16.start.end [1/1] (short) (narrow) %v13429_v27, 16  ;;  %v1907_v47 = vpop.trf.xlu0  ;;  %v1979_v50 = vpop.trf.xlu1  ;;  %v13408_v27 = vld [vmem:[%s13664_s19 + $0x108] sm:$0xff]  }
  0x99   : > { %12574 = vmatmul.mubr.msk.bf16.vlgmr.msra.gmra.mrb[16].mxu0 %vm768_vm1, %v1331_v23 }
  0x9a   : > { %12584 = vmatpush3.bf16.msra.mxu0 %v13363_v22  ;;  %12585 = vmatprep.mubr.msk.bf16.mxu0 %vm13599_vm0, %v13598_v0  ;;  %v13466_v22 = vld [vmem:[%s13645_s16 + $0x2b0] sm:$0xff]  }
  0x9b   : > { %12595 = vmatprep.subr.bf16.mxu0 %v13598_v0  ;;  %5643 = vxpose.xlu0.c.b16.start.end [1/1] (short) (narrow) %v13430_v31, 16  ;;  %v13411_v31 = vld [vmem:[%s13664_s19 + $0x110] sm:$0xff]  }
  0x9c   : > { %5715 = vxpose.xlu1.c.b16.start.end [1/1] (short) (narrow) %v13433_v33, 16  ;;  %v2051_v53 = vpop.trf.xlu0  ;;  %v2123_v56 = vpop.trf.xlu1  ;;  %v13412_v33 = vld [vmem:[%s13664_s19 + $0x118] sm:$0xff]  }
  0x9d   : > { %12580 = vmatmul.mubr.msk.bf16.vlgmr.msra.gmra.mrb[16].mxu1 %vm768_vm1, %v1403_v26 }
  0x9e   : > { %12590 = vmatpush3.bf16.msra.mxu1 %v13364_v24  ;;  %12591 = vmatprep.mubr.msk.bf16.mxu1 %vm13599_vm0, %v13598_v0  ;;  %v13469_v24 = vld [vmem:[%s13645_s16 + $0x2b8] sm:$0xff]  }
  0x9f   : > { %12601 = vmatprep.subr.bf16.mxu1 %v13598_v0  ;;  %5787 = vxpose.xlu0.c.b16.start.end [1/1] (short) (narrow) %v13434_v37, 16 }
  0xa0   : > { %5859 = vxpose.xlu1.c.b16.start.end [1/1] (short) (narrow) %v13437_v39, 16  ;;  %v2195_v59 = vpop.trf.xlu0  ;;  %v2267_v62 = vpop.trf.xlu1  ;;  %v13478_v39 = vld [vmem:[%s13645_s16 + $0x2e0] sm:$0xff]  }
  0xa1   : > { %12586 = vmatmul.mubr.msk.bf16.vlgmr.msra.gmra.mrb[20].mxu0 %vm768_vm1, %v1475_v29 }
  0xa2   : > { %12596 = vmatpush3.bf16.msra.mxu0 %v13367_v28  ;;  %12597 = vmatprep.mubr.msk.bf16.mxu0 %vm13599_vm0, %v13598_v0  ;;  %v13470_v28 = vld [vmem:[%s13645_s16 + $0x2c0] sm:$0xff]  }
  0xa3   : > { %12607 = vmatprep.subr.bf16.mxu0 %v13598_v0  ;;  %5931 = vxpose.xlu0.c.b16.start.end [1/1] (short) (narrow) %v13438_v43, 16 }
  0xa4   : > { %6003 = vxpose.xlu1.c.b16.start.end [1/1] (short) (narrow) %v13441_v45, 16  ;;  %v2339_v2 = vpop.trf.xlu0  ;;  %v2411_v5 = vpop.trf.xlu1  ;;  %v13482_v45 = vld [vmem:[%s13645_s16 + $0x2f0] sm:$0xff]  }
  0xa5   : > { %12592 = vmatmul.mubr.msk.bf16.vlgmr.msra.gmra.mrb[20].mxu1 %vm768_vm1, %v1547_v32 }
  0xa6   : > { %12602 = vmatpush3.bf16.msra.mxu1 %v13368_v30  ;;  %12603 = vmatprep.mubr.msk.bf16.mxu1 %vm13599_vm0, %v13598_v0  ;;  %v13473_v30 = vld [vmem:[%s13645_s16 + $0x2c8] sm:$0xff]  }
  0xa7   : > { %12613 = vmatprep.subr.bf16.mxu1 %v13598_v0  ;;  %6075 = vxpose.xlu0.c.b16.start.end [1/1] (short) (narrow) %v13442_v49, 16 }
  0xa8   : > { %6147 = vxpose.xlu1.c.b16.start.end [1/1] (short) (narrow) %v13445_v51, 16  ;;  %v2483_v8 = vpop.trf.xlu0  ;;  %v2555_v11 = vpop.trf.xlu1  ;;  %v13486_v51 = vld [vmem:[%s13645_s16 + $0x300] sm:$0xff]  }
  0xa9   : > { %12598 = vmatmul.mubr.msk.bf16.vlgmr.msra.gmra.mrb[24].mxu0 %vm768_vm1, %v1619_v35 }
  0xaa   : > { %12608 = vmatpush3.bf16.msra.mxu0 %v13371_v34  ;;  %12609 = vmatprep.mubr.msk.bf16.mxu0 %vm13599_vm0, %v13598_v0  ;;  %v13474_v34 = vld [vmem:[%s13645_s16 + $0x2d0] sm:$0xff]  }
  0xab   : > { %12619 = vmatprep.subr.bf16.mxu0 %v13598_v0  ;;  %6219 = vxpose.xlu0.c.b16.start.end [1/1] (short) (narrow) %v13446_v55, 16 }
  0xac   : > { %6291 = vxpose.xlu1.c.b16.start.end [1/1] (short) (narrow) %v13449_v57, 16  ;;  %v2627_v14 = vpop.trf.xlu0  ;;  %v2699_v17 = vpop.trf.xlu1  ;;  %v13490_v57 = vld [vmem:[%s13645_s16 + $0x310] sm:$0xff]  }
  0xad   : > { %12604 = vmatmul.mubr.msk.bf16.vlgmr.msra.gmra.mrb[24].mxu1 %vm768_vm1, %v1691_v38  ;;  %v13415_v38 = vld [vmem:[%s13664_s19 + $0x120] sm:$0xff]  }
  0xae   : > { %12614 = vmatpush3.bf16.msra.mxu1 %v13372_v36  ;;  %12615 = vmatprep.mubr.msk.bf16.mxu1 %vm13599_vm0, %v13598_v0  ;;  %v13477_v36 = vld [vmem:[%s13645_s16 + $0x2d8] sm:$0xff]  }
  0xaf   : > { %12625 = vmatprep.subr.bf16.mxu1 %v13598_v0  ;;  %6363 = vxpose.xlu0.c.b16.start.end [1/1] (short) (narrow) %v13450_v61, 16 }
  0xb0   : > { %6435 = vxpose.xlu1.c.b16.start.end [1/1] (short) (narrow) %v13453_v63, 16  ;;  %v2771_v20 = vpop.trf.xlu0  ;;  %v2843_v23 = vpop.trf.xlu1  ;;  %v13494_v63 = vld [vmem:[%s13645_s16 + $0x320] sm:$0xff]  }
  0xb1   : > { %12610 = vmatmul.mubr.msk.bf16.vlgmr.msra.gmra.mrb[28].mxu0 %vm768_vm1, %v1763_v41  ;;  %v13416_v41 = vld [vmem:[%s13664_s19 + $0x128] sm:$0xff]  }
  0xb2   : > { %12620 = vmatpush3.bf16.msra.mxu0 %v13375_v40  ;;  %12621 = vmatprep.mubr.msk.bf16.mxu0 %vm13599_vm0, %v13598_v0 }
  0xb3   : > { %12631 = vmatprep.subr.bf16.mxu0 %v13598_v0  ;;  %6507 = vxpose.xlu0.c.b16.start.end [1/1] (short) (narrow) %v13454_v4, 16 }
  0xb4   : > { %6579 = vxpose.xlu1.c.b16.start.end [1/1] (short) (narrow) %v13457_v6, 16  ;;  %v2915_v26 = vpop.trf.xlu0  ;;  %v2987_v29 = vpop.trf.xlu1  ;;  %v13498_v6 = vld [vmem:[%s13645_s16 + $0x330] sm:$0xff]  }
  0xb5   : > { %12616 = vmatmul.mubr.msk.bf16.vlgmr.msra.gmra.mrb[28].mxu1 %vm768_vm1, %v1835_v44  ;;  %v13419_v44 = vld [vmem:[%s13664_s19 + $0x130] sm:$0xff]  }
  0xb6   : > { %12626 = vmatpush3.bf16.msra.mxu1 %v13376_v42  ;;  %12627 = vmatprep.mubr.msk.bf16.mxu1 %vm13599_vm0, %v13598_v0  ;;  %v13481_v42 = vld [vmem:[%s13645_s16 + $0x2e8] sm:$0xff]  }
  0xb7   : > { %12637 = vmatprep.subr.bf16.mxu1 %v13598_v0  ;;  %6651 = vxpose.xlu0.c.b16.start.end [1/1] (short) (narrow) %v13458_v10, 16 }
  0xb8   : > { %6723 = vxpose.xlu1.c.b16.start.end [1/1] (short) (narrow) %v13461_v12, 16  ;;  %v3059_v32 = vpop.trf.xlu0  ;;  %v3131_v35 = vpop.trf.xlu1  ;;  %v13502_v12 = vld [vmem:[%s13645_s16 + $0x340] sm:$0xff]  }
  0xb9   : > { %12622 = vmatmul.mubr.msk.bf16.vlgmr.msra.gmra.mrb[32].mxu0 %vm768_vm1, %v1907_v47  ;;  %v13420_v47 = vld [vmem:[%s13664_s19 + $0x138] sm:$0xff]  }
  0xba   : > { %12632 = vmatpush3.bf16.msra.mxu0 %v13379_v46  ;;  %12633 = vmatprep.mubr.msk.bf16.mxu0 %vm13599_vm0, %v13598_v0 }
  0xbb   : > { %12643 = vmatprep.subr.bf16.mxu0 %v13598_v0  ;;  %6795 = vxpose.xlu0.c.b16.start.end [1/1] (short) (narrow) %v13462_v16, 16 }
  0xbc   : > { %6867 = vxpose.xlu1.c.b16.start.end [1/1] (short) (narrow) %v13465_v18, 16  ;;  %v3203_v37 = vpop.trf.xlu0  ;;  %v3275_v40 = vpop.trf.xlu1  ;;  %v13506_v18 = vld [vmem:[%s13645_s16 + $0x350] sm:$0xff]  }
  0xbd   : > { %12628 = vmatmul.mubr.msk.bf16.vlgmr.msra.gmra.mrb[32].mxu1 %vm768_vm1, %v1979_v50  ;;  %v13423_v50 = vld [vmem:[%s13664_s19 + $0x140] sm:$0xff]  }
  0xbe   : > { %12638 = vmatpush3.bf16.msra.mxu1 %v13380_v48  ;;  %12639 = vmatprep.mubr.msk.bf16.mxu1 %vm13599_vm0, %v13598_v0  ;;  %v13485_v48 = vld [vmem:[%s13645_s16 + $0x2f8] sm:$0xff]  }
  0xbf   : > { %12649 = vmatprep.subr.bf16.mxu1 %v13598_v0  ;;  %6939 = vxpose.xlu0.c.b16.start.end [1/1] (short) (narrow) %v13466_v22, 16 }
  0xc0   : > { %7011 = vxpose.xlu1.c.b16.start.end [1/1] (short) (narrow) %v13469_v24, 16  ;;  %v3347_v43 = vpop.trf.xlu0  ;;  %v3419_v46 = vpop.trf.xlu1  ;;  %v13510_v24 = vld [vmem:[%s13645_s16 + $0x360] sm:$0xff]  }
  0xc1   : > { %12634 = vmatmul.mubr.msk.bf16.vlgmr.msra.gmra.mrb[36].mxu0 %vm768_vm1, %v2051_v53  ;;  %v13424_v53 = vld [vmem:[%s13664_s19 + $0x148] sm:$0xff]  }
  0xc2   : > { %12644 = vmatpush3.bf16.msra.mxu0 %v13383_v52  ;;  %12645 = vmatprep.mubr.msk.bf16.mxu0 %vm13599_vm0, %v13598_v0 }
  0xc3   : > { %12655 = vmatprep.subr.bf16.mxu0 %v13598_v0  ;;  %7083 = vxpose.xlu0.c.b16.start.end [1/1] (short) (narrow) %v13470_v28, 16 }
  0xc4   : > { %7155 = vxpose.xlu1.c.b16.start.end [1/1] (short) (narrow) %v13473_v30, 16  ;;  %v3491_v49 = vpop.trf.xlu0  ;;  %v3563_v52 = vpop.trf.xlu1  ;;  %v13514_v30 = vld [vmem:[%s13645_s16 + $0x370] sm:$0xff]  }
  0xc5   : > { %12640 = vmatmul.mubr.msk.bf16.vlgmr.msra.gmra.mrb[36].mxu1 %vm768_vm1, %v2123_v56  ;;  %v13427_v56 = vld [vmem:[%s13664_s19 + $0x150] sm:$0xff]  }
  0xc6   : > { %12650 = vmatpush3.bf16.msra.mxu1 %v13384_v54  ;;  %12651 = vmatprep.mubr.msk.bf16.mxu1 %vm13599_vm0, %v13598_v0  ;;  %v13489_v54 = vld [vmem:[%s13645_s16 + $0x308] sm:$0xff]  }
  0xc7   : > { %12661 = vmatprep.subr.bf16.mxu1 %v13598_v0  ;;  %7227 = vxpose.xlu0.c.b16.start.end [1/1] (short) (narrow) %v13474_v34, 16  ;;  %v13517_v34 = vld [vmem:[%s13645_s16 + $0x378] sm:$0xff]  }
  0xc8   : > { %7299 = vxpose.xlu1.c.b16.start.end [1/1] (short) (narrow) %v13477_v36, 16  ;;  %v3635_v55 = vpop.trf.xlu0 }
  0xc9   : > { %12646 = vmatmul.mubr.msk.bf16.vlgmr.msra.gmra.mrb[40].mxu0 %vm768_vm1, %v2195_v59  ;;  %v13428_v59 = vld [vmem:[%s13664_s19 + $0x158] sm:$0xff]  }
  0xca   : > { %12656 = vmatpush3.bf16.msra.mxu0 %v13387_v58  ;;  %12657 = vmatprep.mubr.msk.bf16.mxu0 %vm13599_vm0, %v13598_v0  ;;  %v3707_v58 = vpop.trf.xlu1 }
  0xcb   : > { %12667 = vmatprep.subr.bf16.mxu0 %v13598_v0  ;;  %7371 = vxpose.xlu0.c.b16.start.end [1/1] (short) (narrow) %v13478_v39, 16  ;;  %v13455_v39 = vld [vmem:[%s13664_s19 + $0x1c0] sm:$0xff]  }
  0xcc   : > { %7443 = vxpose.xlu1.c.b16.start.end [1/1] (short) (narrow) %v13481_v42, 16  ;;  %v3779_v61 = vpop.trf.xlu0 }
  0xcd   : > { %12652 = vmatmul.mubr.msk.bf16.vlgmr.msra.gmra.mrb[40].mxu1 %vm768_vm1, %v2267_v62  ;;  %v13431_v62 = vld [vmem:[%s13664_s19 + $0x160] sm:$0xff]  }
  0xce   : > { %12662 = vmatpush3.bf16.msra.mxu1 %v13388_v60  ;;  %12663 = vmatprep.mubr.msk.bf16.mxu1 %vm13599_vm0, %v13598_v0  ;;  %v13493_v60 = vld [vmem:[%s13645_s16 + $0x318] sm:$0xff]  }
  0xcf   : > { %12673 = vmatprep.subr.bf16.mxu1 %v13598_v0  ;;  %7515 = vxpose.xlu0.c.b16.start.end [1/1] (short) (narrow) %v13482_v45, 16  ;;  %v13518_v45 = vld [vmem:[%s13645_s16 + $0x380] sm:$0xff]  }
  0xd0   : > { %7587 = vxpose.xlu1.c.b16.start.end [1/1] (short) (narrow) %v13485_v48, 16  ;;  %v3923_v4 = vpop.trf.xlu0  ;;  %v13456_v48 = vld [vmem:[%s13664_s19 + $0x1c8] sm:$0xff]  }
  0xd1   : > { %12658 = vmatmul.mubr.msk.bf16.vlgmr.msra.gmra.mrb[44].mxu0 %vm768_vm1, %v2339_v2  ;;  %v13432_v2 = vld [vmem:[%s13664_s19 + $0x168] sm:$0xff]  }
  0xd2   : > { %12668 = vmatpush3.bf16.msra.mxu0 %v13391_v1  ;;  %12669 = vmatprep.mubr.msk.bf16.mxu0 %vm13599_vm0, %v13598_v0  ;;  %v3851_v1 = vpop.trf.xlu1 }
  0xd3   : > { %12679 = vmatprep.subr.bf16.mxu0 %v13598_v0  ;;  %7659 = vxpose.xlu0.c.b16.start.end [1/1] (short) (narrow) %v13486_v51, 16 }
  0xd4   : > { %7731 = vxpose.xlu1.c.b16.start.end [1/1] (short) (narrow) %v13489_v54, 16  ;;  %v4067_v10 = vpop.trf.xlu0 }
  0xd5   : > { %12664 = vmatmul.mubr.msk.bf16.vlgmr.msra.gmra.mrb[44].mxu1 %vm768_vm1, %v2411_v5  ;;  %v13435_v5 = vld [vmem:[%s13664_s19 + $0x170] sm:$0xff]  }
  0xd6   : > { %12674 = vmatpush3.bf16.msra.mxu1 %v13392_v3  ;;  %12675 = vmatprep.mubr.msk.bf16.mxu1 %vm13599_vm0, %v13598_v0  ;;  %v13497_v3 = vld [vmem:[%s13645_s16 + $0x328] sm:$0xff]  }
  0xd7   : > { %12685 = vmatprep.subr.bf16.mxu1 %v13598_v0  ;;  %7803 = vxpose.xlu0.c.b16.start.end [1/1] (short) (narrow) %v13490_v57, 16  ;;  %v13459_v57 = vld [vmem:[%s13664_s19 + $0x1d0] sm:$0xff]  }
  0xd8   : > { %7875 = vxpose.xlu1.c.b16.start.end [1/1] (short) (narrow) %v13493_v60, 16  ;;  %v4211_v16 = vpop.trf.xlu0 }
  0xd9   : > { %12670 = vmatmul.mubr.msk.bf16.vlgmr.msra.gmra.mrb[48].mxu0 %vm768_vm1, %v2483_v8  ;;  %v13436_v8 = vld [vmem:[%s13664_s19 + $0x178] sm:$0xff]  }
  0xda   : > { %12680 = vmatpush3.bf16.msra.mxu0 %v13395_v7  ;;  %12681 = vmatprep.mubr.msk.bf16.mxu0 %vm13599_vm0, %v13598_v0  ;;  %v3995_v7 = vpop.trf.xlu1 }
  0xdb   : > { %12691 = vmatprep.subr.bf16.mxu0 %v13598_v0  ;;  %7947 = vxpose.xlu0.c.b16.start.end [1/1] (short) (narrow) %v13494_v63, 16  ;;  %v13522_v63 = vld [vmem:[%s13645_s16 + $0x390] sm:$0xff]  }
  0xdc   : > { %8019 = vxpose.xlu1.c.b16.start.end [1/1] (short) (narrow) %v13497_v3, 16  ;;  %v4355_v22 = vpop.trf.xlu0  ;;  %v13460_v3 = vld [vmem:[%s13664_s19 + $0x1d8] sm:$0xff]  }
  0xdd   : > { %12676 = vmatmul.mubr.msk.bf16.vlgmr.msra.gmra.mrb[48].mxu1 %vm768_vm1, %v2555_v11  ;;  %v13439_v11 = vld [vmem:[%s13664_s19 + $0x180] sm:$0xff]  }
  0xde   : > { %12686 = vmatpush3.bf16.msra.mxu1 %v13396_v9  ;;  %12687 = vmatprep.mubr.msk.bf16.mxu1 %vm13599_vm0, %v13598_v0  ;;  %v13501_v9 = vld [vmem:[%s13645_s16 + $0x338] sm:$0xff]  }
  0xdf   : > { %12697 = vmatprep.subr.bf16.mxu1 %v13598_v0  ;;  %8091 = vxpose.xlu0.c.b16.start.end [1/1] (short) (narrow) %v13498_v6, 16 }
  0xe0   : > { %8163 = vxpose.xlu1.c.b16.start.end [1/1] (short) (narrow) %v13501_v9, 16 }
  0xe1   : > { %12682 = vmatmul.mubr.msk.bf16.vlgmr.msra.gmra.mrb[52].mxu0 %vm768_vm1, %v2627_v14  ;;  %v13440_v14 = vld [vmem:[%s13664_s19 + $0x188] sm:$0xff]   ;;  %v4499_v28 = vpop.trf.xlu0 }
  0xe2   : > { %12692 = vmatpush3.bf16.msra.mxu0 %v13399_v13  ;;  %12693 = vmatprep.mubr.msk.bf16.mxu0 %vm13599_vm0, %v13598_v0  ;;  %v4139_v13 = vpop.trf.xlu1 }
  0xe3   : > { %12703 = vmatprep.subr.bf16.mxu0 %v13598_v0  ;;  %8235 = vxpose.xlu0.c.b16.start.end [1/1] (short) (narrow) %v13502_v12, 16  ;;  %v13463_v12 = vld [vmem:[%s13664_s19 + $0x1e0] sm:$0xff]  }
  0xe5   : > { %12688 = vmatmul.mubr.msk.bf16.vlgmr.msra.gmra.mrb[52].mxu1 %vm768_vm1, %v2699_v17  ;;  %v13443_v17 = vld [vmem:[%s13664_s19 + $0x190] sm:$0xff]  }
  0xe6   : > { %12698 = vmatpush3.bf16.msra.mxu1 %v13400_v15  ;;  %12699 = vmatprep.mubr.msk.bf16.mxu1 %vm13599_vm0, %v13598_v0  ;;  %v13505_v15 = vld [vmem:[%s13645_s16 + $0x348] sm:$0xff]  }
  0xe7   : > { %12709 = vmatprep.subr.bf16.mxu1 %v13598_v0  ;;  %8307 = vxpose.xlu1.c.b16.start.end [1/1] (short) (narrow) %v13505_v15, 16 }
  0xe8   : > { %8379 = vxpose.xlu0.c.b16.start.end [1/1] (short) (narrow) %v13506_v18, 16  ;;  %v13526_v18 = vld [vmem:[%s13645_s16 + $0x3a0] sm:$0xff]  }
  0xe9   : > { %12694 = vmatmul.mubr.msk.bf16.vlgmr.msra.gmra.mrb[56].mxu0 %vm768_vm1, %v2771_v20  ;;  %v13444_v20 = vld [vmem:[%s13664_s19 + $0x198] sm:$0xff]  }
  0xea   : > { %12704 = vmatpush3.bf16.msra.mxu0 %v13403_v19  ;;  %12705 = vmatprep.mubr.msk.bf16.mxu0 %vm13599_vm0, %v13598_v0  ;;  %v4283_v19 = vpop.trf.xlu1 }
  0xeb   : > { %12715 = vmatprep.subr.bf16.mxu0 %v13598_v0 }
  0xec   : > { %8523 = vxpose.xlu0.c.b16.start.end [1/1] (short) (narrow) %v13510_v24, 16 }
  0xed   : > { %12700 = vmatmul.mubr.msk.bf16.vlgmr.msra.gmra.mrb[56].mxu1 %vm768_vm1, %v2843_v23  ;;  %v13447_v23 = vld [vmem:[%s13664_s19 + $0x1a0] sm:$0xff]  }
  0xee   : > { %12710 = vmatpush3.bf16.msra.mxu1 %v13404_v21  ;;  %12711 = vmatprep.mubr.msk.bf16.mxu1 %vm13599_vm0, %v13598_v0  ;;  %v13509_v21 = vld [vmem:[%s13645_s16 + $0x358] sm:$0xff]  }
  0xef   : > { %12721 = vmatprep.subr.bf16.mxu1 %v13598_v0  ;;  %8451 = vxpose.xlu1.c.b16.start.end [1/1] (short) (narrow) %v13509_v21, 16  ;;  %v13464_v21 = vld [vmem:[%s13664_s19 + $0x1e8] sm:$0xff]  }
  0xf0   : > { %8667 = vxpose.xlu0.c.b16.start.end [1/1] (short) (narrow) %v13514_v30, 16  ;;  %v13467_v30 = vld [vmem:[%s13664_s19 + $0x1f0] sm:$0xff]  }
  0xf1   : > { %12706 = vmatmul.mubr.msk.bf16.vlgmr.msra.gmra.mrb[60].mxu0 %vm768_vm1, %v2915_v26  ;;  %v13448_v26 = vld [vmem:[%s13664_s19 + $0x1a8] sm:$0xff]  }
  0xf2   : > { %12716 = vmatpush3.bf16.msra.mxu0 %v13407_v25  ;;  %12717 = vmatprep.mubr.msk.bf16.mxu0 %vm13599_vm0, %v13598_v0  ;;  %v4427_v25 = vpop.trf.xlu1 }
  0xf3   : > { %12727 = vmatprep.subr.bf16.mxu0 %v13598_v0 }
  0xf4   : > { %8811 = vxpose.xlu0.c.b16.start.end [1/1] (short) (narrow) %v13518_v45, 16 }
  0xf5   : > { %12712 = vmatmul.mubr.msk.bf16.vlgmr.msra.gmra.mrb[60].mxu1 %vm768_vm1, %v2987_v29  ;;  %v13451_v29 = vld [vmem:[%s13664_s19 + $0x1b0] sm:$0xff]  }
  0xf6   : > { %12722 = vmatpush3.bf16.msra.mxu1 %v13408_v27  ;;  %12723 = vmatprep.mubr.msk.bf16.mxu1 %vm13599_vm0, %v13598_v0  ;;  %v13513_v27 = vld [vmem:[%s13645_s16 + $0x368] sm:$0xff]  }
  0xf7   : > { %12733 = vmatprep.subr.bf16.mxu1 %v13598_v0  ;;  %8595 = vxpose.xlu1.c.b16.start.end [1/1] (short) (narrow) %v13513_v27, 16 }
  0xf8   : > { %8955 = vxpose.xlu0.c.b16.start.end [1/1] (short) (narrow) %v13522_v63, 16 }
  0xf9   : > { %12718 = vmatmul.mubr.msk.bf16.vlgmr.msra.gmra.mrb[64].mxu0 %vm768_vm1, %v3059_v32  ;;  %v13452_v32 = vld [vmem:[%s13664_s19 + $0x1b8] sm:$0xff]  }
  0xfa   : > { %12728 = vmatpush3.bf16.msra.mxu0 %v13411_v31  ;;  %12729 = vmatprep.mubr.msk.bf16.mxu0 %vm13599_vm0, %v13598_v0  ;;  %v4571_v31 = vpop.trf.xlu1 }
  0xfb   : > { %12739 = vmatprep.subr.bf16.mxu0 %v13598_v0  ;;  %8739 = vxpose.xlu1.c.b16.start.end [1/1] (short) (narrow) %v13517_v34, 16 }
  0xfc   : > { %9099 = vxpose.xlu0.c.b16.start.end [1/1] (short) (narrow) %v13526_v18, 16 }
  0xfd   : > { %12724 = vmatmul.mubr.msk.bf16.vlgmr.msra.gmra.mrb[64].mxu1 %vm768_vm1, %v3131_v35 }
  0xfe   : > { %12734 = vmatpush3.bf16.msra.mxu1 %v13412_v33  ;;  %12735 = vmatprep.mubr.msk.bf16.mxu1 %vm13599_vm0, %v13598_v0 }
  0xff   : > { %12745 = vmatprep.subr.bf16.mxu1 %v13598_v0 }
 0x101   : > { %12730 = vmatmul.mubr.msk.bf16.vlgmr.msra.gmra.mrb[68].mxu0 %vm768_vm1, %v3203_v37 }
 0x102   : > { %12740 = vmatpush3.bf16.msra.mxu0 %v13415_v38  ;;  %12741 = vmatprep.mubr.msk.bf16.mxu0 %vm13599_vm0, %v13598_v0  ;;  %v4643_v38 = vpop.trf.xlu0 }
 0x103   : > { %12751 = vmatprep.subr.bf16.mxu0 %v13598_v0 }
 0x105   : > { %12736 = vmatmul.mubr.msk.bf16.vlgmr.msra.gmra.mrb[68].mxu1 %vm768_vm1, %v3275_v40 }
 0x106   : > { %12746 = vmatpush3.bf16.msra.mxu1 %v13416_v41  ;;  %12747 = vmatprep.mubr.msk.bf16.mxu1 %vm13599_vm0, %v13598_v0 }
 0x107   : > { %12757 = vmatprep.subr.bf16.mxu1 %v13598_v0 }
 0x109   : > { %12742 = vmatmul.mubr.msk.bf16.vlgmr.msra.gmra.mrb[72].mxu0 %vm768_vm1, %v3347_v43 }
 0x10a   : > { %12752 = vmatpush3.bf16.msra.mxu0 %v13419_v44  ;;  %12753 = vmatprep.mubr.msk.bf16.mxu0 %vm13599_vm0, %v13598_v0 }
 0x10b   : > { %12763 = vmatprep.subr.bf16.mxu0 %v13598_v0 }
 0x10d   : > { %12748 = vmatmul.mubr.msk.bf16.vlgmr.msra.gmra.mrb[72].mxu1 %vm768_vm1, %v3419_v46 }
 0x10e   : > { %12758 = vmatpush3.bf16.msra.mxu1 %v13420_v47  ;;  %12759 = vmatprep.mubr.msk.bf16.mxu1 %vm13599_vm0, %v13598_v0  ;;  %v4715_v47 = vpop.trf.xlu1 }
 0x10f   : > { %12769 = vmatprep.subr.bf16.mxu1 %v13598_v0 }
 0x111   : > { %12754 = vmatmul.mubr.msk.bf16.vlgmr.msra.gmra.mrb[76].mxu0 %vm768_vm1, %v3491_v49 }
 0x112   : > { %12764 = vmatpush3.bf16.msra.mxu0 %v13423_v50  ;;  %12765 = vmatprep.mubr.msk.bf16.mxu0 %vm13599_vm0, %v13598_v0 }
 0x113   : > { %12775 = vmatprep.subr.bf16.mxu0 %v13598_v0 }
 0x115   : > { %12760 = vmatmul.mubr.msk.bf16.vlgmr.msra.gmra.mrb[76].mxu1 %vm768_vm1, %v3563_v52  ;;  %v13521_v52 = vld [vmem:[%s13645_s16 + $0x388] sm:$0xff]  }
 0x116   : > { %12770 = vmatpush3.bf16.msra.mxu1 %v13424_v53  ;;  %12771 = vmatprep.mubr.msk.bf16.mxu1 %vm13599_vm0, %v13598_v0 }
 0x117   : > { %12781 = vmatprep.subr.bf16.mxu1 %v13598_v0  ;;  %8883 = vxpose.xlu1.c.b16.start.end [1/1] (short) (narrow) %v13521_v52, 16 }
 0x119   : > { %12766 = vmatmul.mubr.msk.bf16.vlgmr.msra.gmra.mrb[80].mxu0 %vm768_vm1, %v3635_v55 }
 0x11a   : > { %12776 = vmatpush3.bf16.msra.mxu0 %v13427_v56  ;;  %12777 = vmatprep.mubr.msk.bf16.mxu0 %vm13599_vm0, %v13598_v0  ;;  %v4787_v56 = vpop.trf.xlu0 }
 0x11b   : > { %12787 = vmatprep.subr.bf16.mxu0 %v13598_v0 }
 0x11d   : > { %12772 = vmatmul.mubr.msk.bf16.vlgmr.msra.gmra.mrb[80].mxu1 %vm768_vm1, %v3707_v58 }
 0x11e   : > { %12782 = vmatpush3.bf16.msra.mxu1 %v13428_v59  ;;  %12783 = vmatprep.mubr.msk.bf16.mxu1 %vm13599_vm0, %v13598_v0 }
 0x11f   : > { %12793 = vmatprep.subr.bf16.mxu1 %v13598_v0 }
 0x121   : > { %12778 = vmatmul.mubr.msk.bf16.vlgmr.msra.gmra.mrb[84].mxu0 %vm768_vm1, %v3779_v61 }
 0x122   : > { %12788 = vmatpush3.bf16.msra.mxu0 %v13431_v62  ;;  %12789 = vmatprep.mubr.msk.bf16.mxu0 %vm13599_vm0, %v13598_v0 }
 0x123   : > { %12799 = vmatprep.subr.bf16.mxu0 %v13598_v0 }
 0x125   : > { %12784 = vmatmul.mubr.msk.bf16.vlgmr.msra.gmra.mrb[84].mxu1 %vm768_vm1, %v3851_v1 }
 0x126   : > { %12794 = vmatpush3.bf16.msra.mxu1 %v13432_v2  ;;  %12795 = vmatprep.mubr.msk.bf16.mxu1 %vm13599_vm0, %v13598_v0  ;;  %v4859_v2 = vpop.trf.xlu1 }
 0x127   : > { %12805 = vmatprep.subr.bf16.mxu1 %v13598_v0 }
 0x129   : > { %12790 = vmatmul.mubr.msk.bf16.vlgmr.msra.gmra.mrb[88].mxu0 %vm768_vm1, %v3923_v4 }
 0x12a   : > { %12800 = vmatpush3.bf16.msra.mxu0 %v13435_v5  ;;  %12801 = vmatprep.mubr.msk.bf16.mxu0 %vm13599_vm0, %v13598_v0 }
 0x12b   : > { %12811 = vmatprep.subr.bf16.mxu0 %v13598_v0 }
 0x12d   : > { %12796 = vmatmul.mubr.msk.bf16.vlgmr.msra.gmra.mrb[88].mxu1 %vm768_vm1, %v3995_v7  ;;  %v13525_v7 = vld [vmem:[%s13645_s16 + $0x398] sm:$0xff]  }
 0x12e   : > { %12806 = vmatpush3.bf16.msra.mxu1 %v13436_v8  ;;  %12807 = vmatprep.mubr.msk.bf16.mxu1 %vm13599_vm0, %v13598_v0 }
 0x12f   : > { %12817 = vmatprep.subr.bf16.mxu1 %v13598_v0  ;;  %9027 = vxpose.xlu1.c.b16.start.end [1/1] (short) (narrow) %v13525_v7, 16 }
 0x131   : > { %12802 = vmatmul.mubr.msk.bf16.vlgmr.msra.gmra.mrb[92].mxu0 %vm768_vm1, %v4067_v10 }
 0x132   : > { %12812 = vmatpush3.bf16.msra.mxu0 %v13439_v11  ;;  %12813 = vmatprep.mubr.msk.bf16.mxu0 %vm13599_vm0, %v13598_v0  ;;  %v4931_v11 = vpop.trf.xlu0 }
 0x133   : > { %12823 = vmatprep.subr.bf16.mxu0 %v13598_v0 }
 0x135   : > { %12808 = vmatmul.mubr.msk.bf16.vlgmr.msra.gmra.mrb[92].mxu1 %vm768_vm1, %v4139_v13 }
 0x136   : > { %12818 = vmatpush3.bf16.msra.mxu1 %v13440_v14  ;;  %12819 = vmatprep.mubr.msk.bf16.mxu1 %vm13599_vm0, %v13598_v0 }
 0x137   : > { %12829 = vmatprep.subr.bf16.mxu1 %v13598_v0 }
 0x139   : > { %12814 = vmatmul.mubr.msk.bf16.vlgmr.msra.gmra.mrb[96].mxu0 %vm768_vm1, %v4211_v16 }
 0x13a   : > { %12824 = vmatpush3.bf16.msra.mxu0 %v13443_v17  ;;  %12825 = vmatprep.mubr.msk.bf16.mxu0 %vm13599_vm0, %v13598_v0 }
 0x13b   : > { %12835 = vmatprep.subr.bf16.mxu0 %v13598_v0 }
 0x13d   : > { %12820 = vmatmul.mubr.msk.bf16.vlgmr.msra.gmra.mrb[96].mxu1 %vm768_vm1, %v4283_v19 }
 0x13e   : > { %12830 = vmatpush3.bf16.msra.mxu1 %v13444_v20  ;;  %12831 = vmatprep.mubr.msk.bf16.mxu1 %vm13599_vm0, %v13598_v0  ;;  %v5003_v20 = vpop.trf.xlu1 }
 0x13f   : > { %12841 = vmatprep.subr.bf16.mxu1 %v13598_v0 }
 0x141   : > { %12826 = vmatmul.mubr.msk.bf16.vlgmr.msra.gmra.mrb[100].mxu0 %vm768_vm1, %v4355_v22 }
 0x142   : > { %12836 = vmatpush3.bf16.msra.mxu0 %v13447_v23  ;;  %12837 = vmatprep.mubr.msk.bf16.mxu0 %vm13599_vm0, %v13598_v0 }
 0x143   : > { %12847 = vmatprep.subr.bf16.mxu0 %v13598_v0 }
 0x145   : > { %12832 = vmatmul.mubr.msk.bf16.vlgmr.msra.gmra.mrb[100].mxu1 %vm768_vm1, %v4427_v25  ;;  %v13529_v25 = vld [vmem:[%s13645_s16 + $0x3a8] sm:$0xff]  }
 0x146   : > { %12842 = vmatpush3.bf16.msra.mxu1 %v13448_v26  ;;  %12843 = vmatprep.mubr.msk.bf16.mxu1 %vm13599_vm0, %v13598_v0 }
 0x147   : > { %12853 = vmatprep.subr.bf16.mxu1 %v13598_v0  ;;  %9171 = vxpose.xlu1.c.b16.start.end [1/1] (short) (narrow) %v13529_v25, 16 }
 0x149   : > { %12838 = vmatmul.mubr.msk.bf16.vlgmr.msra.gmra.mrb[104].mxu0 %vm768_vm1, %v4499_v28 }
 0x14a   : > { %12848 = vmatpush3.bf16.msra.mxu0 %v13451_v29  ;;  %12849 = vmatprep.mubr.msk.bf16.mxu0 %vm13599_vm0, %v13598_v0  ;;  %v5075_v29 = vpop.trf.xlu0 }
 0x14b   : > { %12859 = vmatprep.subr.bf16.mxu0 %v13598_v0 }
 0x14c   : > { %v806_v33 = vpop.f32.mrb[0].mxu0 }
 0x14d   : > { %v12011_v35 = vpack.c.bf16 %v806_v33, %v806_v33  ;;  %v12527_v36 = vpop.f32.mrb[1].mxu0  ;;  %12844 = vmatmul.mubr.msk.bf16.vlgmr.msra.gmra.mrb[104].mxu1 %vm768_vm1, %v4571_v31 }
 0x14e   : > { %12854 = vmatpush3.bf16.msra.mxu1 %v13452_v32  ;;  %v809_v37 = vpop.f32.mrb[2].mxu0  ;;  %12855 = vmatprep.mubr.msk.bf16.mxu1 %vm13599_vm0, %v13598_v0  ;;  %v13530_v36 = vld [vmem:[%s13645_s16 + $0x3b0] sm:$0xff]  }
 0x14f   : > { %10982 = vst.msk [vmem:[%s14038_s22] sm:$0xf] %vm10981_vm2, %v12011_v35  ;;  %v12012_v40 = vpack.c.bf16 %v809_v37, %v809_v37  ;;  %v12528_v41 = vpop.f32.mrb[3].mxu0  ;;  %12865 = vmatprep.subr.bf16.mxu1 %v13598_v0  ;;  %9243 = vxpose.xlu0.c.b16.start.end [1/1] (short) (narrow) %v13530_v36, 16 }
 0x150   : > { %v878_v42 = vpop.f32.mrb[0].mxu1 }
 0x151   : > { %10983 = vst.msk [vmem:[%s14038_s22 + $0x4] sm:$0xf] %vm10981_vm2, %v12012_v40  ;;  %v12013_v43 = vpack.c.bf16 %v878_v42, %v878_v42  ;;  %v12533_v44 = vpop.f32.mrb[1].mxu1  ;;  %12850 = vmatmul.mubr.msk.bf16.vlgmr.msra.gmra.mrb[108].mxu0 %vm768_vm1, %v4643_v38  ;;  %v5147_v38 = vpop.trf.xlu1 }
 0x152   : > { %v881_v46 = vpop.f32.mrb[2].mxu1  ;;  %12860 = vmatpush3.bf16.msra.mxu0 %v13455_v39  ;;  %12861 = vmatprep.mubr.msk.bf16.mxu0 %vm13599_vm0, %v13598_v0  ;;  %v13468_v39 = vld [vmem:[%s13664_s19 + $0x1f8] sm:$0xff]  }
 0x153   : > { %10984 = vst.msk [vmem:[%s14038_s22 + $0x8] sm:$0xf] %vm10981_vm2, %v12013_v43  ;;  %v12014_v49 = vpack.c.bf16 %v881_v46, %v881_v46  ;;  %v12534_v50 = vpop.f32.mrb[3].mxu1  ;;  %12871 = vmatprep.subr.bf16.mxu0 %v13598_v0  ;;  %v13533_v43 = vld [vmem:[%s13645_s16 + $0x3b8] sm:$0xff]  }
 0x154   : > { %v950_v51 = vpop.f32.mrb[4].mxu0  ;;  %9315 = vxpose.xlu1.c.b16.start.end [1/1] (short) (narrow) %v13533_v43, 16 }
 0x155   : > { %10985 = vst.msk [vmem:[%s14038_s22 + $0xc] sm:$0xf] %vm10981_vm2, %v12014_v49  ;;  %v12015_v53 = vpack.c.bf16 %v950_v51, %v950_v51  ;;  %v12539_v54 = vpop.f32.mrb[5].mxu0  ;;  %12856 = vmatmul.mubr.msk.bf16.vlgmr.msra.gmra.mrb[108].mxu1 %vm768_vm1, %v4715_v47  ;;  %v5219_v47 = vpop.trf.xlu0 }
 0x156   : > { %12866 = vmatpush3.bf16.msra.mxu1 %v13456_v48  ;;  %v953_v55 = vpop.f32.mrb[6].mxu0  ;;  %12867 = vmatprep.mubr.msk.bf16.mxu1 %vm13599_vm0, %v13598_v0  ;;  %v13471_v48 = vld [vmem:[%s13664_s19 + $0x200] sm:$0xff]  }
 0x157   : > { %10986 = vst.msk [vmem:[%s14038_s22 + $0x10] sm:$0xf] %vm10981_vm2, %v12015_v53  ;;  %v12016_v58 = vpack.c.bf16 %v953_v55, %v953_v55  ;;  %v12540_v59 = vpop.f32.mrb[7].mxu0  ;;  %12877 = vmatprep.subr.bf16.mxu1 %v13598_v0  ;;  %v13534_v54 = vld [vmem:[%s13645_s16 + $0x3c0] sm:$0xff]  }
 0x158   : > { %v1022_v60 = vpop.f32.mrb[4].mxu1  ;;  %9387 = vxpose.xlu0.c.b16.start.end [1/1] (short) (narrow) %v13534_v54, 16 }
 0x159   : > { %10987 = vst.msk [vmem:[%s14038_s22 + $0x14] sm:$0xf] %vm10981_vm2, %v12016_v58  ;;  %v12017_v61 = vpack.c.bf16 %v1022_v60, %v1022_v60  ;;  %v12545_v62 = vpop.f32.mrb[5].mxu1  ;;  %12862 = vmatmul.mubr.msk.bf16.vlgmr.msra.gmra.mrb[112].mxu0 %vm768_vm1, %v4787_v56  ;;  %v5291_v56 = vpop.trf.xlu1 }
 0x15a   : > { %v1025_v1 = vpop.f32.mrb[6].mxu1  ;;  %12872 = vmatpush3.bf16.msra.mxu0 %v13459_v57  ;;  %12873 = vmatprep.mubr.msk.bf16.mxu0 %vm13599_vm0, %v13598_v0  ;;  %v13472_v57 = vld [vmem:[%s13664_s19 + $0x208] sm:$0xff]  }
 0x15b   : > { %10988 = vst.msk [vmem:[%s14038_s22 + $0x18] sm:$0xf] %vm10981_vm2, %v12017_v61  ;;  %v12018_v4 = vpack.c.bf16 %v1025_v1, %v1025_v1  ;;  %v12546_v5 = vpop.f32.mrb[7].mxu1  ;;  %12883 = vmatprep.subr.bf16.mxu0 %v13598_v0  ;;  %v13537_v61 = vld [vmem:[%s13645_s16 + $0x3c8] sm:$0xff]  }
 0x15c   : > { %v1094_v6 = vpop.f32.mrb[8].mxu0  ;;  %9459 = vxpose.xlu1.c.b16.start.end [1/1] (short) (narrow) %v13537_v61, 16 }
 0x15d   : > { %10989 = vst.msk [vmem:[%s14038_s22 + $0x1c] sm:$0xf] %vm10981_vm2, %v12018_v4  ;;  %v12019_v8 = vpack.c.bf16 %v1094_v6, %v1094_v6  ;;  %12868 = vmatmul.mubr.msk.bf16.vlgmr.msra.gmra.mrb[112].mxu1 %vm768_vm1, %v4859_v2  ;;  %v12551_v9 = vpop.f32.mrb[9].mxu0  ;;  %v5363_v2 = vpop.trf.xlu0 }
 0x15e   : > { %12878 = vmatpush3.bf16.msra.mxu1 %v13460_v3  ;;  %v1097_v10 = vpop.f32.mrb[10].mxu0  ;;  %12879 = vmatprep.mubr.msk.bf16.mxu1 %vm13599_vm0, %v13598_v0  ;;  %v13475_v3 = vld [vmem:[%s13664_s19 + $0x210] sm:$0xff]  }
 0x15f   : > { %10990 = vst.msk [vmem:[%s14038_s22 + $0x20] sm:$0xf] %vm10981_vm2, %v12019_v8  ;;  %v12020_v13 = vpack.c.bf16 %v1097_v10, %v1097_v10  ;;  %v12552_v14 = vpop.f32.mrb[11].mxu0  ;;  %12889 = vmatprep.subr.bf16.mxu1 %v13598_v0  ;;  %v13538_v9 = vld [vmem:[%s13645_s16 + $0x3d0] sm:$0xff]  }
 0x160   : > { %v1166_v15 = vpop.f32.mrb[8].mxu1  ;;  %9531 = vxpose.xlu0.c.b16.start.end [1/1] (short) (narrow) %v13538_v9, 16 }
 0x161   : > { %10991 = vst.msk [vmem:[%s14038_s22 + $0x24] sm:$0xf] %vm10981_vm2, %v12020_v13  ;;  %v12021_v16 = vpack.c.bf16 %v1166_v15, %v1166_v15  ;;  %v12557_v17 = vpop.f32.mrb[9].mxu1  ;;  %12874 = vmatmul.mubr.msk.bf16.vlgmr.msra.gmra.mrb[116].mxu0 %vm768_vm1, %v4931_v11  ;;  %v5435_v11 = vpop.trf.xlu1 }
 0x162   : > { %v1169_v19 = vpop.f32.mrb[10].mxu1  ;;  %12884 = vmatpush3.bf16.msra.mxu0 %v13463_v12  ;;  %12885 = vmatprep.mubr.msk.bf16.mxu0 %vm13599_vm0, %v13598_v0  ;;  %v13476_v12 = vld [vmem:[%s13664_s19 + $0x218] sm:$0xff]  }
 0x163   : > { %10992 = vst.msk [vmem:[%s14038_s22 + $0x28] sm:$0xf] %vm10981_vm2, %v12021_v16  ;;  %v12022_v22 = vpack.c.bf16 %v1169_v19, %v1169_v19  ;;  %v12558_v23 = vpop.f32.mrb[11].mxu1  ;;  %12895 = vmatprep.subr.bf16.mxu0 %v13598_v0  ;;  %v13541_v16 = vld [vmem:[%s13645_s16 + $0x3d8] sm:$0xff]  }
 0x164   : > { %v1238_v24 = vpop.f32.mrb[12].mxu0  ;;  %9603 = vxpose.xlu1.c.b16.start.end [1/1] (short) (narrow) %v13541_v16, 16 }
 0x165   : > { %10993 = vst.msk [vmem:[%s14038_s22 + $0x2c] sm:$0xf] %vm10981_vm2, %v12022_v22  ;;  %v12023_v26 = vpack.c.bf16 %v1238_v24, %v1238_v24  ;;  %12880 = vmatmul.mubr.msk.bf16.vlgmr.msra.gmra.mrb[116].mxu1 %vm768_vm1, %v5003_v20  ;;  %v12563_v27 = vpop.f32.mrb[13].mxu0  ;;  %v5507_v20 = vpop.trf.xlu0 }
 0x166   : > { %12890 = vmatpush3.bf16.msra.mxu1 %v13464_v21  ;;  %v1241_v28 = vpop.f32.mrb[14].mxu0  ;;  %12891 = vmatprep.mubr.msk.bf16.mxu1 %vm13599_vm0, %v13598_v0  ;;  %v13479_v21 = vld [vmem:[%s13664_s19 + $0x220] sm:$0xff]  }
 0x167   : > { %10994 = vst.msk [vmem:[%s14038_s22 + $0x30] sm:$0xf] %vm10981_vm2, %v12023_v26  ;;  %v12024_v31 = vpack.c.bf16 %v1241_v28, %v1241_v28  ;;  %v12564_v32 = vpop.f32.mrb[15].mxu0  ;;  %12901 = vmatprep.subr.bf16.mxu1 %v13598_v0  ;;  %v13542_v27 = vld [vmem:[%s13645_s16 + $0x3e0] sm:$0xff]  }
 0x168   : > { %v1310_v33 = vpop.f32.mrb[12].mxu1  ;;  %9675 = vxpose.xlu0.c.b16.start.end [1/1] (short) (narrow) %v13542_v27, 16 }
 0x169   : > { %10995 = vst.msk [vmem:[%s14038_s22 + $0x34] sm:$0xf] %vm10981_vm2, %v12024_v31  ;;  %v12025_v34 = vpack.c.bf16 %v1310_v33, %v1310_v33  ;;  %v12569_v35 = vpop.f32.mrb[13].mxu1  ;;  %12886 = vmatmul.mubr.msk.bf16.vlgmr.msra.gmra.mrb[120].mxu0 %vm768_vm1, %v5075_v29  ;;  %v5579_v29 = vpop.trf.xlu1 }
 0x16a   : > { %v1313_v37 = vpop.f32.mrb[14].mxu1  ;;  %12896 = vmatpush3.bf16.msra.mxu0 %v13467_v30  ;;  %12897 = vmatprep.mubr.msk.bf16.mxu0 %vm13599_vm0, %v13598_v0  ;;  %v13480_v30 = vld [vmem:[%s13664_s19 + $0x228] sm:$0xff]  }
 0x16b   : > { %10996 = vst.msk [vmem:[%s14038_s22 + $0x38] sm:$0xf] %vm10981_vm2, %v12025_v34  ;;  %v12026_v40 = vpack.c.bf16 %v1313_v37, %v1313_v37  ;;  %v12570_v41 = vpop.f32.mrb[15].mxu1  ;;  %12907 = vmatprep.subr.bf16.mxu0 %v13598_v0  ;;  %v13545_v34 = vld [vmem:[%s13645_s16 + $0x3e8] sm:$0xff]  }
 0x16c   : > { %v1382_v42 = vpop.f32.mrb[16].mxu0  ;;  %9747 = vxpose.xlu1.c.b16.start.end [1/1] (short) (narrow) %v13545_v34, 16  ;;  %v13496_v34 = vld [vmem:[%s13664_s19 + $0x268] sm:$0xff]  }
 0x16d   : > { %10997 = vst.msk [vmem:[%s14038_s22 + $0x3c] sm:$0xf] %vm10981_vm2, %v12026_v40  ;;  %v12027_v44 = vpack.c.bf16 %v1382_v42, %v1382_v42  ;;  %12892 = vmatmul.mubr.msk.bf16.vlgmr.msra.gmra.mrb[120].mxu1 %vm768_vm1, %v5147_v38  ;;  %v12575_v45 = vpop.f32.mrb[17].mxu0  ;;  %v5651_v38 = vpop.trf.xlu0 }
 0x16e   : > { %12902 = vmatpush3.bf16.msra.mxu1 %v13468_v39  ;;  %v1385_v46 = vpop.f32.mrb[18].mxu0  ;;  %12903 = vmatprep.mubr.msk.bf16.mxu1 %vm13599_vm0, %v13598_v0  ;;  %v13483_v39 = vld [vmem:[%s13664_s19 + $0x230] sm:$0xff]  }
 0x16f   : > { %10998 = vst.msk [vmem:[%s14038_s22 + $0x40] sm:$0xf] %vm10981_vm2, %v12027_v44  ;;  %v12028_v49 = vpack.c.bf16 %v1385_v46, %v1385_v46  ;;  %v12576_v50 = vpop.f32.mrb[19].mxu0  ;;  %12913 = vmatprep.subr.bf16.mxu1 %v13598_v0  ;;  %v13546_v45 = vld [vmem:[%s13645_s16 + $0x3f0] sm:$0xff]  }
 0x170   : > { %v1454_v51 = vpop.f32.mrb[16].mxu1  ;;  %9819 = vxpose.xlu0.c.b16.start.end [1/1] (short) (narrow) %v13546_v45, 16 }
 0x171   : > { %10999 = vst.msk [vmem:[%s14038_s22 + $0x44] sm:$0xf] %vm10981_vm2, %v12028_v49  ;;  %v12029_v52 = vpack.c.bf16 %v1454_v51, %v1454_v51  ;;  %v12581_v53 = vpop.f32.mrb[17].mxu1  ;;  %12898 = vmatmul.mubr.msk.bf16.vlgmr.msra.gmra.mrb[124].mxu0 %vm768_vm1, %v5219_v47  ;;  %v5723_v47 = vpop.trf.xlu1 }
 0x172   : > { %v1457_v55 = vpop.f32.mrb[18].mxu1  ;;  %12908 = vmatpush3.bf16.msra.mxu0 %v13471_v48  ;;  %12909 = vmatprep.mubr.msk.bf16.mxu0 %vm13599_vm0, %v13598_v0  ;;  %v13484_v48 = vld [vmem:[%s13664_s19 + $0x238] sm:$0xff]  }
 0x173   : > { %11000 = vst.msk [vmem:[%s14038_s22 + $0x48] sm:$0xf] %vm10981_vm2, %v12029_v52  ;;  %v12030_v58 = vpack.c.bf16 %v1457_v55, %v1457_v55  ;;  %v12582_v59 = vpop.f32.mrb[19].mxu1  ;;  %12919 = vmatprep.subr.bf16.mxu0 %v13598_v0  ;;  %v13549_v52 = vld [vmem:[%s13645_s16 + $0x3f8] sm:$0xff]  }
 0x174   : > { %v1526_v60 = vpop.f32.mrb[20].mxu0  ;;  %9891 = vxpose.xlu1.c.b16.start.end [1/1] (short) (narrow) %v13549_v52, 16 }
 0x175   : > { %11001 = vst.msk [vmem:[%s14038_s22 + $0x4c] sm:$0xf] %vm10981_vm2, %v12030_v58  ;;  %v12031_v62 = vpack.c.bf16 %v1526_v60, %v1526_v60  ;;  %12904 = vmatmul.mubr.msk.bf16.vlgmr.msra.gmra.mrb[124].mxu1 %vm768_vm1, %v5291_v56  ;;  %v12587_v63 = vpop.f32.mrb[21].mxu0  ;;  %v5795_v56 = vpop.trf.xlu0 }
 0x176   : > { %12914 = vmatpush3.bf16.msra.mxu1 %v13472_v57  ;;  %v1529_v1 = vpop.f32.mrb[22].mxu0  ;;  %12915 = vmatprep.mubr.msk.bf16.mxu1 %vm13599_vm0, %v13598_v0  ;;  %v13487_v57 = vld [vmem:[%s13664_s19 + $0x240] sm:$0xff]  }
 0x177   : > { %11002 = vst.msk [vmem:[%s14038_s22 + $0x50] sm:$0xf] %vm10981_vm2, %v12031_v62  ;;  %v12032_v4 = vpack.c.bf16 %v1529_v1, %v1529_v1  ;;  %v12588_v5 = vpop.f32.mrb[23].mxu0  ;;  %12925 = vmatprep.subr.bf16.mxu1 %v13598_v0  ;;  %v5867_v1 = vpop.trf.xlu1 }
 0x178   : > { %v1598_v6 = vpop.f32.mrb[20].mxu1 }
 0x179   : > { %11003 = vst.msk [vmem:[%s14038_s22 + $0x54] sm:$0xf] %vm10981_vm2, %v12032_v4  ;;  %v12033_v7 = vpack.c.bf16 %v1598_v6, %v1598_v6  ;;  %v12593_v8 = vpop.f32.mrb[21].mxu1  ;;  %12910 = vmatmul.mubr.msk.bf16.vlgmr.msra.gmra.mrb[128].mxu0 %vm768_vm1, %v5363_v2  ;;  %v13488_v2 = vld [vmem:[%s13664_s19 + $0x248] sm:$0xff]   ;;  %v5939_v9 = vpop.trf.xlu0 }
 0x17a   : > { %v1601_v10 = vpop.f32.mrb[22].mxu1  ;;  %12920 = vmatpush3.bf16.msra.mxu0 %v13475_v3  ;;  %12921 = vmatprep.mubr.msk.bf16.mxu0 %vm13599_vm0, %v13598_v0 }
 0x17b   : > { %11004 = vst.msk [vmem:[%s14038_s22 + $0x58] sm:$0xf] %vm10981_vm2, %v12033_v7  ;;  %v12034_v13 = vpack.c.bf16 %v1601_v10, %v1601_v10  ;;  %v12594_v14 = vpop.f32.mrb[23].mxu1  ;;  %12931 = vmatprep.subr.bf16.mxu0 %v13598_v0  ;;  %v13491_v10 = vld [vmem:[%s13664_s19 + $0x250] sm:$0xff]  }
 0x17c   : > { %v1670_v15 = vpop.f32.mrb[24].mxu0 }
 0x17d   : > { %11005 = vst.msk [vmem:[%s14038_s22 + $0x5c] sm:$0xf] %vm10981_vm2, %v12034_v13  ;;  %v12035_v17 = vpack.c.bf16 %v1670_v15, %v1670_v15  ;;  %12916 = vmatmul.mubr.msk.bf16.vlgmr.msra.gmra.mrb[128].mxu1 %vm768_vm1, %v5435_v11  ;;  %v12599_v18 = vpop.f32.mrb[25].mxu0 }
 0x17e   : > { %12926 = vmatpush3.bf16.msra.mxu1 %v13476_v12  ;;  %v1673_v19 = vpop.f32.mrb[26].mxu0  ;;  %12927 = vmatprep.mubr.msk.bf16.mxu1 %vm13599_vm0, %v13598_v0  ;;  %v13492_v18 = vld [vmem:[%s13664_s19 + $0x258] sm:$0xff]  }
 0x17f   : > { %11006 = vst.msk [vmem:[%s14038_s22 + $0x60] sm:$0xf] %vm10981_vm2, %v12035_v17  ;;  %v12036_v22 = vpack.c.bf16 %v1673_v19, %v1673_v19  ;;  %v12600_v23 = vpop.f32.mrb[27].mxu0  ;;  %12937 = vmatprep.subr.bf16.mxu1 %v13598_v0  ;;  %v6011_v17 = vpop.trf.xlu1 }
 0x180   : > { %v1742_v24 = vpop.f32.mrb[24].mxu1 }
 0x181   : > { %11007 = vst.msk [vmem:[%s14038_s22 + $0x64] sm:$0xf] %vm10981_vm2, %v12036_v22  ;;  %v12037_v25 = vpack.c.bf16 %v1742_v24, %v1742_v24  ;;  %v12605_v26 = vpop.f32.mrb[25].mxu1  ;;  %12922 = vmatmul.mubr.msk.bf16.vlgmr.msra.gmra.mrb[132].mxu0 %vm768_vm1, %v5507_v20 }
 0x182   : > { %v1745_v28 = vpop.f32.mrb[26].mxu1  ;;  %12932 = vmatpush3.bf16.msra.mxu0 %v13479_v21  ;;  %12933 = vmatprep.mubr.msk.bf16.mxu0 %vm13599_vm0, %v13598_v0  ;;  %v13495_v26 = vld [vmem:[%s13664_s19 + $0x260] sm:$0xff]  }
 0x183   : > { %11008 = vst.msk [vmem:[%s14038_s22 + $0x68] sm:$0xf] %vm10981_vm2, %v12037_v25  ;;  %v12038_v31 = vpack.c.bf16 %v1745_v28, %v1745_v28  ;;  %v12606_v32 = vpop.f32.mrb[27].mxu1  ;;  %12943 = vmatprep.subr.bf16.mxu0 %v13598_v0  ;;  %v6083_v25 = vpop.trf.xlu0 }
 0x184   : > { %v1814_v33 = vpop.f32.mrb[28].mxu0 }
 0x185   : > { %11009 = vst.msk [vmem:[%s14038_s22 + $0x6c] sm:$0xf] %vm10981_vm2, %v12038_v31  ;;  %v12039_v35 = vpack.c.bf16 %v1814_v33, %v1814_v33  ;;  %12928 = vmatmul.mubr.msk.bf16.vlgmr.msra.gmra.mrb[132].mxu1 %vm768_vm1, %v5579_v29  ;;  %v12611_v36 = vpop.f32.mrb[29].mxu0  ;;  %v6155_v33 = vpop.trf.xlu1 }
 0x186   : > { %12938 = vmatpush3.bf16.msra.mxu1 %v13480_v30  ;;  %v1817_v37 = vpop.f32.mrb[30].mxu0  ;;  %12939 = vmatprep.mubr.msk.bf16.mxu1 %vm13599_vm0, %v13598_v0 }
 0x187   : > { %11010 = vst.msk [vmem:[%s14038_s22 + $0x70] sm:$0xf] %vm10981_vm2, %v12039_v35  ;;  %v12040_v40 = vpack.c.bf16 %v1817_v37, %v1817_v37  ;;  %v12612_v41 = vpop.f32.mrb[31].mxu0  ;;  %12949 = vmatprep.subr.bf16.mxu1 %v13598_v0 }
 0x188   : > { %v1886_v42 = vpop.f32.mrb[28].mxu1  ;;  %v6227_v41 = vpop.trf.xlu0 }
 0x189   : > { %11011 = vst.msk [vmem:[%s14038_s22 + $0x74] sm:$0xf] %vm10981_vm2, %v12040_v40  ;;  %v12041_v43 = vpack.c.bf16 %v1886_v42, %v1886_v42  ;;  %v12617_v44 = vpop.f32.mrb[29].mxu1  ;;  %12934 = vmatmul.mubr.msk.bf16.vlgmr.msra.gmra.mrb[136].mxu0 %vm768_vm1, %v5651_v38  ;;  %v13499_v42 = vld [vmem:[%s13664_s19 + $0x270] sm:$0xff]  }
 0x18a   : > { %v1889_v46 = vpop.f32.mrb[30].mxu1  ;;  %12944 = vmatpush3.bf16.msra.mxu0 %v13483_v39  ;;  %12945 = vmatprep.mubr.msk.bf16.mxu0 %vm13599_vm0, %v13598_v0 }
 0x18b   : > { %11012 = vst.msk [vmem:[%s14038_s22 + $0x78] sm:$0xf] %vm10981_vm2, %v12041_v43  ;;  %v12042_v49 = vpack.c.bf16 %v1889_v46, %v1889_v46  ;;  %v12618_v50 = vpop.f32.mrb[31].mxu1  ;;  %12955 = vmatprep.subr.bf16.mxu0 %v13598_v0 }
 0x18c   : > { %v1958_v51 = vpop.f32.mrb[32].mxu0  ;;  %v13500_v50 = vld [vmem:[%s13664_s19 + $0x278] sm:$0xff]  }
 0x18d   : > { %11013 = vst.msk [vmem:[%s14038_s22 + $0x7c] sm:$0xf] %vm10981_vm2, %v12042_v49  ;;  %v12043_v53 = vpack.c.bf16 %v1958_v51, %v1958_v51  ;;  %12940 = vmatmul.mubr.msk.bf16.vlgmr.msra.gmra.mrb[136].mxu1 %vm768_vm1, %v5723_v47  ;;  %v12623_v54 = vpop.f32.mrb[33].mxu0  ;;  %v6299_v49 = vpop.trf.xlu1 }
 0x18e   : > { %12950 = vmatpush3.bf16.msra.mxu1 %v13484_v48  ;;  %v1961_v55 = vpop.f32.mrb[34].mxu0  ;;  %12951 = vmatprep.mubr.msk.bf16.mxu1 %vm13599_vm0, %v13598_v0 }
 0x18f   : > { %11014 = vst.msk [vmem:[%s14038_s22 + $0x80] sm:$0xf] %vm10981_vm2, %v12043_v53  ;;  %v12044_v58 = vpack.c.bf16 %v1961_v55, %v1961_v55  ;;  %v12624_v59 = vpop.f32.mrb[35].mxu0  ;;  %12961 = vmatprep.subr.bf16.mxu1 %v13598_v0 }
 0x190   : > { %v2030_v60 = vpop.f32.mrb[32].mxu1 }
 0x191   : > { %11015 = vst.msk [vmem:[%s14038_s22 + $0x84] sm:$0xf] %vm10981_vm2, %v12044_v58  ;;  %v12045_v61 = vpack.c.bf16 %v2030_v60, %v2030_v60  ;;  %v12629_v62 = vpop.f32.mrb[33].mxu1  ;;  %12946 = vmatmul.mubr.msk.bf16.vlgmr.msra.gmra.mrb[140].mxu0 %vm768_vm1, %v5795_v56  ;;  %v13503_v58 = vld [vmem:[%s13664_s19 + $0x280] sm:$0xff]  }
 0x192   : > { %v2033_v63 = vpop.f32.mrb[34].mxu1  ;;  %12956 = vmatpush3.bf16.msra.mxu0 %v13487_v57  ;;  %12957 = vmatprep.mubr.msk.bf16.mxu0 %vm13599_vm0, %v13598_v0  ;;  %v6371_v57 = vpop.trf.xlu0 }
 0x193   : > { %11016 = vst.msk [vmem:[%s14038_s22 + $0x88] sm:$0xf] %vm10981_vm2, %v12045_v61  ;;  %v12046_v3 = vpack.c.bf16 %v2033_v63, %v2033_v63  ;;  %v12630_v4 = vpop.f32.mrb[35].mxu1  ;;  %12967 = vmatprep.subr.bf16.mxu0 %v13598_v0 }
 0x194   : > { %v2102_v5 = vpop.f32.mrb[36].mxu0 }
 0x195   : > { %11017 = vst.msk [vmem:[%s14038_s22 + $0x8c] sm:$0xf] %vm10981_vm2, %v12046_v3  ;;  %v12047_v6 = vpack.c.bf16 %v2102_v5, %v2102_v5  ;;  %12952 = vmatmul.mubr.msk.bf16.vlgmr.msra.gmra.mrb[140].mxu1 %vm768_vm1, %v5867_v1  ;;  %v12635_v7 = vpop.f32.mrb[37].mxu0  ;;  %v13504_v3 = vld [vmem:[%s13664_s19 + $0x288] sm:$0xff]  }
 0x196   : > { %12962 = vmatpush3.bf16.msra.mxu1 %v13488_v2  ;;  %v2105_v8 = vpop.f32.mrb[38].mxu0  ;;  %12963 = vmatprep.mubr.msk.bf16.mxu1 %vm13599_vm0, %v13598_v0  ;;  %v6443_v2 = vpop.trf.xlu1 }
 0x197   : > { %11018 = vst.msk [vmem:[%s14038_s22 + $0x90] sm:$0xf] %vm10981_vm2, %v12047_v6  ;;  %v12048_v11 = vpack.c.bf16 %v2105_v8, %v2105_v8  ;;  %v12636_v12 = vpop.f32.mrb[39].mxu0  ;;  %12973 = vmatprep.subr.bf16.mxu1 %v13598_v0 }
 0x198   : > { %v2174_v13 = vpop.f32.mrb[36].mxu1 }
 0x199   : > { %11019 = vst.msk [vmem:[%s14038_s22 + $0x94] sm:$0xf] %vm10981_vm2, %v12048_v11  ;;  %v12049_v14 = vpack.c.bf16 %v2174_v13, %v2174_v13  ;;  %v12641_v15 = vpop.f32.mrb[37].mxu1  ;;  %12958 = vmatmul.mubr.msk.bf16.vlgmr.msra.gmra.mrb[144].mxu0 %vm768_vm1, %v5939_v9  ;;  %v13507_v11 = vld [vmem:[%s13664_s19 + $0x290] sm:$0xff]  }
 0x19a   : > { %v2177_v16 = vpop.f32.mrb[38].mxu1  ;;  %12968 = vmatpush3.bf16.msra.mxu0 %v13491_v10  ;;  %12969 = vmatprep.mubr.msk.bf16.mxu0 %vm13599_vm0, %v13598_v0  ;;  %v6515_v10 = vpop.trf.xlu0 }
 0x19b   : > { %11020 = vst.msk [vmem:[%s14038_s22 + $0x98] sm:$0xf] %vm10981_vm2, %v12049_v14  ;;  %v12050_v19 = vpack.c.bf16 %v2177_v16, %v2177_v16  ;;  %v12642_v20 = vpop.f32.mrb[39].mxu1  ;;  %12979 = vmatprep.subr.bf16.mxu0 %v13598_v0 }
 0x19c   : > { %v2246_v21 = vpop.f32.mrb[40].mxu0 }
 0x19d   : > { %11021 = vst.msk [vmem:[%s14038_s22 + $0x9c] sm:$0xf] %vm10981_vm2, %v12050_v19  ;;  %v12051_v22 = vpack.c.bf16 %v2246_v21, %v2246_v21  ;;  %12964 = vmatmul.mubr.msk.bf16.vlgmr.msra.gmra.mrb[144].mxu1 %vm768_vm1, %v6011_v17  ;;  %v12647_v23 = vpop.f32.mrb[41].mxu0  ;;  %v13508_v19 = vld [vmem:[%s13664_s19 + $0x298] sm:$0xff]  }
 0x19e   : > { %12974 = vmatpush3.bf16.msra.mxu1 %v13492_v18  ;;  %v2249_v24 = vpop.f32.mrb[42].mxu0  ;;  %12975 = vmatprep.mubr.msk.bf16.mxu1 %vm13599_vm0, %v13598_v0  ;;  %v6587_v18 = vpop.trf.xlu1 }
 0x19f   : > { %11022 = vst.msk [vmem:[%s14038_s22 + $0xa0] sm:$0xf] %vm10981_vm2, %v12051_v22  ;;  %v12052_v27 = vpack.c.bf16 %v2249_v24, %v2249_v24  ;;  %v12648_v28 = vpop.f32.mrb[43].mxu0  ;;  %12985 = vmatprep.subr.bf16.mxu1 %v13598_v0 }
 0x1a0   : > { %v2318_v29 = vpop.f32.mrb[40].mxu1 }
 0x1a1   : > { %11023 = vst.msk [vmem:[%s14038_s22 + $0xa4] sm:$0xf] %vm10981_vm2, %v12052_v27  ;;  %v12053_v30 = vpack.c.bf16 %v2318_v29, %v2318_v29  ;;  %v12653_v31 = vpop.f32.mrb[41].mxu1  ;;  %12970 = vmatmul.mubr.msk.bf16.vlgmr.msra.gmra.mrb[148].mxu0 %vm768_vm1, %v6083_v25  ;;  %v13511_v27 = vld [vmem:[%s13664_s19 + $0x2a0] sm:$0xff]  }
 0x1a2   : > { %v2321_v32 = vpop.f32.mrb[42].mxu1  ;;  %12980 = vmatpush3.bf16.msra.mxu0 %v13495_v26  ;;  %12981 = vmatprep.mubr.msk.bf16.mxu0 %vm13599_vm0, %v13598_v0  ;;  %v6659_v26 = vpop.trf.xlu0 }
 0x1a3   : > { %11024 = vst.msk [vmem:[%s14038_s22 + $0xa8] sm:$0xf] %vm10981_vm2, %v12053_v30  ;;  %v12054_v35 = vpack.c.bf16 %v2321_v32, %v2321_v32  ;;  %v12654_v36 = vpop.f32.mrb[43].mxu1  ;;  %12991 = vmatprep.subr.bf16.mxu0 %v13598_v0 }
 0x1a4   : > { %v2390_v37 = vpop.f32.mrb[44].mxu0 }
 0x1a5   : > { %11025 = vst.msk [vmem:[%s14038_s22 + $0xac] sm:$0xf] %vm10981_vm2, %v12054_v35  ;;  %v12055_v38 = vpack.c.bf16 %v2390_v37, %v2390_v37  ;;  %12976 = vmatmul.mubr.msk.bf16.vlgmr.msra.gmra.mrb[148].mxu1 %vm768_vm1, %v6155_v33  ;;  %v12659_v39 = vpop.f32.mrb[45].mxu0  ;;  %v13512_v35 = vld [vmem:[%s13664_s19 + $0x2a8] sm:$0xff]  }
 0x1a6   : > { %12986 = vmatpush3.bf16.msra.mxu1 %v13496_v34  ;;  %v2393_v40 = vpop.f32.mrb[46].mxu0  ;;  %12987 = vmatprep.mubr.msk.bf16.mxu1 %vm13599_vm0, %v13598_v0  ;;  %v6731_v34 = vpop.trf.xlu1 }
 0x1a7   : > { %11026 = vst.msk [vmem:[%s14038_s22 + $0xb0] sm:$0xf] %vm10981_vm2, %v12055_v38  ;;  %v12056_v43 = vpack.c.bf16 %v2393_v40, %v2393_v40  ;;  %v12660_v44 = vpop.f32.mrb[47].mxu0  ;;  %12997 = vmatprep.subr.bf16.mxu1 %v13598_v0 }
 0x1a8   : > { %v2462_v45 = vpop.f32.mrb[44].mxu1 }
 0x1a9   : > { %11027 = vst.msk [vmem:[%s14038_s22 + $0xb4] sm:$0xf] %vm10981_vm2, %v12056_v43  ;;  %v12057_v46 = vpack.c.bf16 %v2462_v45, %v2462_v45  ;;  %v12665_v47 = vpop.f32.mrb[45].mxu1  ;;  %12982 = vmatmul.mubr.msk.bf16.vlgmr.msra.gmra.mrb[152].mxu0 %vm768_vm1, %v6227_v41  ;;  %v13515_v43 = vld [vmem:[%s13664_s19 + $0x2b0] sm:$0xff]  }
 0x1aa   : > { %v2465_v48 = vpop.f32.mrb[46].mxu1  ;;  %12992 = vmatpush3.bf16.msra.mxu0 %v13499_v42  ;;  %12993 = vmatprep.mubr.msk.bf16.mxu0 %vm13599_vm0, %v13598_v0  ;;  %v6803_v42 = vpop.trf.xlu0 }
 0x1ab   : > { %11028 = vst.msk [vmem:[%s14038_s22 + $0xb8] sm:$0xf] %vm10981_vm2, %v12057_v46  ;;  %v12058_v51 = vpack.c.bf16 %v2465_v48, %v2465_v48  ;;  %v12666_v52 = vpop.f32.mrb[47].mxu1  ;;  %13003 = vmatprep.subr.bf16.mxu0 %v13598_v0 }
 0x1ac   : > { %v2534_v53 = vpop.f32.mrb[48].mxu0 }
 0x1ad   : > { %11029 = vst.msk [vmem:[%s14038_s22 + $0xbc] sm:$0xf] %vm10981_vm2, %v12058_v51  ;;  %v12059_v54 = vpack.c.bf16 %v2534_v53, %v2534_v53  ;;  %12988 = vmatmul.mubr.msk.bf16.vlgmr.msra.gmra.mrb[152].mxu1 %vm768_vm1, %v6299_v49  ;;  %v12671_v55 = vpop.f32.mrb[49].mxu0  ;;  %v13516_v51 = vld [vmem:[%s13664_s19 + $0x2b8] sm:$0xff]  }
 0x1ae   : > { %12998 = vmatpush3.bf16.msra.mxu1 %v13500_v50  ;;  %v2537_v56 = vpop.f32.mrb[50].mxu0  ;;  %12999 = vmatprep.mubr.msk.bf16.mxu1 %vm13599_vm0, %v13598_v0  ;;  %v6875_v50 = vpop.trf.xlu1 }
 0x1af   : > { %11030 = vst.msk [vmem:[%s14038_s22 + $0xc0] sm:$0xf] %vm10981_vm2, %v12059_v54  ;;  %v12060_v59 = vpack.c.bf16 %v2537_v56, %v2537_v56  ;;  %v12672_v60 = vpop.f32.mrb[51].mxu0  ;;  %13009 = vmatprep.subr.bf16.mxu1 %v13598_v0 }
 0x1b0   : > { %v2606_v61 = vpop.f32.mrb[48].mxu1 }
 0x1b1   : > { %11031 = vst.msk [vmem:[%s14038_s22 + $0xc4] sm:$0xf] %vm10981_vm2, %v12060_v59  ;;  %v12061_v62 = vpack.c.bf16 %v2606_v61, %v2606_v61  ;;  %v12677_v63 = vpop.f32.mrb[49].mxu1  ;;  %12994 = vmatmul.mubr.msk.bf16.vlgmr.msra.gmra.mrb[156].mxu0 %vm768_vm1, %v6371_v57  ;;  %v13519_v59 = vld [vmem:[%s13664_s19 + $0x2c0] sm:$0xff]  }
 0x1b2   : > { %v2609_v1 = vpop.f32.mrb[50].mxu1  ;;  %13004 = vmatpush3.bf16.msra.mxu0 %v13503_v58  ;;  %13005 = vmatprep.mubr.msk.bf16.mxu0 %vm13599_vm0, %v13598_v0  ;;  %v6947_v58 = vpop.trf.xlu0 }
 0x1b3   : > { %11032 = vst.msk [vmem:[%s14038_s22 + $0xc8] sm:$0xf] %vm10981_vm2, %v12061_v62  ;;  %v12062_v4 = vpack.c.bf16 %v2609_v1, %v2609_v1  ;;  %v12678_v5 = vpop.f32.mrb[51].mxu1  ;;  %13015 = vmatprep.subr.bf16.mxu0 %v13598_v0 }
 0x1b4   : > { %v2678_v6 = vpop.f32.mrb[52].mxu0 }
 0x1b5   : > { %11033 = vst.msk [vmem:[%s14038_s22 + $0xcc] sm:$0xf] %vm10981_vm2, %v12062_v4  ;;  %v12063_v7 = vpack.c.bf16 %v2678_v6, %v2678_v6  ;;  %13000 = vmatmul.mubr.msk.bf16.vlgmr.msra.gmra.mrb[156].mxu1 %vm768_vm1, %v6443_v2  ;;  %v12683_v8 = vpop.f32.mrb[53].mxu0  ;;  %v13520_v4 = vld [vmem:[%s13664_s19 + $0x2c8] sm:$0xff]  }
 0x1b6   : > { %13010 = vmatpush3.bf16.msra.mxu1 %v13504_v3  ;;  %v2681_v9 = vpop.f32.mrb[54].mxu0  ;;  %13011 = vmatprep.mubr.msk.bf16.mxu1 %vm13599_vm0, %v13598_v0  ;;  %v7019_v3 = vpop.trf.xlu1 }
 0x1b7   : > { %11034 = vst.msk [vmem:[%s14038_s22 + $0xd0] sm:$0xf] %vm10981_vm2, %v12063_v7  ;;  %v12064_v12 = vpack.c.bf16 %v2681_v9, %v2681_v9  ;;  %v12684_v13 = vpop.f32.mrb[55].mxu0  ;;  %13021 = vmatprep.subr.bf16.mxu1 %v13598_v0 }
 0x1b8   : > { %v2750_v14 = vpop.f32.mrb[52].mxu1 }
 0x1b9   : > { %11035 = vst.msk [vmem:[%s14038_s22 + $0xd4] sm:$0xf] %vm10981_vm2, %v12064_v12  ;;  %v12065_v15 = vpack.c.bf16 %v2750_v14, %v2750_v14  ;;  %v12689_v16 = vpop.f32.mrb[53].mxu1  ;;  %13006 = vmatmul.mubr.msk.bf16.vlgmr.msra.gmra.mrb[160].mxu0 %vm768_vm1, %v6515_v10  ;;  %v13523_v12 = vld [vmem:[%s13664_s19 + $0x2d0] sm:$0xff]  }
 0x1ba   : > { %v2753_v17 = vpop.f32.mrb[54].mxu1  ;;  %13016 = vmatpush3.bf16.msra.mxu0 %v13507_v11  ;;  %13017 = vmatprep.mubr.msk.bf16.mxu0 %vm13599_vm0, %v13598_v0  ;;  %v7091_v11 = vpop.trf.xlu0 }
 0x1bb   : > { %11036 = vst.msk [vmem:[%s14038_s22 + $0xd8] sm:$0xf] %vm10981_vm2, %v12065_v15  ;;  %v12066_v20 = vpack.c.bf16 %v2753_v17, %v2753_v17  ;;  %v12690_v21 = vpop.f32.mrb[55].mxu1  ;;  %13027 = vmatprep.subr.bf16.mxu0 %v13598_v0 }
 0x1bc   : > { %v2822_v22 = vpop.f32.mrb[56].mxu0 }
 0x1bd   : > { %11037 = vst.msk [vmem:[%s14038_s22 + $0xdc] sm:$0xf] %vm10981_vm2, %v12066_v20  ;;  %v12067_v23 = vpack.c.bf16 %v2822_v22, %v2822_v22  ;;  %13012 = vmatmul.mubr.msk.bf16.vlgmr.msra.gmra.mrb[160].mxu1 %vm768_vm1, %v6587_v18  ;;  %v12695_v24 = vpop.f32.mrb[57].mxu0  ;;  %v13524_v20 = vld [vmem:[%s13664_s19 + $0x2d8] sm:$0xff]  }
 0x1be   : > { %13022 = vmatpush3.bf16.msra.mxu1 %v13508_v19  ;;  %v2825_v25 = vpop.f32.mrb[58].mxu0  ;;  %13023 = vmatprep.mubr.msk.bf16.mxu1 %vm13599_vm0, %v13598_v0  ;;  %v7163_v19 = vpop.trf.xlu1 }
 0x1bf   : > { %11038 = vst.msk [vmem:[%s14038_s22 + $0xe0] sm:$0xf] %vm10981_vm2, %v12067_v23  ;;  %v12068_v28 = vpack.c.bf16 %v2825_v25, %v2825_v25  ;;  %v12696_v29 = vpop.f32.mrb[59].mxu0  ;;  %13033 = vmatprep.subr.bf16.mxu1 %v13598_v0 }
 0x1c0   : > { %v2894_v30 = vpop.f32.mrb[56].mxu1 }
 0x1c1   : > { %11039 = vst.msk [vmem:[%s14038_s22 + $0xe4] sm:$0xf] %vm10981_vm2, %v12068_v28  ;;  %v12069_v31 = vpack.c.bf16 %v2894_v30, %v2894_v30  ;;  %v12701_v32 = vpop.f32.mrb[57].mxu1  ;;  %13018 = vmatmul.mubr.msk.bf16.vlgmr.msra.gmra.mrb[164].mxu0 %vm768_vm1, %v6659_v26  ;;  %v13527_v28 = vld [vmem:[%s13664_s19 + $0x2e0] sm:$0xff]  }
 0x1c2   : > { %v2897_v33 = vpop.f32.mrb[58].mxu1  ;;  %13028 = vmatpush3.bf16.msra.mxu0 %v13511_v27  ;;  %13029 = vmatprep.mubr.msk.bf16.mxu0 %vm13599_vm0, %v13598_v0  ;;  %v7235_v27 = vpop.trf.xlu0 }
 0x1c3   : > { %11040 = vst.msk [vmem:[%s14038_s22 + $0xe8] sm:$0xf] %vm10981_vm2, %v12069_v31  ;;  %v12070_v36 = vpack.c.bf16 %v2897_v33, %v2897_v33  ;;  %v12702_v37 = vpop.f32.mrb[59].mxu1  ;;  %13039 = vmatprep.subr.bf16.mxu0 %v13598_v0 }
 0x1c4   : > { %v2966_v38 = vpop.f32.mrb[60].mxu0 }
 0x1c5   : > { %11041 = vst.msk [vmem:[%s14038_s22 + $0xec] sm:$0xf] %vm10981_vm2, %v12070_v36  ;;  %v12071_v39 = vpack.c.bf16 %v2966_v38, %v2966_v38  ;;  %13024 = vmatmul.mubr.msk.bf16.vlgmr.msra.gmra.mrb[164].mxu1 %vm768_vm1, %v6731_v34  ;;  %v12707_v40 = vpop.f32.mrb[61].mxu0  ;;  %v13528_v36 = vld [vmem:[%s13664_s19 + $0x2e8] sm:$0xff]  }
 0x1c6   : > { %13034 = vmatpush3.bf16.msra.mxu1 %v13512_v35  ;;  %v2969_v41 = vpop.f32.mrb[62].mxu0  ;;  %13035 = vmatprep.mubr.msk.bf16.mxu1 %vm13599_vm0, %v13598_v0  ;;  %v7307_v35 = vpop.trf.xlu1 }
 0x1c7   : > { %11042 = vst.msk [vmem:[%s14038_s22 + $0xf0] sm:$0xf] %vm10981_vm2, %v12071_v39  ;;  %v12072_v44 = vpack.c.bf16 %v2969_v41, %v2969_v41  ;;  %v12708_v45 = vpop.f32.mrb[63].mxu0  ;;  %13045 = vmatprep.subr.bf16.mxu1 %v13598_v0 }
 0x1c8   : > { %v3038_v46 = vpop.f32.mrb[60].mxu1 }
 0x1c9   : > { %11043 = vst.msk [vmem:[%s14038_s22 + $0xf4] sm:$0xf] %vm10981_vm2, %v12072_v44  ;;  %v12073_v47 = vpack.c.bf16 %v3038_v46, %v3038_v46  ;;  %v12713_v48 = vpop.f32.mrb[61].mxu1  ;;  %13030 = vmatmul.mubr.msk.bf16.vlgmr.msra.gmra.mrb[168].mxu0 %vm768_vm1, %v6803_v42  ;;  %v13531_v44 = vld [vmem:[%s13664_s19 + $0x2f0] sm:$0xff]  }
 0x1ca   : > { %v3041_v49 = vpop.f32.mrb[62].mxu1  ;;  %13040 = vmatpush3.bf16.msra.mxu0 %v13515_v43  ;;  %13041 = vmatprep.mubr.msk.bf16.mxu0 %vm13599_vm0, %v13598_v0  ;;  %v7379_v43 = vpop.trf.xlu0 }
 0x1cb   : > { %11044 = vst.msk [vmem:[%s14038_s22 + $0xf8] sm:$0xf] %vm10981_vm2, %v12073_v47  ;;  %v12074_v52 = vpack.c.bf16 %v3041_v49, %v3041_v49  ;;  %v12714_v53 = vpop.f32.mrb[63].mxu1  ;;  %13051 = vmatprep.subr.bf16.mxu0 %v13598_v0 }
 0x1cc   : > { %v3110_v54 = vpop.f32.mrb[64].mxu0 }
 0x1cd   : > { %11045 = vst.msk [vmem:[%s14038_s22 + $0xfc] sm:$0xf] %vm10981_vm2, %v12074_v52  ;;  %v12075_v55 = vpack.c.bf16 %v3110_v54, %v3110_v54  ;;  %13036 = vmatmul.mubr.msk.bf16.vlgmr.msra.gmra.mrb[168].mxu1 %vm768_vm1, %v6875_v50  ;;  %v12719_v56 = vpop.f32.mrb[65].mxu0  ;;  %v13532_v52 = vld [vmem:[%s13664_s19 + $0x2f8] sm:$0xff]  }
 0x1ce   : > { %13046 = vmatpush3.bf16.msra.mxu1 %v13516_v51  ;;  %v3113_v57 = vpop.f32.mrb[66].mxu0  ;;  %13047 = vmatprep.mubr.msk.bf16.mxu1 %vm13599_vm0, %v13598_v0  ;;  %v7451_v51 = vpop.trf.xlu1 }
 0x1cf   : > { %11046 = vst.msk [vmem:[%s14038_s22 + $0x100] sm:$0xf] %vm10981_vm2, %v12075_v55  ;;  %v12076_v60 = vpack.c.bf16 %v3113_v57, %v3113_v57  ;;  %v12720_v61 = vpop.f32.mrb[67].mxu0  ;;  %13057 = vmatprep.subr.bf16.mxu1 %v13598_v0 }
 0x1d0   : > { %v3182_v62 = vpop.f32.mrb[64].mxu1 }
 0x1d1   : > { %11047 = vst.msk [vmem:[%s14038_s22 + $0x104] sm:$0xf] %vm10981_vm2, %v12076_v60  ;;  %v12077_v63 = vpack.c.bf16 %v3182_v62, %v3182_v62  ;;  %v12725_v1 = vpop.f32.mrb[65].mxu1  ;;  %13042 = vmatmul.mubr.msk.bf16.vlgmr.msra.gmra.mrb[172].mxu0 %vm768_vm1, %v6947_v58  ;;  %v13535_v60 = vld [vmem:[%s13664_s19 + $0x300] sm:$0xff]  }
 0x1d2   : > { %v3185_v2 = vpop.f32.mrb[66].mxu1  ;;  %13052 = vmatpush3.bf16.msra.mxu0 %v13519_v59  ;;  %13053 = vmatprep.mubr.msk.bf16.mxu0 %vm13599_vm0, %v13598_v0  ;;  %v7523_v59 = vpop.trf.xlu0 }
 0x1d3   : > { %11048 = vst.msk [vmem:[%s14038_s22 + $0x108] sm:$0xf] %vm10981_vm2, %v12077_v63  ;;  %v12078_v5 = vpack.c.bf16 %v3185_v2, %v3185_v2  ;;  %v12726_v6 = vpop.f32.mrb[67].mxu1  ;;  %13063 = vmatprep.subr.bf16.mxu0 %v13598_v0 }
 0x1d4   : > { %v3254_v7 = vpop.f32.mrb[68].mxu0 }
 0x1d5   : > { %11049 = vst.msk [vmem:[%s14038_s22 + $0x10c] sm:$0xf] %vm10981_vm2, %v12078_v5  ;;  %v12079_v8 = vpack.c.bf16 %v3254_v7, %v3254_v7  ;;  %13048 = vmatmul.mubr.msk.bf16.vlgmr.msra.gmra.mrb[172].mxu1 %vm768_vm1, %v7019_v3  ;;  %v12731_v9 = vpop.f32.mrb[69].mxu0  ;;  %v13536_v5 = vld [vmem:[%s13664_s19 + $0x308] sm:$0xff]  }
 0x1d6   : > { %13058 = vmatpush3.bf16.msra.mxu1 %v13520_v4  ;;  %v3257_v10 = vpop.f32.mrb[70].mxu0  ;;  %13059 = vmatprep.mubr.msk.bf16.mxu1 %vm13599_vm0, %v13598_v0  ;;  %v7595_v4 = vpop.trf.xlu1 }
 0x1d7   : > { %11050 = vst.msk [vmem:[%s14038_s22 + $0x110] sm:$0xf] %vm10981_vm2, %v12079_v8  ;;  %v12080_v13 = vpack.c.bf16 %v3257_v10, %v3257_v10  ;;  %v12732_v14 = vpop.f32.mrb[71].mxu0  ;;  %13069 = vmatprep.subr.bf16.mxu1 %v13598_v0 }
 0x1d8   : > { %v3326_v15 = vpop.f32.mrb[68].mxu1 }
 0x1d9   : > { %11051 = vst.msk [vmem:[%s14038_s22 + $0x114] sm:$0xf] %vm10981_vm2, %v12080_v13  ;;  %v12081_v16 = vpack.c.bf16 %v3326_v15, %v3326_v15  ;;  %v12737_v17 = vpop.f32.mrb[69].mxu1  ;;  %13054 = vmatmul.mubr.msk.bf16.vlgmr.msra.gmra.mrb[176].mxu0 %vm768_vm1, %v7091_v11  ;;  %v13539_v13 = vld [vmem:[%s13664_s19 + $0x310] sm:$0xff]  }
 0x1da   : > { %v3329_v18 = vpop.f32.mrb[70].mxu1  ;;  %13064 = vmatpush3.bf16.msra.mxu0 %v13523_v12  ;;  %13065 = vmatprep.mubr.msk.bf16.mxu0 %vm13599_vm0, %v13598_v0  ;;  %v7667_v12 = vpop.trf.xlu0 }
 0x1db   : > { %11052 = vst.msk [vmem:[%s14038_s22 + $0x118] sm:$0xf] %vm10981_vm2, %v12081_v16  ;;  %v12082_v21 = vpack.c.bf16 %v3329_v18, %v3329_v18  ;;  %v12738_v22 = vpop.f32.mrb[71].mxu1  ;;  %13075 = vmatprep.subr.bf16.mxu0 %v13598_v0 }
 0x1dc   : > { %v3398_v23 = vpop.f32.mrb[72].mxu0 }
 0x1dd   : > { %11053 = vst.msk [vmem:[%s14038_s22 + $0x11c] sm:$0xf] %vm10981_vm2, %v12082_v21  ;;  %v12083_v24 = vpack.c.bf16 %v3398_v23, %v3398_v23  ;;  %13060 = vmatmul.mubr.msk.bf16.vlgmr.msra.gmra.mrb[176].mxu1 %vm768_vm1, %v7163_v19  ;;  %v12743_v25 = vpop.f32.mrb[73].mxu0  ;;  %v13540_v21 = vld [vmem:[%s13664_s19 + $0x318] sm:$0xff]  }
 0x1de   : > { %13070 = vmatpush3.bf16.msra.mxu1 %v13524_v20  ;;  %v3401_v26 = vpop.f32.mrb[74].mxu0  ;;  %13071 = vmatprep.mubr.msk.bf16.mxu1 %vm13599_vm0, %v13598_v0  ;;  %v7739_v20 = vpop.trf.xlu1 }
 0x1df   : > { %11054 = vst.msk [vmem:[%s14038_s22 + $0x120] sm:$0xf] %vm10981_vm2, %v12083_v24  ;;  %v12084_v29 = vpack.c.bf16 %v3401_v26, %v3401_v26  ;;  %v12744_v30 = vpop.f32.mrb[75].mxu0  ;;  %13081 = vmatprep.subr.bf16.mxu1 %v13598_v0 }
 0x1e0   : > { %v3470_v31 = vpop.f32.mrb[72].mxu1 }
 0x1e1   : > { %11055 = vst.msk [vmem:[%s14038_s22 + $0x124] sm:$0xf] %vm10981_vm2, %v12084_v29  ;;  %v12085_v32 = vpack.c.bf16 %v3470_v31, %v3470_v31  ;;  %v12749_v33 = vpop.f32.mrb[73].mxu1  ;;  %13066 = vmatmul.mubr.msk.bf16.vlgmr.msra.gmra.mrb[180].mxu0 %vm768_vm1, %v7235_v27  ;;  %v13543_v29 = vld [vmem:[%s13664_s19 + $0x320] sm:$0xff]  }
 0x1e2   : > { %v3473_v34 = vpop.f32.mrb[74].mxu1  ;;  %13076 = vmatpush3.bf16.msra.mxu0 %v13527_v28  ;;  %13077 = vmatprep.mubr.msk.bf16.mxu0 %vm13599_vm0, %v13598_v0  ;;  %v7811_v28 = vpop.trf.xlu0 }
 0x1e3   : > { %11056 = vst.msk [vmem:[%s14038_s22 + $0x128] sm:$0xf] %vm10981_vm2, %v12085_v32  ;;  %v12086_v37 = vpack.c.bf16 %v3473_v34, %v3473_v34  ;;  %v12750_v38 = vpop.f32.mrb[75].mxu1  ;;  %13087 = vmatprep.subr.bf16.mxu0 %v13598_v0 }
 0x1e4   : > { %v3542_v39 = vpop.f32.mrb[76].mxu0 }
 0x1e5   : > { %11057 = vst.msk [vmem:[%s14038_s22 + $0x12c] sm:$0xf] %vm10981_vm2, %v12086_v37  ;;  %v12087_v40 = vpack.c.bf16 %v3542_v39, %v3542_v39  ;;  %13072 = vmatmul.mubr.msk.bf16.vlgmr.msra.gmra.mrb[180].mxu1 %vm768_vm1, %v7307_v35  ;;  %v12755_v41 = vpop.f32.mrb[77].mxu0  ;;  %v13544_v37 = vld [vmem:[%s13664_s19 + $0x328] sm:$0xff]  }
 0x1e6   : > { %13082 = vmatpush3.bf16.msra.mxu1 %v13528_v36  ;;  %v3545_v42 = vpop.f32.mrb[78].mxu0  ;;  %13083 = vmatprep.mubr.msk.bf16.mxu1 %vm13599_vm0, %v13598_v0  ;;  %v7883_v36 = vpop.trf.xlu1 }
 0x1e7   : > { %11058 = vst.msk [vmem:[%s14038_s22 + $0x130] sm:$0xf] %vm10981_vm2, %v12087_v40  ;;  %v12088_v45 = vpack.c.bf16 %v3545_v42, %v3545_v42  ;;  %v12756_v46 = vpop.f32.mrb[79].mxu0  ;;  %13093 = vmatprep.subr.bf16.mxu1 %v13598_v0 }
 0x1e8   : > { %v3614_v47 = vpop.f32.mrb[76].mxu1 }
 0x1e9   : > { %11059 = vst.msk [vmem:[%s14038_s22 + $0x134] sm:$0xf] %vm10981_vm2, %v12088_v45  ;;  %v12089_v48 = vpack.c.bf16 %v3614_v47, %v3614_v47  ;;  %v12761_v49 = vpop.f32.mrb[77].mxu1  ;;  %13078 = vmatmul.mubr.msk.bf16.vlgmr.msra.gmra.mrb[184].mxu0 %vm768_vm1, %v7379_v43  ;;  %v13547_v45 = vld [vmem:[%s13664_s19 + $0x330] sm:$0xff]  }
 0x1ea   : > { %v3617_v50 = vpop.f32.mrb[78].mxu1  ;;  %13088 = vmatpush3.bf16.msra.mxu0 %v13531_v44  ;;  %13089 = vmatprep.mubr.msk.bf16.mxu0 %vm13599_vm0, %v13598_v0  ;;  %v7955_v44 = vpop.trf.xlu0 }
 0x1eb   : > { %11060 = vst.msk [vmem:[%s14038_s22 + $0x138] sm:$0xf] %vm10981_vm2, %v12089_v48  ;;  %v12090_v53 = vpack.c.bf16 %v3617_v50, %v3617_v50  ;;  %v12762_v54 = vpop.f32.mrb[79].mxu1  ;;  %13099 = vmatprep.subr.bf16.mxu0 %v13598_v0 }
 0x1ec   : > { %v3686_v55 = vpop.f32.mrb[80].mxu0 }
 0x1ed   : > { %11061 = vst.msk [vmem:[%s14038_s22 + $0x13c] sm:$0xf] %vm10981_vm2, %v12090_v53  ;;  %v12091_v56 = vpack.c.bf16 %v3686_v55, %v3686_v55  ;;  %13084 = vmatmul.mubr.msk.bf16.vlgmr.msra.gmra.mrb[184].mxu1 %vm768_vm1, %v7451_v51  ;;  %v12767_v57 = vpop.f32.mrb[81].mxu0  ;;  %v13548_v53 = vld [vmem:[%s13664_s19 + $0x338] sm:$0xff]  }
 0x1ee   : > { %13094 = vmatpush3.bf16.msra.mxu1 %v13532_v52  ;;  %v3689_v58 = vpop.f32.mrb[82].mxu0  ;;  %13095 = vmatprep.mubr.msk.bf16.mxu1 %vm13599_vm0, %v13598_v0  ;;  %v8027_v52 = vpop.trf.xlu1 }
 0x1ef   : > { %11062 = vst.msk [vmem:[%s14038_s22 + $0x140] sm:$0xf] %vm10981_vm2, %v12091_v56  ;;  %v12092_v61 = vpack.c.bf16 %v3689_v58, %v3689_v58  ;;  %v12768_v62 = vpop.f32.mrb[83].mxu0  ;;  %13105 = vmatprep.subr.bf16.mxu1 %v13598_v0 }
 0x1f0   : > { %v3758_v63 = vpop.f32.mrb[80].mxu1 }
 0x1f1   : > { %11063 = vst.msk [vmem:[%s14038_s22 + $0x144] sm:$0xf] %vm10981_vm2, %v12092_v61  ;;  %v12093_v1 = vpack.c.bf16 %v3758_v63, %v3758_v63  ;;  %v12773_v2 = vpop.f32.mrb[81].mxu1  ;;  %13090 = vmatmul.mubr.msk.bf16.vlgmr.msra.gmra.mrb[188].mxu0 %vm768_vm1, %v7523_v59  ;;  %v13550_v61 = vld [vmem:[%s13664_s19 + $0x340] sm:$0xff]  }
 0x1f2   : > { %v3761_v3 = vpop.f32.mrb[82].mxu1  ;;  %13100 = vmatpush3.bf16.msra.mxu0 %v13535_v60  ;;  %13101 = vmatprep.mubr.msk.bf16.mxu0 %vm13599_vm0, %v13598_v0  ;;  %v8099_v60 = vpop.trf.xlu0 }
 0x1f3   : > { %11064 = vst.msk [vmem:[%s14038_s22 + $0x148] sm:$0xf] %vm10981_vm2, %v12093_v1  ;;  %v12094_v6 = vpack.c.bf16 %v3761_v3, %v3761_v3  ;;  %v12774_v7 = vpop.f32.mrb[83].mxu1  ;;  %13111 = vmatprep.subr.bf16.mxu0 %v13598_v0 }
 0x1f4   : > { %v3830_v8 = vpop.f32.mrb[84].mxu0 }
 0x1f5   : > { %11065 = vst.msk [vmem:[%s14038_s22 + $0x14c] sm:$0xf] %vm10981_vm2, %v12094_v6  ;;  %v12095_v9 = vpack.c.bf16 %v3830_v8, %v3830_v8  ;;  %13096 = vmatmul.mubr.msk.bf16.vlgmr.msra.gmra.mrb[188].mxu1 %vm768_vm1, %v7595_v4  ;;  %v12779_v10 = vpop.f32.mrb[85].mxu0  ;;  %v13551_v6 = vld [vmem:[%s13664_s19 + $0x348] sm:$0xff]  }
 0x1f6   : > { %13106 = vmatpush3.bf16.msra.mxu1 %v13536_v5  ;;  %v3833_v11 = vpop.f32.mrb[86].mxu0  ;;  %13107 = vmatprep.mubr.msk.bf16.mxu1 %vm13599_vm0, %v13598_v0  ;;  %v8171_v5 = vpop.trf.xlu1 }
 0x1f7   : > { %11066 = vst.msk [vmem:[%s14038_s22 + $0x150] sm:$0xf] %vm10981_vm2, %v12095_v9  ;;  %v12096_v14 = vpack.c.bf16 %v3833_v11, %v3833_v11  ;;  %v12780_v15 = vpop.f32.mrb[87].mxu0  ;;  %13117 = vmatprep.subr.bf16.mxu1 %v13598_v0 }
 0x1f8   : > { %v3902_v16 = vpop.f32.mrb[84].mxu1 }
 0x1f9   : > { %11067 = vst.msk [vmem:[%s14038_s22 + $0x154] sm:$0xf] %vm10981_vm2, %v12096_v14  ;;  %v12097_v17 = vpack.c.bf16 %v3902_v16, %v3902_v16  ;;  %v12785_v18 = vpop.f32.mrb[85].mxu1  ;;  %13102 = vmatmul.mubr.msk.bf16.vlgmr.msra.gmra.mrb[192].mxu0 %vm768_vm1, %v7667_v12  ;;  %v13552_v14 = vld [vmem:[%s13664_s19 + $0x350] sm:$0xff]  }
 0x1fa   : > { %v3905_v19 = vpop.f32.mrb[86].mxu1  ;;  %13112 = vmatpush3.bf16.msra.mxu0 %v13539_v13  ;;  %13113 = vmatprep.mubr.msk.bf16.mxu0 %vm13599_vm0, %v13598_v0  ;;  %v8243_v13 = vpop.trf.xlu0 }
 0x1fb   : > { %11068 = vst.msk [vmem:[%s14038_s22 + $0x158] sm:$0xf] %vm10981_vm2, %v12097_v17  ;;  %v12098_v22 = vpack.c.bf16 %v3905_v19, %v3905_v19  ;;  %v12786_v23 = vpop.f32.mrb[87].mxu1  ;;  %13123 = vmatprep.subr.bf16.mxu0 %v13598_v0 }
 0x1fc   : > { %v3974_v24 = vpop.f32.mrb[88].mxu0 }
 0x1fd   : > { %11069 = vst.msk [vmem:[%s14038_s22 + $0x15c] sm:$0xf] %vm10981_vm2, %v12098_v22  ;;  %v12099_v25 = vpack.c.bf16 %v3974_v24, %v3974_v24  ;;  %13108 = vmatmul.mubr.msk.bf16.vlgmr.msra.gmra.mrb[192].mxu1 %vm768_vm1, %v7739_v20  ;;  %v12791_v26 = vpop.f32.mrb[89].mxu0  ;;  %v13553_v22 = vld [vmem:[%s13664_s19 + $0x358] sm:$0xff]  }
 0x1fe   : > { %13118 = vmatpush3.bf16.msra.mxu1 %v13540_v21  ;;  %v3977_v27 = vpop.f32.mrb[90].mxu0  ;;  %13119 = vmatprep.mubr.msk.bf16.mxu1 %vm13599_vm0, %v13598_v0  ;;  %v8315_v21 = vpop.trf.xlu1 }
 0x1ff   : > { %11070 = vst.msk [vmem:[%s14038_s22 + $0x160] sm:$0xf] %vm10981_vm2, %v12099_v25  ;;  %v12100_v30 = vpack.c.bf16 %v3977_v27, %v3977_v27  ;;  %v12792_v31 = vpop.f32.mrb[91].mxu0  ;;  %13129 = vmatprep.subr.bf16.mxu1 %v13598_v0 }
 0x200   : > { %v4046_v32 = vpop.f32.mrb[88].mxu1 }
 0x201   : > { %11071 = vst.msk [vmem:[%s14038_s22 + $0x164] sm:$0xf] %vm10981_vm2, %v12100_v30  ;;  %v12101_v33 = vpack.c.bf16 %v4046_v32, %v4046_v32  ;;  %v12797_v34 = vpop.f32.mrb[89].mxu1  ;;  %13114 = vmatmul.mubr.msk.bf16.vlgmr.msra.gmra.mrb[196].mxu0 %vm768_vm1, %v7811_v28  ;;  %v13554_v30 = vld [vmem:[%s13664_s19 + $0x360] sm:$0xff]  }
 0x202   : > { %v4049_v35 = vpop.f32.mrb[90].mxu1  ;;  %13124 = vmatpush3.bf16.msra.mxu0 %v13543_v29  ;;  %13125 = vmatprep.mubr.msk.bf16.mxu0 %vm13599_vm0, %v13598_v0  ;;  %v8387_v29 = vpop.trf.xlu0 }
 0x203   : > { %11072 = vst.msk [vmem:[%s14038_s22 + $0x168] sm:$0xf] %vm10981_vm2, %v12101_v33  ;;  %v12102_v38 = vpack.c.bf16 %v4049_v35, %v4049_v35  ;;  %v12798_v39 = vpop.f32.mrb[91].mxu1  ;;  %13135 = vmatprep.subr.bf16.mxu0 %v13598_v0 }
 0x204   : > { %v4118_v40 = vpop.f32.mrb[92].mxu0 }
 0x205   : > { %11073 = vst.msk [vmem:[%s14038_s22 + $0x16c] sm:$0xf] %vm10981_vm2, %v12102_v38  ;;  %v12103_v41 = vpack.c.bf16 %v4118_v40, %v4118_v40  ;;  %13120 = vmatmul.mubr.msk.bf16.vlgmr.msra.gmra.mrb[196].mxu1 %vm768_vm1, %v7883_v36  ;;  %v12803_v42 = vpop.f32.mrb[93].mxu0  ;;  %v13555_v38 = vld [vmem:[%s13664_s19 + $0x368] sm:$0xff]  }
 0x206   : > { %13130 = vmatpush3.bf16.msra.mxu1 %v13544_v37  ;;  %v4121_v43 = vpop.f32.mrb[94].mxu0  ;;  %13131 = vmatprep.mubr.msk.bf16.mxu1 %vm13599_vm0, %v13598_v0  ;;  %v8459_v37 = vpop.trf.xlu1 }
 0x207   : > { %11074 = vst.msk [vmem:[%s14038_s22 + $0x170] sm:$0xf] %vm10981_vm2, %v12103_v41  ;;  %v12104_v46 = vpack.c.bf16 %v4121_v43, %v4121_v43  ;;  %v12804_v47 = vpop.f32.mrb[95].mxu0  ;;  %13141 = vmatprep.subr.bf16.mxu1 %v13598_v0 }
 0x208   : > { %v4190_v48 = vpop.f32.mrb[92].mxu1 }
 0x209   : > { %11075 = vst.msk [vmem:[%s14038_s22 + $0x174] sm:$0xf] %vm10981_vm2, %v12104_v46  ;;  %v12105_v49 = vpack.c.bf16 %v4190_v48, %v4190_v48  ;;  %v12809_v50 = vpop.f32.mrb[93].mxu1  ;;  %13126 = vmatmul.mubr.msk.bf16.vlgmr.msra.gmra.mrb[200].mxu0 %vm768_vm1, %v7955_v44  ;;  %v13556_v46 = vld [vmem:[%s13664_s19 + $0x370] sm:$0xff]  }
 0x20a   : > { %v4193_v51 = vpop.f32.mrb[94].mxu1  ;;  %13136 = vmatpush3.bf16.msra.mxu0 %v13547_v45  ;;  %13137 = vmatprep.mubr.msk.bf16.mxu0 %vm13599_vm0, %v13598_v0  ;;  %v8531_v45 = vpop.trf.xlu0 }
 0x20b   : > { %11076 = vst.msk [vmem:[%s14038_s22 + $0x178] sm:$0xf] %vm10981_vm2, %v12105_v49  ;;  %v12106_v54 = vpack.c.bf16 %v4193_v51, %v4193_v51  ;;  %v12810_v55 = vpop.f32.mrb[95].mxu1  ;;  %13147 = vmatprep.subr.bf16.mxu0 %v13598_v0 }
 0x20c   : > { %v4262_v56 = vpop.f32.mrb[96].mxu0 }
 0x20d   : > { %11077 = vst.msk [vmem:[%s14038_s22 + $0x17c] sm:$0xf] %vm10981_vm2, %v12106_v54  ;;  %v12107_v57 = vpack.c.bf16 %v4262_v56, %v4262_v56  ;;  %13132 = vmatmul.mubr.msk.bf16.vlgmr.msra.gmra.mrb[200].mxu1 %vm768_vm1, %v8027_v52  ;;  %v12815_v58 = vpop.f32.mrb[97].mxu0  ;;  %v13557_v54 = vld [vmem:[%s13664_s19 + $0x378] sm:$0xff]  }
 0x20e   : > { %13142 = vmatpush3.bf16.msra.mxu1 %v13548_v53  ;;  %v4265_v59 = vpop.f32.mrb[98].mxu0  ;;  %13143 = vmatprep.mubr.msk.bf16.mxu1 %vm13599_vm0, %v13598_v0  ;;  %v8603_v53 = vpop.trf.xlu1 }
 0x20f   : > { %11078 = vst.msk [vmem:[%s14038_s22 + $0x180] sm:$0xf] %vm10981_vm2, %v12107_v57  ;;  %v12108_v62 = vpack.c.bf16 %v4265_v59, %v4265_v59  ;;  %v12816_v63 = vpop.f32.mrb[99].mxu0  ;;  %13153 = vmatprep.subr.bf16.mxu1 %v13598_v0 }
 0x210   : > { %v4334_v1 = vpop.f32.mrb[96].mxu1 }
 0x211   : > { %11079 = vst.msk [vmem:[%s14038_s22 + $0x184] sm:$0xf] %vm10981_vm2, %v12108_v62  ;;  %v12109_v2 = vpack.c.bf16 %v4334_v1, %v4334_v1  ;;  %v12821_v3 = vpop.f32.mrb[97].mxu1  ;;  %13138 = vmatmul.mubr.msk.bf16.vlgmr.msra.gmra.mrb[204].mxu0 %vm768_vm1, %v8099_v60  ;;  %v13558_v62 = vld [vmem:[%s13664_s19 + $0x380] sm:$0xff]  }
 0x212   : > { %v4337_v4 = vpop.f32.mrb[98].mxu1  ;;  %13148 = vmatpush3.bf16.msra.mxu0 %v13550_v61  ;;  %13149 = vmatprep.mubr.msk.bf16.mxu0 %vm13599_vm0, %v13598_v0  ;;  %v8675_v61 = vpop.trf.xlu0 }
 0x213   : > { %11080 = vst.msk [vmem:[%s14038_s22 + $0x188] sm:$0xf] %vm10981_vm2, %v12109_v2  ;;  %v12110_v7 = vpack.c.bf16 %v4337_v4, %v4337_v4  ;;  %v12822_v8 = vpop.f32.mrb[99].mxu1  ;;  %13159 = vmatprep.subr.bf16.mxu0 %v13598_v0 }
 0x214   : > { %v4406_v9 = vpop.f32.mrb[100].mxu0 }
 0x215   : > { %11081 = vst.msk [vmem:[%s14038_s22 + $0x18c] sm:$0xf] %vm10981_vm2, %v12110_v7  ;;  %v12111_v10 = vpack.c.bf16 %v4406_v9, %v4406_v9  ;;  %13144 = vmatmul.mubr.msk.bf16.vlgmr.msra.gmra.mrb[204].mxu1 %vm768_vm1, %v8171_v5  ;;  %v12827_v11 = vpop.f32.mrb[101].mxu0  ;;  %v13559_v7 = vld [vmem:[%s13664_s19 + $0x388] sm:$0xff]  }
 0x216   : > { %13154 = vmatpush3.bf16.msra.mxu1 %v13551_v6  ;;  %v4409_v12 = vpop.f32.mrb[102].mxu0  ;;  %13155 = vmatprep.mubr.msk.bf16.mxu1 %vm13599_vm0, %v13598_v0  ;;  %v8747_v6 = vpop.trf.xlu1 }
 0x217   : > { %11082 = vst.msk [vmem:[%s14038_s22 + $0x190] sm:$0xf] %vm10981_vm2, %v12111_v10  ;;  %v12112_v15 = vpack.c.bf16 %v4409_v12, %v4409_v12  ;;  %v12828_v16 = vpop.f32.mrb[103].mxu0  ;;  %13165 = vmatprep.subr.bf16.mxu1 %v13598_v0 }
 0x218   : > { %v4478_v17 = vpop.f32.mrb[100].mxu1 }
 0x219   : > { %11083 = vst.msk [vmem:[%s14038_s22 + $0x194] sm:$0xf] %vm10981_vm2, %v12112_v15  ;;  %v12113_v18 = vpack.c.bf16 %v4478_v17, %v4478_v17  ;;  %v12833_v19 = vpop.f32.mrb[101].mxu1  ;;  %13150 = vmatmul.mubr.msk.bf16.vlgmr.msra.gmra.mrb[208].mxu0 %vm768_vm1, %v8243_v13  ;;  %v13560_v15 = vld [vmem:[%s13664_s19 + $0x390] sm:$0xff]  }
 0x21a   : > { %v4481_v20 = vpop.f32.mrb[102].mxu1  ;;  %13160 = vmatpush3.bf16.msra.mxu0 %v13552_v14  ;;  %13161 = vmatprep.mubr.msk.bf16.mxu0 %vm13599_vm0, %v13598_v0  ;;  %v8819_v14 = vpop.trf.xlu0 }
 0x21b   : > { %11084 = vst.msk [vmem:[%s14038_s22 + $0x198] sm:$0xf] %vm10981_vm2, %v12113_v18  ;;  %v12114_v23 = vpack.c.bf16 %v4481_v20, %v4481_v20  ;;  %v12834_v24 = vpop.f32.mrb[103].mxu1  ;;  %13171 = vmatprep.subr.bf16.mxu0 %v13598_v0 }
 0x21c   : > { %v4550_v25 = vpop.f32.mrb[104].mxu0 }
 0x21d   : > { %11085 = vst.msk [vmem:[%s14038_s22 + $0x19c] sm:$0xf] %vm10981_vm2, %v12114_v23  ;;  %v12115_v26 = vpack.c.bf16 %v4550_v25, %v4550_v25  ;;  %13156 = vmatmul.mubr.msk.bf16.vlgmr.msra.gmra.mrb[208].mxu1 %vm768_vm1, %v8315_v21  ;;  %v12839_v27 = vpop.f32.mrb[105].mxu0  ;;  %v13561_v23 = vld [vmem:[%s13664_s19 + $0x398] sm:$0xff]  }
 0x21e   : > { %13166 = vmatpush3.bf16.msra.mxu1 %v13553_v22  ;;  %v4553_v28 = vpop.f32.mrb[106].mxu0  ;;  %13167 = vmatprep.mubr.msk.bf16.mxu1 %vm13599_vm0, %v13598_v0  ;;  %v8891_v22 = vpop.trf.xlu1 }
 0x21f   : > { %11086 = vst.msk [vmem:[%s14038_s22 + $0x1a0] sm:$0xf] %vm10981_vm2, %v12115_v26  ;;  %v12116_v31 = vpack.c.bf16 %v4553_v28, %v4553_v28  ;;  %v12840_v32 = vpop.f32.mrb[107].mxu0  ;;  %13177 = vmatprep.subr.bf16.mxu1 %v13598_v0 }
 0x220   : > { %v4622_v33 = vpop.f32.mrb[104].mxu1 }
 0x221   : > { %11087 = vst.msk [vmem:[%s14038_s22 + $0x1a4] sm:$0xf] %vm10981_vm2, %v12116_v31  ;;  %v12117_v34 = vpack.c.bf16 %v4622_v33, %v4622_v33  ;;  %v12845_v35 = vpop.f32.mrb[105].mxu1  ;;  %13162 = vmatmul.mubr.msk.bf16.vlgmr.msra.gmra.mrb[212].mxu0 %vm768_vm1, %v8387_v29  ;;  %v13562_v31 = vld [vmem:[%s13664_s19 + $0x3a0] sm:$0xff]  }
 0x222   : > { %v4625_v36 = vpop.f32.mrb[106].mxu1  ;;  %13172 = vmatpush3.bf16.msra.mxu0 %v13554_v30  ;;  %13173 = vmatprep.mubr.msk.bf16.mxu0 %vm13599_vm0, %v13598_v0  ;;  %v8963_v30 = vpop.trf.xlu0 }
 0x223   : > { %11088 = vst.msk [vmem:[%s14038_s22 + $0x1a8] sm:$0xf] %vm10981_vm2, %v12117_v34  ;;  %v12118_v39 = vpack.c.bf16 %v4625_v36, %v4625_v36  ;;  %v12846_v40 = vpop.f32.mrb[107].mxu1  ;;  %13183 = vmatprep.subr.bf16.mxu0 %v13598_v0 }
 0x224   : > { %v4694_v41 = vpop.f32.mrb[108].mxu0 }
 0x225   : > { %11089 = vst.msk [vmem:[%s14038_s22 + $0x1ac] sm:$0xf] %vm10981_vm2, %v12118_v39  ;;  %v12119_v42 = vpack.c.bf16 %v4694_v41, %v4694_v41  ;;  %13168 = vmatmul.mubr.msk.bf16.vlgmr.msra.gmra.mrb[212].mxu1 %vm768_vm1, %v8459_v37  ;;  %v12851_v43 = vpop.f32.mrb[109].mxu0  ;;  %v13563_v39 = vld [vmem:[%s13664_s19 + $0x3a8] sm:$0xff]  }
 0x226   : > { %13178 = vmatpush3.bf16.msra.mxu1 %v13555_v38  ;;  %v4697_v44 = vpop.f32.mrb[110].mxu0  ;;  %13179 = vmatprep.mubr.msk.bf16.mxu1 %vm13599_vm0, %v13598_v0  ;;  %v9035_v38 = vpop.trf.xlu1 }
 0x227   : > { %11090 = vst.msk [vmem:[%s14038_s22 + $0x1b0] sm:$0xf] %vm10981_vm2, %v12119_v42  ;;  %v12120_v47 = vpack.c.bf16 %v4697_v44, %v4697_v44  ;;  %v12852_v48 = vpop.f32.mrb[111].mxu0  ;;  %13189 = vmatprep.subr.bf16.mxu1 %v13598_v0 }
 0x228   : > { %v4766_v49 = vpop.f32.mrb[108].mxu1 }
 0x229   : > { %11091 = vst.msk [vmem:[%s14038_s22 + $0x1b4] sm:$0xf] %vm10981_vm2, %v12120_v47  ;;  %v12121_v50 = vpack.c.bf16 %v4766_v49, %v4766_v49  ;;  %v12857_v51 = vpop.f32.mrb[109].mxu1  ;;  %13174 = vmatmul.mubr.msk.bf16.vlgmr.msra.gmra.mrb[216].mxu0 %vm768_vm1, %v8531_v45  ;;  %v13564_v47 = vld [vmem:[%s13664_s19 + $0x3b0] sm:$0xff]  }
 0x22a   : > { %v4769_v52 = vpop.f32.mrb[110].mxu1  ;;  %13184 = vmatpush3.bf16.msra.mxu0 %v13556_v46  ;;  %13185 = vmatprep.mubr.msk.bf16.mxu0 %vm13599_vm0, %v13598_v0  ;;  %v9107_v46 = vpop.trf.xlu0 }
 0x22b   : > { %11092 = vst.msk [vmem:[%s14038_s22 + $0x1b8] sm:$0xf] %vm10981_vm2, %v12121_v50  ;;  %v12122_v55 = vpack.c.bf16 %v4769_v52, %v4769_v52  ;;  %v12858_v56 = vpop.f32.mrb[111].mxu1  ;;  %13195 = vmatprep.subr.bf16.mxu0 %v13598_v0 }
 0x22c   : > { %v4838_v57 = vpop.f32.mrb[112].mxu0 }
 0x22d   : > { %11093 = vst.msk [vmem:[%s14038_s22 + $0x1bc] sm:$0xf] %vm10981_vm2, %v12122_v55  ;;  %v12123_v58 = vpack.c.bf16 %v4838_v57, %v4838_v57  ;;  %13180 = vmatmul.mubr.msk.bf16.vlgmr.msra.gmra.mrb[216].mxu1 %vm768_vm1, %v8603_v53  ;;  %v12863_v59 = vpop.f32.mrb[113].mxu0  ;;  %v13565_v55 = vld [vmem:[%s13664_s19 + $0x3b8] sm:$0xff]  }
 0x22e   : > { %13190 = vmatpush3.bf16.msra.mxu1 %v13557_v54  ;;  %v4841_v60 = vpop.f32.mrb[114].mxu0  ;;  %13191 = vmatprep.mubr.msk.bf16.mxu1 %vm13599_vm0, %v13598_v0  ;;  %v9179_v54 = vpop.trf.xlu1 }
 0x22f   : > { %11094 = vst.msk [vmem:[%s14038_s22 + $0x1c0] sm:$0xf] %vm10981_vm2, %v12123_v58  ;;  %v12124_v63 = vpack.c.bf16 %v4841_v60, %v4841_v60  ;;  %v12864_v1 = vpop.f32.mrb[115].mxu0  ;;  %13201 = vmatprep.subr.bf16.mxu1 %v13598_v0 }
 0x230   : > { %v4910_v2 = vpop.f32.mrb[112].mxu1 }
 0x231   : > { %11095 = vst.msk [vmem:[%s14038_s22 + $0x1c4] sm:$0xf] %vm10981_vm2, %v12124_v63  ;;  %v12125_v3 = vpack.c.bf16 %v4910_v2, %v4910_v2  ;;  %v12869_v4 = vpop.f32.mrb[113].mxu1  ;;  %13186 = vmatmul.mubr.msk.bf16.vlgmr.msra.gmra.mrb[220].mxu0 %vm768_vm1, %v8675_v61  ;;  %v13566_v63 = vld [vmem:[%s13664_s19 + $0x3c0] sm:$0xff]  }
 0x232   : > { %v4913_v5 = vpop.f32.mrb[114].mxu1  ;;  %13196 = vmatpush3.bf16.msra.mxu0 %v13558_v62  ;;  %13197 = vmatprep.mubr.msk.bf16.mxu0 %vm13599_vm0, %v13598_v0  ;;  %v9251_v62 = vpop.trf.xlu0 }
 0x233   : > { %11096 = vst.msk [vmem:[%s14038_s22 + $0x1c8] sm:$0xf] %vm10981_vm2, %v12125_v3  ;;  %v12126_v8 = vpack.c.bf16 %v4913_v5, %v4913_v5  ;;  %v12870_v9 = vpop.f32.mrb[115].mxu1  ;;  %13207 = vmatprep.subr.bf16.mxu0 %v13598_v0 }
 0x234   : > { %v4982_v10 = vpop.f32.mrb[116].mxu0 }
 0x235   : > { %11097 = vst.msk [vmem:[%s14038_s22 + $0x1cc] sm:$0xf] %vm10981_vm2, %v12126_v8  ;;  %v12127_v11 = vpack.c.bf16 %v4982_v10, %v4982_v10  ;;  %13192 = vmatmul.mubr.msk.bf16.vlgmr.msra.gmra.mrb[220].mxu1 %vm768_vm1, %v8747_v6  ;;  %v12875_v12 = vpop.f32.mrb[117].mxu0  ;;  %v13567_v8 = vld [vmem:[%s13664_s19 + $0x3c8] sm:$0xff]  }
 0x236   : > { %13202 = vmatpush3.bf16.msra.mxu1 %v13559_v7  ;;  %v4985_v13 = vpop.f32.mrb[118].mxu0  ;;  %13203 = vmatprep.mubr.msk.bf16.mxu1 %vm13599_vm0, %v13598_v0  ;;  %v9323_v7 = vpop.trf.xlu1 }
 0x237   : > { %11098 = vst.msk [vmem:[%s14038_s22 + $0x1d0] sm:$0xf] %vm10981_vm2, %v12127_v11  ;;  %v12128_v16 = vpack.c.bf16 %v4985_v13, %v4985_v13  ;;  %v12876_v17 = vpop.f32.mrb[119].mxu0  ;;  %13213 = vmatprep.subr.bf16.mxu1 %v13598_v0 }
 0x238   : > { %v5054_v18 = vpop.f32.mrb[116].mxu1 }
 0x239   : > { %11099 = vst.msk [vmem:[%s14038_s22 + $0x1d4] sm:$0xf] %vm10981_vm2, %v12128_v16  ;;  %v12129_v19 = vpack.c.bf16 %v5054_v18, %v5054_v18  ;;  %v12881_v20 = vpop.f32.mrb[117].mxu1  ;;  %13198 = vmatmul.mubr.msk.bf16.vlgmr.msra.gmra.mrb[224].mxu0 %vm768_vm1, %v8819_v14  ;;  %v13568_v16 = vld [vmem:[%s13664_s19 + $0x3d0] sm:$0xff]  }
 0x23a   : > { %v5057_v21 = vpop.f32.mrb[118].mxu1  ;;  %13208 = vmatpush3.bf16.msra.mxu0 %v13560_v15  ;;  %13209 = vmatprep.mubr.msk.bf16.mxu0 %vm13599_vm0, %v13598_v0  ;;  %v9395_v15 = vpop.trf.xlu0 }
 0x23b   : > { %11100 = vst.msk [vmem:[%s14038_s22 + $0x1d8] sm:$0xf] %vm10981_vm2, %v12129_v19  ;;  %v12130_v24 = vpack.c.bf16 %v5057_v21, %v5057_v21  ;;  %v12882_v25 = vpop.f32.mrb[119].mxu1  ;;  %13219 = vmatprep.subr.bf16.mxu0 %v13598_v0 }
 0x23c   : > { %v5126_v26 = vpop.f32.mrb[120].mxu0 }
 0x23d   : > { %11101 = vst.msk [vmem:[%s14038_s22 + $0x1dc] sm:$0xf] %vm10981_vm2, %v12130_v24  ;;  %v12131_v27 = vpack.c.bf16 %v5126_v26, %v5126_v26  ;;  %13204 = vmatmul.mubr.msk.bf16.vlgmr.msra.gmra.mrb[224].mxu1 %vm768_vm1, %v8891_v22  ;;  %v12887_v28 = vpop.f32.mrb[121].mxu0  ;;  %v13569_v24 = vld [vmem:[%s13664_s19 + $0x3d8] sm:$0xff]  }
 0x23e   : > { %13214 = vmatpush3.bf16.msra.mxu1 %v13561_v23  ;;  %v5129_v29 = vpop.f32.mrb[122].mxu0  ;;  %13215 = vmatprep.mubr.msk.bf16.mxu1 %vm13599_vm0, %v13598_v0  ;;  %v9467_v23 = vpop.trf.xlu1 }
 0x23f   : > { %11102 = vst.msk [vmem:[%s14038_s22 + $0x1e0] sm:$0xf] %vm10981_vm2, %v12131_v27  ;;  %v12132_v32 = vpack.c.bf16 %v5129_v29, %v5129_v29  ;;  %v12888_v33 = vpop.f32.mrb[123].mxu0  ;;  %13225 = vmatprep.subr.bf16.mxu1 %v13598_v0 }
 0x240   : > { %v5198_v34 = vpop.f32.mrb[120].mxu1 }
 0x241   : > { %11103 = vst.msk [vmem:[%s14038_s22 + $0x1e4] sm:$0xf] %vm10981_vm2, %v12132_v32  ;;  %v12133_v35 = vpack.c.bf16 %v5198_v34, %v5198_v34  ;;  %v12893_v36 = vpop.f32.mrb[121].mxu1  ;;  %13210 = vmatmul.mubr.msk.bf16.vlgmr.msra.gmra.mrb[228].mxu0 %vm768_vm1, %v8963_v30  ;;  %v13570_v32 = vld [vmem:[%s13664_s19 + $0x3e0] sm:$0xff]  }
 0x242   : > { %v5201_v37 = vpop.f32.mrb[122].mxu1  ;;  %13220 = vmatpush3.bf16.msra.mxu0 %v13562_v31  ;;  %13221 = vmatprep.mubr.msk.bf16.mxu0 %vm13599_vm0, %v13598_v0  ;;  %v9539_v31 = vpop.trf.xlu0 }
 0x243   : > { %11104 = vst.msk [vmem:[%s14038_s22 + $0x1e8] sm:$0xf] %vm10981_vm2, %v12133_v35  ;;  %v12134_v40 = vpack.c.bf16 %v5201_v37, %v5201_v37  ;;  %v12894_v41 = vpop.f32.mrb[123].mxu1  ;;  %13231 = vmatprep.subr.bf16.mxu0 %v13598_v0 }
 0x244   : > { %v5270_v42 = vpop.f32.mrb[124].mxu0 }
 0x245   : > { %11105 = vst.msk [vmem:[%s14038_s22 + $0x1ec] sm:$0xf] %vm10981_vm2, %v12134_v40  ;;  %v12135_v43 = vpack.c.bf16 %v5270_v42, %v5270_v42  ;;  %13216 = vmatmul.mubr.msk.bf16.vlgmr.msra.gmra.mrb[228].mxu1 %vm768_vm1, %v9035_v38  ;;  %v12899_v44 = vpop.f32.mrb[125].mxu0  ;;  %v13571_v40 = vld [vmem:[%s13664_s19 + $0x3e8] sm:$0xff]  }
 0x246   : > { %13226 = vmatpush3.bf16.msra.mxu1 %v13563_v39  ;;  %v5273_v45 = vpop.f32.mrb[126].mxu0  ;;  %13227 = vmatprep.mubr.msk.bf16.mxu1 %vm13599_vm0, %v13598_v0  ;;  %v9611_v39 = vpop.trf.xlu1 }
 0x247   : > { %11106 = vst.msk [vmem:[%s14038_s22 + $0x1f0] sm:$0xf] %vm10981_vm2, %v12135_v43  ;;  %v12136_v48 = vpack.c.bf16 %v5273_v45, %v5273_v45  ;;  %v12900_v49 = vpop.f32.mrb[127].mxu0  ;;  %13237 = vmatprep.subr.bf16.mxu1 %v13598_v0 }
 0x248   : > { %v5342_v50 = vpop.f32.mrb[124].mxu1 }
 0x249   : > { %11107 = vst.msk [vmem:[%s14038_s22 + $0x1f4] sm:$0xf] %vm10981_vm2, %v12136_v48  ;;  %v12137_v51 = vpack.c.bf16 %v5342_v50, %v5342_v50  ;;  %v12905_v52 = vpop.f32.mrb[125].mxu1  ;;  %13222 = vmatmul.mubr.msk.bf16.vlgmr.msra.gmra.mrb[232].mxu0 %vm768_vm1, %v9107_v46  ;;  %v13572_v48 = vld [vmem:[%s13664_s19 + $0x3f0] sm:$0xff]  }
 0x24a   : > { %v5345_v53 = vpop.f32.mrb[126].mxu1  ;;  %13232 = vmatpush3.bf16.msra.mxu0 %v13564_v47  ;;  %13233 = vmatprep.mubr.msk.bf16.mxu0 %vm13599_vm0, %v13598_v0  ;;  %v9683_v47 = vpop.trf.xlu0 }
 0x24b   : > { %11108 = vst.msk [vmem:[%s14038_s22 + $0x1f8] sm:$0xf] %vm10981_vm2, %v12137_v51  ;;  %v12138_v56 = vpack.c.bf16 %v5345_v53, %v5345_v53  ;;  %v12906_v57 = vpop.f32.mrb[127].mxu1  ;;  %13243 = vmatprep.subr.bf16.mxu0 %v13598_v0 }
 0x24c   : > { %v5414_v58 = vpop.f32.mrb[128].mxu0 }
 0x24d   : > { %11109 = vst.msk [vmem:[%s14038_s22 + $0x1fc] sm:$0xf] %vm10981_vm2, %v12138_v56  ;;  %v12139_v59 = vpack.c.bf16 %v5414_v58, %v5414_v58  ;;  %13228 = vmatmul.mubr.msk.bf16.vlgmr.msra.gmra.mrb[232].mxu1 %vm768_vm1, %v9179_v54  ;;  %v12911_v60 = vpop.f32.mrb[129].mxu0  ;;  %v13573_v56 = vld [vmem:[%s13664_s19 + $0x3f8] sm:$0xff]  }
 0x24e   : > { %13238 = vmatpush3.bf16.msra.mxu1 %v13565_v55  ;;  %v5417_v61 = vpop.f32.mrb[130].mxu0  ;;  %13239 = vmatprep.mubr.msk.bf16.mxu1 %vm13599_vm0, %v13598_v0  ;;  %v9755_v55 = vpop.trf.xlu1 }
 0x24f   : > { %11110 = vst.msk [vmem:[%s14038_s22 + $0x200] sm:$0xf] %vm10981_vm2, %v12139_v59  ;;  %v12140_v1 = vpack.c.bf16 %v5417_v61, %v5417_v61  ;;  %v12912_v2 = vpop.f32.mrb[131].mxu0  ;;  %13249 = vmatprep.subr.bf16.mxu1 %v13598_v0 }
 0x250   : > { %v5486_v3 = vpop.f32.mrb[128].mxu1 }
 0x251   : > { %11111 = vst.msk [vmem:[%s14038_s22 + $0x204] sm:$0xf] %vm10981_vm2, %v12140_v1  ;;  %v12141_v4 = vpack.c.bf16 %v5486_v3, %v5486_v3  ;;  %v12917_v5 = vpop.f32.mrb[129].mxu1  ;;  %13234 = vmatmul.mubr.msk.bf16.vlgmr.msra.gmra.mrb[236].mxu0 %vm768_vm1, %v9251_v62 }
 0x252   : > { %v5489_v6 = vpop.f32.mrb[130].mxu1  ;;  %13244 = vmatpush3.bf16.msra.mxu0 %v13566_v63  ;;  %13245 = vmatprep.mubr.msk.bf16.mxu0 %vm13599_vm0, %v13598_v0  ;;  %v9827_v63 = vpop.trf.xlu0 }
 0x253   : > { %11112 = vst.msk [vmem:[%s14038_s22 + $0x208] sm:$0xf] %vm10981_vm2, %v12141_v4  ;;  %v12142_v9 = vpack.c.bf16 %v5489_v6, %v5489_v6  ;;  %v12918_v10 = vpop.f32.mrb[131].mxu1  ;;  %13255 = vmatprep.subr.bf16.mxu0 %v13598_v0 }
 0x254   : > { %v5558_v11 = vpop.f32.mrb[132].mxu0 }
 0x255   : > { %11113 = vst.msk [vmem:[%s14038_s22 + $0x20c] sm:$0xf] %vm10981_vm2, %v12142_v9  ;;  %v12143_v12 = vpack.c.bf16 %v5558_v11, %v5558_v11  ;;  %13240 = vmatmul.mubr.msk.bf16.vlgmr.msra.gmra.mrb[236].mxu1 %vm768_vm1, %v9323_v7  ;;  %v12923_v13 = vpop.f32.mrb[133].mxu0  ;;  %v9899_v7 = vpop.trf.xlu1 }
 0x256   : > { %13250 = vmatpush3.bf16.msra.mxu1 %v13567_v8  ;;  %v5561_v14 = vpop.f32.mrb[134].mxu0  ;;  %13251 = vmatprep.mubr.msk.bf16.mxu1 %vm13599_vm0, %v13598_v0 }
 0x257   : > { %11114 = vst.msk [vmem:[%s14038_s22 + $0x210] sm:$0xf] %vm10981_vm2, %v12143_v12  ;;  %v12144_v17 = vpack.c.bf16 %v5561_v14, %v5561_v14  ;;  %v12924_v18 = vpop.f32.mrb[135].mxu0  ;;  %13261 = vmatprep.subr.bf16.mxu1 %v13598_v0 }
 0x258   : > { %v5630_v19 = vpop.f32.mrb[132].mxu1 }
 0x259   : > { %11115 = vst.msk [vmem:[%s14038_s22 + $0x214] sm:$0xf] %vm10981_vm2, %v12144_v17  ;;  %v12145_v20 = vpack.c.bf16 %v5630_v19, %v5630_v19  ;;  %v12929_v21 = vpop.f32.mrb[133].mxu1  ;;  %13246 = vmatmul.mubr.msk.bf16.vlgmr.msra.gmra.mrb[240].mxu0 %vm768_vm1, %v9395_v15 }
 0x25a   : > { %v5633_v22 = vpop.f32.mrb[134].mxu1  ;;  %13256 = vmatpush3.bf16.msra.mxu0 %v13568_v16  ;;  %13257 = vmatprep.mubr.msk.bf16.mxu0 %vm13599_vm0, %v13598_v0 }
 0x25b   : > { %11116 = vst.msk [vmem:[%s14038_s22 + $0x218] sm:$0xf] %vm10981_vm2, %v12145_v20  ;;  %v12146_v25 = vpack.c.bf16 %v5633_v22, %v5633_v22  ;;  %v12930_v26 = vpop.f32.mrb[135].mxu1  ;;  %13267 = vmatprep.subr.bf16.mxu0 %v13598_v0 }
 0x25c   : > { %v5702_v27 = vpop.f32.mrb[136].mxu0 }
 0x25d   : > { %11117 = vst.msk [vmem:[%s14038_s22 + $0x21c] sm:$0xf] %vm10981_vm2, %v12146_v25  ;;  %v12147_v28 = vpack.c.bf16 %v5702_v27, %v5702_v27  ;;  %13252 = vmatmul.mubr.msk.bf16.vlgmr.msra.gmra.mrb[240].mxu1 %vm768_vm1, %v9467_v23  ;;  %v12935_v29 = vpop.f32.mrb[137].mxu0 }
 0x25e   : > { %13262 = vmatpush3.bf16.msra.mxu1 %v13569_v24  ;;  %v5705_v30 = vpop.f32.mrb[138].mxu0  ;;  %13263 = vmatprep.mubr.msk.bf16.mxu1 %vm13599_vm0, %v13598_v0 }
 0x25f   : > { %11118 = vst.msk [vmem:[%s14038_s22 + $0x220] sm:$0xf] %vm10981_vm2, %v12147_v28  ;;  %v12148_v33 = vpack.c.bf16 %v5705_v30, %v5705_v30  ;;  %v12936_v34 = vpop.f32.mrb[139].mxu0  ;;  %13273 = vmatprep.subr.bf16.mxu1 %v13598_v0 }
 0x260   : > { %v5774_v35 = vpop.f32.mrb[136].mxu1 }
 0x261   : > { %11119 = vst.msk [vmem:[%s14038_s22 + $0x224] sm:$0xf] %vm10981_vm2, %v12148_v33  ;;  %v12149_v36 = vpack.c.bf16 %v5774_v35, %v5774_v35  ;;  %v12941_v37 = vpop.f32.mrb[137].mxu1  ;;  %13258 = vmatmul.mubr.msk.bf16.vlgmr.msra.gmra.mrb[244].mxu0 %vm768_vm1, %v9539_v31 }
 0x262   : > { %v5777_v38 = vpop.f32.mrb[138].mxu1  ;;  %13268 = vmatpush3.bf16.msra.mxu0 %v13570_v32  ;;  %13269 = vmatprep.mubr.msk.bf16.mxu0 %vm13599_vm0, %v13598_v0 }
 0x263   : > { %11120 = vst.msk [vmem:[%s14038_s22 + $0x228] sm:$0xf] %vm10981_vm2, %v12149_v36  ;;  %v12150_v41 = vpack.c.bf16 %v5777_v38, %v5777_v38  ;;  %v12942_v42 = vpop.f32.mrb[139].mxu1  ;;  %13279 = vmatprep.subr.bf16.mxu0 %v13598_v0 }
 0x264   : > { %v5846_v43 = vpop.f32.mrb[140].mxu0 }
 0x265   : > { %11121 = vst.msk [vmem:[%s14038_s22 + $0x22c] sm:$0xf] %vm10981_vm2, %v12150_v41  ;;  %v12151_v44 = vpack.c.bf16 %v5846_v43, %v5846_v43  ;;  %13264 = vmatmul.mubr.msk.bf16.vlgmr.msra.gmra.mrb[244].mxu1 %vm768_vm1, %v9611_v39  ;;  %v12947_v45 = vpop.f32.mrb[141].mxu0 }
 0x266   : > { %13274 = vmatpush3.bf16.msra.mxu1 %v13571_v40  ;;  %v5849_v46 = vpop.f32.mrb[142].mxu0  ;;  %13275 = vmatprep.mubr.msk.bf16.mxu1 %vm13599_vm0, %v13598_v0 }
 0x267   : > { %11122 = vst.msk [vmem:[%s14038_s22 + $0x230] sm:$0xf] %vm10981_vm2, %v12151_v44  ;;  %v12152_v49 = vpack.c.bf16 %v5849_v46, %v5849_v46  ;;  %v12948_v50 = vpop.f32.mrb[143].mxu0  ;;  %13285 = vmatprep.subr.bf16.mxu1 %v13598_v0 }
 0x268   : > { %v5918_v51 = vpop.f32.mrb[140].mxu1 }
 0x269   : > { %11123 = vst.msk [vmem:[%s14038_s22 + $0x234] sm:$0xf] %vm10981_vm2, %v12152_v49  ;;  %v12153_v52 = vpack.c.bf16 %v5918_v51, %v5918_v51  ;;  %v12953_v53 = vpop.f32.mrb[141].mxu1  ;;  %13270 = vmatmul.mubr.msk.bf16.vlgmr.msra.gmra.mrb[248].mxu0 %vm768_vm1, %v9683_v47 }
 0x26a   : > { %v5921_v54 = vpop.f32.mrb[142].mxu1  ;;  %13280 = vmatpush3.bf16.msra.mxu0 %v13572_v48  ;;  %13281 = vmatprep.mubr.msk.bf16.mxu0 %vm13599_vm0, %v13598_v0 }
 0x26b   : > { %11124 = vst.msk [vmem:[%s14038_s22 + $0x238] sm:$0xf] %vm10981_vm2, %v12153_v52  ;;  %v12154_v57 = vpack.c.bf16 %v5921_v54, %v5921_v54  ;;  %v12954_v58 = vpop.f32.mrb[143].mxu1 }
 0x26c   : > { %v5990_v59 = vpop.f32.mrb[144].mxu0 }
 0x26d   : > { %11125 = vst.msk [vmem:[%s14038_s22 + $0x23c] sm:$0xf] %vm10981_vm2, %v12154_v57  ;;  %v12155_v60 = vpack.c.bf16 %v5990_v59, %v5990_v59  ;;  %13276 = vmatmul.mubr.msk.bf16.vlgmr.msra.gmra.mrb[248].mxu1 %vm768_vm1, %v9755_v55  ;;  %v12959_v61 = vpop.f32.mrb[145].mxu0 }
 0x26e   : > { %13286 = vmatpush3.bf16.msra.mxu1 %v13573_v56  ;;  %v5993_v62 = vpop.f32.mrb[146].mxu0  ;;  %13287 = vmatprep.mubr.msk.bf16.mxu1 %vm13599_vm0, %v13598_v0 }
 0x26f   : > { %11126 = vst.msk [vmem:[%s14038_s22 + $0x240] sm:$0xf] %vm10981_vm2, %v12155_v60  ;;  %v12156_v1 = vpack.c.bf16 %v5993_v62, %v5993_v62  ;;  %v12960_v2 = vpop.f32.mrb[147].mxu0 }
 0x270   : > { %v6062_v3 = vpop.f32.mrb[144].mxu1 }
 0x271   : > { %11127 = vst.msk [vmem:[%s14038_s22 + $0x244] sm:$0xf] %vm10981_vm2, %v12156_v1  ;;  %v12157_v4 = vpack.c.bf16 %v6062_v3, %v6062_v3  ;;  %v12965_v5 = vpop.f32.mrb[145].mxu1  ;;  %13282 = vmatmul.mubr.msk.bf16.vlgmr.msra.gmra.mrb[252].mxu0 %vm768_vm1, %v9827_v63 }
 0x272   : > { %v6065_v6 = vpop.f32.mrb[146].mxu1 }
 0x273   : > { %11128 = vst.msk [vmem:[%s14038_s22 + $0x248] sm:$0xf] %vm10981_vm2, %v12157_v4  ;;  %v12158_v8 = vpack.c.bf16 %v6065_v6, %v6065_v6  ;;  %v12966_v0 = vpop.f32.mrb[147].mxu1 }
 0x274   : > { %v6134_v9 = vpop.f32.mrb[148].mxu0 }
 0x275   : > { %11129 = vst.msk [vmem:[%s14038_s22 + $0x24c] sm:$0xf] %vm10981_vm2, %v12158_v8  ;;  %v12159_v10 = vpack.c.bf16 %v6134_v9, %v6134_v9  ;;  %13288 = vmatmul.mubr.msk.bf16.vlgmr.msra.gmra.mrb[252].mxu1 %vm768_vm1, %v9899_v7  ;;  %v12971_v11 = vpop.f32.mrb[149].mxu0 }
 0x276   : > { %v6137_v12 = vpop.f32.mrb[150].mxu0 }
 0x277   : > { %11130 = vst.msk [vmem:[%s14038_s22 + $0x250] sm:$0xf] %vm10981_vm2, %v12159_v10  ;;  %v12160_v13 = vpack.c.bf16 %v6137_v12, %v6137_v12  ;;  %v12972_v14 = vpop.f32.mrb[151].mxu0 }
 0x278   : > { %v6206_v15 = vpop.f32.mrb[148].mxu1 }
 0x279   : > { %11131 = vst.msk [vmem:[%s14038_s22 + $0x254] sm:$0xf] %vm10981_vm2, %v12160_v13  ;;  %v12161_v16 = vpack.c.bf16 %v6206_v15, %v6206_v15  ;;  %v12977_v17 = vpop.f32.mrb[149].mxu1 }
 0x27a   : > { %v6209_v18 = vpop.f32.mrb[150].mxu1 }
 0x27b   : > { %11132 = vst.msk [vmem:[%s14038_s22 + $0x258] sm:$0xf] %vm10981_vm2, %v12161_v16  ;;  %v12162_v19 = vpack.c.bf16 %v6209_v18, %v6209_v18  ;;  %v12978_v20 = vpop.f32.mrb[151].mxu1 }
 0x27c   : > { %v6278_v21 = vpop.f32.mrb[152].mxu0 }
 0x27d   : > { %11133 = vst.msk [vmem:[%s14038_s22 + $0x25c] sm:$0xf] %vm10981_vm2, %v12162_v19  ;;  %v12163_v22 = vpack.c.bf16 %v6278_v21, %v6278_v21  ;;  %v12983_v23 = vpop.f32.mrb[153].mxu0 }
 0x27e   : > { %v6281_v24 = vpop.f32.mrb[154].mxu0 }
 0x27f   : > { %11134 = vst.msk [vmem:[%s14038_s22 + $0x260] sm:$0xf] %vm10981_vm2, %v12163_v22  ;;  %v12164_v25 = vpack.c.bf16 %v6281_v24, %v6281_v24  ;;  %v12984_v26 = vpop.f32.mrb[155].mxu0 }
 0x280   : > { %v6350_v27 = vpop.f32.mrb[152].mxu1 }
 0x281   : > { %11135 = vst.msk [vmem:[%s14038_s22 + $0x264] sm:$0xf] %vm10981_vm2, %v12164_v25  ;;  %v12165_v28 = vpack.c.bf16 %v6350_v27, %v6350_v27  ;;  %v12989_v29 = vpop.f32.mrb[153].mxu1 }
 0x282   : > { %v6353_v30 = vpop.f32.mrb[154].mxu1 }
 0x283   : > { %11136 = vst.msk [vmem:[%s14038_s22 + $0x268] sm:$0xf] %vm10981_vm2, %v12165_v28  ;;  %v12166_v31 = vpack.c.bf16 %v6353_v30, %v6353_v30  ;;  %v12990_v32 = vpop.f32.mrb[155].mxu1 }
 0x284   : > { %v6422_v33 = vpop.f32.mrb[156].mxu0 }
 0x285   : > { %11137 = vst.msk [vmem:[%s14038_s22 + $0x26c] sm:$0xf] %vm10981_vm2, %v12166_v31  ;;  %v12167_v34 = vpack.c.bf16 %v6422_v33, %v6422_v33  ;;  %v12995_v35 = vpop.f32.mrb[157].mxu0 }
 0x286   : > { %v6425_v36 = vpop.f32.mrb[158].mxu0 }
 0x287   : > { %11138 = vst.msk [vmem:[%s14038_s22 + $0x270] sm:$0xf] %vm10981_vm2, %v12167_v34  ;;  %v12168_v37 = vpack.c.bf16 %v6425_v36, %v6425_v36  ;;  %v12996_v38 = vpop.f32.mrb[159].mxu0 }
 0x288   : > { %v6494_v39 = vpop.f32.mrb[156].mxu1 }
 0x289   : > { %11139 = vst.msk [vmem:[%s14038_s22 + $0x274] sm:$0xf] %vm10981_vm2, %v12168_v37  ;;  %v12169_v40 = vpack.c.bf16 %v6494_v39, %v6494_v39  ;;  %v13001_v41 = vpop.f32.mrb[157].mxu1 }
 0x28a   : > { %v6497_v42 = vpop.f32.mrb[158].mxu1 }
 0x28b   : > { %11140 = vst.msk [vmem:[%s14038_s22 + $0x278] sm:$0xf] %vm10981_vm2, %v12169_v40  ;;  %v12170_v43 = vpack.c.bf16 %v6497_v42, %v6497_v42  ;;  %v13002_v44 = vpop.f32.mrb[159].mxu1 }
 0x28c   : > { %v6566_v45 = vpop.f32.mrb[160].mxu0 }
 0x28d   : > { %11141 = vst.msk [vmem:[%s14038_s22 + $0x27c] sm:$0xf] %vm10981_vm2, %v12170_v43  ;;  %v12171_v46 = vpack.c.bf16 %v6566_v45, %v6566_v45  ;;  %v13007_v47 = vpop.f32.mrb[161].mxu0 }
 0x28e   : > { %v6569_v48 = vpop.f32.mrb[162].mxu0 }
 0x28f   : > { %11142 = vst.msk [vmem:[%s14038_s22 + $0x280] sm:$0xf] %vm10981_vm2, %v12171_v46  ;;  %v12172_v49 = vpack.c.bf16 %v6569_v48, %v6569_v48  ;;  %v13008_v50 = vpop.f32.mrb[163].mxu0 }
 0x290   : > { %v6638_v51 = vpop.f32.mrb[160].mxu1 }
 0x291   : > { %11143 = vst.msk [vmem:[%s14038_s22 + $0x284] sm:$0xf] %vm10981_vm2, %v12172_v49  ;;  %v12173_v52 = vpack.c.bf16 %v6638_v51, %v6638_v51  ;;  %v13013_v53 = vpop.f32.mrb[161].mxu1 }
 0x292   : > { %v6641_v54 = vpop.f32.mrb[162].mxu1 }
 0x293   : > { %11144 = vst.msk [vmem:[%s14038_s22 + $0x288] sm:$0xf] %vm10981_vm2, %v12173_v52  ;;  %v12174_v55 = vpack.c.bf16 %v6641_v54, %v6641_v54  ;;  %v13014_v56 = vpop.f32.mrb[163].mxu1 }
 0x294   : > { %v6710_v57 = vpop.f32.mrb[164].mxu0 }
 0x295   : > { %11145 = vst.msk [vmem:[%s14038_s22 + $0x28c] sm:$0xf] %vm10981_vm2, %v12174_v55  ;;  %v12175_v58 = vpack.c.bf16 %v6710_v57, %v6710_v57  ;;  %v13019_v59 = vpop.f32.mrb[165].mxu0 }
 0x296   : > { %v6713_v60 = vpop.f32.mrb[166].mxu0 }
 0x297   : > { %11146 = vst.msk [vmem:[%s14038_s22 + $0x290] sm:$0xf] %vm10981_vm2, %v12175_v58  ;;  %v12176_v61 = vpack.c.bf16 %v6713_v60, %v6713_v60  ;;  %v13020_v62 = vpop.f32.mrb[167].mxu0 }
 0x298   : > { %v6782_v63 = vpop.f32.mrb[164].mxu1 }
 0x299   : > { %11147 = vst.msk [vmem:[%s14038_s22 + $0x294] sm:$0xf] %vm10981_vm2, %v12176_v61  ;;  %v12177_v1 = vpack.c.bf16 %v6782_v63, %v6782_v63  ;;  %v13025_v2 = vpop.f32.mrb[165].mxu1 }
 0x29a   : > { %v6785_v3 = vpop.f32.mrb[166].mxu1 }
 0x29b   : > { %11148 = vst.msk [vmem:[%s14038_s22 + $0x298] sm:$0xf] %vm10981_vm2, %v12177_v1  ;;  %v12178_v4 = vpack.c.bf16 %v6785_v3, %v6785_v3  ;;  %v13026_v5 = vpop.f32.mrb[167].mxu1 }
 0x29c   : > { %v6854_v6 = vpop.f32.mrb[168].mxu0 }
 0x29d   : > { %11149 = vst.msk [vmem:[%s14038_s22 + $0x29c] sm:$0xf] %vm10981_vm2, %v12178_v4  ;;  %v12179_v7 = vpack.c.bf16 %v6854_v6, %v6854_v6  ;;  %v13031_v8 = vpop.f32.mrb[169].mxu0 }
 0x29e   : > { %v6857_v0 = vpop.f32.mrb[170].mxu0 }
 0x29f   : > { %11150 = vst.msk [vmem:[%s14038_s22 + $0x2a0] sm:$0xf] %vm10981_vm2, %v12179_v7  ;;  %v12180_v9 = vpack.c.bf16 %v6857_v0, %v6857_v0  ;;  %v13032_v10 = vpop.f32.mrb[171].mxu0 }
 0x2a0   : > { %v6926_v11 = vpop.f32.mrb[168].mxu1 }
 0x2a1   : > { %11151 = vst.msk [vmem:[%s14038_s22 + $0x2a4] sm:$0xf] %vm10981_vm2, %v12180_v9  ;;  %v12181_v12 = vpack.c.bf16 %v6926_v11, %v6926_v11  ;;  %v13037_v13 = vpop.f32.mrb[169].mxu1 }
 0x2a2   : > { %v6929_v14 = vpop.f32.mrb[170].mxu1 }
 0x2a3   : > { %11152 = vst.msk [vmem:[%s14038_s22 + $0x2a8] sm:$0xf] %vm10981_vm2, %v12181_v12  ;;  %v12182_v15 = vpack.c.bf16 %v6929_v14, %v6929_v14  ;;  %v13038_v16 = vpop.f32.mrb[171].mxu1 }
 0x2a4   : > { %v6998_v17 = vpop.f32.mrb[172].mxu0 }
 0x2a5   : > { %11153 = vst.msk [vmem:[%s14038_s22 + $0x2ac] sm:$0xf] %vm10981_vm2, %v12182_v15  ;;  %v12183_v18 = vpack.c.bf16 %v6998_v17, %v6998_v17  ;;  %v13043_v19 = vpop.f32.mrb[173].mxu0 }
 0x2a6   : > { %v7001_v20 = vpop.f32.mrb[174].mxu0 }
 0x2a7   : > { %11154 = vst.msk [vmem:[%s14038_s22 + $0x2b0] sm:$0xf] %vm10981_vm2, %v12183_v18  ;;  %v12184_v21 = vpack.c.bf16 %v7001_v20, %v7001_v20  ;;  %v13044_v22 = vpop.f32.mrb[175].mxu0 }
 0x2a8   : > { %v7070_v23 = vpop.f32.mrb[172].mxu1 }
 0x2a9   : > { %11155 = vst.msk [vmem:[%s14038_s22 + $0x2b4] sm:$0xf] %vm10981_vm2, %v12184_v21  ;;  %v12185_v24 = vpack.c.bf16 %v7070_v23, %v7070_v23  ;;  %v13049_v25 = vpop.f32.mrb[173].mxu1 }
 0x2aa   : > { %v7073_v26 = vpop.f32.mrb[174].mxu1 }
 0x2ab   : > { %11156 = vst.msk [vmem:[%s14038_s22 + $0x2b8] sm:$0xf] %vm10981_vm2, %v12185_v24  ;;  %v12186_v27 = vpack.c.bf16 %v7073_v26, %v7073_v26  ;;  %v13050_v28 = vpop.f32.mrb[175].mxu1 }
 0x2ac   : > { %v7142_v29 = vpop.f32.mrb[176].mxu0 }
 0x2ad   : > { %11157 = vst.msk [vmem:[%s14038_s22 + $0x2bc] sm:$0xf] %vm10981_vm2, %v12186_v27  ;;  %v12187_v30 = vpack.c.bf16 %v7142_v29, %v7142_v29  ;;  %v13055_v31 = vpop.f32.mrb[177].mxu0 }
 0x2ae   : > { %v7145_v32 = vpop.f32.mrb[178].mxu0 }
 0x2af   : > { %11158 = vst.msk [vmem:[%s14038_s22 + $0x2c0] sm:$0xf] %vm10981_vm2, %v12187_v30  ;;  %v12188_v33 = vpack.c.bf16 %v7145_v32, %v7145_v32  ;;  %v13056_v34 = vpop.f32.mrb[179].mxu0 }
 0x2b0   : > { %v7214_v35 = vpop.f32.mrb[176].mxu1 }
 0x2b1   : > { %11159 = vst.msk [vmem:[%s14038_s22 + $0x2c4] sm:$0xf] %vm10981_vm2, %v12188_v33  ;;  %v12189_v36 = vpack.c.bf16 %v7214_v35, %v7214_v35  ;;  %v13061_v37 = vpop.f32.mrb[177].mxu1 }
 0x2b2   : > { %v7217_v38 = vpop.f32.mrb[178].mxu1 }
 0x2b3   : > { %11160 = vst.msk [vmem:[%s14038_s22 + $0x2c8] sm:$0xf] %vm10981_vm2, %v12189_v36  ;;  %v12190_v39 = vpack.c.bf16 %v7217_v38, %v7217_v38  ;;  %v13062_v40 = vpop.f32.mrb[179].mxu1 }
 0x2b4   : > { %v7286_v41 = vpop.f32.mrb[180].mxu0 }
 0x2b5   : > { %11161 = vst.msk [vmem:[%s14038_s22 + $0x2cc] sm:$0xf] %vm10981_vm2, %v12190_v39  ;;  %v12191_v42 = vpack.c.bf16 %v7286_v41, %v7286_v41  ;;  %v13067_v43 = vpop.f32.mrb[181].mxu0 }
 0x2b6   : > { %v7289_v44 = vpop.f32.mrb[182].mxu0 }
 0x2b7   : > { %11162 = vst.msk [vmem:[%s14038_s22 + $0x2d0] sm:$0xf] %vm10981_vm2, %v12191_v42  ;;  %v12192_v45 = vpack.c.bf16 %v7289_v44, %v7289_v44  ;;  %v13068_v46 = vpop.f32.mrb[183].mxu0 }
 0x2b8   : > { %v7358_v47 = vpop.f32.mrb[180].mxu1 }
 0x2b9   : > { %11163 = vst.msk [vmem:[%s14038_s22 + $0x2d4] sm:$0xf] %vm10981_vm2, %v12192_v45  ;;  %v12193_v48 = vpack.c.bf16 %v7358_v47, %v7358_v47  ;;  %v13073_v49 = vpop.f32.mrb[181].mxu1 }
 0x2ba   : > { %v7361_v50 = vpop.f32.mrb[182].mxu1 }
 0x2bb   : > { %11164 = vst.msk [vmem:[%s14038_s22 + $0x2d8] sm:$0xf] %vm10981_vm2, %v12193_v48  ;;  %v12194_v51 = vpack.c.bf16 %v7361_v50, %v7361_v50  ;;  %v13074_v52 = vpop.f32.mrb[183].mxu1 }
 0x2bc   : > { %v7430_v53 = vpop.f32.mrb[184].mxu0 }
 0x2bd   : > { %11165 = vst.msk [vmem:[%s14038_s22 + $0x2dc] sm:$0xf] %vm10981_vm2, %v12194_v51  ;;  %v12195_v54 = vpack.c.bf16 %v7430_v53, %v7430_v53  ;;  %v13079_v55 = vpop.f32.mrb[185].mxu0 }
 0x2be   : > { %v7433_v56 = vpop.f32.mrb[186].mxu0 }
 0x2bf   : > { %11166 = vst.msk [vmem:[%s14038_s22 + $0x2e0] sm:$0xf] %vm10981_vm2, %v12195_v54  ;;  %v12196_v57 = vpack.c.bf16 %v7433_v56, %v7433_v56  ;;  %v13080_v58 = vpop.f32.mrb[187].mxu0 }
 0x2c0   : > { %v7502_v59 = vpop.f32.mrb[184].mxu1 }
 0x2c1   : > { %11167 = vst.msk [vmem:[%s14038_s22 + $0x2e4] sm:$0xf] %vm10981_vm2, %v12196_v57  ;;  %v12197_v60 = vpack.c.bf16 %v7502_v59, %v7502_v59  ;;  %v13085_v61 = vpop.f32.mrb[185].mxu1 }
 0x2c2   : > { %v7505_v62 = vpop.f32.mrb[186].mxu1 }
 0x2c3   : > { %11168 = vst.msk [vmem:[%s14038_s22 + $0x2e8] sm:$0xf] %vm10981_vm2, %v12197_v60  ;;  %v12198_v63 = vpack.c.bf16 %v7505_v62, %v7505_v62  ;;  %v13086_v1 = vpop.f32.mrb[187].mxu1 }
 0x2c4   : > { %v7574_v2 = vpop.f32.mrb[188].mxu0 }
 0x2c5   : > { %11169 = vst.msk [vmem:[%s14038_s22 + $0x2ec] sm:$0xf] %vm10981_vm2, %v12198_v63  ;;  %v12199_v3 = vpack.c.bf16 %v7574_v2, %v7574_v2  ;;  %v13091_v4 = vpop.f32.mrb[189].mxu0 }
 0x2c6   : > { %v7577_v5 = vpop.f32.mrb[190].mxu0 }
 0x2c7   : > { %11170 = vst.msk [vmem:[%s14038_s22 + $0x2f0] sm:$0xf] %vm10981_vm2, %v12199_v3  ;;  %v12200_v6 = vpack.c.bf16 %v7577_v5, %v7577_v5  ;;  %v13092_v7 = vpop.f32.mrb[191].mxu0 }
 0x2c8   : > { %v7646_v8 = vpop.f32.mrb[188].mxu1 }
 0x2c9   : > { %11171 = vst.msk [vmem:[%s14038_s22 + $0x2f4] sm:$0xf] %vm10981_vm2, %v12200_v6  ;;  %v12201_v0 = vpack.c.bf16 %v7646_v8, %v7646_v8  ;;  %v13097_v9 = vpop.f32.mrb[189].mxu1 }
 0x2ca   : > { %v7649_v10 = vpop.f32.mrb[190].mxu1 }
 0x2cb   : > { %11172 = vst.msk [vmem:[%s14038_s22 + $0x2f8] sm:$0xf] %vm10981_vm2, %v12201_v0  ;;  %v12202_v11 = vpack.c.bf16 %v7649_v10, %v7649_v10  ;;  %v13098_v12 = vpop.f32.mrb[191].mxu1 }
 0x2cc   : > { %v7718_v13 = vpop.f32.mrb[192].mxu0 }
 0x2cd   : > { %11173 = vst.msk [vmem:[%s14038_s22 + $0x2fc] sm:$0xf] %vm10981_vm2, %v12202_v11  ;;  %v12203_v14 = vpack.c.bf16 %v7718_v13, %v7718_v13  ;;  %v13103_v15 = vpop.f32.mrb[193].mxu0 }
 0x2ce   : > { %v7721_v16 = vpop.f32.mrb[194].mxu0 }
 0x2cf   : > { %11174 = vst.msk [vmem:[%s14038_s22 + $0x300] sm:$0xf] %vm10981_vm2, %v12203_v14  ;;  %v12204_v17 = vpack.c.bf16 %v7721_v16, %v7721_v16  ;;  %v13104_v18 = vpop.f32.mrb[195].mxu0 }
 0x2d0   : > { %v7790_v19 = vpop.f32.mrb[192].mxu1 }
 0x2d1   : > { %11175 = vst.msk [vmem:[%s14038_s22 + $0x304] sm:$0xf] %vm10981_vm2, %v12204_v17  ;;  %v12205_v20 = vpack.c.bf16 %v7790_v19, %v7790_v19  ;;  %v13109_v21 = vpop.f32.mrb[193].mxu1 }
 0x2d2   : > { %v7793_v22 = vpop.f32.mrb[194].mxu1 }
 0x2d3   : > { %11176 = vst.msk [vmem:[%s14038_s22 + $0x308] sm:$0xf] %vm10981_vm2, %v12205_v20  ;;  %v12206_v23 = vpack.c.bf16 %v7793_v22, %v7793_v22  ;;  %v13110_v24 = vpop.f32.mrb[195].mxu1 }
 0x2d4   : > { %v7862_v25 = vpop.f32.mrb[196].mxu0 }
 0x2d5   : > { %11177 = vst.msk [vmem:[%s14038_s22 + $0x30c] sm:$0xf] %vm10981_vm2, %v12206_v23  ;;  %v12207_v26 = vpack.c.bf16 %v7862_v25, %v7862_v25  ;;  %v13115_v27 = vpop.f32.mrb[197].mxu0 }
 0x2d6   : > { %v7865_v28 = vpop.f32.mrb[198].mxu0 }
 0x2d7   : > { %11178 = vst.msk [vmem:[%s14038_s22 + $0x310] sm:$0xf] %vm10981_vm2, %v12207_v26  ;;  %v12208_v29 = vpack.c.bf16 %v7865_v28, %v7865_v28  ;;  %v13116_v30 = vpop.f32.mrb[199].mxu0 }
 0x2d8   : > { %v7934_v31 = vpop.f32.mrb[196].mxu1 }
 0x2d9   : > { %11179 = vst.msk [vmem:[%s14038_s22 + $0x314] sm:$0xf] %vm10981_vm2, %v12208_v29  ;;  %v12209_v32 = vpack.c.bf16 %v7934_v31, %v7934_v31  ;;  %v13121_v33 = vpop.f32.mrb[197].mxu1 }
 0x2da   : > { %v7937_v34 = vpop.f32.mrb[198].mxu1 }
 0x2db   : > { %11180 = vst.msk [vmem:[%s14038_s22 + $0x318] sm:$0xf] %vm10981_vm2, %v12209_v32  ;;  %v12210_v35 = vpack.c.bf16 %v7937_v34, %v7937_v34  ;;  %v13122_v36 = vpop.f32.mrb[199].mxu1 }
 0x2dc   : > { %v8006_v37 = vpop.f32.mrb[200].mxu0 }
 0x2dd   : > { %11181 = vst.msk [vmem:[%s14038_s22 + $0x31c] sm:$0xf] %vm10981_vm2, %v12210_v35  ;;  %v12211_v38 = vpack.c.bf16 %v8006_v37, %v8006_v37  ;;  %v13127_v39 = vpop.f32.mrb[201].mxu0 }
 0x2de   : > { %v8009_v40 = vpop.f32.mrb[202].mxu0 }
 0x2df   : > { %11182 = vst.msk [vmem:[%s14038_s22 + $0x320] sm:$0xf] %vm10981_vm2, %v12211_v38  ;;  %v12212_v41 = vpack.c.bf16 %v8009_v40, %v8009_v40  ;;  %v13128_v42 = vpop.f32.mrb[203].mxu0 }
 0x2e0   : > { %v8078_v43 = vpop.f32.mrb[200].mxu1 }
 0x2e1   : > { %11183 = vst.msk [vmem:[%s14038_s22 + $0x324] sm:$0xf] %vm10981_vm2, %v12212_v41  ;;  %v12213_v44 = vpack.c.bf16 %v8078_v43, %v8078_v43  ;;  %v13133_v45 = vpop.f32.mrb[201].mxu1 }
 0x2e2   : > { %v8081_v46 = vpop.f32.mrb[202].mxu1 }
 0x2e3   : > { %11184 = vst.msk [vmem:[%s14038_s22 + $0x328] sm:$0xf] %vm10981_vm2, %v12213_v44  ;;  %v12214_v47 = vpack.c.bf16 %v8081_v46, %v8081_v46  ;;  %v13134_v48 = vpop.f32.mrb[203].mxu1 }
 0x2e4   : > { %v8150_v49 = vpop.f32.mrb[204].mxu0 }
 0x2e5   : > { %11185 = vst.msk [vmem:[%s14038_s22 + $0x32c] sm:$0xf] %vm10981_vm2, %v12214_v47  ;;  %v12215_v50 = vpack.c.bf16 %v8150_v49, %v8150_v49  ;;  %v13139_v51 = vpop.f32.mrb[205].mxu0 }
 0x2e6   : > { %v8153_v52 = vpop.f32.mrb[206].mxu0 }
 0x2e7   : > { %11186 = vst.msk [vmem:[%s14038_s22 + $0x330] sm:$0xf] %vm10981_vm2, %v12215_v50  ;;  %v12216_v53 = vpack.c.bf16 %v8153_v52, %v8153_v52  ;;  %v13140_v54 = vpop.f32.mrb[207].mxu0 }
 0x2e8   : > { %v8222_v55 = vpop.f32.mrb[204].mxu1 }
 0x2e9   : > { %11187 = vst.msk [vmem:[%s14038_s22 + $0x334] sm:$0xf] %vm10981_vm2, %v12216_v53  ;;  %v12217_v56 = vpack.c.bf16 %v8222_v55, %v8222_v55  ;;  %v13145_v57 = vpop.f32.mrb[205].mxu1 }
 0x2ea   : > { %v8225_v58 = vpop.f32.mrb[206].mxu1 }
 0x2eb   : > { %11188 = vst.msk [vmem:[%s14038_s22 + $0x338] sm:$0xf] %vm10981_vm2, %v12217_v56  ;;  %v12218_v59 = vpack.c.bf16 %v8225_v58, %v8225_v58  ;;  %v13146_v60 = vpop.f32.mrb[207].mxu1 }
 0x2ec   : > { %v8294_v61 = vpop.f32.mrb[208].mxu0 }
 0x2ed   : > { %11189 = vst.msk [vmem:[%s14038_s22 + $0x33c] sm:$0xf] %vm10981_vm2, %v12218_v59  ;;  %v12219_v62 = vpack.c.bf16 %v8294_v61, %v8294_v61  ;;  %v13151_v63 = vpop.f32.mrb[209].mxu0 }
 0x2ee   : > { %v8297_v1 = vpop.f32.mrb[210].mxu0 }
 0x2ef   : > { %11190 = vst.msk [vmem:[%s14038_s22 + $0x340] sm:$0xf] %vm10981_vm2, %v12219_v62  ;;  %v12220_v2 = vpack.c.bf16 %v8297_v1, %v8297_v1  ;;  %v13152_v3 = vpop.f32.mrb[211].mxu0 }
 0x2f0   : > { %v8366_v4 = vpop.f32.mrb[208].mxu1 }
 0x2f1   : > { %11191 = vst.msk [vmem:[%s14038_s22 + $0x344] sm:$0xf] %vm10981_vm2, %v12220_v2  ;;  %v12221_v5 = vpack.c.bf16 %v8366_v4, %v8366_v4  ;;  %v13157_v6 = vpop.f32.mrb[209].mxu1 }
 0x2f2   : > { %v8369_v7 = vpop.f32.mrb[210].mxu1 }
 0x2f3   : > { %11192 = vst.msk [vmem:[%s14038_s22 + $0x348] sm:$0xf] %vm10981_vm2, %v12221_v5  ;;  %v12222_v8 = vpack.c.bf16 %v8369_v7, %v8369_v7  ;;  %v13158_v0 = vpop.f32.mrb[211].mxu1 }
 0x2f4   : > { %v8438_v9 = vpop.f32.mrb[212].mxu0 }
 0x2f5   : > { %11193 = vst.msk [vmem:[%s14038_s22 + $0x34c] sm:$0xf] %vm10981_vm2, %v12222_v8  ;;  %v12223_v10 = vpack.c.bf16 %v8438_v9, %v8438_v9  ;;  %v13163_v11 = vpop.f32.mrb[213].mxu0 }
 0x2f6   : > { %v8441_v12 = vpop.f32.mrb[214].mxu0 }
 0x2f7   : > { %11194 = vst.msk [vmem:[%s14038_s22 + $0x350] sm:$0xf] %vm10981_vm2, %v12223_v10  ;;  %v12224_v13 = vpack.c.bf16 %v8441_v12, %v8441_v12  ;;  %v13164_v14 = vpop.f32.mrb[215].mxu0 }
 0x2f8   : > { %v8510_v15 = vpop.f32.mrb[212].mxu1 }
 0x2f9   : > { %11195 = vst.msk [vmem:[%s14038_s22 + $0x354] sm:$0xf] %vm10981_vm2, %v12224_v13  ;;  %v12225_v16 = vpack.c.bf16 %v8510_v15, %v8510_v15  ;;  %v13169_v17 = vpop.f32.mrb[213].mxu1 }
 0x2fa   : > { %v8513_v18 = vpop.f32.mrb[214].mxu1 }
 0x2fb   : > { %11196 = vst.msk [vmem:[%s14038_s22 + $0x358] sm:$0xf] %vm10981_vm2, %v12225_v16  ;;  %v12226_v19 = vpack.c.bf16 %v8513_v18, %v8513_v18  ;;  %v13170_v20 = vpop.f32.mrb[215].mxu1 }
 0x2fc   : > { %v8582_v21 = vpop.f32.mrb[216].mxu0 }
 0x2fd   : > { %11197 = vst.msk [vmem:[%s14038_s22 + $0x35c] sm:$0xf] %vm10981_vm2, %v12226_v19  ;;  %v12227_v22 = vpack.c.bf16 %v8582_v21, %v8582_v21  ;;  %v13175_v23 = vpop.f32.mrb[217].mxu0 }
 0x2fe   : > { %v8585_v24 = vpop.f32.mrb[218].mxu0 }
 0x2ff   : > { %11198 = vst.msk [vmem:[%s14038_s22 + $0x360] sm:$0xf] %vm10981_vm2, %v12227_v22  ;;  %v12228_v25 = vpack.c.bf16 %v8585_v24, %v8585_v24  ;;  %v13176_v26 = vpop.f32.mrb[219].mxu0 }
 0x300   : > { %v8654_v27 = vpop.f32.mrb[216].mxu1 }
 0x301   : > { %11199 = vst.msk [vmem:[%s14038_s22 + $0x364] sm:$0xf] %vm10981_vm2, %v12228_v25  ;;  %v12229_v28 = vpack.c.bf16 %v8654_v27, %v8654_v27  ;;  %v13181_v29 = vpop.f32.mrb[217].mxu1 }
 0x302   : > { %v8657_v30 = vpop.f32.mrb[218].mxu1 }
 0x303   : > { %11200 = vst.msk [vmem:[%s14038_s22 + $0x368] sm:$0xf] %vm10981_vm2, %v12229_v28  ;;  %v12230_v31 = vpack.c.bf16 %v8657_v30, %v8657_v30  ;;  %v13182_v32 = vpop.f32.mrb[219].mxu1 }
 0x304   : > { %v8726_v33 = vpop.f32.mrb[220].mxu0 }
 0x305   : > { %11201 = vst.msk [vmem:[%s14038_s22 + $0x36c] sm:$0xf] %vm10981_vm2, %v12230_v31  ;;  %v12231_v34 = vpack.c.bf16 %v8726_v33, %v8726_v33  ;;  %v13187_v35 = vpop.f32.mrb[221].mxu0 }
 0x306   : > { %v8729_v36 = vpop.f32.mrb[222].mxu0 }
 0x307   : > { %11202 = vst.msk [vmem:[%s14038_s22 + $0x370] sm:$0xf] %vm10981_vm2, %v12231_v34  ;;  %v12232_v37 = vpack.c.bf16 %v8729_v36, %v8729_v36  ;;  %v13188_v38 = vpop.f32.mrb[223].mxu0 }
 0x308   : > { %v8798_v39 = vpop.f32.mrb[220].mxu1 }
 0x309   : > { %11203 = vst.msk [vmem:[%s14038_s22 + $0x374] sm:$0xf] %vm10981_vm2, %v12232_v37  ;;  %v12233_v40 = vpack.c.bf16 %v8798_v39, %v8798_v39  ;;  %v13193_v41 = vpop.f32.mrb[221].mxu1 }
 0x30a   : > { %v8801_v42 = vpop.f32.mrb[222].mxu1 }
 0x30b   : > { %11204 = vst.msk [vmem:[%s14038_s22 + $0x378] sm:$0xf] %vm10981_vm2, %v12233_v40  ;;  %v12234_v43 = vpack.c.bf16 %v8801_v42, %v8801_v42  ;;  %v13194_v44 = vpop.f32.mrb[223].mxu1 }
 0x30c   : > { %v8870_v45 = vpop.f32.mrb[224].mxu0 }
 0x30d   : > { %11205 = vst.msk [vmem:[%s14038_s22 + $0x37c] sm:$0xf] %vm10981_vm2, %v12234_v43  ;;  %v12235_v46 = vpack.c.bf16 %v8870_v45, %v8870_v45  ;;  %v13199_v47 = vpop.f32.mrb[225].mxu0 }
 0x30e   : > { %v8873_v48 = vpop.f32.mrb[226].mxu0 }
 0x30f   : > { %11206 = vst.msk [vmem:[%s14038_s22 + $0x380] sm:$0xf] %vm10981_vm2, %v12235_v46  ;;  %v12236_v49 = vpack.c.bf16 %v8873_v48, %v8873_v48  ;;  %v13200_v50 = vpop.f32.mrb[227].mxu0 }
 0x310   : > { %v8942_v51 = vpop.f32.mrb[224].mxu1 }
 0x311   : > { %11207 = vst.msk [vmem:[%s14038_s22 + $0x384] sm:$0xf] %vm10981_vm2, %v12236_v49  ;;  %v12237_v52 = vpack.c.bf16 %v8942_v51, %v8942_v51  ;;  %v13205_v53 = vpop.f32.mrb[225].mxu1 }
 0x312   : > { %v8945_v54 = vpop.f32.mrb[226].mxu1 }
 0x313   : > { %11208 = vst.msk [vmem:[%s14038_s22 + $0x388] sm:$0xf] %vm10981_vm2, %v12237_v52  ;;  %v12238_v55 = vpack.c.bf16 %v8945_v54, %v8945_v54  ;;  %v13206_v56 = vpop.f32.mrb[227].mxu1 }
 0x314   : > { %v9014_v57 = vpop.f32.mrb[228].mxu0 }
 0x315   : > { %11209 = vst.msk [vmem:[%s14038_s22 + $0x38c] sm:$0xf] %vm10981_vm2, %v12238_v55  ;;  %v12239_v58 = vpack.c.bf16 %v9014_v57, %v9014_v57  ;;  %v13211_v59 = vpop.f32.mrb[229].mxu0 }
 0x316   : > { %v9017_v60 = vpop.f32.mrb[230].mxu0 }
 0x317   : > { %11210 = vst.msk [vmem:[%s14038_s22 + $0x390] sm:$0xf] %vm10981_vm2, %v12239_v58  ;;  %v12240_v61 = vpack.c.bf16 %v9017_v60, %v9017_v60  ;;  %v13212_v62 = vpop.f32.mrb[231].mxu0 }
 0x318   : > { %v9086_v63 = vpop.f32.mrb[228].mxu1 }
 0x319   : > { %11211 = vst.msk [vmem:[%s14038_s22 + $0x394] sm:$0xf] %vm10981_vm2, %v12240_v61  ;;  %v12241_v1 = vpack.c.bf16 %v9086_v63, %v9086_v63  ;;  %v13217_v2 = vpop.f32.mrb[229].mxu1 }
 0x31a   : > { %v9089_v3 = vpop.f32.mrb[230].mxu1 }
 0x31b   : > { %11212 = vst.msk [vmem:[%s14038_s22 + $0x398] sm:$0xf] %vm10981_vm2, %v12241_v1  ;;  %v12242_v4 = vpack.c.bf16 %v9089_v3, %v9089_v3  ;;  %v13218_v5 = vpop.f32.mrb[231].mxu1 }
 0x31c   : > { %v9158_v6 = vpop.f32.mrb[232].mxu0 }
 0x31d   : > { %11213 = vst.msk [vmem:[%s14038_s22 + $0x39c] sm:$0xf] %vm10981_vm2, %v12242_v4  ;;  %v12243_v7 = vpack.c.bf16 %v9158_v6, %v9158_v6  ;;  %v13223_v8 = vpop.f32.mrb[233].mxu0 }
 0x31e   : > { %v9161_v0 = vpop.f32.mrb[234].mxu0 }
 0x31f   : > { %11214 = vst.msk [vmem:[%s14038_s22 + $0x3a0] sm:$0xf] %vm10981_vm2, %v12243_v7  ;;  %v12244_v9 = vpack.c.bf16 %v9161_v0, %v9161_v0  ;;  %v13224_v10 = vpop.f32.mrb[235].mxu0 }
 0x320   : > { %v9230_v11 = vpop.f32.mrb[232].mxu1 }
 0x321   : > { %11215 = vst.msk [vmem:[%s14038_s22 + $0x3a4] sm:$0xf] %vm10981_vm2, %v12244_v9  ;;  %v12245_v12 = vpack.c.bf16 %v9230_v11, %v9230_v11  ;;  %v13229_v13 = vpop.f32.mrb[233].mxu1 }
 0x322   : > { %v9233_v14 = vpop.f32.mrb[234].mxu1 }
 0x323   : > { %11216 = vst.msk [vmem:[%s14038_s22 + $0x3a8] sm:$0xf] %vm10981_vm2, %v12245_v12  ;;  %v12246_v15 = vpack.c.bf16 %v9233_v14, %v9233_v14  ;;  %v13230_v16 = vpop.f32.mrb[235].mxu1 }
 0x324   : > { %v9302_v17 = vpop.f32.mrb[236].mxu0 }
 0x325   : > { %11217 = vst.msk [vmem:[%s14038_s22 + $0x3ac] sm:$0xf] %vm10981_vm2, %v12246_v15  ;;  %v12247_v18 = vpack.c.bf16 %v9302_v17, %v9302_v17  ;;  %v13235_v19 = vpop.f32.mrb[237].mxu0 }
 0x326   : > { %v9305_v20 = vpop.f32.mrb[238].mxu0 }
 0x327   : > { %11218 = vst.msk [vmem:[%s14038_s22 + $0x3b0] sm:$0xf] %vm10981_vm2, %v12247_v18  ;;  %v12248_v21 = vpack.c.bf16 %v9305_v20, %v9305_v20  ;;  %v13236_v22 = vpop.f32.mrb[239].mxu0 }
 0x328   : > { %v9374_v23 = vpop.f32.mrb[236].mxu1 }
 0x329   : > { %11219 = vst.msk [vmem:[%s14038_s22 + $0x3b4] sm:$0xf] %vm10981_vm2, %v12248_v21  ;;  %v12249_v24 = vpack.c.bf16 %v9374_v23, %v9374_v23  ;;  %v13241_v25 = vpop.f32.mrb[237].mxu1 }
 0x32a   : > { %v9377_v26 = vpop.f32.mrb[238].mxu1 }
 0x32b   : > { %11220 = vst.msk [vmem:[%s14038_s22 + $0x3b8] sm:$0xf] %vm10981_vm2, %v12249_v24  ;;  %v12250_v27 = vpack.c.bf16 %v9377_v26, %v9377_v26  ;;  %v13242_v28 = vpop.f32.mrb[239].mxu1 }
 0x32c   : > { %v9446_v29 = vpop.f32.mrb[240].mxu0 }
 0x32d   : > { %11221 = vst.msk [vmem:[%s14038_s22 + $0x3bc] sm:$0xf] %vm10981_vm2, %v12250_v27  ;;  %v12251_v30 = vpack.c.bf16 %v9446_v29, %v9446_v29  ;;  %v13247_v31 = vpop.f32.mrb[241].mxu0 }
 0x32e   : > { %v9449_v32 = vpop.f32.mrb[242].mxu0 }
 0x32f   : > { %11222 = vst.msk [vmem:[%s14038_s22 + $0x3c0] sm:$0xf] %vm10981_vm2, %v12251_v30  ;;  %v12252_v33 = vpack.c.bf16 %v9449_v32, %v9449_v32  ;;  %v13248_v34 = vpop.f32.mrb[243].mxu0 }
 0x330   : > { %v9518_v35 = vpop.f32.mrb[240].mxu1 }
 0x331   : > { %11223 = vst.msk [vmem:[%s14038_s22 + $0x3c4] sm:$0xf] %vm10981_vm2, %v12252_v33  ;;  %v12253_v36 = vpack.c.bf16 %v9518_v35, %v9518_v35  ;;  %v13253_v37 = vpop.f32.mrb[241].mxu1 }
 0x332   : > { %v9521_v38 = vpop.f32.mrb[242].mxu1 }
 0x333   : > { %11224 = vst.msk [vmem:[%s14038_s22 + $0x3c8] sm:$0xf] %vm10981_vm2, %v12253_v36  ;;  %v12254_v39 = vpack.c.bf16 %v9521_v38, %v9521_v38  ;;  %v13254_v40 = vpop.f32.mrb[243].mxu1 }
 0x334   : > { %v9590_v41 = vpop.f32.mrb[244].mxu0 }
 0x335   : > { %11225 = vst.msk [vmem:[%s14038_s22 + $0x3cc] sm:$0xf] %vm10981_vm2, %v12254_v39  ;;  %v12255_v42 = vpack.c.bf16 %v9590_v41, %v9590_v41  ;;  %v13259_v43 = vpop.f32.mrb[245].mxu0 }
 0x336   : > { %v9593_v44 = vpop.f32.mrb[246].mxu0 }
 0x337   : > { %11226 = vst.msk [vmem:[%s14038_s22 + $0x3d0] sm:$0xf] %vm10981_vm2, %v12255_v42  ;;  %v12256_v45 = vpack.c.bf16 %v9593_v44, %v9593_v44  ;;  %v13260_v46 = vpop.f32.mrb[247].mxu0 }
 0x338   : > { %v9662_v47 = vpop.f32.mrb[244].mxu1 }
 0x339   : > { %11227 = vst.msk [vmem:[%s14038_s22 + $0x3d4] sm:$0xf] %vm10981_vm2, %v12256_v45  ;;  %v12257_v48 = vpack.c.bf16 %v9662_v47, %v9662_v47  ;;  %v13265_v49 = vpop.f32.mrb[245].mxu1 }
 0x33a   : > { %v9665_v50 = vpop.f32.mrb[246].mxu1 }
 0x33b   : > { %11228 = vst.msk [vmem:[%s14038_s22 + $0x3d8] sm:$0xf] %vm10981_vm2, %v12257_v48  ;;  %v12258_v51 = vpack.c.bf16 %v9665_v50, %v9665_v50  ;;  %v13266_v52 = vpop.f32.mrb[247].mxu1 }
 0x33c   : > { %v9734_v53 = vpop.f32.mrb[248].mxu0 }
 0x33d   : > { %11229 = vst.msk [vmem:[%s14038_s22 + $0x3dc] sm:$0xf] %vm10981_vm2, %v12258_v51  ;;  %v12259_v54 = vpack.c.bf16 %v9734_v53, %v9734_v53  ;;  %v13271_v55 = vpop.f32.mrb[249].mxu0 }
 0x33e   : > { %v9737_v56 = vpop.f32.mrb[250].mxu0 }
 0x33f   : > { %11230 = vst.msk [vmem:[%s14038_s22 + $0x3e0] sm:$0xf] %vm10981_vm2, %v12259_v54  ;;  %v12260_v57 = vpack.c.bf16 %v9737_v56, %v9737_v56  ;;  %v13272_v58 = vpop.f32.mrb[251].mxu0 }
 0x340   : > { %v9806_v59 = vpop.f32.mrb[248].mxu1 }
 0x341   : > { %11231 = vst.msk [vmem:[%s14038_s22 + $0x3e4] sm:$0xf] %vm10981_vm2, %v12260_v57  ;;  %v12261_v60 = vpack.c.bf16 %v9806_v59, %v9806_v59  ;;  %v13277_v61 = vpop.f32.mrb[249].mxu1 }
 0x342   : > { %v9809_v62 = vpop.f32.mrb[250].mxu1 }
 0x343   : > { %11232 = vst.msk [vmem:[%s14038_s22 + $0x3e8] sm:$0xf] %vm10981_vm2, %v12261_v60  ;;  %v12262_v63 = vpack.c.bf16 %v9809_v62, %v9809_v62  ;;  %v13278_v1 = vpop.f32.mrb[251].mxu1 }
 0x344   : > { %v9878_v2 = vpop.f32.mrb[252].mxu0 }
 0x345   : > { %11233 = vst.msk [vmem:[%s14038_s22 + $0x3ec] sm:$0xf] %vm10981_vm2, %v12262_v63  ;;  %v12263_v3 = vpack.c.bf16 %v9878_v2, %v9878_v2  ;;  %v13283_v4 = vpop.f32.mrb[253].mxu0 }
 0x346   : > { %v9881_v5 = vpop.f32.mrb[254].mxu0 }
 0x347   : > { %11234 = vst.msk [vmem:[%s14038_s22 + $0x3f0] sm:$0xf] %vm10981_vm2, %v12263_v3  ;;  %v12264_v6 = vpack.c.bf16 %v9881_v5, %v9881_v5  ;;  %v13284_v7 = vpop.f32.mrb[255].mxu0 }
 0x348   : > { %v9950_v8 = vpop.f32.mrb[252].mxu1 }
 0x349   : > { %11235 = vst.msk [vmem:[%s14038_s22 + $0x3f4] sm:$0xf] %vm10981_vm2, %v12264_v6  ;;  %v12265_v0 = vpack.c.bf16 %v9950_v8, %v9950_v8  ;;  %v13289_v9 = vpop.f32.mrb[253].mxu1 }
 0x34a   : > { %v9953_v10 = vpop.f32.mrb[254].mxu1 }
 0x34b   : > { %11236 = vst.msk [vmem:[%s14038_s22 + $0x3f8] sm:$0xf] %vm10981_vm2, %v12265_v0  ;;  %v12266_v11 = vpack.c.bf16 %v9953_v10, %v9953_v10  ;;  %v13290_v12 = vpop.f32.mrb[255].mxu1 }
 0x34d   : > { %11237 = vst.msk [vmem:[%s14038_s22 + $0x3fc] sm:$0xf] %vm10981_vm2, %v12266_v11 }
 0x34e PF: > { %s12_s11 = sadd.s32 1, %s13596_s11   ;;  %s14945_s9 = smov %s13592_s10 }
 0x34f   : > { %p9_p5 = scmp.ge.s32.totalorder %s12_s11, 4   ;;  %s14946_s10 = smov %s14948_s12 }
 0x351   :  { %11 = sbr.rel (!%p9_p5) target bundleno = 2 (0x2), region = 61 }

</bundles_post_ra>
